<compile_context>
chip_gen: v7x
topology: tpu7x:2x2x1
jax: 0.10.0
libtpu: 0.0.40
codegen_flags: <defaults>
</compile_context>

<pallas_src>
import functools

import jax
import jax.numpy as jnp
from jax import lax
from jax.experimental import pallas as pl
from jax.experimental.pallas import tpu as pltpu


# ---------------- fused Pallas kernel ----------------

def _elu(v):
    # ELU(alpha=1): v if v > 0 else exp(v) - 1   (clamp arg so exp never overflows)
    return jnp.where(v > 0, v, jnp.exp(jnp.minimum(v, 0.0)) - 1.0)


def _make_kernel(B):
    BR = B * 8  # rows of the conv2 activation per step

    def kernel(x_ref, w1_ref, b1_ref, rstk_ref, w2f_ref, b2_ref,
               whd_ref, hm_ref, sumb_ref, hf_ref, bfc_ref, o_ref):
        # x_ref: (B*24, 140) bf16 -- rows = B images x 24 conv1-output rows,
        #        lanes = 5 h-shifted copies of the 28-pixel input row.
        # ---- conv1 (1->32, k=5): ONE MXU matmul, K=140 ----
        acc1 = jnp.dot(x_ref[...], w1_ref[...],
                       preferred_element_type=jnp.float32)          # (B*24, 768)
        y1 = _elu(acc1 + b1_ref[...])                                # f32 elementwise
        y1b = y1.astype(jnp.bfloat16)

        # ---- 2x2 row-pool + conv2 row-window select (all 5 taps) in ONE matmul ----
        lall = jnp.dot(rstk_ref[...], y1b,
                       preferred_element_type=jnp.float32)           # (5*B*8, 768)
        lb = lall.astype(jnp.bfloat16)

        # ---- conv2 (32->64, k=5) with the column 2x2 pool folded into W2fold ----
        acc2 = jnp.dot(lb[0:BR, :], w2f_ref[0],
                       preferred_element_type=jnp.float32)           # (B*8, 512)
        for i in range(1, 5):
            acc2 = acc2 + jnp.dot(lb[i * BR:(i + 1) * BR, :], w2f_ref[i],
                                  preferred_element_type=jnp.float32)
        q = _elu(acc2 + b2_ref[...])                                 # (B*8, 512) f32
        qb = q.astype(jnp.bfloat16)

        # ---- avg_pool2d(2,2) + NCHW flatten + Linear(1024,10), folded into WHD ----
        e = jnp.dot(qb, whd_ref[...],
                    preferred_element_type=jnp.float32)              # (B*8, 80)
        em = e * hm_ref[...]                                         # diag (h'==h) mask
        s = jnp.dot(sumb_ref[...], em,
                    preferred_element_type=jnp.float32)              # (B, 80)  per-image sum
        r = jnp.dot(s, hf_ref[...],
                    preferred_element_type=jnp.float32)              # (B, 10)
        o_ref[...] = r + bfc_ref[...]

    return kernel


# ---------------- wrapper-side weight packing (plain JAX, free reshapes) ----

def _band_matrix(taps, w_in, w_out):
    # taps: (K, C1, C2).  Returns B (w_in*C1, w_out*C2) with
    # B[w*C1+c1, wo*C2+c2] = taps[w-wo, c1, c2] if 0 <= w-wo < K else 0.
    K, C1, C2 = taps.shape
    d = jnp.arange(w_in)[:, None] - jnp.arange(w_out)[None, :]          # w - wo
    onehot = (d[:, :, None] == jnp.arange(K)[None, None, :]).astype(taps.dtype)
    b4 = jnp.einsum("woj,jab->waob", onehot, taps)                       # (w_in,C1,w_out,C2)
    return b4.reshape(w_in * C1, w_out * C2)


def pack_params(params, block_n=8):
    f32, bf16 = jnp.float32, jnp.bfloat16
    B = block_n
    w1 = params["w1"].astype(f32)    # (32, 1, 5, 5)  OIHW
    b1 = params["b1"].astype(f32)    # (32,)
    w2 = params["w2"].astype(f32)    # (64, 32, 5, 5) OIHW
    b2 = params["b2"].astype(f32)    # (64,)
    wfc = params["wfc"].astype(f32)  # (10, 1024) acting on NCHW flatten c*16+h*4+w
    bfc = params["bfc"].astype(f32)  # (10,)

    # conv taps reordered to [i, j, cin, cout]
    w1t = jnp.transpose(w1, (2, 3, 1, 0))     # (5, 5, 1, 32)
    w2t = jnp.transpose(w2, (2, 3, 1, 0))     # (5, 5, 32, 64)

    # conv1: 5 h-tap banded matrices concatenated along K -> (140, 768)
    W1cat = jnp.concatenate([_band_matrix(w1t[i], 28, 24) for i in range(5)], axis=0)

    # column 2x2 pool matrix (768 -> 384), folded into the conv2 banded weights
    sel = 0.5 * (jnp.arange(24)[:, None] // 2 == jnp.arange(12)[None, :]).astype(f32)
    Pw1w = jnp.kron(sel, jnp.eye(32, dtype=f32))                          # (768, 384)
    W2fold = jnp.stack([Pw1w @ _band_matrix(w2t[i], 12, 8)
                        for i in range(5)])                               # (5, 768, 512)

    # row 2x2 pool + conv2 row-window selection, all 5 taps stacked: (5*B*8, B*24)
    rows, cols = B * 8, B * 24
    bidx = jnp.arange(rows) // 8                                          # image index
    ho = jnp.arange(rows) % 8                                             # conv2 out-row
    col = jnp.arange(cols)[None, :]
    rstk = []
    for i in range(5):
        src = (bidx * 24 + 2 * (ho + i))[:, None]
        rstk.append(0.5 * ((col == src) | (col == src + 1)).astype(f32))
    Rstk = jnp.concatenate(rstk, axis=0)                                  # (5*B*8, B*24)

    b1w = jnp.tile(b1, 24).reshape(1, 24 * 32)   # (1, 768)
    b2w = jnp.tile(b2, 8).reshape(1, 8 * 64)     # (1, 512)

    # pool2 + flatten(NCHW) + Linear folded into WHD (512, 80):
    # WHD[w*64+c, h*10+k] = 0.25 * wfc[k, c*16 + (h//2)*4 + (w//2)]
    wfc3 = wfc.reshape(10, 64, 4, 4)                                      # [k, c, ho, wo]
    wh4 = 0.25 * jnp.transpose(wfc3, (2, 3, 1, 0))                        # [ho, wo, c, k]
    wh4 = jnp.repeat(jnp.repeat(wh4, 2, axis=0), 2, axis=1)               # [h, w, c, k]
    WHD = jnp.transpose(wh4, (1, 2, 0, 3)).reshape(8 * 64, 8 * 10)        # (512, 80)

    hmB = jnp.tile(jnp.repeat(jnp.eye(8, dtype=f32), 10, axis=1), (B, 1))  # (B*8, 80)
    sumB = (jnp.arange(rows)[None, :] // 8 ==
            jnp.arange(B)[:, None]).astype(f32)                            # (B, B*8)
    headF = jnp.tile(jnp.eye(10, dtype=f32), (8, 1))                       # (80, 10)
    bfc2 = bfc.reshape(1, 10)

    return dict(
        W1cat=W1cat.astype(bf16), b1w=b1w,
        Rstk=Rstk.astype(bf16),
        W2fold=W2fold.astype(bf16), b2w=b2w,
        WHD=WHD.astype(bf16), hmB=hmB, sumB=sumB, headF=headF, bfc2=bfc2,
    )


def _whole_spec(arr):
    nd = arr.ndim
    return pl.BlockSpec(arr.shape, lambda n, _nd=nd: (0,) * _nd)


def cnn_forward(x_nchw, packed, *, block_n=8):
    B = block_n
    N = x_nchw.shape[0]
    Np = ((N + B - 1) // B) * B
    x3 = x_nchw.reshape(N, 28, 28)        # C=1: NCHW->"NHW" is a free reshape
    if Np != N:
        x3 = jnp.pad(x3, ((0, Np - N), (0, 0), (0, 0)))

    # host-side h-shift concat (5 row-shifted copies along lanes), then flatten
    # the image dim into rows: (Np*24, 140) bf16 -- directly the conv1 LHS.
    xcat = jnp.concatenate([x3[:, i:i + 24, :] for i in range(5)], axis=-1)
    xrows = xcat.reshape(Np * 24, 5 * 28).astype(jnp.bfloat16)

    kernel = _make_kernel(B)
    out = pl.pallas_call(
        kernel,
        out_shape=jax.ShapeDtypeStruct((Np, 10), jnp.float32),
        grid=(Np // B,),
        in_specs=[
            pl.BlockSpec((B * 24, 5 * 28), lambda n: (n, 0)),
            _whole_spec(packed["W1cat"]),
            _whole_spec(packed["b1w"]),
            _whole_spec(packed["Rstk"]),
            _whole_spec(packed["W2fold"]),
            _whole_spec(packed["b2w"]),
            _whole_spec(packed["WHD"]),
            _whole_spec(packed["hmB"]),
            _whole_spec(packed["sumB"]),
            _whole_spec(packed["headF"]),
            _whole_spec(packed["bfc2"]),
        ],
        out_specs=pl.BlockSpec((B, 10), lambda n: (n, 0)),
        compiler_params=pltpu.CompilerParams(
            dimension_semantics=("parallel",),
            vmem_limit_bytes=32 * 1024 * 1024),
    )(xrows, packed["W1cat"], packed["b1w"], packed["Rstk"], packed["W2fold"],
      packed["b2w"], packed["WHD"], packed["hmB"], packed["sumB"],
      packed["headF"], packed["bfc2"])
    return out[:N]


# ---------------- pure-JAX reference (for correctness) ----------------

def ref_forward(x, params):
    w1, b1 = params["w1"], params["b1"]
    w2, b2 = params["w2"], params["b2"]
    wfc, bfc = params["wfc"], params["bfc"]

    dn1 = lax.conv_dimension_numbers(x.shape, w1.shape, ("NCHW", "OIHW", "NCHW"))
    y = lax.conv_general_dilated(x, w1, (1, 1), "VALID", dimension_numbers=dn1)
    y = jax.nn.elu(y + b1.reshape(1, -1, 1, 1))
    y = lax.reduce_window(y, 0.0, lax.add, (1, 1, 2, 2), (1, 1, 2, 2), "VALID") / 4.0

    dn2 = lax.conv_dimension_numbers(y.shape, w2.shape, ("NCHW", "OIHW", "NCHW"))
    z = lax.conv_general_dilated(y, w2, (1, 1), "VALID", dimension_numbers=dn2)
    z = jax.nn.elu(z + b2.reshape(1, -1, 1, 1))
    z = lax.reduce_window(z, 0.0, lax.add, (1, 1, 2, 2), (1, 1, 2, 2), "VALID") / 4.0

    v = z.reshape(z.shape[0], -1)          # NCHW flatten: c*16 + h*4 + w
    return v @ wfc.T + bfc


if __name__ == "__main__":
    key = jax.random.PRNGKey(0)
    kx, k1, k2, k3, k4, k5, k6 = jax.random.split(key, 7)

    # MNIST-like input implied by the module: 28x28, 1 channel.
    N, B = 16, 8                      # grid = 2 steps (even split for v7x megacore)
    x = jax.random.normal(kx, (N, 1, 28, 28), jnp.float32)

    params = {
        "w1": 0.1 * jax.random.normal(k1, (32, 1, 5, 5), jnp.float32),
        "b1": 0.1 * jax.random.normal(k2, (32,), jnp.float32),
        "w2": 0.1 * jax.random.normal(k3, (64, 32, 5, 5), jnp.float32),
        "b2": 0.1 * jax.random.normal(k4, (64,), jnp.float32),
        "wfc": 0.05 * jax.random.normal(k5, (10, 4 * 4 * 64), jnp.float32),
        "bfc": 0.1 * jax.random.normal(k6, (10,), jnp.float32),
    }

    packed = pack_params(params, block_n=B)
    fwd = jax.jit(functools.partial(cnn_forward, block_n=B))
    out = jax.block_until_ready(fwd(x, packed))
    assert out.shape == (N, 10), out.shape

    ref = jax.block_until_ready(jax.jit(ref_forward)(x, params))
    # bf16 matmul operands with f32 accumulation: ~1% relative error expected.
    err = float(jnp.max(jnp.abs(out - ref)))
    assert jnp.allclose(out, ref, rtol=5e-2, atol=5e-2), err

    print("KERNEL_OK")
</pallas_src>

<mosaic_0001>
module attributes {stable_mosaic.version = 11 : i64} {
  func.func @kernel(%arg0: i32, %arg1: memref<192x140xbf16, #tpu.memory_space<vmem>>, %arg2: memref<140x768xbf16, #tpu.memory_space<vmem>>, %arg3: memref<1x768xf32, #tpu.memory_space<vmem>>, %arg4: memref<320x192xbf16, #tpu.memory_space<vmem>>, %arg5: memref<5x768x512xbf16, #tpu.memory_space<vmem>>, %arg6: memref<1x512xf32, #tpu.memory_space<vmem>>, %arg7: memref<512x80xbf16, #tpu.memory_space<vmem>>, %arg8: memref<64x80xf32, #tpu.memory_space<vmem>>, %arg9: memref<8x64xf32, #tpu.memory_space<vmem>>, %arg10: memref<80x10xf32, #tpu.memory_space<vmem>>, %arg11: memref<1x10xf32, #tpu.memory_space<vmem>>, %arg12: memref<8x10xf32, #tpu.memory_space<vmem>>) attributes {dimension_semantics = [#tpu.dimension_semantics<parallel>], iteration_bounds = array<i64: 2>, scalar_prefetch = 0 : i64, scratch_operands = 0 : i64, tpu.core_type = #tpu.core_type<tc>, window_params = [{transform_indices = @transform_0, window_bounds = array<i64: 192, 140>}, {pipeline_mode = #tpu.pipeline_mode<synchronous>, transform_indices = @transform_1, window_bounds = array<i64: 140, 768>}, {pipeline_mode = #tpu.pipeline_mode<synchronous>, transform_indices = @transform_2, window_bounds = array<i64: 1, 768>}, {pipeline_mode = #tpu.pipeline_mode<synchronous>, transform_indices = @transform_3, window_bounds = array<i64: 320, 192>}, {pipeline_mode = #tpu.pipeline_mode<synchronous>, transform_indices = @transform_4, window_bounds = array<i64: 5, 768, 512>}, {pipeline_mode = #tpu.pipeline_mode<synchronous>, transform_indices = @transform_5, window_bounds = array<i64: 1, 512>}, {pipeline_mode = #tpu.pipeline_mode<synchronous>, transform_indices = @transform_6, window_bounds = array<i64: 512, 80>}, {pipeline_mode = #tpu.pipeline_mode<synchronous>, transform_indices = @transform_7, window_bounds = array<i64: 64, 80>}, {pipeline_mode = #tpu.pipeline_mode<synchronous>, transform_indices = @transform_8, window_bounds = array<i64: 8, 64>}, {pipeline_mode = #tpu.pipeline_mode<synchronous>, transform_indices = @transform_9, window_bounds = array<i64: 80, 10>}, {pipeline_mode = #tpu.pipeline_mode<synchronous>, transform_indices = @transform_10, window_bounds = array<i64: 1, 10>}, {transform_indices = @transform_11, window_bounds = array<i64: 8, 10>}]} {
    %c0 = arith.constant 0 : index
    %c0_0 = arith.constant 0 : index
    %0 = vector.load %arg1[%c0, %c0_0] : memref<192x140xbf16, #tpu.memory_space<vmem>>, vector<192x140xbf16>
    %c0_1 = arith.constant 0 : index
    %c0_2 = arith.constant 0 : index
    %1 = vector.load %arg2[%c0_1, %c0_2] : memref<140x768xbf16, #tpu.memory_space<vmem>>, vector<140x768xbf16>
    %cst = arith.constant dense<0.000000e+00> : vector<192x768xf32>
    %2 = tpu.matmul %0, %1, %cst {dimension_numbers = #tpu.dot_dimension_numbers<[1], [0], [0], [1], [0, 0, 1, 1], [], []>} : vector<192x140xbf16>, vector<140x768xbf16>, vector<192x768xf32> -> vector<192x768xf32>
    %c0_3 = arith.constant 0 : index
    %c0_4 = arith.constant 0 : index
    %3 = vector.load %arg3[%c0_3, %c0_4] : memref<1x768xf32, #tpu.memory_space<vmem>>, vector<1x768xf32>
    %4 = vector.broadcast %3 : vector<1x768xf32> to vector<192x768xf32>
    %5 = arith.addf %2, %4 : vector<192x768xf32>
    %cst_5 = arith.constant 0.000000e+00 : f32
    %6 = vector.broadcast %cst_5 : f32 to vector<192x768xf32>
    %7 = arith.cmpf ogt, %5, %6 : vector<192x768xf32>
    %cst_6 = arith.constant 0.000000e+00 : f32
    %8 = vector.broadcast %cst_6 : f32 to vector<192x768xf32>
    %9 = arith.minimumf %5, %8 : vector<192x768xf32>
    %10 = math.exp %9 : vector<192x768xf32>
    %cst_7 = arith.constant 1.000000e+00 : f32
    %11 = vector.broadcast %cst_7 : f32 to vector<192x768xf32>
    %12 = arith.subf %10, %11 : vector<192x768xf32>
    %13 = arith.select %7, %5, %12 : vector<192x768xi1>, vector<192x768xf32>
    %14 = arith.truncf %13 : vector<192x768xf32> to vector<192x768xbf16>
    %c0_8 = arith.constant 0 : index
    %c0_9 = arith.constant 0 : index
    %15 = vector.load %arg4[%c0_8, %c0_9] : memref<320x192xbf16, #tpu.memory_space<vmem>>, vector<320x192xbf16>
    %cst_10 = arith.constant dense<0.000000e+00> : vector<320x768xf32>
    %16 = tpu.matmul %15, %14, %cst_10 {dimension_numbers = #tpu.dot_dimension_numbers<[1], [0], [0], [1], [0, 0, 1, 1], [], []>} : vector<320x192xbf16>, vector<192x768xbf16>, vector<320x768xf32> -> vector<320x768xf32>
    %17 = arith.truncf %16 : vector<320x768xf32> to vector<320x768xbf16>
    %18 = vector.extract_strided_slice %17 {offsets = [0, 0], sizes = [64, 768], strides = [1, 1]} : vector<320x768xbf16> to vector<64x768xbf16>
    %c0_11 = arith.constant 0 : index
    %c0_12 = arith.constant 0 : index
    %c0_13 = arith.constant 0 : index
    %19 = vector.load %arg5[%c0_11, %c0_12, %c0_13] : memref<5x768x512xbf16, #tpu.memory_space<vmem>>, vector<1x768x512xbf16>
    %20 = vector.shape_cast %19 : vector<1x768x512xbf16> to vector<768x512xbf16>
    %cst_14 = arith.constant dense<0.000000e+00> : vector<64x512xf32>
    %21 = tpu.matmul %18, %20, %cst_14 {dimension_numbers = #tpu.dot_dimension_numbers<[1], [0], [0], [1], [0, 0, 1, 1], [], []>} : vector<64x768xbf16>, vector<768x512xbf16>, vector<64x512xf32> -> vector<64x512xf32>
    %22 = vector.extract_strided_slice %17 {offsets = [64, 0], sizes = [64, 768], strides = [1, 1]} : vector<320x768xbf16> to vector<64x768xbf16>
    %c1 = arith.constant 1 : index
    %c0_15 = arith.constant 0 : index
    %c0_16 = arith.constant 0 : index
    %23 = vector.load %arg5[%c1, %c0_15, %c0_16] : memref<5x768x512xbf16, #tpu.memory_space<vmem>>, vector<1x768x512xbf16>
    %24 = vector.shape_cast %23 : vector<1x768x512xbf16> to vector<768x512xbf16>
    %cst_17 = arith.constant dense<0.000000e+00> : vector<64x512xf32>
    %25 = tpu.matmul %22, %24, %cst_17 {dimension_numbers = #tpu.dot_dimension_numbers<[1], [0], [0], [1], [0, 0, 1, 1], [], []>} : vector<64x768xbf16>, vector<768x512xbf16>, vector<64x512xf32> -> vector<64x512xf32>
    %26 = arith.addf %21, %25 : vector<64x512xf32>
    %27 = vector.extract_strided_slice %17 {offsets = [128, 0], sizes = [64, 768], strides = [1, 1]} : vector<320x768xbf16> to vector<64x768xbf16>
    %c2 = arith.constant 2 : index
    %c0_18 = arith.constant 0 : index
    %c0_19 = arith.constant 0 : index
    %28 = vector.load %arg5[%c2, %c0_18, %c0_19] : memref<5x768x512xbf16, #tpu.memory_space<vmem>>, vector<1x768x512xbf16>
    %29 = vector.shape_cast %28 : vector<1x768x512xbf16> to vector<768x512xbf16>
    %cst_20 = arith.constant dense<0.000000e+00> : vector<64x512xf32>
    %30 = tpu.matmul %27, %29, %cst_20 {dimension_numbers = #tpu.dot_dimension_numbers<[1], [0], [0], [1], [0, 0, 1, 1], [], []>} : vector<64x768xbf16>, vector<768x512xbf16>, vector<64x512xf32> -> vector<64x512xf32>
    %31 = arith.addf %26, %30 : vector<64x512xf32>
    %32 = vector.extract_strided_slice %17 {offsets = [192, 0], sizes = [64, 768], strides = [1, 1]} : vector<320x768xbf16> to vector<64x768xbf16>
    %c3 = arith.constant 3 : index
    %c0_21 = arith.constant 0 : index
    %c0_22 = arith.constant 0 : index
    %33 = vector.load %arg5[%c3, %c0_21, %c0_22] : memref<5x768x512xbf16, #tpu.memory_space<vmem>>, vector<1x768x512xbf16>
    %34 = vector.shape_cast %33 : vector<1x768x512xbf16> to vector<768x512xbf16>
    %cst_23 = arith.constant dense<0.000000e+00> : vector<64x512xf32>
    %35 = tpu.matmul %32, %34, %cst_23 {dimension_numbers = #tpu.dot_dimension_numbers<[1], [0], [0], [1], [0, 0, 1, 1], [], []>} : vector<64x768xbf16>, vector<768x512xbf16>, vector<64x512xf32> -> vector<64x512xf32>
    %36 = arith.addf %31, %35 : vector<64x512xf32>
    %37 = vector.extract_strided_slice %17 {offsets = [256, 0], sizes = [64, 768], strides = [1, 1]} : vector<320x768xbf16> to vector<64x768xbf16>
    %c4 = arith.constant 4 : index
    %c0_24 = arith.constant 0 : index
    %c0_25 = arith.constant 0 : index
    %38 = vector.load %arg5[%c4, %c0_24, %c0_25] : memref<5x768x512xbf16, #tpu.memory_space<vmem>>, vector<1x768x512xbf16>
    %39 = vector.shape_cast %38 : vector<1x768x512xbf16> to vector<768x512xbf16>
    %cst_26 = arith.constant dense<0.000000e+00> : vector<64x512xf32>
    %40 = tpu.matmul %37, %39, %cst_26 {dimension_numbers = #tpu.dot_dimension_numbers<[1], [0], [0], [1], [0, 0, 1, 1], [], []>} : vector<64x768xbf16>, vector<768x512xbf16>, vector<64x512xf32> -> vector<64x512xf32>
    %41 = arith.addf %36, %40 : vector<64x512xf32>
    %c0_27 = arith.constant 0 : index
    %c0_28 = arith.constant 0 : index
    %42 = vector.load %arg6[%c0_27, %c0_28] : memref<1x512xf32, #tpu.memory_space<vmem>>, vector<1x512xf32>
    %43 = vector.broadcast %42 : vector<1x512xf32> to vector<64x512xf32>
    %44 = arith.addf %41, %43 : vector<64x512xf32>
    %cst_29 = arith.constant 0.000000e+00 : f32
    %45 = vector.broadcast %cst_29 : f32 to vector<64x512xf32>
    %46 = arith.cmpf ogt, %44, %45 : vector<64x512xf32>
    %cst_30 = arith.constant 0.000000e+00 : f32
    %47 = vector.broadcast %cst_30 : f32 to vector<64x512xf32>
    %48 = arith.minimumf %44, %47 : vector<64x512xf32>
    %49 = math.exp %48 : vector<64x512xf32>
    %cst_31 = arith.constant 1.000000e+00 : f32
    %50 = vector.broadcast %cst_31 : f32 to vector<64x512xf32>
    %51 = arith.subf %49, %50 : vector<64x512xf32>
    %52 = arith.select %46, %44, %51 : vector<64x512xi1>, vector<64x512xf32>
    %53 = arith.truncf %52 : vector<64x512xf32> to vector<64x512xbf16>
    %c0_32 = arith.constant 0 : index
    %c0_33 = arith.constant 0 : index
    %54 = vector.load %arg7[%c0_32, %c0_33] : memref<512x80xbf16, #tpu.memory_space<vmem>>, vector<512x80xbf16>
    %cst_34 = arith.constant dense<0.000000e+00> : vector<64x80xf32>
    %55 = tpu.matmul %53, %54, %cst_34 {dimension_numbers = #tpu.dot_dimension_numbers<[1], [0], [0], [1], [0, 0, 1, 1], [], []>} : vector<64x512xbf16>, vector<512x80xbf16>, vector<64x80xf32> -> vector<64x80xf32>
    %c0_35 = arith.constant 0 : index
    %c0_36 = arith.constant 0 : index
    %56 = vector.load %arg8[%c0_35, %c0_36] : memref<64x80xf32, #tpu.memory_space<vmem>>, vector<64x80xf32>
    %57 = arith.mulf %55, %56 : vector<64x80xf32>
    %c0_37 = arith.constant 0 : index
    %c0_38 = arith.constant 0 : index
    %58 = vector.load %arg9[%c0_37, %c0_38] : memref<8x64xf32, #tpu.memory_space<vmem>>, vector<8x64xf32>
    %cst_39 = arith.constant dense<0.000000e+00> : vector<8x80xf32>
    %59 = tpu.matmul %58, %57, %cst_39 {dimension_numbers = #tpu.dot_dimension_numbers<[1], [0], [0], [1], [0, 0, 1, 1], [], []>} : vector<8x64xf32>, vector<64x80xf32>, vector<8x80xf32> -> vector<8x80xf32>
    %c0_40 = arith.constant 0 : index
    %c0_41 = arith.constant 0 : index
    %60 = vector.load %arg10[%c0_40, %c0_41] : memref<80x10xf32, #tpu.memory_space<vmem>>, vector<80x10xf32>
    %cst_42 = arith.constant dense<0.000000e+00> : vector<8x10xf32>
    %61 = tpu.matmul %59, %60, %cst_42 {dimension_numbers = #tpu.dot_dimension_numbers<[1], [0], [0], [1], [0, 0, 1, 1], [], []>} : vector<8x80xf32>, vector<80x10xf32>, vector<8x10xf32> -> vector<8x10xf32>
    %c0_43 = arith.constant 0 : index
    %c0_44 = arith.constant 0 : index
    %62 = vector.load %arg11[%c0_43, %c0_44] : memref<1x10xf32, #tpu.memory_space<vmem>>, vector<1x10xf32>
    %63 = vector.broadcast %62 : vector<1x10xf32> to vector<8x10xf32>
    %64 = arith.addf %61, %63 : vector<8x10xf32>
    %c0_45 = arith.constant 0 : index
    %c0_46 = arith.constant 0 : index
    %65 = vector.load %arg12[%c0_45, %c0_46] : memref<8x10xf32, #tpu.memory_space<vmem>>, vector<8x10xf32>
    tpu.vector_store %arg12[%c0_45, %c0_46], %64 {strides = array<i32>} : memref<8x10xf32, #tpu.memory_space<vmem>>, vector<8x10xf32>,
    return
  }
  func.func @transform_0(%arg0: i32) -> (i32, i32) {
    %c0_i32 = arith.constant 0 : i32
    %c0_i32_0 = arith.constant 0 : i32
    return %arg0, %c0_i32 : i32, i32
  }
  func.func @transform_1(%arg0: i32) -> (i32, i32) {
    %c0_i32 = arith.constant 0 : i32
    %c0_i32_0 = arith.constant 0 : i32
    %c0_i32_1 = arith.constant 0 : i32
    return %c0_i32, %c0_i32_0 : i32, i32
  }
  func.func @transform_2(%arg0: i32) -> (i32, i32) {
    %c0_i32 = arith.constant 0 : i32
    %c0_i32_0 = arith.constant 0 : i32
    %c0_i32_1 = arith.constant 0 : i32
    return %c0_i32, %c0_i32_0 : i32, i32
  }
  func.func @transform_3(%arg0: i32) -> (i32, i32) {
    %c0_i32 = arith.constant 0 : i32
    %c0_i32_0 = arith.constant 0 : i32
    %c0_i32_1 = arith.constant 0 : i32
    return %c0_i32, %c0_i32_0 : i32, i32
  }
  func.func @transform_4(%arg0: i32) -> (i32, i32, i32) {
    %c0_i32 = arith.constant 0 : i32
    %c0_i32_0 = arith.constant 0 : i32
    %c0_i32_1 = arith.constant 0 : i32
    %c0_i32_2 = arith.constant 0 : i32
    return %c0_i32, %c0_i32_0, %c0_i32_1 : i32, i32, i32
  }
  func.func @transform_5(%arg0: i32) -> (i32, i32) {
    %c0_i32 = arith.constant 0 : i32
    %c0_i32_0 = arith.constant 0 : i32
    %c0_i32_1 = arith.constant 0 : i32
    return %c0_i32, %c0_i32_0 : i32, i32
  }
  func.func @transform_6(%arg0: i32) -> (i32, i32) {
    %c0_i32 = arith.constant 0 : i32
    %c0_i32_0 = arith.constant 0 : i32
    %c0_i32_1 = arith.constant 0 : i32
    return %c0_i32, %c0_i32_0 : i32, i32
  }
  func.func @transform_7(%arg0: i32) -> (i32, i32) {
    %c0_i32 = arith.constant 0 : i32
    %c0_i32_0 = arith.constant 0 : i32
    %c0_i32_1 = arith.constant 0 : i32
    return %c0_i32, %c0_i32_0 : i32, i32
  }
  func.func @transform_8(%arg0: i32) -> (i32, i32) {
    %c0_i32 = arith.constant 0 : i32
    %c0_i32_0 = arith.constant 0 : i32
    %c0_i32_1 = arith.constant 0 : i32
    return %c0_i32, %c0_i32_0 : i32, i32
  }
  func.func @transform_9(%arg0: i32) -> (i32, i32) {
    %c0_i32 = arith.constant 0 : i32
    %c0_i32_0 = arith.constant 0 : i32
    %c0_i32_1 = arith.constant 0 : i32
    return %c0_i32, %c0_i32_0 : i32, i32
  }
  func.func @transform_10(%arg0: i32) -> (i32, i32) {
    %c0_i32 = arith.constant 0 : i32
    %c0_i32_0 = arith.constant 0 : i32
    %c0_i32_1 = arith.constant 0 : i32
    return %c0_i32, %c0_i32_0 : i32, i32
  }
  func.func @transform_11(%arg0: i32) -> (i32, i32) {
    %c0_i32 = arith.constant 0 : i32
    %c0_i32_0 = arith.constant 0 : i32
    return %arg0, %c0_i32 : i32, i32
  }
}

</mosaic_0001>

<bundles_post_ra>
// kernel: cnn_forward.1
= control target key start
LH: loop header
LB: loop body
LE: loop exit
PB: predicated region body
PF: predicated region fallthrough
CT: control target
= control target key end

     0   :  { %s20393_s0 = inlined_call_operand.vmem [shape: bf16[384,140], index: 0, kind: input, shape index: {}]   ;;  %s20394_s1 = inlined_call_operand.hbm [shape: bf16[140,768], index: 1, kind: input, shape index: {}]   ;;  %s20395_s2 = inlined_call_operand.hbm [shape: f32[1,768], index: 2, kind: input, shape index: {}]   ;;  %s20396_s3 = inlined_call_operand.vmem [shape: bf16[320,192], index: 3, kind: input, shape index: {}]   ;;  %s20397_s4 = inlined_call_operand.hbm [shape: bf16[5,768,512], index: 4, kind: input, shape index: {}]   ;;  %s20398_s5 = inlined_call_operand.hbm [shape: f32[1,512], index: 5, kind: input, shape index: {}]   ;;  %s20399_s6 = inlined_call_operand.vmem [shape: bf16[512,80], index: 6, kind: input, shape index: {}]   ;;  %s20400_s7 = inlined_call_operand.hbm [shape: f32[64,80], index: 7, kind: input, shape index: {}]   ;;  %s20401_s8 = inlined_call_operand.hbm [shape: f32[8,64], index: 8, kind: input, shape index: {}]   ;;  %s20402_s9 = inlined_call_operand.vmem [shape: f32[80,10], index: 9, kind: input, shape index: {}]   ;;  %s20403_s10 = inlined_call_operand.hbm [shape: f32[1,10], index: 10, kind: input, shape index: {}]   ;;  %s20404_s11 = inlined_call_operand.hbm [shape: f32[16,10], index: 11, kind: output, shape index: {}]  }
   0x1   :  { %20463 = sst [smem:[#allocation68_spill]] %s20395_s2 }
   0x2   :  { %20464 = sst [smem:[#allocation69_spill]] %s20398_s5 }
   0x3   :  { %16 = vsyncpa [#allocation3], 0 }
   0x4   :  { %17 = vsyncpa [#allocation6], 0 }
   0x5   :  { %18 = vsyncpa [#allocation9], 0 }
   0x6   :  { %19 = vsyncpa [#allocation12], 0 }
   0x7   :  { %20 = vsyncpa [#allocation4], 0 }
   0x8   :  { %22 = vsyncpa [#allocation4 + $0x1], 0  ;;  %s17071_s17 = smov 0   ;;  %s17073_s18 = smov 0  }
   0x9   :  { %s17075_s19 = smov 0   ;;  %s17077_s20 = smov 0  }
   0xa LB: > { %20465 = sst [smem:[#allocation20_spill]] %s16980_s17  ;;  %s17092_s21 = sadd.s32 4294967295, %s16992_s20   ;;  %s16992_s20 = sphi %s17077_s20, %s20683_s20   ;;  %s16988_s19 = sphi %s17075_s19, %s20685_s19   ;;  %s16984_s18 = sphi %s17073_s18, %s20687_s18   ;;  %s16980_s17 = sphi %s17071_s17, %s20686_s17  }
   0xb   : > { %20466 = sst [smem:[#allocation21_spill]] %s16988_s19  ;;  %s12541_s22 = sadd.s32 4294967294, %s16992_s20  }
   0xc   : > { %s17096_s23 = sadd.s32 1, %s16992_s20   ;;  %s271_s24 = sadd.s32 1, %s16988_s19 }
   0xd   : > { %20467 = sst [smem:[#allocation22_spill]] %s17096_s23  ;;  %s268_s25 = ssub.s32 %s16992_s20, %s17096_s23 }
   0xe   : > { %p281_p0 = scmp.ne.s32.totalorder %s16988_s19, %s16984_s18  ;;  %p269_p1 = scmp.eq.s32.totalorder %s268_s25, 0 }
   0xf   : > { %p282_p2 = scmp.eq.s32.totalorder %s17092_s21, 1  ;;  %p287_p3 = scmp.ne.s32.totalorder %s16984_s18, %s16980_s17 }
  0x10   : > { %p288_p4 = scmp.eq.s32.totalorder %s12541_s22, 1  ;;  %p12542_p7 = scmp.ge.s32.totalorder %s16992_s20, 1 }
  0x11   : > { %s17107_s26 = scalar_select %p269_p1, %s16988_s19, %s271_s24  }
  0x12   : > { %p17109_p5 = por %p282_p2, %p281_p0  ;;  %p17113_p6 = por %p288_p4, %p287_p3 }
  0x13   : > { %20468 = sst [smem:[#allocation23_spill]] %s17107_s26  ;;  %p295_p8 = scmp.lt.s32.totalorder %s16992_s20, 3 }
  0x14   : > { %s20469_s27 = scalar_select %p17109_p5, 1, 0 }
  0x15   : > { %s20470_s28 = scalar_select %p17113_p6, 1, 0 }
  0x16   : > { %p20408_p9 = scmp.eq.s32.totalorder %s17092_s21, 0  ;;  %p17120_p10 = pnand %p12542_p7, %p295_p8 }
  0x17   : > { %20471 = sst [smem:[#allocation24_spill]] %s20470_s28  ;;  %s16994_s30 = smov [#allocation5]  }
  0x18   : > { %s20472_s29 = scalar_select %p17120_p10, 1, 0 }
  0x19   : > { %s321_s12 = sshll.u32 %s16994_s30, 4  ;;  %p14602_p11 = pneg %p17120_p10  ;;  %s322_s12 = int_to_ptr.vmem [resolvable:$true] %s321_s12 }
  0x1a   : > { %s16995_s13 = smov [#allocation8]   ;;  %s16996_s16 = smov [#allocation11]  }
  0x1b   : > { %s348_s14 = sshll.u32 %s16995_s13, 4  ;;  %p17128_p12 = pnand %p20408_p9, %p14602_p11  ;;  %s17132_s14 = int_to_ptr.vmem [resolvable:$true] %s348_s14 }
  0x1c   : > { %s375_s22 = sshll.u32 %s16996_s16, 4  ;;  %s20474_s2 = sld [smem:[#allocation68_spill]]  ;;  %s17134_s22 = int_to_ptr.vmem [resolvable:$true] %s375_s22 }
  0x1d   : > { %p17144_p0 = pneg %p17128_p12 }
  0x22   : > { %s16718_s30 = scalar_lea.hbm %s20474_s2, 96 }
  0x23   : > { %p16719_p13 = scmp.ne.s32.totalorder %s20474_s2, %s16718_s30  ;;  %p16725_p3 = scmp.lt.u32.totalorder %s16718_s30, %s20474_s2 }
  0x25   : > { %p16721_p1 = pnand %p17144_p0, %p16719_p13 }
  0x27   : > { %p16722_p2 = pneg %p16721_p1 }
  0x29   : > { %p16727_p4 = pnand %p16725_p3, %p16722_p2 }
  0x2b   : > { %16730 = shalt.err (!%p16727_p4)
}
  0x2c   : > { %s16731_s24 = scalar_lea.vmem %s322_s12, 96  ;;  %p16739_p9 = scmp.lt.s32.totalorder %s322_s12, %s322_s12 }
  0x2d   : > { %p16732_p7 = scmp.ne.s32.totalorder %s322_s12, %s16731_s24  ;;  %p16740_p6 = scmp.lt.s32.totalorder %s16731_s24, %s16731_s24 }
  0x2f   : > { %p16734_p8 = pnand %p16732_p7, %p17144_p0  ;;  %p16741_p5 = por %p16740_p6, %p16739_p9 }
  0x31   : > { %p16735_p11 = pneg %p16734_p8 }
  0x33   : > { %p16742_p10 = pnand %p16741_p5, %p16735_p11 }
  0x35   : > { %16745 = shalt.err (!%p16742_p10)
}
  0x36   : > { %14608 = dma.hbm_to_vmem [thread:$0]  (!%p17128_p12), %s20474_s2, 96, %s322_s12, [#allocation6]  }
  0x37   : > { %s20476_s5 = sld [smem:[#allocation69_spill]] }
  0x3d   : > { %s16746_s30 = scalar_lea.hbm %s20476_s5, 64 }
  0x3e   : > { %p16747_p13 = scmp.ne.s32.totalorder %s20476_s5, %s16746_s30  ;;  %p16753_p5 = scmp.lt.u32.totalorder %s16746_s30, %s20476_s5 }
  0x40   : > { %p16749_p1 = pnand %p16747_p13, %p17144_p0 }
  0x42   : > { %p16750_p6 = pneg %p16749_p1 }
  0x44   : > { %p16755_p9 = pnand %p16753_p5, %p16750_p6 }
  0x46   : > { %16758 = shalt.err (!%p16755_p9)
}
  0x47   : > { %s16759_s12 = scalar_lea.vmem %s17132_s14, 64  ;;  %p16767_p4 = scmp.lt.s32.totalorder %s17132_s14, %s17132_s14 }
  0x48   : > { %p16760_p10 = scmp.ne.s32.totalorder %s17132_s14, %s16759_s12  ;;  %p16768_p7 = scmp.lt.s32.totalorder %s16759_s12, %s16759_s12 }
  0x4a   : > { %p16762_p2 = pnand %p16760_p10, %p17144_p0  ;;  %p16769_p8 = por %p16768_p7, %p16767_p4 }
  0x4c   : > { %p16763_p3 = pneg %p16762_p2 }
  0x4e   : > { %p16770_p11 = pnand %p16769_p8, %p16763_p3 }
  0x50   : > { %16773 = shalt.err (!%p16770_p11)
}
  0x51   : > { %14614 = dma.hbm_to_vmem [thread:$0]  (!%p17128_p12), %s20476_s5, 64, %s17132_s14, [#allocation9]  }
  0x52   : > { %s16774_s23 = scalar_lea.hbm %s20401_s8, 128 }
  0x53   : > { %p16775_p13 = scmp.ne.s32.totalorder %s20401_s8, %s16774_s23  ;;  %p16781_p5 = scmp.lt.u32.totalorder %s16774_s23, %s20401_s8 }
  0x55   : > { %p16777_p1 = pnand %p16775_p13, %p17144_p0 }
  0x57   : > { %p16778_p6 = pneg %p16777_p1 }
  0x59   : > { %p16783_p9 = pnand %p16781_p5, %p16778_p6 }
  0x5b   : > { %16786 = shalt.err (!%p16783_p9)
}
  0x5c   : > { %s16787_s14 = scalar_lea.vmem %s17134_s22, 128  ;;  %p16795_p4 = scmp.lt.s32.totalorder %s17134_s22, %s17134_s22 }
  0x5d   : > { %p16788_p10 = scmp.ne.s32.totalorder %s17134_s22, %s16787_s14  ;;  %p16796_p7 = scmp.lt.s32.totalorder %s16787_s14, %s16787_s14 }
  0x5f   : > { %p16790_p2 = pnand %p16788_p10, %p17144_p0  ;;  %p16797_p8 = por %p16796_p7, %p16795_p4 }
  0x61   : > { %p16791_p3 = pneg %p16790_p2 }
  0x63   : > { %p16798_p11 = pnand %p16797_p8, %p16791_p3 }
  0x65   : > { %16801 = shalt.err (!%p16798_p11)
}
  0x66   : > { %14620 = dma.hbm_to_vmem [thread:$0]  (!%p17128_p12), %s20401_s8, 128, %s17134_s22, [#allocation12]  }
  0x67   : > { %s16997_s28 = smov [#allocation2]   ;;  %s16802_s25 = scalar_lea.hbm %s20394_s1, 6912 }
  0x68   : > { %s307_s19 = sshll.u32 %s16997_s28, 4  ;;  %p16803_p13 = scmp.ne.s32.totalorder %s20394_s1, %s16802_s25  ;;  %s308_s19 = int_to_ptr.vmem [resolvable:$true] %s307_s19 }
  0x69   : > { %p16809_p5 = scmp.lt.u32.totalorder %s16802_s25, %s20394_s1 }
  0x6a   : > { %p16805_p1 = pnand %p16803_p13, %p17144_p0 }
  0x6c   : > { %p16806_p6 = pneg %p16805_p1 }
  0x6e   : > { %p16811_p9 = pnand %p16809_p5, %p16806_p6 }
  0x70   : > { %16814 = shalt.err (!%p16811_p9)
}
  0x71   : > { %s16815_s22 = scalar_lea.vmem %s308_s19, 6912  ;;  %p16823_p4 = scmp.lt.s32.totalorder %s308_s19, %s308_s19 }
  0x72   : > { %p16816_p10 = scmp.ne.s32.totalorder %s308_s19, %s16815_s22  ;;  %p16824_p7 = scmp.lt.s32.totalorder %s16815_s22, %s16815_s22 }
  0x74   : > { %p16818_p2 = pnand %p16816_p10, %p17144_p0  ;;  %p16825_p8 = por %p16824_p7, %p16823_p4 }
  0x76   : > { %p16819_p3 = pneg %p16818_p2 }
  0x78   : > { %p16826_p11 = pnand %p16825_p8, %p16819_p3 }
  0x7a   : > { %16829 = shalt.err (!%p16826_p11)
}
  0x7b   : > { %s16998_s12 = smov 384   ;;  %s16999_s17 = smov 24  }
  0x7c   : > { %14605 = dma.hbm_to_vmem [thread:$0]  (!%p17128_p12), %s20394_s1, 6912, %s308_s19, [#allocation3], %s16998_s12, %s16998_s12, %s16999_s17  }
  0x7d   : > { %s17000_s23 = smov [#allocation7]   ;;  %s16830_s24 = scalar_lea.hbm %s20397_s4, 122880 }
  0x7e   : > { %s334_s25 = sshll.u32 %s17000_s23, 4  ;;  %p16831_p13 = scmp.ne.s32.totalorder %s20397_s4, %s16830_s24  ;;  %s335_s25 = int_to_ptr.vmem [resolvable:$true] %s334_s25 }
  0x7f   : > { %p16837_p5 = scmp.lt.u32.totalorder %s16830_s24, %s20397_s4 }
  0x80   : > { %p16833_p1 = pnand %p16831_p13, %p17144_p0 }
  0x82   : > { %p16834_p6 = pneg %p16833_p1 }
  0x84   : > { %p16839_p9 = pnand %p16837_p5, %p16834_p6 }
  0x86   : > { %16842 = shalt.err (!%p16839_p9)
}
  0x87   : > { %s16843_s19 = scalar_lea.vmem %s335_s25, 122880  ;;  %p16851_p4 = scmp.lt.s32.totalorder %s335_s25, %s335_s25 }
  0x88   : > { %p16844_p10 = scmp.ne.s32.totalorder %s335_s25, %s16843_s19  ;;  %p16852_p7 = scmp.lt.s32.totalorder %s16843_s19, %s16843_s19 }
  0x8a   : > { %p16846_p2 = pnand %p16844_p10, %p17144_p0  ;;  %p16853_p8 = por %p16852_p7, %p16851_p4 }
  0x8c   : > { %p16847_p3 = pneg %p16846_p2 }
  0x8e   : > { %p16854_p11 = pnand %p16853_p8, %p16847_p3 }
  0x90   : > { %16857 = shalt.err (!%p16854_p11)
}
  0x91   : > { %s17001_s12 = smov 256   ;;  %s17002_s17 = smov 16  }
  0x92   : > { %14611 = dma.hbm_to_vmem [thread:$0]  (!%p17128_p12), %s20397_s4, 122880, %s335_s25, [#allocation6], %s17001_s12, %s17001_s12, %s17002_s17  }
  0x93   : > { %s17003_s28 = smov [#allocation10]   ;;  %s16858_s16 = scalar_lea.hbm %s20400_s7, 1024 }
  0x94   : > { %s361_s26 = sshll.u32 %s17003_s28, 4  ;;  %p16859_p13 = scmp.ne.s32.totalorder %s20400_s7, %s16858_s16  ;;  %s362_s26 = int_to_ptr.vmem [resolvable:$true] %s361_s26 }
  0x95   : > { %p16865_p5 = scmp.lt.u32.totalorder %s16858_s16, %s20400_s7 }
  0x96   : > { %p16861_p1 = pnand %p16859_p13, %p17144_p0 }
  0x98   : > { %p16862_p6 = pneg %p16861_p1 }
  0x9a   : > { %p16867_p9 = pnand %p16865_p5, %p16862_p6 }
  0x9c   : > { %16870 = shalt.err (!%p16867_p9)
}
  0x9d   : > { %s16871_s25 = scalar_lea.vmem %s362_s26, 1024  ;;  %p16879_p4 = scmp.lt.s32.totalorder %s362_s26, %s362_s26 }
  0x9e   : > { %p16872_p10 = scmp.ne.s32.totalorder %s362_s26, %s16871_s25  ;;  %p16880_p7 = scmp.lt.s32.totalorder %s16871_s25, %s16871_s25 }
  0xa0   : > { %p16874_p2 = pnand %p16872_p10, %p17144_p0  ;;  %p16881_p8 = por %p16880_p7, %p16879_p4 }
  0xa2   : > { %p16875_p3 = pneg %p16874_p2 }
  0xa4   : > { %p16882_p11 = pnand %p16881_p8, %p16875_p3 }
  0xa6   : > { %16885 = shalt.err (!%p16882_p11)
}
  0xa7   : > { %s17004_s12 = smov 128   ;;  %s17005_s17 = smov 8  }
  0xa8   : > { %14617 = dma.hbm_to_vmem [thread:$0]  (!%p17128_p12), %s20400_s7, 1024, %s362_s26, [#allocation9], %s17004_s12, %s17004_s12, %s17005_s17  }
  0xa9   : > { %s17006_s28 = smov [#allocation13]   ;;  %s16886_s24 = scalar_lea.hbm %s20403_s10, 16 }
  0xaa   : > { %s389_s23 = sshll.u32 %s17006_s28, 4  ;;  %p16887_p13 = scmp.ne.s32.totalorder %s20403_s10, %s16886_s24  ;;  %s390_s23 = int_to_ptr.vmem [resolvable:$true] %s389_s23 }
  0xab   : > { %p16893_p5 = scmp.lt.u32.totalorder %s16886_s24, %s20403_s10 }
  0xac   : > { %p16889_p1 = pnand %p16887_p13, %p17144_p0 }
  0xae   : > { %p16890_p6 = pneg %p16889_p1 }
  0xb0   : > { %p16895_p9 = pnand %p16893_p5, %p16890_p6 }
  0xb2   : > { %16898 = shalt.err (!%p16895_p9)
}
  0xb3   : > { %s16899_s26 = scalar_lea.vmem %s390_s23, 16  ;;  %s16906_s12 = scalar_lea.vmem %s390_s23, 32 }
  0xb4   : > { %p16900_p10 = scmp.ne.s32.totalorder %s390_s23, %s16899_s26  ;;  %p16907_p4 = scmp.lt.s32.totalorder %s390_s23, %s390_s23 }
  0xb5   : > { %p16908_p7 = scmp.lt.s32.totalorder %s16906_s12, %s16899_s26 }
  0xb6   : > { %p16902_p2 = pnand %p16900_p10, %p17144_p0 }
  0xb7   : > { %p16909_p8 = por %p16908_p7, %p16907_p4 }
  0xb8   : > { %p16903_p3 = pneg %p16902_p2 }
  0xba   : > { %p16910_p11 = pnand %p16909_p8, %p16903_p3 }
  0xbc   : > { %16913 = shalt.err (!%p16910_p11)
}
  0xbd   : > { %14623 = dma.hbm_to_vmem [thread:$0]  (!%p17128_p12), %s20403_s10, 16, %s390_s23, [#allocation12]  }
  0xbe   : > { %p20477_p13 = scmp.ne.s32.totalorder %s20472_s29, 0 }
  0xc0   : > { %412 = sbr.rel (%p20477_p13) target bundleno = 2768 (0xad0), region = 64 }
  0xc7   : > { %p20478_p1 = scmp.eq.s32.totalorder %s17092_s21, 0 }
  0xc9   : > { %16959 = dma.done.wait (%p20478_p1), [#allocation3], 6912   ;;  %p20479_p0 = pmov %p20478_p1 }
  0xcb   : > { %16961 = vsyncadd (%p20479_p0), [#allocation3], 4294960384  ;;  %p20480_p6 = pmov %p20479_p0 }
  0xcc   : > { %p20481_p5 = pmov %p20479_p0 }
  0xcd   : > { %16963 = dma.done.wait (%p20480_p6), [#allocation6], 122976  }
  0xce   : > { %16965 = vsyncadd (%p20481_p5), [#allocation6], 4294844320  ;;  %p20482_p9 = pmov %p20479_p0 }
  0xcf   : > { %p20483_p12 = pmov %p20479_p0 }
  0xd0   : > { %16967 = dma.done.wait (%p20482_p9), [#allocation9], 1088  }
  0xd1   : > { %16969 = vsyncadd (%p20483_p12), [#allocation9], 4294966208  ;;  %p20484_p10 = pmov %p20479_p0 }
  0xd2   : > { %p20485_p2 = pmov %p20479_p0 }
  0xd3   : > { %16971 = dma.done.wait (%p20484_p10), [#allocation12], 144  }
  0xd4   : > { %16973 = vsyncadd (%p20485_p2), [#allocation12], 4294967152  ;;  %s477_s29 = smul.u32 24, %s17092_s21  ;;  %v14691_v0 = vld [vmem:[#allocation2 + $0x4] ss:$24 sps:$4 sm:$0xff]   ;;  %vm967_vm0 = vcmask 97280  }
  0xd5   : > { %v14693_v1 = vld [vmem:[#allocation2] ss:$24 sps:$4 sm:$0xff]   ;;  %1023 = vmatprep.subr.bf16.mxu0 %v14691_v0  ;;  %v14694_v2 = vld [vmem:[#allocation2 + $0x34] ss:$24 sps:$4 sm:$0xff]   ;;  %v14696_v3 = vld [vmem:[#allocation2 + $0x30] ss:$24 sps:$4 sm:$0xff]  }
  0xd6   : > { %p478_p3 = scmp.lt.s32.totalorder %s477_s29, 47  ;;  %1024 = vmatpush1.bf16.msra.mxu0 %v14693_v1  ;;  %v14697_v4 = vld [vmem:[#allocation2 + $0x64] ss:$24 sps:$4 sm:$0xff]   ;;  %v14699_v5 = vld [vmem:[#allocation2 + $0x60] ss:$24 sps:$4 sm:$0xff]   ;;  %vm1004_vm1 = vcmask 1045504  }
  0xd7   : > { %1025 = vmatprep.subr.bf16.mxu0 %v14694_v2  ;;  %v14700_v6 = vld [vmem:[#allocation2 + $0x94] ss:$24 sps:$4 sm:$0xff]   ;;  %v14702_v7 = vld [vmem:[#allocation2 + $0x90] ss:$24 sps:$4 sm:$0xff]   ;;  %v14703_v8 = vld [vmem:[#allocation2 + $0xc4] ss:$24 sps:$4 sm:$0xff]  }
  0xd8   : > { %s20689_s29 = smov (!%p478_p3, %s477_s29), 47  ;;  %v14705_v10 = vld [vmem:[#allocation2 + $0xc0] ss:$24 sps:$4 sm:$0xff]   ;;  %v14706_v11 = vld [vmem:[#allocation2 + $0xf4] ss:$24 sps:$4 sm:$0xff]   ;;  %s474_s17 = sand.u32 1, %s16984_s18  }
  0xd9   : > { %s13954_s15 = sshll.u32 %s20689_s29, 3  ;;  %v14708_v12 = vld [vmem:[#allocation2 + $0xf0] ss:$24 sps:$4 sm:$0xff]   ;;  %v14709_v13 = vld [vmem:[#allocation2 + $0x124] ss:$24 sps:$4 sm:$0xff]   ;;  %s12559_s2 = sshll.u32 %s474_s17, 3 }
  0xda   : > { %1026 = vmatpush1.bf16.msra.mxu0 %v14696_v3  ;;  %s17300_s28 = scalar_lea.vmem %s20393_s0, %s13954_s15  ;;  %v14736_v14 = vld [vmem:[#allocation2 + $0xc] ss:$24 sps:$4 sm:$0xff]   ;;  %v14738_v15 = vld [vmem:[#allocation2 + $0x8] ss:$24 sps:$4 sm:$0xff]   ;;  %v14742_v18 = vld [vmem:[#allocation2 + $0x3c] ss:$24 sps:$4 sm:$0xff]  }
  0xdb   : > { %1027 = vmatprep.subr.bf16.mxu0 %v14697_v4  ;;  %v17303_v9 = vld [vmem:[%s17300_s28 + $0x4] ss:$8 sps:$4 sm:$0xff]   ;;  %v14711_v16 = vld [vmem:[#allocation2 + $0x120] ss:$24 sps:$4 sm:$0xff]   ;;  %1176 = vmatprep.subr.bf16.mxu1 %v14736_v14  ;;  %v14714_v21 = vld [vmem:[#allocation2 + $0x150] ss:$24 sps:$4 sm:$0xff]  }
  0xdc   : > { %12641 = vmatprep.mubr.msk.bf16.mxu0 %vm967_vm0, %v17303_v9  ;;  %12654 = vmatprep.mubr.msk.bf16.mxu1 %vm967_vm0, %v17303_v9  ;;  %v14712_v17 = vld [vmem:[#allocation2 + $0x154] ss:$24 sps:$4 sm:$0xff]   ;;  %v14744_v19 = vld [vmem:[#allocation2 + $0x38] ss:$24 sps:$4 sm:$0xff]   ;;  %v14747_v24 = vld [vmem:[#allocation2 + $0x68] ss:$24 sps:$4 sm:$0xff]  }
  0xdd   : > { %1177 = vmatpush1.bf16.msra.mxu1 %v14738_v15  ;;  %v14745_v20 = vld [vmem:[#allocation2 + $0x6c] ss:$24 sps:$4 sm:$0xff]   ;;  %v14717_v23 = vld [vmem:[#allocation2 + $0x180] ss:$24 sps:$4 sm:$0x3f]   ;;  %s13951_s29 = sshll.u32 %s17092_s21, 7 }
  0xde   : > { %1028 = vmatpush1.bf16.msra.mxu0 %v14699_v5  ;;  %1178 = vmatprep.subr.bf16.mxu1 %v14742_v18  ;;  %v14715_v22 = vld [vmem:[#allocation2 + $0x184] ss:$24 sps:$4 sm:$0x3f]   ;;  %v14753_v26 = vld [vmem:[#allocation2 + $0x98] ss:$24 sps:$4 sm:$0xff]   ;;  %v1006_v28 = vsel %vm1004_vm1, %v14717_v23, 0  ;;  %s20351_s23 = scalar_lea.hbm %s20404_s11, %s13951_s29 }
  0xdf   : > { %1029 = vmatprep.subr.bf16.mxu0 %v14700_v6  ;;  %v14751_v25 = vld [vmem:[#allocation2 + $0x9c] ss:$24 sps:$4 sm:$0xff]   ;;  %v14757_v29 = vld [vmem:[#allocation2 + $0xcc] ss:$24 sps:$4 sm:$0xff]   ;;  %v17312_v30 = vld [vmem:[%s17300_s28] ss:$8 sps:$4 sm:$0xff]  }
  0xe0   : > { %v14756_v27 = vld [vmem:[#allocation2 + $0x14] ss:$24 sps:$4 sm:$0xff]   ;;  %v14754_v32 = vld [vmem:[#allocation2 + $0x10] ss:$24 sps:$4 sm:$0xff]   ;;  %v14765_v34 = vld [vmem:[#allocation2 + $0x44] ss:$24 sps:$4 sm:$0xff]  }
  0xe1   : > { %1179 = vmatpush1.bf16.msra.mxu1 %v14744_v19  ;;  %v17315_v31 = vld [vmem:[%s17300_s28 + $0x14] ss:$8 sps:$4 sm:$0xff]   ;;  %v14759_v33 = vld [vmem:[#allocation2 + $0xc8] ss:$24 sps:$4 sm:$0xff]   ;;  %v14768_v37 = vld [vmem:[#allocation2 + $0xf8] ss:$24 sps:$4 sm:$0xff]  }
  0xe2   : > { %1030 = vmatpush1.bf16.msra.mxu0 %v14702_v7  ;;  %1180 = vmatprep.subr.bf16.mxu1 %v14745_v20  ;;  %v14766_v35 = vld [vmem:[#allocation2 + $0xfc] ss:$24 sps:$4 sm:$0xff]   ;;  %v14763_v36 = vld [vmem:[#allocation2 + $0x40] ss:$24 sps:$4 sm:$0xff]   ;;  %v14772_v39 = vld [vmem:[#allocation2 + $0x12c] ss:$24 sps:$4 sm:$0xff]  }
  0xe3   : > { %1031 = vmatprep.subr.bf16.mxu0 %v14703_v8  ;;  %v14771_v38 = vld [vmem:[#allocation2 + $0x74] ss:$24 sps:$4 sm:$0xff]   ;;  %v17321_v40 = vld [vmem:[%s17300_s28 + $0x10] ss:$8 sps:$4 sm:$0xff]   ;;  %v14774_v43 = vld [vmem:[#allocation2 + $0x128] ss:$24 sps:$4 sm:$0xff]  }
  0xe4   : > { %v17324_v41 = vld [vmem:[%s17300_s28 + $0x24] ss:$8 sps:$4 sm:$0xff]   ;;  %v14769_v42 = vld [vmem:[#allocation2 + $0x70] ss:$24 sps:$4 sm:$0xff]   ;;  %v14781_v45 = vld [vmem:[#allocation2 + $0x15c] ss:$24 sps:$4 sm:$0xff]  }
  0xe5   : > { %1181 = vmatpush1.bf16.msra.mxu1 %v14747_v24  ;;  %v14780_v44 = vld [vmem:[#allocation2 + $0xa4] ss:$24 sps:$4 sm:$0xff]   ;;  %v14778_v46 = vld [vmem:[#allocation2 + $0xa0] ss:$24 sps:$4 sm:$0xff]   ;;  %v14786_v48 = vld [vmem:[#allocation2 + $0xd4] ss:$24 sps:$4 sm:$0xff]  }
  0xe6   : > { %1032 = vmatpush1.bf16.msra.mxu0 %v14705_v10  ;;  %1182 = vmatprep.subr.bf16.mxu1 %v14751_v25  ;;  %v14783_v47 = vld [vmem:[#allocation2 + $0x158] ss:$24 sps:$4 sm:$0xff]   ;;  %v14787_v49 = vld [vmem:[#allocation2 + $0x18c] ss:$24 sps:$4 sm:$0x3f]   ;;  %s476_s15 = scalar_lea.vmem [#allocation14], %s12559_s2 }
  0xe7   : > { %1033 = vmatprep.subr.bf16.mxu0 %v14706_v11  ;;  %v14789_v50 = vld [vmem:[#allocation2 + $0x188] ss:$24 sps:$4 sm:$0x3f]   ;;  %v17333_v52 = vld [vmem:[%s17300_s28 + $0x34] ss:$8 sps:$4 sm:$0xff]   ;;  %s12413_s13 = sshll.u32 %s476_s15, 4  ;;  %s20353_s13 = int_to_ptr.vmem [resolvable:$true] %s12413_s13 }
  0xe8   : > { %v17330_v51 = vld [vmem:[%s17300_s28 + $0x20] ss:$8 sps:$4 sm:$0xff]   ;;  %v14795_v54 = vld [vmem:[#allocation2 + $0x104] ss:$24 sps:$4 sm:$0xff]   ;;  %v1012_v55 = vsel %vm1004_vm1, %v14789_v50, 0  ;;  %s12400_s30 = scalar_lea.sflag [#allocation4], %s474_s17 }
  0xe9   : > { %1183 = vmatpush1.bf16.msra.mxu1 %v14753_v26  ;;  %v14784_v53 = vld [vmem:[#allocation2 + $0xd0] ss:$24 sps:$4 sm:$0xff]   ;;  %v14793_v56 = vld [vmem:[#allocation2 + $0x100] ss:$24 sps:$4 sm:$0xff]   ;;  %v14798_v57 = vld [vmem:[#allocation2 + $0x134] ss:$24 sps:$4 sm:$0xff]  }
  0xea   : > { %1034 = vmatpush1.bf16.msra.mxu0 %v14708_v12  ;;  %1184 = vmatprep.subr.bf16.mxu1 %v14757_v29  ;;  %v17341_v58 = vld [vmem:[%s17300_s28 + $0x30] ss:$8 sps:$4 sm:$0xff]   ;;  %v17344_v59 = vld [vmem:[%s17300_s28 + $0x44] ss:$8 sps:$4 sm:$0xff]   ;;  %v17353_v1 = vld [vmem:[%s17300_s28 + $0x40] ss:$8 sps:$4 sm:$0xff]  }
  0xeb   : > { %1035 = vmatprep.subr.bf16.mxu0 %v14709_v13  ;;  %v14796_v60 = vld [vmem:[#allocation2 + $0x130] ss:$24 sps:$4 sm:$0xff]   ;;  %v14804_v61 = vld [vmem:[#allocation2 + $0x164] ss:$24 sps:$4 sm:$0xff]   ;;  %v14802_v62 = vld [vmem:[#allocation2 + $0x160] ss:$24 sps:$4 sm:$0xff]  }
  0xec   : > { %v14805_v63 = vld [vmem:[#allocation2 + $0x194] ss:$24 sps:$4 sm:$0x3f]   ;;  %v14807_v0 = vld [vmem:[#allocation2 + $0x190] ss:$24 sps:$4 sm:$0x3f]  }
  0xed   : > { %1185 = vmatpush1.bf16.msra.mxu1 %v14759_v33  ;;  %v17356_v2 = vld [vmem:[%s17300_s28 + $0x54] ss:$8 sps:$4 sm:$0xff]   ;;  %v1018_v3 = vsel %vm1004_vm1, %v14807_v0, 0  ;;  %v14735_v4 = vld [vmem:[%s17300_s28 + $0x50] ss:$8 sps:$4 sm:$0xff]   ;;  %s16914_s16 = scalar_lea.vmem %s20353_s13, 128 }
  0xee   : > { %1036 = vmatpush1.bf16.msra.mxu0 %v14711_v16  ;;  %1186 = vmatprep.subr.bf16.mxu1 %v14766_v35  ;;  %v14739_v5 = vld [vmem:[%s17300_s28 + $0x64] ss:$8 sps:$4 sm:$0xff]   ;;  %v14741_v6 = vld [vmem:[%s17300_s28 + $0x60] ss:$8 sps:$4 sm:$0xff]   ;;  %v14748_v7 = vld [vmem:[%s17300_s28 + $0x74] ss:$8 sps:$4 sm:$0xff]   ;;  %p16915_p4 = scmp.ne.s32.totalorder %s20353_s13, %s16914_s16 }
  0xef   : > { %1037 = vmatprep.subr.bf16.mxu0 %v14712_v17  ;;  %v14750_v8 = vld [vmem:[%s17300_s28 + $0x70] ss:$8 sps:$4 sm:$0xff]   ;;  %v14760_v10 = vld [vmem:[%s17300_s28 + $0x84] ss:$8 sps:$4 sm:$0xff]   ;;  %v14762_v11 = vld [vmem:[%s17300_s28 + $0x80] ss:$8 sps:$4 sm:$0xff]  }
  0xf0   : > { %v14775_v12 = vld [vmem:[%s17300_s28 + $0x94] ss:$8 sps:$4 sm:$0xff]   ;;  %v14777_v13 = vld [vmem:[%s17300_s28 + $0x90] ss:$8 sps:$4 sm:$0xff]   ;;  %v14790_v14 = vld [vmem:[%s17300_s28 + $0xa4] ss:$8 sps:$4 sm:$0xff]  }
  0xf1   : > { %1187 = vmatpush1.bf16.msra.mxu1 %v14768_v37  ;;  %v14792_v15 = vld [vmem:[%s17300_s28 + $0xa0] ss:$8 sps:$4 sm:$0xff]   ;;  %v14799_v16 = vld [vmem:[%s17300_s28 + $0xb4] ss:$8 sps:$4 sm:$0xff]   ;;  %v14801_v17 = vld [vmem:[%s17300_s28 + $0xb0] ss:$8 sps:$4 sm:$0xff]  }
  0xf2   : > { %1038 = vmatpush1.bf16.msra.mxu0 %v14714_v21  ;;  %1188 = vmatprep.subr.bf16.mxu1 %v14772_v39  ;;  %v17425_v19 = vld [vmem:[#allocation5] sm:$0x3f]  ;;  %p20679_p7 = scmp.ne.s32.totalorder %s20469_s27, 0  ;;  %s17010_s21 = smov [#allocation14]  }
  0xf3   : > { %12640 = vmatprep.subr.msk.bf16.mxu0 %vm1004_vm1, %v14715_v22  ;;  %s16918_s24 = sshll.u32 %s17010_s21, 4  ;;  %s16919_s24 = int_to_ptr.vmem [resolvable:$false] %s16918_s24 }
  0xf4   : > { %p16916_p8 = pnand %p16915_p4, %p20679_p7  ;;  %s16920_s14 = scalar_lea.vmem %s16919_s24, 256 }
  0xf5   : > { %1189 = vmatpush1.bf16.msra.mxu1 %v14774_v43  ;;  %p16921_p13 = scmp.lt.s32.totalorder %s20353_s13, %s16919_s24  ;;  %p16922_p1 = scmp.lt.s32.totalorder %s16920_s14, %s16914_s16 }
  0xf6   : > { %1040 = vmatpush1.bf16.msra.mxu0 %v1006_v28  ;;  %1190 = vmatprep.subr.bf16.mxu1 %v14781_v45  ;;  %p16917_p11 = pneg %p16916_p8 }
  0xf7   : > { %1329 = vmatprep.subr.bf16.mxu0 %v14756_v27  ;;  %p16923_p0 = por %p16922_p1, %p16921_p13 }
  0xf9   : > { %1056 = vmatmul.mubr.bf16.vlgmr.msra.gmra.mrb[0].mxu0 %v17312_v30  ;;  %1191 = vmatpush1.bf16.msra.mxu1 %v14783_v47  ;;  %p16924_p6 = pnand %p16923_p0, %p16917_p11 }
  0xfa   : > { %12642 = vmatprep.mubr.msk.bf16.mxu0 %vm967_vm0, %v17315_v31  ;;  %1330 = vmatpush1.bf16.msra.mxu0 %v14754_v32 }
  0xfb   : > { %1331 = vmatprep.subr.bf16.mxu0 %v14765_v34  ;;  %12653 = vmatprep.subr.msk.bf16.mxu1 %vm1004_vm1, %v14787_v49 }
  0xfd   : > { %1193 = vmatpush1.bf16.msra.mxu1 %v1012_v55 }
  0xfe   : > { %1332 = vmatpush1.bf16.msra.mxu0 %v14763_v36 }
  0xff   : > { %1333 = vmatprep.subr.bf16.mxu0 %v14771_v38 }
 0x100   : > { %1209 = vmatmul.mubr.bf16.vlgmr.msra.gmra.mrb[0].mxu1 %v17312_v30 }
 0x101   : > { %1066 = vmatmul.mubr.bf16.gmra.mrb[4].mxu0 %v17321_v40  ;;  %12655 = vmatprep.mubr.msk.bf16.mxu1 %vm967_vm0, %v17315_v31 }
 0x102   : > { %12643 = vmatprep.mubr.msk.bf16.mxu0 %vm967_vm0, %v17324_v41  ;;  %1334 = vmatpush1.bf16.msra.mxu0 %v14769_v42 }
 0x103   : > { %1335 = vmatprep.subr.bf16.mxu0 %v14780_v44 }
 0x106   : > { %1336 = vmatpush1.bf16.msra.mxu0 %v14778_v46 }
 0x107   : > { %1337 = vmatprep.subr.bf16.mxu0 %v14786_v48 }
 0x108   : > { %1219 = vmatmul.mubr.bf16.gmra.mrb[4].mxu1 %v17321_v40 }
 0x109   : > { %1076 = vmatmul.mubr.bf16.gmra.mrb[8].mxu0 %v17330_v51  ;;  %12656 = vmatprep.mubr.msk.bf16.mxu1 %vm967_vm0, %v17324_v41 }
 0x10a   : > { %12644 = vmatprep.mubr.msk.bf16.mxu0 %vm967_vm0, %v17333_v52  ;;  %1338 = vmatpush1.bf16.msra.mxu0 %v14784_v53 }
 0x10b   : > { %1339 = vmatprep.subr.bf16.mxu0 %v14795_v54 }
 0x10e   : > { %1340 = vmatpush1.bf16.msra.mxu0 %v14793_v56 }
 0x10f   : > { %1341 = vmatprep.subr.bf16.mxu0 %v14798_v57 }
 0x110   : > { %1229 = vmatmul.mubr.bf16.gmra.mrb[8].mxu1 %v17330_v51 }
 0x111   : > { %1086 = vmatmul.mubr.bf16.gmra.mrb[12].mxu0 %v17341_v58  ;;  %12657 = vmatprep.mubr.msk.bf16.mxu1 %vm967_vm0, %v17333_v52 }
 0x112   : > { %12645 = vmatprep.mubr.msk.bf16.mxu0 %vm967_vm0, %v17344_v59  ;;  %1342 = vmatpush1.bf16.msra.mxu0 %v14796_v60 }
 0x113   : > { %1343 = vmatprep.subr.bf16.mxu0 %v14804_v61 }
 0x116   : > { %1344 = vmatpush1.bf16.msra.mxu0 %v14802_v62 }
 0x117   : > { %12666 = vmatprep.subr.msk.bf16.mxu0 %vm1004_vm1, %v14805_v63 }
 0x118   : > { %1239 = vmatmul.mubr.bf16.gmra.mrb[12].mxu1 %v17341_v58 }
 0x119   : > { %1096 = vmatmul.mubr.bf16.gmra.mrb[16].mxu0 %v17353_v1  ;;  %12658 = vmatprep.mubr.msk.bf16.mxu1 %vm967_vm0, %v17344_v59 }
 0x11a   : > { %12646 = vmatprep.mubr.msk.bf16.mxu0 %vm967_vm0, %v17356_v2  ;;  %1346 = vmatpush1.bf16.msra.mxu0 %v1018_v3 }
 0x120   : > { %1249 = vmatmul.mubr.bf16.gmra.mrb[16].mxu1 %v17353_v1 }
 0x121   : > { %1106 = vmatmul.mubr.bf16.gmra.mrb[20].mxu0 %v14735_v4  ;;  %12659 = vmatprep.mubr.msk.bf16.mxu1 %vm967_vm0, %v17356_v2 }
 0x122   : > { %12647 = vmatprep.mubr.msk.bf16.mxu0 %vm967_vm0, %v14739_v5 }
 0x128   : > { %1259 = vmatmul.mubr.bf16.gmra.mrb[20].mxu1 %v14735_v4 }
 0x129   : > { %1116 = vmatmul.mubr.bf16.gmra.mrb[24].mxu0 %v14741_v6  ;;  %12660 = vmatprep.mubr.msk.bf16.mxu1 %vm967_vm0, %v14739_v5 }
 0x12a   : > { %12648 = vmatprep.mubr.msk.bf16.mxu0 %vm967_vm0, %v14748_v7 }
 0x130   : > { %1269 = vmatmul.mubr.bf16.gmra.mrb[24].mxu1 %v14741_v6 }
 0x131   : > { %1126 = vmatmul.mubr.bf16.gmra.mrb[28].mxu0 %v14750_v8  ;;  %12661 = vmatprep.mubr.msk.bf16.mxu1 %vm967_vm0, %v14748_v7 }
 0x132   : > { %12649 = vmatprep.mubr.msk.bf16.mxu0 %vm967_vm0, %v14760_v10 }
 0x138   : > { %1279 = vmatmul.mubr.bf16.gmra.mrb[28].mxu1 %v14750_v8 }
 0x139   : > { %1136 = vmatmul.mubr.bf16.gmra.mrb[32].mxu0 %v14762_v11  ;;  %12662 = vmatprep.mubr.msk.bf16.mxu1 %vm967_vm0, %v14760_v10 }
 0x13a   : > { %12650 = vmatprep.mubr.msk.bf16.mxu0 %vm967_vm0, %v14775_v12 }
 0x140   : > { %1289 = vmatmul.mubr.bf16.gmra.mrb[32].mxu1 %v14762_v11 }
 0x141   : > { %1146 = vmatmul.mubr.bf16.gmra.mrb[36].mxu0 %v14777_v13  ;;  %12663 = vmatprep.mubr.msk.bf16.mxu1 %vm967_vm0, %v14775_v12 }
 0x142   : > { %12651 = vmatprep.mubr.msk.bf16.mxu0 %vm967_vm0, %v14790_v14 }
 0x148   : > { %1299 = vmatmul.mubr.bf16.gmra.mrb[36].mxu1 %v14777_v13 }
 0x149   : > { %1156 = vmatmul.mubr.bf16.gmra.mrb[40].mxu0 %v14792_v15  ;;  %12664 = vmatprep.mubr.msk.bf16.mxu1 %vm967_vm0, %v14790_v14 }
 0x14a   : > { %12652 = vmatprep.mubr.msk.bf16.mxu0 %vm967_vm0, %v14799_v16 }
 0x150   : > { %1309 = vmatmul.mubr.bf16.gmra.mrb[40].mxu1 %v14792_v15 }
 0x151   : > { %1166 = vmatmul.mubr.bf16.gmra.mrb[44].mxu0 %v14801_v17  ;;  %12665 = vmatprep.mubr.msk.bf16.mxu1 %vm967_vm0, %v14799_v16 }
 0x152   : > { %12667 = vmatprep.mubr.msk.bf16.mxu0 %vm967_vm0, %v17303_v9  ;;  %v565_v9 = vlaneseq }
 0x154   : > { %v17423_v18 = vshrl.u32 %v565_v9, 7 }
 0x156   : > { %20486 = vst [vmem:[#allocation25_spill] sm:$0xff] %v17423_v18  ;;  %v20416_v20 = vsub.s32 0, %v17423_v18  ;;  %v20415_v21 = vsub.s32 1, %v17423_v18 }
 0x158   : > { %1319 = vmatmul.mubr.bf16.gmra.mrb[44].mxu1 %v14801_v17  ;;  %v17432_v22 = vrot.slane %v17425_v19, %v20416_v20  ;;  %v17437_v23 = vrot.slane %v17425_v19, %v20415_v21 }
 0x159   : > { %1362 = vmatmul.mubr.bf16.vlgmr.msra.gmra.mrb[48].mxu0 %v17312_v30 }
 0x15a   : > { %12668 = vmatprep.mubr.msk.bf16.mxu0 %vm967_vm0, %v17315_v31 }
 0x161   : > { %1372 = vmatmul.mubr.bf16.gmra.mrb[52].mxu0 %v17321_v40 }
 0x162   : > { %12669 = vmatprep.mubr.msk.bf16.mxu0 %vm967_vm0, %v17324_v41 }
 0x169   : > { %1382 = vmatmul.mubr.bf16.gmra.mrb[56].mxu0 %v17330_v51 }
 0x16a   : > { %12670 = vmatprep.mubr.msk.bf16.mxu0 %vm967_vm0, %v17333_v52 }
 0x171   : > { %1392 = vmatmul.mubr.bf16.gmra.mrb[60].mxu0 %v17341_v58 }
 0x172   : > { %12671 = vmatprep.mubr.msk.bf16.mxu0 %vm967_vm0, %v17344_v59 }
 0x179   : > { %1402 = vmatmul.mubr.bf16.gmra.mrb[64].mxu0 %v17353_v1 }
 0x17a   : > { %12672 = vmatprep.mubr.msk.bf16.mxu0 %vm967_vm0, %v17356_v2 }
 0x181   : > { %1412 = vmatmul.mubr.bf16.gmra.mrb[68].mxu0 %v14735_v4 }
 0x182   : > { %12673 = vmatprep.mubr.msk.bf16.mxu0 %vm967_vm0, %v14739_v5 }
 0x189   : > { %1422 = vmatmul.mubr.bf16.gmra.mrb[72].mxu0 %v14741_v6 }
 0x18a   : > { %12674 = vmatprep.mubr.msk.bf16.mxu0 %vm967_vm0, %v14748_v7 }
 0x191   : > { %1432 = vmatmul.mubr.bf16.gmra.mrb[76].mxu0 %v14750_v8 }
 0x192   : > { %12675 = vmatprep.mubr.msk.bf16.mxu0 %vm967_vm0, %v14760_v10 }
 0x199   : > { %1442 = vmatmul.mubr.bf16.gmra.mrb[80].mxu0 %v14762_v11 }
 0x19a   : > { %12676 = vmatprep.mubr.msk.bf16.mxu0 %vm967_vm0, %v14775_v12 }
 0x1a1   : > { %1452 = vmatmul.mubr.bf16.gmra.mrb[84].mxu0 %v14777_v13 }
 0x1a2   : > { %12677 = vmatprep.mubr.msk.bf16.mxu0 %vm967_vm0, %v14790_v14 }
 0x1a9   : > { %1462 = vmatmul.mubr.bf16.gmra.mrb[88].mxu0 %v14792_v15 }
 0x1aa   : > { %12678 = vmatprep.mubr.msk.bf16.mxu0 %vm967_vm0, %v14799_v16 }
 0x1b1   : > { %1472 = vmatmul.mubr.bf16.gmra.mrb[92].mxu0 %v14801_v17 }
 0x1cc   : > { %v1057_v24 = vpop.f32.mrb[0].mxu0 }
 0x1cd   : > { %v1058_v25 = vadd.f32 %v1057_v24, %v17432_v22  ;;  %v1059_v26 = vpop.f32.mrb[1].mxu0 }
 0x1ce   : > { %v17441_v27 = vadd.f32 %v1059_v26, %v17437_v23  ;;  %v1061_v28 = vpop.f32.mrb[2].mxu0 }
 0x1cf   : > { %v1626_v29 = vmin.f32 %v1058_v25, 0.0  ;;  %v1062_v30 = vadd.f32 %v1061_v28, %v17432_v22  ;;  %v1063_v31 = vpop.f32.mrb[3].mxu0  ;;  %vm1482_vm2 = vcmp.gt.f32.partialorder %v1058_v25, 0.0 }
 0x1d0   : > { %v1627_v32 = vmin.f32 %v17441_v27, 0.0  ;;  %v17446_v33 = vadd.f32 %v1063_v31, %v17437_v23  ;;  %vm1483_vm3 = vcmp.gt.f32.partialorder %v17441_v27, 0.0 }
 0x1d1   : > { %v1770_v34 = vmul.f32 1.442695, %v1626_v29  ;;  %v1632_v35 = vmin.f32 %v1062_v30, 0.0  ;;  %vm1488_vm4 = vcmp.gt.f32.partialorder %v1062_v30, 0.0 }
 0x1d2   : > { %v1772_v36 = vmul.f32 1.442695, %v1627_v32  ;;  %v1633_v37 = vmin.f32 %v17446_v33, 0.0  ;;  %vm1489_vm5 = vcmp.gt.f32.partialorder %v17446_v33, 0.0 }
 0x1d3   : > { %16340 = vpow2.f32 %v1770_v34  ;;  %v1782_v38 = vmul.f32 1.442695, %v1632_v35  ;;  %v17480_v13 = vpop.f32.mrb[0].mxu1 }
 0x1d4   : > { %16342 = vpow2.f32 %v1772_v36  ;;  %v1784_v39 = vmul.f32 1.442695, %v1633_v37  ;;  %v1067_v40 = vpop.f32.mrb[4].mxu0  ;;  %v17488_v9 = vpop.f32.mrb[1].mxu1 }
 0x1d5   : > { %16344 = vpow2.f32 %v1782_v38  ;;  %v17450_v41 = vadd.f32 %v1067_v40, %v17432_v22  ;;  %v1069_v42 = vpop.f32.mrb[5].mxu0  ;;  %v17491_v28 = vpop.f32.mrb[2].mxu1 }
 0x1d6   : > { %16346 = vpow2.f32 %v1784_v39  ;;  %v17453_v43 = vadd.f32 %v1069_v42, %v17437_v23  ;;  %v1071_v44 = vpop.f32.mrb[6].mxu0  ;;  %v17494_v32 = vpop.f32.mrb[3].mxu1 }
 0x1d7   : > { %v1638_v45 = vmin.f32 %v17450_v41, 0.0  ;;  %v17457_v46 = vadd.f32 %v1071_v44, %v17432_v22  ;;  %v1073_v47 = vpop.f32.mrb[7].mxu0  ;;  %vm1494_vm6 = vcmp.gt.f32.partialorder %v17450_v41, 0.0 }
 0x1d8   : > { %v1639_v48 = vmin.f32 %v17453_v43, 0.0  ;;  %v17461_v49 = vadd.f32 %v1073_v47, %v17437_v23  ;;  %vm1495_vm7 = vcmp.gt.f32.partialorder %v17453_v43, 0.0 }
 0x1d9   : > { %v1794_v50 = vmul.f32 1.442695, %v1638_v45  ;;  %v1644_v51 = vmin.f32 %v17457_v46, 0.0  ;;  %vm1500_vm8 = vcmp.gt.f32.partialorder %v17457_v46, 0.0 }
 0x1da   : > { %v1796_v52 = vmul.f32 1.442695, %v1639_v48  ;;  %v1645_v53 = vmin.f32 %v17461_v49, 0.0  ;;  %vm1501_vm9 = vcmp.gt.f32.partialorder %v17461_v49, 0.0 }
 0x1db   : > { %16348 = vpow2.f32 %v1794_v50  ;;  %v1806_v54 = vmul.f32 1.442695, %v1644_v51 }
 0x1dc   : > { %16350 = vpow2.f32 %v1796_v52  ;;  %v1808_v55 = vmul.f32 1.442695, %v1645_v53  ;;  %v1077_v56 = vpop.f32.mrb[8].mxu0 }
 0x1dd   : > { %v16341_v57 = vpop.eup %16340  ;;  %16352 = vpow2.f32 %v1806_v54  ;;  %v17466_v58 = vadd.f32 %v1077_v56, %v17432_v22  ;;  %v1079_v59 = vpop.f32.mrb[9].mxu0 }
 0x1de   : > { %v16343_v60 = vpop.eup %16342  ;;  %v12679_v61 = vadd.f32 -1.0, %v16341_v57  ;;  %16354 = vpow2.f32 %v1808_v55  ;;  %v17470_v62 = vadd.f32 %v1079_v59, %v17437_v23  ;;  %v1081_v63 = vpop.f32.mrb[10].mxu0 }
 0x1df   : > { %v16345_v0 = vpop.eup %16344  ;;  %v12680_v1 = vadd.f32 -1.0, %v16343_v60  ;;  %v1650_v2 = vmin.f32 %v17466_v58, 0.0  ;;  %v17474_v3 = vadd.f32 %v1081_v63, %v17432_v22  ;;  %v1083_v4 = vpop.f32.mrb[11].mxu0  ;;  %vm1506_vm10 = vcmp.gt.f32.partialorder %v17466_v58, 0.0 }
 0x1e0   : > { %v16347_v5 = vpop.eup %16346  ;;  %v12685_v6 = vadd.f32 -1.0, %v16345_v0  ;;  %v1651_v7 = vmin.f32 %v17470_v62, 0.0  ;;  %v2202_v8 = vsel %vm1482_vm2, %v1058_v25, %v12679_v61  ;;  %v17483_v16 = vadd.f32 %v1083_v4, %v17437_v23  ;;  %v17514_v55 = vpop.f32.mrb[4].mxu1 }
 0x1e1   : > { %v12686_v10 = vadd.f32 -1.0, %v16347_v5  ;;  %v1818_v11 = vmul.f32 1.442695, %v1650_v2  ;;  %v1656_v12 = vmin.f32 %v17474_v3, 0.0  ;;  %v2203_v17 = vsel %vm1483_vm3, %v17441_v27, %v12680_v1  ;;  %v17524_v61 = vpop.f32.mrb[5].mxu1 }
 0x1e2   : > { %v2208_v14 = vsel %vm1488_vm4, %v1062_v30, %v12685_v6  ;;  %v1820_v15 = vmul.f32 1.442695, %v1651_v7  ;;  %v1657_v29 = vmin.f32 %v17483_v16, 0.0  ;;  %v17527_v1 = vpop.f32.mrb[6].mxu1  ;;  %vm1512_vm11 = vcmp.gt.f32.partialorder %v17474_v3, 0.0 }
 0x1e3   : > { %v2346_v24 = vpack.c.bf16 %v2208_v14, %v2202_v8  ;;  %16356 = vpow2.f32 %v1818_v11  ;;  %v1830_v25 = vmul.f32 1.442695, %v1656_v12  ;;  %v2209_v26 = vsel %vm1489_vm5, %v17446_v33, %v12686_v10  ;;  %v17530_v6 = vpop.f32.mrb[7].mxu1 }
 0x1e4   : > { %16358 = vpow2.f32 %v1820_v15  ;;  %v1087_v30 = vpop.f32.mrb[12].mxu0  ;;  %v2347_v31 = vpack.c.bf16 %v2209_v26, %v2203_v17  ;;  %v1832_v33 = vmul.f32 1.442695, %v1657_v29  ;;  %v20414_v26 = vsub.s32 2, %v17423_v18 }
 0x1e5   : > { %v16349_v34 = vpop.eup %16348  ;;  %16360 = vpow2.f32 %v1830_v25  ;;  %v17498_v27 = vadd.f32 %v1087_v30, %v17432_v22  ;;  %v1089_v35 = vpop.f32.mrb[13].mxu0  ;;  %v20413_v29 = vsub.s32 3, %v17423_v18  ;;  %vm1507_vm12 = vcmp.gt.f32.partialorder %v17470_v62, 0.0 }
 0x1e6   : > { %v16351_v36 = vpop.eup %16350  ;;  %v12691_v37 = vadd.f32 -1.0, %v16349_v34  ;;  %v17501_v38 = vadd.f32 %v1089_v35, %v17437_v23  ;;  %v1091_v39 = vpop.f32.mrb[14].mxu0  ;;  %2699 = vmatprep.subr.bf16.mxu1 %v2347_v31  ;;  %16362 = vpow2.f32 %v1832_v33  ;;  %vm1513_vm13 = vcmp.gt.f32.partialorder %v17483_v16, 0.0 }
 0x1e7   : > { %v16353_v40 = vpop.eup %16352  ;;  %v12692_v42 = vadd.f32 -1.0, %v16351_v36  ;;  %v1662_v44 = vmin.f32 %v17498_v27, 0.0  ;;  %v17506_v45 = vadd.f32 %v1091_v39, %v17432_v22  ;;  %v1093_v47 = vpop.f32.mrb[15].mxu0  ;;  %2700 = vmatpush1.bf16.msra.mxu1 %v2346_v24  ;;  %vm1518_vm14 = vcmp.gt.f32.partialorder %v17498_v27, 0.0 }
 0x1e8   : > { %v16355_v48 = vpop.eup %16354  ;;  %v12697_v50 = vadd.f32 -1.0, %v16353_v40  ;;  %v2214_v51 = vsel %vm1494_vm6, %v17450_v41, %v12691_v37  ;;  %v1663_v54 = vmin.f32 %v17501_v38, 0.0  ;;  %v17519_v59 = vadd.f32 %v1093_v47, %v17437_v23  ;;  %v17548_v37 = vpop.f32.mrb[8].mxu1 }
 0x1e9   : > { %v12698_v52 = vadd.f32 -1.0, %v16355_v48  ;;  %v1842_v53 = vmul.f32 1.442695, %v1662_v44  ;;  %v1668_v57 = vmin.f32 %v17506_v45, 0.0  ;;  %v2215_v60 = vsel %vm1495_vm7, %v17453_v43, %v12692_v42  ;;  %v17556_v44 = vpop.f32.mrb[9].mxu1 }
 0x1ea   : > { %v2220_v56 = vsel %vm1500_vm8, %v17457_v46, %v12697_v50  ;;  %v1844_v63 = vmul.f32 1.442695, %v1663_v54  ;;  %v1669_v46 = vmin.f32 %v17519_v59, 0.0  ;;  %vm1519_vm15 = vcmp.gt.f32.partialorder %v17501_v38, 0.0 }
 0x1eb   : > { %v2352_v41 = vpack.c.bf16 %v2220_v56, %v2214_v51  ;;  %16364 = vpow2.f32 %v1842_v53  ;;  %v2221_v0 = vsel %vm1501_vm9, %v17461_v49, %v12698_v52  ;;  %v1854_v2 = vmul.f32 1.442695, %v1668_v57  ;;  %v17558_v51 = vpop.f32.mrb[10].mxu1 }
 0x1ec   : > { %v1097_v4 = vpop.f32.mrb[16].mxu0  ;;  %v2353_v5 = vpack.c.bf16 %v2221_v0, %v2215_v60  ;;  %16366 = vpow2.f32 %v1844_v63  ;;  %v1856_v12 = vmul.f32 1.442695, %v1669_v46  ;;  %v17567_v54 = vpop.f32.mrb[11].mxu1  ;;  %vm1524_vm0 = vcmp.gt.f32.partialorder %v17506_v45, 0.0 }
 0x1ed   : > { %v16357_v7 = vpop.eup %16356  ;;  %v17533_v43 = vadd.f32 %v1097_v4, %v17432_v22  ;;  %v1099_v8 = vpop.f32.mrb[17].mxu0  ;;  %16368 = vpow2.f32 %v1854_v2  ;;  %vm1525_vm1 = vcmp.gt.f32.partialorder %v17519_v59, 0.0 }
 0x1ee   : > { %v16359_v10 = vpop.eup %16358  ;;  %v12703_v11 = vadd.f32 -1.0, %v16357_v7  ;;  %v17536_v49 = vadd.f32 %v1099_v8, %v17437_v23  ;;  %v1101_v14 = vpop.f32.mrb[18].mxu0  ;;  %2701 = vmatprep.subr.bf16.mxu1 %v2353_v5  ;;  %16370 = vpow2.f32 %v1856_v12 }
 0x1ef   : > { %v16361_v15 = vpop.eup %16360  ;;  %v1674_v17 = vmin.f32 %v17533_v43, 0.0  ;;  %v17540_v24 = vadd.f32 %v1101_v14, %v17432_v22  ;;  %v1103_v25 = vpop.f32.mrb[19].mxu0  ;;  %2702 = vmatpush1.bf16.msra.mxu1 %v2352_v41  ;;  %v12704_v31 = vadd.f32 -1.0, %v16359_v10  ;;  %vm1530_vm2 = vcmp.gt.f32.partialorder %v17533_v43, 0.0 }
 0x1f0   : > { %v12709_v30 = vadd.f32 -1.0, %v16361_v15  ;;  %v1675_v35 = vmin.f32 %v17536_v49, 0.0  ;;  %v16363_v33 = vpop.eup %16362  ;;  %v2226_v39 = vsel %vm1506_vm10, %v17466_v58, %v12703_v11  ;;  %v17554_v42 = vadd.f32 %v1103_v25, %v17437_v23 }
 0x1f1   : > { %v1866_v34 = vmul.f32 1.442695, %v1674_v17  ;;  %v1680_v36 = vmin.f32 %v17540_v24, 0.0  ;;  %v12710_v48 = vadd.f32 -1.0, %v16363_v33  ;;  %v2227_v41 = vsel %vm1507_vm12, %v17470_v62, %v12704_v31 }
 0x1f2   : > { %v2232_v40 = vsel %vm1512_vm11, %v17474_v3, %v12709_v30  ;;  %v1868_v50 = vmul.f32 1.442695, %v1675_v35  ;;  %v1681_v58 = vmin.f32 %v17554_v42, 0.0  ;;  %v17565_v3 = vrot.slane %v17425_v19, %v20414_v26  ;;  %v17595_v30 = vpop.f32.mrb[12].mxu1 }
 0x1f3   : > { %v2358_v47 = vpack.c.bf16 %v2232_v40, %v2226_v39  ;;  %16372 = vpow2.f32 %v1866_v34  ;;  %v1878_v52 = vmul.f32 1.442695, %v1680_v36  ;;  %v2233_v63 = vsel %vm1513_vm13, %v17483_v16, %v12710_v48 }
 0x1f4   : > { %v1107_v53 = vpop.f32.mrb[20].mxu0  ;;  %16374 = vpow2.f32 %v1868_v50  ;;  %v1880_v2 = vmul.f32 1.442695, %v1681_v58  ;;  %v2359_v10 = vpack.c.bf16 %v2233_v63, %v2227_v41  ;;  %v17586_v62 = vrot.slane %v17425_v19, %v20413_v29 }
 0x1f5   : > { %v16365_v56 = vpop.eup %16364  ;;  %v17570_v57 = vadd.f32 %v1107_v53, %v17432_v22  ;;  %v1109_v60 = vpop.f32.mrb[21].mxu0  ;;  %16376 = vpow2.f32 %v1878_v52  ;;  %v17592_v12 = vadd.f32 %v17480_v13, %v17565_v3  ;;  %vm1531_vm3 = vcmp.gt.f32.partialorder %v17536_v49, 0.0 }
 0x1f6   : > { %v12715_v0 = vadd.f32 -1.0, %v16365_v56  ;;  %v17577_v46 = vadd.f32 %v1109_v60, %v17437_v23  ;;  %v1111_v4 = vpop.f32.mrb[22].mxu0  ;;  %v16367_v5 = vpop.eup %16366  ;;  %16378 = vpow2.f32 %v1880_v2  ;;  %2703 = vmatprep.subr.bf16.mxu1 %v2359_v10  ;;  %vm1536_vm4 = vcmp.gt.f32.partialorder %v17540_v24, 0.0 }
 0x1f7   : > { %v1686_v7 = vmin.f32 %v17570_v57, 0.0  ;;  %v17581_v8 = vadd.f32 %v1111_v4, %v17432_v22  ;;  %v1113_v11 = vpop.f32.mrb[23].mxu0  ;;  %v16369_v16 = vpop.eup %16368  ;;  %v12716_v14 = vadd.f32 -1.0, %v16367_v5  ;;  %2704 = vmatpush1.bf16.msra.mxu1 %v2358_v47  ;;  %vm1537_vm5 = vcmp.gt.f32.partialorder %v17554_v42, 0.0 }
 0x1f8   : > { %v12721_v15 = vadd.f32 -1.0, %v16369_v16  ;;  %v1687_v25 = vmin.f32 %v17577_v46, 0.0  ;;  %v16371_v19 = vpop.eup %16370  ;;  %v2238_v31 = vsel %vm1518_vm14, %v17498_v27, %v12715_v0  ;;  %v17601_v35 = vadd.f32 %v1113_v11, %v17437_v23  ;;  %v17603_v13 = vpop.f32.mrb[13].mxu1 }
 0x1f9   : > { %v1890_v17 = vmul.f32 1.442695, %v1686_v7  ;;  %v1692_v34 = vmin.f32 %v17581_v8, 0.0  ;;  %v12722_v33 = vadd.f32 -1.0, %v16371_v19  ;;  %v17606_v40 = vpop.f32.mrb[14].mxu1  ;;  %v2239_v56 = vsel %vm1519_vm15, %v17501_v38, %v12716_v14 }
 0x1fa   : > { %v2244_v36 = vsel %vm1524_vm0, %v17506_v45, %v12721_v15  ;;  %v1892_v39 = vmul.f32 1.442695, %v1687_v25  ;;  %v1693_v50 = vmin.f32 %v17601_v35, 0.0  ;;  %v17610_v58 = vpop.f32.mrb[15].mxu1  ;;  %v17628_v38 = vadd.f32 %v17488_v9, %v17586_v62 }
 0x1fb   : > { %16380 = vpow2.f32 %v1890_v17  ;;  %v2364_v48 = vpack.c.bf16 %v2244_v36, %v2238_v31  ;;  %v1902_v27 = vmul.f32 1.442695, %v1692_v34  ;;  %v2245_v60 = vsel %vm1525_vm1, %v17519_v59, %v12722_v33  ;;  %v17634_v19 = vpop.f32.mrb[16].mxu1 }
 0x1fc   : > { %v1117_v52 = vpop.f32.mrb[24].mxu0  ;;  %16382 = vpow2.f32 %v1892_v39  ;;  %v1904_v63 = vmul.f32 1.442695, %v1693_v50  ;;  %v2365_v10 = vpack.c.bf16 %v2245_v60, %v2239_v56  ;;  %v1628_v16 = vmin.f32 %v17592_v12, 0.0  ;;  %v17642_v33 = vpop.f32.mrb[17].mxu1 }
 0x1fd   : > { %v16373_v53 = vpop.eup %16372  ;;  %v17613_v47 = vadd.f32 %v1117_v52, %v17432_v22  ;;  %v1119_v45 = vpop.f32.mrb[25].mxu0  ;;  %16384 = vpow2.f32 %v1902_v27  ;;  %vm1542_vm6 = vcmp.gt.f32.partialorder %v17570_v57, 0.0  ;;  %vm1548_vm7 = vcmp.gt.f32.partialorder %v17581_v8, 0.0 }
 0x1fe   : > { %v12727_v41 = vadd.f32 -1.0, %v16373_v53  ;;  %v17620_v0 = vadd.f32 %v1119_v45, %v17437_v23  ;;  %v1121_v2 = vpop.f32.mrb[26].mxu0  ;;  %v16375_v4 = vpop.eup %16374  ;;  %16386 = vpow2.f32 %v1904_v63  ;;  %2705 = vmatprep.subr.bf16.mxu1 %v2365_v10  ;;  %vm1549_vm8 = vcmp.gt.f32.partialorder %v17601_v35, 0.0 }
 0x1ff   : > { %v1698_v5 = vmin.f32 %v17613_v47, 0.0  ;;  %v17624_v7 = vadd.f32 %v1121_v2, %v17432_v22  ;;  %v1123_v11 = vpop.f32.mrb[27].mxu0  ;;  %v16377_v59 = vpop.eup %16376  ;;  %v12728_v14 = vadd.f32 -1.0, %v16375_v4  ;;  %2706 = vmatpush1.bf16.msra.mxu1 %v2364_v48  ;;  %vm1543_vm9 = vcmp.gt.f32.partialorder %v17577_v46, 0.0 }
 0x200   : > { %v12733_v15 = vadd.f32 -1.0, %v16377_v59  ;;  %v1699_v25 = vmin.f32 %v17620_v0, 0.0  ;;  %v16379_v31 = vpop.eup %16378  ;;  %v2250_v9 = vsel %vm1530_vm2, %v17533_v43, %v12727_v41  ;;  %v17640_v36 = vadd.f32 %v1123_v11, %v17437_v23  ;;  %v17645_v52 = vpop.f32.mrb[18].mxu1 }
 0x201   : > { %v1914_v17 = vmul.f32 1.442695, %v1698_v5  ;;  %v1704_v34 = vmin.f32 %v17624_v7, 0.0  ;;  %v12734_v27 = vadd.f32 -1.0, %v16379_v31  ;;  %v17649_v60 = vpop.f32.mrb[19].mxu1  ;;  %v2251_v63 = vsel %vm1531_vm3, %v17536_v49, %v12728_v14 }
 0x202   : > { %v2256_v39 = vsel %vm1536_vm4, %v17540_v24, %v12733_v15  ;;  %v1916_v50 = vmul.f32 1.442695, %v1699_v25  ;;  %v1705_v45 = vmin.f32 %v17640_v36, 0.0  ;;  %20487 = vst [vmem:[#allocation26_spill] sm:$0xff] %v17649_v60  ;;  %v17667_v49 = vmul.f32 1.442695, %v1628_v16 }
 0x203   : > { %16388 = vpow2.f32 %v1914_v17  ;;  %v2370_v53 = vpack.c.bf16 %v2256_v39, %v2250_v9  ;;  %v1926_v43 = vmul.f32 1.442695, %v1704_v34  ;;  %v2257_v2 = vsel %vm1537_vm5, %v17554_v42, %v12734_v27  ;;  %v17671_v27 = vpop.f32.mrb[20].mxu1 }
 0x204   : > { %v1127_v56 = vpop.f32.mrb[28].mxu0  ;;  %16390 = vpow2.f32 %v1916_v50  ;;  %v1928_v5 = vmul.f32 1.442695, %v1705_v45  ;;  %v2371_v25 = vpack.c.bf16 %v2257_v2, %v2251_v63  ;;  %v1629_v39 = vmin.f32 %v17628_v38, 0.0  ;;  %20488 = vst [vmem:[#allocation27_spill] sm:$0xff] %v17671_v27  ;;  %v17678_v16 = vpop.f32.mrb[21].mxu1 }
 0x205   : > { %v16381_v41 = vpop.eup %16380  ;;  %v17652_v48 = vadd.f32 %v1127_v56, %v17432_v22  ;;  %v1129_v24 = vpop.f32.mrb[29].mxu0  ;;  %16392 = vpow2.f32 %v1926_v43  ;;  %20489 = vst [vmem:[#allocation28_spill] sm:$0xff] %v17678_v16  ;;  %vm1554_vm10 = vcmp.gt.f32.partialorder %v17613_v47, 0.0  ;;  %vm1560_vm11 = vcmp.gt.f32.partialorder %v17624_v7, 0.0 }
 0x206   : > { %v12739_v4 = vadd.f32 -1.0, %v16381_v41  ;;  %v17659_v10 = vadd.f32 %v1129_v24, %v17437_v23  ;;  %v1131_v11 = vpop.f32.mrb[30].mxu0  ;;  %v16383_v59 = vpop.eup %16382  ;;  %16394 = vpow2.f32 %v1928_v5  ;;  %2707 = vmatprep.subr.bf16.mxu1 %v2371_v25  ;;  %vm1561_vm12 = vcmp.gt.f32.partialorder %v17640_v36, 0.0 }
 0x207   : > { %v1710_v15 = vmin.f32 %v17652_v48, 0.0  ;;  %v17663_v17 = vadd.f32 %v1131_v11, %v17432_v22  ;;  %v1133_v31 = vpop.f32.mrb[31].mxu0  ;;  %v16385_v9 = vpop.eup %16384  ;;  %v12740_v45 = vadd.f32 -1.0, %v16383_v59  ;;  %2708 = vmatpush1.bf16.msra.mxu1 %v2370_v53  ;;  %vm1555_vm13 = vcmp.gt.f32.partialorder %v17620_v0, 0.0 }
 0x208   : > { %v12745_v42 = vadd.f32 -1.0, %v16385_v9  ;;  %v1711_v34 = vmin.f32 %v17659_v10, 0.0  ;;  %v16387_v50 = vpop.eup %16386  ;;  %v2262_v43 = vsel %vm1542_vm6, %v17570_v57, %v12739_v4  ;;  %v17676_v41 = vadd.f32 %v1133_v31, %v17437_v23  ;;  %v17683_v5 = vpop.f32.mrb[22].mxu1 }
 0x209   : > { %v1938_v14 = vmul.f32 1.442695, %v1710_v15  ;;  %v1716_v56 = vmin.f32 %v17663_v17, 0.0  ;;  %v12746_v63 = vadd.f32 -1.0, %v16387_v50  ;;  %20490 = vst [vmem:[#allocation29_spill] sm:$0xff] %v17683_v5  ;;  %v17687_v15 = vpop.f32.mrb[23].mxu1 }
 0x20a   : > { %v2268_v24 = vsel %vm1548_vm7, %v17581_v8, %v12745_v42  ;;  %v1940_v2 = vmul.f32 1.442695, %v1711_v34  ;;  %v1717_v4 = vmin.f32 %v17676_v41, 0.0  ;;  %20491 = vst [vmem:[#allocation30_spill] sm:$0xff] %v17687_v15  ;;  %vm1566_vm14 = vcmp.gt.f32.partialorder %v17652_v48, 0.0 }
 0x20b   : > { %16396 = vpow2.f32 %v1938_v14  ;;  %v2376_v11 = vpack.c.bf16 %v2268_v24, %v2262_v43  ;;  %v1950_v57 = vmul.f32 1.442695, %v1716_v56  ;;  %v2269_v31 = vsel %vm1549_vm8, %v17601_v35, %v12746_v63  ;;  %v17704_v63 = vpop.f32.mrb[24].mxu1 }
 0x20c   : > { %v1137_v59 = vpop.f32.mrb[32].mxu0  ;;  %16398 = vpow2.f32 %v1940_v2  ;;  %v1952_v9 = vmul.f32 1.442695, %v1717_v4  ;;  %v2263_v14 = vsel %vm1543_vm9, %v17577_v46, %v12740_v45  ;;  %v1776_v35 = vmul.f32 1.442695, %v1629_v39  ;;  %20492 = vst [vmem:[#allocation31_spill] sm:$0xff] %v17704_v63 }
 0x20d   : > { %v16389_v53 = vpop.eup %16388  ;;  %v17691_v8 = vadd.f32 %v1137_v59, %v17432_v22  ;;  %v1139_v25 = vpop.f32.mrb[33].mxu0  ;;  %16400 = vpow2.f32 %v1950_v57  ;;  %v2377_v24 = vpack.c.bf16 %v2269_v31, %v2263_v14  ;;  %v17712_v39 = vadd.f32 %v17491_v28, %v17565_v3 }
 0x20e   : > { %v1141_v42 = vpop.f32.mrb[34].mxu0  ;;  %v16391_v34 = vpop.eup %16390  ;;  %v12751_v50 = vadd.f32 -1.0, %v16389_v53  ;;  %16402 = vpow2.f32 %v1952_v9  ;;  %v17700_v59 = vadd.f32 %v1139_v25, %v17437_v23  ;;  %vm1567_vm15 = vcmp.gt.f32.partialorder %v17659_v10, 0.0 }
 0x20f   : > { %v1722_v43 = vmin.f32 %v17691_v8, 0.0  ;;  %v17697_v56 = vadd.f32 %v1141_v42, %v17432_v22  ;;  %v1143_v2 = vpop.f32.mrb[35].mxu0  ;;  %v16393_v29 = vpop.eup %16392  ;;  %2709 = vmatprep.subr.bf16.mxu1 %v2377_v24  ;;  %v12752_v4 = vadd.f32 -1.0, %v16391_v34  ;;  %vm1572_vm0 = vcmp.gt.f32.partialorder %v17663_v17, 0.0 }
 0x210   : > { %v12757_v46 = vadd.f32 -1.0, %v16393_v29  ;;  %v16395_v57 = vpop.eup %16394  ;;  %v17708_v31 = vadd.f32 %v1143_v2, %v17437_v23  ;;  %2710 = vmatpush1.bf16.msra.mxu1 %v2376_v11  ;;  %v17714_v25 = vpop.f32.mrb[25].mxu1  ;;  %v2274_v29 = vsel %vm1554_vm10, %v17613_v47, %v12751_v50  ;;  %vm1573_vm1 = vcmp.gt.f32.partialorder %v17676_v41, 0.0 }
 0x211   : > { %v1962_v45 = vmul.f32 1.442695, %v1722_v43  ;;  %v1728_v53 = vmin.f32 %v17697_v56, 0.0  ;;  %20493 = vst [vmem:[#allocation32_spill] sm:$0xff] %v17714_v25  ;;  %v12758_v42 = vadd.f32 -1.0, %v16395_v57  ;;  %v17718_v14 = vpop.f32.mrb[26].mxu1  ;;  %v2275_v57 = vsel %vm1555_vm13, %v17620_v0, %v12752_v4 }
 0x212   : > { %v2280_v9 = vsel %vm1560_vm11, %v17624_v7, %v12757_v46  ;;  %20494 = vst [vmem:[#allocation33_spill] sm:$0xff] %v17718_v14  ;;  %v1723_v43 = vmin.f32 %v17700_v59, 0.0  ;;  %v17722_v2 = vpop.f32.mrb[27].mxu1  ;;  %v1729_v47 = vmin.f32 %v17708_v31, 0.0  ;;  %vm1578_vm2 = vcmp.gt.f32.partialorder %v17691_v8, 0.0 }
 0x213   : > { %16404 = vpow2.f32 %v1962_v45  ;;  %v2382_v34 = vpack.c.bf16 %v2280_v9, %v2274_v29  ;;  %v1974_v11 = vmul.f32 1.442695, %v1728_v53  ;;  %20495 = vst [vmem:[#allocation34_spill] sm:$0xff] %v17722_v2  ;;  %v2281_v46 = vsel %vm1561_vm12, %v17640_v36, %v12758_v42  ;;  %v17742_v4 = vpop.f32.mrb[28].mxu1 }
 0x214   : > { %v1147_v24 = vpop.f32.mrb[36].mxu0  ;;  %v1964_v36 = vmul.f32 1.442695, %v1723_v43  ;;  %20496 = vst [vmem:[#allocation35_spill] sm:$0xff] %v17742_v4  ;;  %v17746_v43 = vpop.f32.mrb[29].mxu1  ;;  %vm1584_vm3 = vcmp.gt.f32.partialorder %v17697_v56, 0.0  ;;  %v17825_v25 = vadd.f32 %v17494_v32, %v17586_v62 }
 0x215   : > { %v16397_v28 = vpop.eup %16396  ;;  %v17727_v7 = vadd.f32 %v1147_v24, %v17432_v22  ;;  %v1149_v50 = vpop.f32.mrb[37].mxu0  ;;  %16406 = vpow2.f32 %v1974_v11  ;;  %v2383_v24 = vpack.c.bf16 %v2281_v46, %v2275_v57  ;;  %v1976_v11 = vmul.f32 1.442695, %v1729_v47  ;;  %20497 = vst [vmem:[#allocation36_spill] sm:$0xff] %v17746_v43 }
 0x216   : > { %v1151_v45 = vpop.f32.mrb[38].mxu0  ;;  %v16399_v53 = vpop.eup %16398  ;;  %v12763_v29 = vadd.f32 -1.0, %v16397_v28  ;;  %16408 = vpow2.f32 %v17667_v49  ;;  %v17740_v0 = vadd.f32 %v1149_v50, %v17437_v23  ;;  %v1634_v57 = vmin.f32 %v17712_v39, 0.0 }
 0x217   : > { %v1734_v9 = vmin.f32 %v17727_v7, 0.0  ;;  %v17735_v26 = vadd.f32 %v1151_v45, %v17432_v22  ;;  %v1153_v21 = vpop.f32.mrb[39].mxu0  ;;  %v16401_v20 = vpop.eup %16400  ;;  %2711 = vmatprep.subr.bf16.mxu1 %v2383_v24  ;;  %v12764_v45 = vadd.f32 -1.0, %v16399_v53  ;;  %16410 = vpow2.f32 %v1776_v35 }
 0x218   : > { %v12769_v42 = vadd.f32 -1.0, %v16401_v20  ;;  %v16403_v28 = vpop.eup %16402  ;;  %2712 = vmatpush1.bf16.msra.mxu1 %v2382_v34  ;;  %v2286_v20 = vsel %vm1566_vm14, %v17652_v48, %v12763_v29  ;;  %v17754_v50 = vpop.f32.mrb[30].mxu1  ;;  %v1735_v48 = vmin.f32 %v17740_v0, 0.0  ;;  %vm1484_vm4 = vcmp.gt.f32.partialorder %v17592_v12, 0.0 }
 0x219   : > { %v1986_v2 = vmul.f32 1.442695, %v1734_v9  ;;  %v1740_v46 = vmin.f32 %v17735_v26, 0.0  ;;  %v12770_v47 = vadd.f32 -1.0, %v16403_v28  ;;  %20498 = vst [vmem:[#allocation37_spill] sm:$0xff] %v17754_v50  ;;  %v17757_v9 = vpop.f32.mrb[31].mxu1 }
 0x21a   : > { %v2292_v49 = vsel %vm1572_vm0, %v17663_v17, %v12769_v42  ;;  %20499 = vst [vmem:[#allocation38_spill] sm:$0xff] %v17757_v9  ;;  %v17765_v42 = vadd.f32 %v1153_v21, %v17437_v23  ;;  %vm1490_vm5 = vcmp.gt.f32.partialorder %v17712_v39, 0.0  ;;  %vm1579_vm6 = vcmp.gt.f32.partialorder %v17700_v59, 0.0 }
 0x21b   : > { %16412 = vpow2.f32 %v1986_v2  ;;  %v2388_v53 = vpack.c.bf16 %v2292_v49, %v2286_v20  ;;  %v1998_v35 = vmul.f32 1.442695, %v1740_v46  ;;  %v2293_v2 = vsel %vm1573_vm1, %v17676_v41, %v12770_v47 }
 0x21c   : > { %16414 = vpow2.f32 %v1964_v36  ;;  %v1157_v34 = vpop.f32.mrb[40].mxu0  ;;  %v2287_v36 = vsel %vm1567_vm15, %v17659_v10, %v12764_v45  ;;  %v1786_v46 = vmul.f32 1.442695, %v1634_v57  ;;  %v583_v10 = vsub.s32 4, %v17423_v18  ;;  %v17779_v45 = vpop.f32.mrb[32].mxu1 }
 0x21d   : > { %v16405_v24 = vpop.eup %16404  ;;  %16416 = vpow2.f32 %v1976_v11  ;;  %v17761_v29 = vadd.f32 %v1157_v34, %v17432_v22  ;;  %v1159_v17 = vpop.f32.mrb[41].mxu0  ;;  %v2389_v34 = vpack.c.bf16 %v2293_v2, %v2287_v36  ;;  %20500 = vst [vmem:[#allocation39_spill] sm:$0xff] %v17779_v45  ;;  %vm1590_vm7 = vcmp.gt.f32.partialorder %v17727_v7, 0.0 }
 0x21e   : > { %16418 = vpow2.f32 %v1998_v35  ;;  %v1161_v28 = vpop.f32.mrb[42].mxu0  ;;  %v12775_v20 = vadd.f32 -1.0, %v16405_v24  ;;  %v17775_v41 = vadd.f32 %v1159_v17, %v17437_v23  ;;  %v1741_v35 = vmin.f32 %v17765_v42, 0.0  ;;  %v17784_v17 = vpop.f32.mrb[33].mxu1 }
 0x21f   : > { %v1746_v11 = vmin.f32 %v17761_v29, 0.0  ;;  %v17772_v49 = vadd.f32 %v1161_v28, %v17432_v22  ;;  %v1163_v9 = vpop.f32.mrb[43].mxu0  ;;  %v16407_v50 = vpop.eup %16406  ;;  %2713 = vmatprep.subr.bf16.mxu1 %v2389_v34  ;;  %16420 = vpow2.f32 %v1786_v46  ;;  %20501 = vst [vmem:[#allocation40_spill] sm:$0xff] %v17784_v17  ;;  %v1988_v28 = vmul.f32 1.442695, %v1735_v48 }
 0x220   : > { %v12781_v21 = vadd.f32 -1.0, %v16407_v50  ;;  %v16409_v57 = vpop.eup %16408  ;;  %2714 = vmatpush1.bf16.msra.mxu1 %v2388_v53  ;;  %v17787_v2 = vsel %vm1578_vm2, %v17691_v8, %v12775_v20  ;;  %v17792_v36 = vpop.f32.mrb[34].mxu1  ;;  %v1747_v45 = vmin.f32 %v17775_v41, 0.0  ;;  %v17812_v17 = vadd.f32 %v17514_v55, %v17565_v3 }
 0x221   : > { %v2010_v47 = vmul.f32 1.442695, %v1746_v11  ;;  %v1752_v24 = vmin.f32 %v17772_v49, 0.0  ;;  %20502 = vst [vmem:[#allocation41_spill] sm:$0xff] %v17792_v36  ;;  %v16411_v11 = vpop.eup %16410  ;;  %v17798_v43 = vpop.f32.mrb[35].mxu1  ;;  %vm1596_vm8 = vcmp.gt.f32.partialorder %v17735_v26, 0.0 }
 0x222   : > { %v17790_v50 = vsel %vm1584_vm3, %v17697_v56, %v12781_v21  ;;  %20503 = vst [vmem:[#allocation42_spill] sm:$0xff] %v17798_v43  ;;  %v12681_v56 = vadd.f32 -1.0, %v16409_v57  ;;  %v17804_v21 = vld [vmem:[#allocation5] sm:$0x3f]  ;;  %v1640_v5 = vmin.f32 %v17812_v17, 0.0  ;;  %vm1585_vm9 = vcmp.gt.f32.partialorder %v17708_v31, 0.0 }
 0x223   : > { %16422 = vpow2.f32 %v2010_v47  ;;  %v2022_v46 = vmul.f32 1.442695, %v1752_v24  ;;  %v17807_v47 = vrot.slane %v17804_v21, %v583_v10  ;;  %v2000_v24 = vmul.f32 1.442695, %v1741_v35 }
 0x224   : > { %v1167_v53 = vpop.f32.mrb[44].mxu0  ;;  %v2012_v35 = vmul.f32 1.442695, %v1747_v45  ;;  %vm1602_vm10 = vcmp.gt.f32.partialorder %v17761_v29, 0.0  ;;  %vm1608_vm11 = vcmp.gt.f32.partialorder %v17772_v49, 0.0  ;;  %vm1591_vm12 = vcmp.gt.f32.partialorder %v17740_v0, 0.0 }
 0x225   : > { %v16413_v8 = vpop.eup %16412  ;;  %v17802_v48 = vadd.f32 %v1167_v53, %v17432_v22  ;;  %v1169_v20 = vpop.f32.mrb[45].mxu0  ;;  %16424 = vpow2.f32 %v2022_v46  ;;  %v17821_v46 = vadd.f32 %v1163_v9, %v17437_v23  ;;  %vm1597_vm13 = vcmp.gt.f32.partialorder %v17765_v42, 0.0 }
 0x226   : > { %v16415_v34 = vpop.eup %16414  ;;  %v1171_v43 = vpop.f32.mrb[46].mxu0  ;;  %v12787_v53 = vadd.f32 -1.0, %v16413_v8  ;;  %16426 = vpow2.f32 %v1988_v28  ;;  %vm1496_vm15 = vcmp.gt.f32.partialorder %v17812_v17, 0.0  ;;  %vm1603_vm3 = vcmp.gt.f32.partialorder %v17775_v41, 0.0 }
 0x227   : > { %v16417_v57 = vpop.eup %16416  ;;  %v1758_v36 = vmin.f32 %v17802_v48, 0.0  ;;  %v17817_v10 = vpop.f32.mrb[47].mxu0  ;;  %v12776_v55 = vadd.f32 -1.0, %v16415_v34  ;;  %16428 = vpow2.f32 %v2000_v24  ;;  %v17831_v28 = vadd.f32 %v1171_v43, %v17432_v22 }
 0x228   : > { %v16419_v4 = vpop.eup %16418  ;;  %v17827_v8 = vpop.f32.mrb[36].mxu1  ;;  %v12782_v15 = vadd.f32 -1.0, %v16417_v57  ;;  %v17848_v43 = vadd.f32 -1.0, %v16411_v11  ;;  %v1753_v34 = vmin.f32 %v17821_v46, 0.0  ;;  %v1635_v11 = vmin.f32 %v17825_v25, 0.0 }
 0x229   : > { %v12793_v14 = vadd.f32 -1.0, %v16419_v4  ;;  %v2034_v63 = vmul.f32 1.442695, %v1758_v36  ;;  %20504 = vst [vmem:[#allocation43_spill] sm:$0xff] %v17827_v8  ;;  %v17833_v45 = vpop.f32.mrb[37].mxu1  ;;  %v17839_v4 = vsel %vm1590_vm7, %v17727_v7, %v12787_v53  ;;  %v16421_v36 = vpop.eup %16420  ;;  %v1764_v24 = vmin.f32 %v17831_v28, 0.0 }
 0x22a   : > { %20505 = vst [vmem:[#allocation44_spill] sm:$0xff] %v17833_v45  ;;  %v17844_v9 = vpop.f32.mrb[38].mxu1  ;;  %vm1614_vm14 = vcmp.gt.f32.partialorder %v17802_v48, 0.0  ;;  %vm1620_vm0 = vcmp.gt.f32.partialorder %v17831_v28, 0.0  ;;  %vm1609_vm1 = vcmp.gt.f32.partialorder %v17821_v46, 0.0 }
 0x22b   : > { %v17842_v32 = vsel %vm1596_vm8, %v17735_v26, %v12793_v14  ;;  %16430 = vpow2.f32 %v2034_v63  ;;  %20506 = vst [vmem:[#allocation45_spill] sm:$0xff] %v17844_v9  ;;  %v17852_v45 = vpop.f32.mrb[39].mxu1  ;;  %v17857_v26 = vsel %vm1484_vm4, %v17592_v12, %v12681_v56  ;;  %v12687_v63 = vadd.f32 -1.0, %v16421_v36 }
 0x22c   : > { %v1363_v57 = vpop.f32.mrb[48].mxu0  ;;  %20507 = vst [vmem:[#allocation46_spill] sm:$0xff] %v17852_v45  ;;  %16432 = vpow2.f32 %v2012_v35  ;;  %v1798_v14 = vmul.f32 1.442695, %v1640_v5  ;;  %v2046_v22 = vmul.f32 1.442695, %v1764_v24  ;;  %v2299_v9 = vsel %vm1579_vm6, %v17700_v59, %v12776_v55 }
 0x22d   : > { %v16423_v7 = vpop.eup %16422  ;;  %v17859_v53 = vpop.f32.mrb[49].mxu0  ;;  %v2305_v35 = vsel %vm1585_vm9, %v17708_v31, %v12782_v15  ;;  %v17873_v12 = vsel %vm1490_vm5, %v17712_v39, %v12687_v63  ;;  %v17876_v5 = vadd.f32 %v1169_v20, %v17437_v23  ;;  %v2024_v59 = vmul.f32 1.442695, %v1753_v34 }
 0x22e   : > { %v17868_v45 = vpop.f32.mrb[50].mxu0  ;;  %v12799_v8 = vadd.f32 -1.0, %v16423_v7  ;;  %v2395_v56 = vpack.c.bf16 %v2305_v35, %v2299_v9  ;;  %16434 = vpow2.f32 %v2046_v22  ;;  %v17886_v39 = vadd.f32 %v17524_v61, %v17586_v62  ;;  %v17888_v20 = vpop.f32.mrb[40].mxu1 }
 0x22f   : > { %v17878_v36 = vpop.f32.mrb[51].mxu0  ;;  %v16425_v24 = vpop.eup %16424  ;;  %16436 = vpow2.f32 %v1798_v14  ;;  %20508 = vst [vmem:[#allocation47_spill] sm:$0xff] %v17888_v20  ;;  %v1788_v9 = vmul.f32 1.442695, %v1635_v11  ;;  %v17892_v34 = vadd.f32 %v17527_v1, %v17565_v3  ;;  %v20509_v22 = vpack.c.bf16 %v17790_v50, %v17787_v2 }
 0x230   : > { %v12805_v31 = vadd.f32 -1.0, %v16425_v24  ;;  %2715 = vmatprep.subr.bf16.mxu1 %v2395_v56  ;;  %v16427_v55 = vpop.eup %16426  ;;  %v17898_v7 = vadd.f32 %v1363_v57, %v17807_v47  ;;  %v17900_v63 = vpop.f32.mrb[41].mxu1  ;;  %v17905_v61 = vsel %vm1602_vm10, %v17761_v29, %v12799_v8  ;;  %v1759_v1 = vmin.f32 %v17876_v5, 0.0 }
 0x231   : > { %2716 = vmatpush1.bf16.msra.mxu1 %v20509_v22  ;;  %20510 = vst [vmem:[#allocation48_spill] sm:$0xff] %v17900_v63  ;;  %v17913_v11 = vadd.f32 %v17548_v37, %v17565_v3  ;;  %v17915_v2 = vpop.f32.mrb[42].mxu1  ;;  %v16429_v50 = vpop.eup %16428  ;;  %16438 = vpow2.f32 %v2024_v59  ;;  %v1646_v29 = vmin.f32 %v17892_v34, 0.0  ;;  %v1641_v37 = vmin.f32 %v17886_v39, 0.0 }
 0x232   : > { %v17908_v14 = vsel %vm1608_vm11, %v17772_v49, %v12805_v31  ;;  %20511 = vst [vmem:[#allocation49_spill] sm:$0xff] %v17915_v2  ;;  %v17921_v49 = vpop.f32.mrb[43].mxu1  ;;  %v20513_v56 = vsub.s32 5, %v17423_v18  ;;  %v12788_v59 = vadd.f32 -1.0, %v16427_v55  ;;  %16440 = vpow2.f32 %v1788_v9 }
 0x233   : > { %20512 = vst [vmem:[#allocation50_spill] sm:$0xff] %v17921_v49  ;;  %v1810_v22 = vmul.f32 1.442695, %v1646_v29  ;;  %v1630_v15 = vmin.f32 %v17898_v7, 0.0  ;;  %v12794_v2 = vadd.f32 -1.0, %v16429_v50  ;;  %v17938_v20 = vadd.f32 %v17817_v10, %v17437_v23 }
 0x234   : > { %v1373_v8 = vpop.f32.mrb[52].mxu0  ;;  %v17929_v24 = vrot.slane %v17804_v21, %v20513_v56  ;;  %v2036_v63 = vmul.f32 1.442695, %v1759_v1  ;;  %v1652_v18 = vmin.f32 %v17913_v11, 0.0  ;;  %v17945_v55 = vadd.f32 %v17530_v6, %v17586_v62  ;;  %v17948_v1 = vpop.f32.mrb[44].mxu1 }
 0x235   : > { %v16431_v35 = vpop.eup %16430  ;;  %v17931_v31 = vpop.f32.mrb[53].mxu0  ;;  %16442 = vpow2.f32 %v1810_v22  ;;  %v1778_v9 = vmul.f32 1.442695, %v1630_v15  ;;  %v1800_v29 = vmul.f32 1.442695, %v1641_v37  ;;  %20514 = vst [vmem:[#allocation51_spill] sm:$0xff] %v17948_v1  ;;  %v17959_v6 = vadd.f32 %v17868_v45, %v17807_v47 }
 0x236   : > { %v17934_v57 = vpop.f32.mrb[54].mxu0  ;;  %v16433_v49 = vpop.eup %16432  ;;  %v12811_v56 = vadd.f32 -1.0, %v16431_v35  ;;  %v1822_v50 = vmul.f32 1.442695, %v1652_v18  ;;  %v17955_v10 = vadd.f32 %v17859_v53, %v17929_v24  ;;  %v1765_v18 = vmin.f32 %v17938_v20, 0.0 }
 0x237   : > { %v17941_v21 = vpop.f32.mrb[55].mxu0  ;;  %v17950_v23 = vadd.f32 -1.0, %v16433_v49  ;;  %v17961_v15 = vpop.f32.mrb[45].mxu1  ;;  %16444 = vpow2.f32 %v1778_v9  ;;  %v2317_v49 = vsel %vm1597_vm13, %v17765_v42, %v12794_v2  ;;  %v1647_v45 = vmin.f32 %v17945_v55, 0.0 }
 0x238   : > { %v16435_v16 = vpop.eup %16434  ;;  %20515 = vst [vmem:[#allocation52_spill] sm:$0xff] %v17961_v15  ;;  %v17967_v22 = vpop.f32.mrb[46].mxu1  ;;  %v17972_v53 = vsel %vm1614_vm14, %v17802_v48, %v12811_v56  ;;  %16446 = vpow2.f32 %v1822_v50  ;;  %v17989_v48 = vadd.f32 %v17556_v44, %v17586_v62  ;;  %v1636_v2 = vmin.f32 %v17959_v6, 0.0 }
 0x239   : > { %v16437_v35 = vpop.eup %16436  ;;  %v12817_v37 = vadd.f32 -1.0, %v16435_v16  ;;  %20516 = vst [vmem:[#allocation53_spill] sm:$0xff] %v17967_v22  ;;  %v2311_v16 = vsel %vm1591_vm12, %v17740_v0, %v12788_v59  ;;  %v17980_v9 = vpop.f32.mrb[47].mxu1  ;;  %v18004_v1 = vadd.f32 %v1373_v8, %v17807_v47  ;;  %16448 = vpow2.f32 %v2036_v63 }
 0x23a   : > { %20517 = vst [vmem:[#allocation54_spill] sm:$0xff] %v17980_v9  ;;  %20518 = vst [vmem:[#allocation55_spill] sm:$0xff] %v17989_v48  ;;  %v2401_v56 = vpack.c.bf16 %v2317_v49, %v2311_v16  ;;  %v12693_v0 = vadd.f32 -1.0, %v16437_v35  ;;  %v1631_v9 = vmin.f32 %v17955_v10, 0.0  ;;  %v1790_v44 = vmul.f32 1.442695, %v1636_v2 }
 0x23b   : > { %v17985_v42 = vsel %vm1620_vm0, %v17831_v28, %v12817_v37  ;;  %v16439_v22 = vpop.eup %16438  ;;  %v17999_v28 = vadd.f32 %v17558_v51, %v17565_v3  ;;  %v18008_v49 = vadd.f32 %v17595_v30, %v17565_v3  ;;  %v2048_v59 = vmul.f32 1.442695, %v1765_v18 }
 0x23c   : > { %v17978_v15 = vpop.f32.mrb[56].mxu0  ;;  %2717 = vmatprep.subr.bf16.mxu1 %v2401_v56  ;;  %v16441_v16 = vpop.eup %16440  ;;  %v18015_v51 = vadd.f32 %v17878_v36, %v17929_v24  ;;  %v20519_v2 = vpack.c.bf16 %v17842_v32, %v17839_v4  ;;  %v12806_v8 = vadd.f32 -1.0, %v16439_v22  ;;  %vm1502_vm2 = vcmp.gt.f32.partialorder %v17892_v34, 0.0 }
 0x23d   : > { %v17992_v50 = vpop.f32.mrb[57].mxu0  ;;  %v1658_v60 = vmin.f32 %v17999_v28, 0.0  ;;  %v1653_v30 = vmin.f32 %v17989_v48, 0.0  ;;  %16450 = vpow2.f32 %v1790_v44  ;;  %v1812_v18 = vmul.f32 1.442695, %v1647_v45 }
 0x23e   : > { %v18001_v37 = vpop.f32.mrb[58].mxu0  ;;  %2718 = vmatpush1.bf16.msra.mxu1 %v20519_v2  ;;  %16452 = vpow2.f32 %v1800_v29  ;;  %v1642_v36 = vmin.f32 %v18004_v1, 0.0  ;;  %vm1485_vm4 = vcmp.gt.f32.partialorder %v17628_v38, 0.0  ;;  %vm1491_vm5 = vcmp.gt.f32.partialorder %v17825_v25, 0.0 }
 0x23f   : > { %v18010_v35 = vpop.f32.mrb[59].mxu0  ;;  %v16443_v63 = vpop.eup %16442  ;;  %v1834_v56 = vmul.f32 1.442695, %v1658_v60  ;;  %v18030_v4 = vsel %vm1496_vm15, %v17812_v17, %v12693_v0  ;;  %v1780_v22 = vmul.f32 1.442695, %v1631_v9  ;;  %v1664_v44 = vmin.f32 %v18008_v49, 0.0 }
 0x240   : > { %v12699_v32 = vadd.f32 -1.0, %v16443_v63  ;;  %v12688_v2 = vadd.f32 -1.0, %v16441_v16  ;;  %v1637_v29 = vmin.f32 %v18015_v51, 0.0  ;;  %v1802_v60 = vmul.f32 1.442695, %v1642_v36 }
 0x241   : > { %16454 = vpow2.f32 %v1834_v56  ;;  %v16445_v27 = vpop.eup %16444  ;;  %vm1486_vm6 = vcmp.gt.f32.partialorder %v17898_v7, 0.0  ;;  %v1824_v17 = vmul.f32 1.442695, %v1653_v30  ;;  %vm1508_vm7 = vcmp.gt.f32.partialorder %v17913_v11, 0.0 }
 0x242   : > { %16456 = vpow2.f32 %v2048_v59  ;;  %v18039_v48 = vsel %vm1502_vm2, %v17892_v34, %v12699_v32  ;;  %v16447_v0 = vpop.eup %16446  ;;  %vm1492_vm8 = vcmp.gt.f32.partialorder %v17959_v6, 0.0  ;;  %v18052_v34 = vadd.f32 %v17567_v54, %v17586_v62 }
 0x243   : > { %16458 = vpow2.f32 %v1812_v18  ;;  %v1846_v63 = vmul.f32 1.442695, %v1664_v44  ;;  %v12683_v56 = vadd.f32 -1.0, %v16445_v27  ;;  %v1792_v36 = vmul.f32 1.442695, %v1637_v29 }
 0x244   : > { %v18034_v45 = vpop.f32.mrb[60].mxu0  ;;  %16460 = vpow2.f32 %v1780_v22  ;;  %v12705_v32 = vadd.f32 -1.0, %v16447_v0  ;;  %v18058_v18 = vadd.f32 %v17931_v31, %v17929_v24  ;;  %v18062_v16 = vadd.f32 %v17934_v57, %v17807_v47  ;;  %v16449_v22 = vpop.eup %16448 }
 0x245   : > { %v18042_v9 = vpop.f32.mrb[61].mxu0  ;;  %16462 = vpow2.f32 %v1802_v60  ;;  %vm1514_vm9 = vcmp.gt.f32.partialorder %v17999_v28, 0.0  ;;  %v18067_v54 = vadd.f32 %v17603_v13, %v17586_v62  ;;  %v2329_v27 = vsel %vm1609_vm1, %v17821_v46, %v12806_v8 }
 0x246   : > { %v18048_v59 = vpop.f32.mrb[62].mxu0  ;;  %16464 = vpow2.f32 %v1824_v17  ;;  %v18074_v44 = vadd.f32 %v17606_v40, %v17565_v3  ;;  %v1659_v29 = vmin.f32 %v18052_v34, 0.0  ;;  %v1648_v57 = vmin.f32 %v18062_v16, 0.0 }
 0x247   : > { %20520 = vst [vmem:[#allocation56_spill] sm:$0xff] %v18048_v59  ;;  %v18054_v30 = vpop.f32.mrb[63].mxu0  ;;  %v16451_v31 = vpop.eup %16450  ;;  %16466 = vpow2.f32 %v1846_v63  ;;  %v2323_v13 = vsel %vm1603_vm3, %v17775_v41, %v17950_v23  ;;  %v18085_v46 = vsel %vm1486_vm6, %v17898_v7, %v12683_v56  ;;  %v18092_v0 = vsel %vm1508_vm7, %v17913_v11, %v12705_v32 }
 0x248   : > { %20521 = vst [vmem:[#allocation57_spill] sm:$0xff] %v18054_v30  ;;  %v16453_v60 = vpop.eup %16452  ;;  %v12689_v8 = vadd.f32 -1.0, %v16451_v31  ;;  %16468 = vpow2.f32 %v1792_v36  ;;  %v2407_v40 = vpack.c.bf16 %v2329_v27, %v2323_v13  ;;  %v1643_v63 = vmin.f32 %v18058_v18, 0.0 }
 0x249   : > { %v1814_v30 = vmul.f32 1.442695, %v1648_v57  ;;  %v1670_v41 = vmin.f32 %v18074_v44, 0.0  ;;  %v1665_v56 = vmin.f32 %v18067_v54, 0.0  ;;  %v2205_v11 = vsel %vm1485_vm4, %v17628_v38, %v17848_v43 }
 0x24a   : > { %v18101_v7 = vsel %vm1492_vm8, %v17959_v6, %v12689_v8  ;;  %2719 = vmatprep.subr.bf16.mxu1 %v2407_v40  ;;  %v2211_v36 = vsel %vm1491_vm5, %v17825_v25, %v12688_v2  ;;  %v20522_v13 = vpack.c.bf16 %v17908_v14, %v17905_v61  ;;  %vm1615_vm10 = vcmp.gt.f32.partialorder %v17876_v5, 0.0 }
 0x24b   : > { %v16455_v59 = vpop.eup %16454  ;;  %16470 = vpow2.f32 %v1814_v30  ;;  %v1858_v57 = vmul.f32 1.442695, %v1670_v41  ;;  %v1836_v43 = vmul.f32 1.442695, %v1659_v29  ;;  %v2349_v25 = vpack.c.bf16 %v2211_v36, %v2205_v11 }
 0x24c   : > { %v18087_v17 = vpop.f32.mrb[64].mxu0  ;;  %v16457_v27 = vpop.eup %16456  ;;  %v12711_v6 = vadd.f32 -1.0, %v16455_v59  ;;  %2720 = vmatpush1.bf16.msra.mxu1 %v20522_v13  ;;  %vm1621_vm11 = vcmp.gt.f32.partialorder %v17938_v20, 0.0  ;;  %v18129_v61 = vadd.f32 %v17978_v15, %v17807_v47  ;;  %v12812_v30 = vadd.f32 -1.0, %v16449_v22 }
 0x24d   : > { %v18096_v23 = vpop.f32.mrb[65].mxu0  ;;  %v16459_v38 = vpop.eup %16458  ;;  %16472 = vpow2.f32 %v1858_v57  ;;  %v1804_v29 = vmul.f32 1.442695, %v1643_v63  ;;  %2932 = vmatprep.subr.bf16.mxu0 %v2349_v25  ;;  %vm1497_vm12 = vcmp.gt.f32.partialorder %v17886_v39, 0.0  ;;  %v18134_v11 = vadd.f32 -1.0, %v16453_v60 }
 0x24e   : > { %v18111_v32 = vpop.f32.mrb[66].mxu0  ;;  %v16461_v2 = vpop.eup %16460  ;;  %v18125_v59 = vsel %vm1514_vm9, %v17999_v28, %v12711_v6  ;;  %v1848_v36 = vmul.f32 1.442695, %v1665_v56  ;;  %v18138_v28 = vadd.f32 %v17941_v21, %v17929_v24  ;;  %v20523_v15 = vpack.c.bf16 %v17873_v12, %v17857_v26 }
 0x24f   : > { %v18118_v8 = vpop.f32.mrb[67].mxu0  ;;  %v16463_v14 = vpop.eup %16462  ;;  %v1654_v22 = vmin.f32 %v18129_v61, 0.0  ;;  %v12818_v6 = vadd.f32 -1.0, %v16457_v27  ;;  %vm1503_vm13 = vcmp.gt.f32.partialorder %v17945_v55, 0.0  ;;  %16474 = vpow2.f32 %v1836_v43 }
 0x250   : > { %v16465_v41 = vpop.eup %16464  ;;  %2933 = vmatpush1.bf16.msra.mxu0 %v20523_v15  ;;  %vm1498_vm14 = vcmp.gt.f32.partialorder %v18004_v1, 0.0  ;;  %v18148_v60 = vadd.f32 %v17634_v19, %v17565_v3  ;;  %v12695_v56 = vadd.f32 -1.0, %v16463_v14  ;;  %vm1520_vm15 = vcmp.gt.f32.partialorder %v18008_v49, 0.0 }
 0x251   : > { %v16467_v21 = vpop.eup %16466  ;;  %v1826_v26 = vmul.f32 1.442695, %v1654_v22  ;;  %v18155_v12 = vadd.f32 %v18001_v37, %v17807_v47  ;;  %v12700_v13 = vadd.f32 -1.0, %v16459_v38  ;;  %v18159_v43 = vadd.f32 -1.0, %v16461_v2 }
 0x252   : > { %v16469_v57 = vpop.eup %16468  ;;  %16476 = vpow2.f32 %v1804_v29  ;;  %v1676_v19 = vmin.f32 %v18148_v60, 0.0  ;;  %v18164_v15 = vadd.f32 -1.0, %v16465_v41  ;;  %vm1504_vm0 = vcmp.gt.f32.partialorder %v18062_v16, 0.0 }
 0x253   : > { %16478 = vpow2.f32 %v1848_v36  ;;  %v1649_v14 = vmin.f32 %v18138_v28, 0.0  ;;  %v12717_v22 = vadd.f32 -1.0, %v16467_v21  ;;  %v18172_v38 = vadd.f32 %v17610_v58, %v17586_v62 }
 0x254   : > { %v18150_v63 = vpop.f32.mrb[68].mxu0  ;;  %16480 = vpow2.f32 %v1826_v26  ;;  %v1870_v2 = vmul.f32 1.442695, %v1676_v19  ;;  %v18177_v41 = vsel %vm1498_vm14, %v18004_v1, %v12695_v56  ;;  %v18181_v36 = vadd.f32 %v17992_v50, %v17929_v24 }
 0x255   : > { %v18157_v27 = vpop.f32.mrb[69].mxu0  ;;  %v16471_v29 = vpop.eup %16470  ;;  %v1660_v40 = vmin.f32 %v18155_v12, 0.0  ;;  %v2335_v21 = vsel %vm1615_vm10, %v17876_v5, %v12812_v30  ;;  %v2341_v26 = vsel %vm1621_vm11, %v17938_v20, %v12818_v6  ;;  %v18192_v1 = vadd.f32 %v17645_v52, %v17565_v3  ;;  %v14810_v5 = vld [vmem:[%s20396_s3 + $0x4] ss:$8 sps:$4 sm:$0xff]  }
 0x256   : > { %v18162_v25 = vpop.f32.mrb[70].mxu0  ;;  %v12701_v58 = vadd.f32 -1.0, %v16471_v29  ;;  %16482 = vpow2.f32 %v1870_v2  ;;  %v18194_v19 = vadd.f32 -1.0, %v16469_v57  ;;  %vm1526_vm1 = vcmp.gt.f32.partialorder %v18074_v44, 0.0 }
 0x257   : > { %v18168_v37 = vpop.f32.mrb[71].mxu0  ;;  %v16473_v56 = vpop.eup %16472  ;;  %v1838_v50 = vmul.f32 1.442695, %v1660_v40  ;;  %v2413_v31 = vpack.c.bf16 %v2341_v26, %v2335_v21  ;;  %v18203_v30 = vsel %vm1520_vm15, %v18008_v49, %v12717_v22  ;;  %v1671_v6 = vmin.f32 %v18172_v38, 0.0  ;;  %v14808_v40 = vld [vmem:[%s20396_s3] ss:$8 sps:$4 sm:$0xff]  }
 0x258   : > { %v18208_v52 = vsel %vm1504_vm0, %v18062_v16, %v12701_v58  ;;  %v12723_v20 = vadd.f32 -1.0, %v16473_v56  ;;  %v1655_v49 = vmin.f32 %v18181_v36, 0.0  ;;  %v1682_v22 = vmin.f32 %v18192_v1, 0.0  ;;  %v14811_v16 = vld [vmem:[%s20396_s3 + $0x14] ss:$8 sps:$4 sm:$0xff]  }
 0x259   : > { %16484 = vpow2.f32 %v1838_v50  ;;  %2721 = vmatprep.subr.bf16.mxu1 %v2413_v31  ;;  %v16475_v21 = vpop.eup %16474  ;;  %vm1487_vm2 = vcmp.gt.f32.partialorder %v17955_v10, 0.0  ;;  %vm1493_vm3 = vcmp.gt.f32.partialorder %v18015_v51, 0.0  ;;  %v1816_v26 = vmul.f32 1.442695, %v1649_v14 }
 0x25a   : > { %v18230_v58 = vsel %vm1526_vm1, %v18074_v44, %v12723_v20  ;;  %v18234_v31 = vadd.f32 %v17642_v33, %v17586_v62  ;;  %v20526_v56 = vpack.c.bf16 %v17985_v42, %v17972_v53  ;;  %v2217_v50 = vsel %vm1497_vm12, %v17886_v39, %v18134_v11 }
 0x25b   : > { %v1882_v20 = vmul.f32 1.442695, %v1682_v22  ;;  %v18249_v14 = vadd.f32 %v18010_v35, %v17929_v24  ;;  %v2223_v33 = vsel %vm1503_vm13, %v17945_v55, %v12700_v13  ;;  %vm2638_vm4 = vcmask 523264   ;;  %v20529_v22 = vld [vmem:[#allocation55_spill] sm:$0xff] }
 0x25c   : > { %v18214_v57 = vpop.f32.mrb[72].mxu0  ;;  %2722 = vmatpush1.bf16.msra.mxu1 %v20526_v56  ;;  %v16477_v42 = vpop.eup %16476  ;;  %v1860_v56 = vmul.f32 1.442695, %v1671_v6  ;;  %v18258_v39 = vadd.f32 %v18034_v45, %v17807_v47  ;;  %vm1509_vm5 = vcmp.gt.f32.partialorder %v20529_v22, 0.0  ;;  %v18261_v44 = vadd.f32 -1.0, %v16475_v21  ;;  %12863 = vmatprep.mubr.msk.bf16.mxu1 %vm2638_vm4, %v14810_v5  ;;  %v20530_v55 = vld [vmem:[#allocation27_spill] sm:$0xff] }
 0x25d   : > { %20524 = vst [vmem:[#allocation58_spill] sm:$0xff] %v18214_v57  ;;  %v18223_v29 = vpop.f32.mrb[73].mxu0  ;;  %v16479_v11 = vpop.eup %16478  ;;  %v1828_v35 = vmul.f32 1.442695, %v1655_v49  ;;  %16486 = vpow2.f32 %v1882_v20  ;;  %v18266_v13 = vadd.f32 %v20530_v55, %v17565_v3  ;;  %12883 = vmatprep.mubr.msk.bf16.mxu0 %vm2638_vm4, %v14810_v5  ;;  %vm1515_vm6 = vcmp.gt.f32.partialorder %v18052_v34, 0.0  ;;  %v20531_v21 = vld [vmem:[#allocation26_spill] sm:$0xff] }
 0x25e   : > { %20525 = vst [vmem:[#allocation59_spill] sm:$0xff] %v18223_v29  ;;  %v18243_v2 = vpop.f32.mrb[74].mxu0  ;;  %v2355_v29 = vpack.c.bf16 %v2223_v33, %v2217_v50  ;;  %v16481_v6 = vpop.eup %16480  ;;  %16488 = vpow2.f32 %v1816_v26  ;;  %v1677_v45 = vmin.f32 %v18234_v31, 0.0  ;;  %v18273_v50 = vadd.f32 %v20531_v21, %v17586_v62  ;;  %v14813_v21 = vld [vmem:[%s20396_s3 + $0x10] ss:$8 sps:$4 sm:$0xff]  }
 0x25f   : > { %20527 = vst [vmem:[#allocation60_spill] sm:$0xff] %v18243_v2  ;;  %v18254_v53 = vpop.f32.mrb[75].mxu0  ;;  %2732 = vmatmul.mubr.bf16.vlgmr.msra.gmra.mrb[48].mxu1 %v14808_v40  ;;  %v1666_v49 = vmin.f32 %v18258_v39, 0.0  ;;  %vm1510_vm7 = vcmp.gt.f32.partialorder %v18129_v61, 0.0  ;;  %vm1532_vm8 = vcmp.gt.f32.partialorder %v18148_v60, 0.0  ;;  %v1661_v5 = vmin.f32 %v18249_v14, 0.0 }
 0x260   : > { %20528 = vst [vmem:[#allocation61_spill] sm:$0xff] %v18254_v53  ;;  %2934 = vmatprep.subr.bf16.mxu0 %v2355_v29  ;;  %v20532_v20 = vpack.c.bf16 %v18039_v48, %v18030_v4  ;;  %v1688_v26 = vmin.f32 %v18266_v13, 0.0  ;;  %12864 = vmatprep.mubr.msk.bf16.mxu1 %vm2638_vm4, %v14811_v16  ;;  %v16483_v29 = vpop.eup %16482  ;;  %16490 = vpow2.f32 %v1860_v56  ;;  %v12707_v33 = vadd.f32 -1.0, %v16481_v6  ;;  %v20534_v16 = vld [vmem:[#allocation56_spill] sm:$0xff] }
 0x261   : > { %v1850_v40 = vmul.f32 1.442695, %v1666_v49  ;;  %v18286_v55 = vadd.f32 %v18042_v9, %v17929_v24  ;;  %v18293_v48 = vadd.f32 -1.0, %v16477_v42  ;;  %16492 = vpow2.f32 %v1828_v35  ;;  %v14814_v56 = vld [vmem:[%s20396_s3 + $0x24] ss:$8 sps:$4 sm:$0xff]  }
 0x262   : > { %2935 = vmatpush1.bf16.msra.mxu0 %v20532_v20  ;;  %v1894_v4 = vmul.f32 1.442695, %v1688_v26  ;;  %v18297_v20 = vadd.f32 %v20534_v16, %v17807_v47  ;;  %v18304_v6 = vadd.f32 -1.0, %v16479_v11  ;;  %v1872_v49 = vmul.f32 1.442695, %v1677_v45 }
 0x263   : > { %v1683_v2 = vmin.f32 %v18273_v50, 0.0  ;;  %16494 = vpow2.f32 %v1850_v40  ;;  %v16485_v35 = vpop.eup %16484  ;;  %v12729_v26 = vadd.f32 -1.0, %v16483_v29  ;;  %vm1516_vm9 = vcmp.gt.f32.partialorder %v18155_v12, 0.0  ;;  %v20537_v40 = vld [vmem:[#allocation28_spill] sm:$0xff] }
 0x264   : > { %v18291_v53 = vpop.f32.mrb[76].mxu0  ;;  %v1840_v16 = vmul.f32 1.442695, %v1661_v5  ;;  %16496 = vpow2.f32 %v1894_v4  ;;  %v12713_v11 = vadd.f32 -1.0, %v16485_v35  ;;  %v1667_v45 = vmin.f32 %v18286_v55, 0.0 }
 0x265   : > { %20533 = vst [vmem:[#allocation55_spill] sm:$0xff] %v18291_v53  ;;  %v18302_v9 = vpop.f32.mrb[77].mxu0  ;;  %v18320_v57 = vadd.f32 %v20537_v40, %v17586_v62  ;;  %v1672_v29 = vmin.f32 %v18297_v20, 0.0  ;;  %v2207_v5 = vsel %vm1487_vm2, %v17955_v10, %v18159_v43  ;;  %vm1499_vm10 = vcmp.gt.f32.partialorder %v18058_v18, 0.0 }
 0x266   : > { %20535 = vst [vmem:[#allocation27_spill] sm:$0xff] %v18302_v9  ;;  %v18307_v42 = vpop.f32.mrb[78].mxu0  ;;  %v18315_v9 = vsel %vm1510_vm7, %v18129_v61, %v12707_v33  ;;  %v2213_v61 = vsel %vm1493_vm3, %v18015_v51, %v18194_v19  ;;  %v20538_v33 = vld [vmem:[#allocation29_spill] sm:$0xff]  ;;  %v18337_v35 = vsel %vm1516_vm9, %v18155_v12, %v12713_v11  ;;  %vm1538_vm11 = vcmp.gt.f32.partialorder %v18192_v1, 0.0 }
 0x267   : > { %v18310_v53 = vpop.f32.mrb[79].mxu0  ;;  %v18333_v4 = vadd.f32 %v20538_v33, %v17565_v3  ;;  %v1884_v40 = vmul.f32 1.442695, %v1683_v2  ;;  %2742 = vmatmul.mubr.bf16.gmra.mrb[52].mxu1 %v14813_v21  ;;  %v16487_v10 = vpop.eup %16486  ;;  %v18343_v43 = vsel %vm1532_vm8, %v18148_v60, %v12729_v26  ;;  %v1862_v19 = vmul.f32 1.442695, %v1672_v29  ;;  %v20539_v11 = vld [vmem:[#allocation57_spill] sm:$0xff] }
 0x268   : > { %20536 = vst [vmem:[#allocation26_spill] sm:$0xff] %v18310_v53  ;;  %v2351_v53 = vpack.c.bf16 %v2213_v61, %v2207_v5  ;;  %12865 = vmatprep.mubr.msk.bf16.mxu1 %vm2638_vm4, %v14814_v56  ;;  %v16489_v12 = vpop.eup %16488  ;;  %vm1505_vm12 = vcmp.gt.f32.partialorder %v18138_v28, 0.0  ;;  %v12735_v2 = vadd.f32 -1.0, %v16487_v10  ;;  %v1689_v21 = vmin.f32 %v18320_v57, 0.0  ;;  %v14816_v56 = vld [vmem:[%s20396_s3 + $0x20] ss:$8 sps:$4 sm:$0xff]  }
 0x269   : > { %v1694_v33 = vmin.f32 %v18333_v4, 0.0  ;;  %v18353_v5 = vadd.f32 %v20539_v11, %v17929_v24  ;;  %v2229_v60 = vsel %vm1509_vm5, %v20529_v22, %v18164_v15  ;;  %v1852_v29 = vmul.f32 1.442695, %v1667_v45  ;;  %v14817_v15 = vld [vmem:[%s20396_s3 + $0x34] ss:$8 sps:$4 sm:$0xff]  }
 0x26a   : > { %3165 = vmatprep.subr.bf16.mxu1 %v2351_v53  ;;  %16498 = vpow2.f32 %v1862_v19  ;;  %v2235_v53 = vsel %vm1515_vm6, %v18052_v34, %v18261_v44  ;;  %v20540_v10 = vpack.c.bf16 %v18101_v7, %v18085_v46  ;;  %v16491_v11 = vpop.eup %16490  ;;  %vm1521_vm13 = vcmp.gt.f32.partialorder %v18067_v54, 0.0 }
 0x26b   : > { %v1906_v61 = vmul.f32 1.442695, %v1694_v33  ;;  %v18380_v45 = vsel %vm1538_vm11, %v18192_v1, %v12735_v2  ;;  %16500 = vpow2.f32 %v1840_v16  ;;  %v1673_v34 = vmin.f32 %v18353_v5, 0.0  ;;  %v16493_v7 = vpop.eup %16492  ;;  %v20543_v33 = vld [vmem:[#allocation30_spill] sm:$0xff]  ;;  %v20544_v1 = vld [vmem:[#allocation31_spill] sm:$0xff] }
 0x26c   : > { %v18362_v26 = vpop.f32.mrb[80].mxu0  ;;  %3166 = vmatpush1.bf16.msra.mxu1 %v20540_v10  ;;  %v2361_v44 = vpack.c.bf16 %v2235_v53, %v2229_v60  ;;  %vm1527_vm14 = vcmp.gt.f32.partialorder %v18172_v38, 0.0  ;;  %v18390_v10 = vadd.f32 %v20543_v33, %v17586_v62  ;;  %v18394_v2 = vadd.f32 %v20544_v1, %v17565_v3 }
 0x26d   : > { %v18374_v22 = vpop.f32.mrb[81].mxu0  ;;  %16502 = vpow2.f32 %v1906_v61  ;;  %v16495_v60 = vpop.eup %16494  ;;  %v12702_v53 = vadd.f32 -1.0, %v16489_v12  ;;  %v1896_v51 = vmul.f32 1.442695, %v1689_v21  ;;  %v12724_v19 = vadd.f32 -1.0, %v16491_v11 }
 0x26e   : > { %20541 = vst [vmem:[#allocation56_spill] sm:$0xff] %v18374_v22  ;;  %v18383_v46 = vpop.f32.mrb[82].mxu0  ;;  %16504 = vpow2.f32 %v1872_v49  ;;  %2936 = vmatprep.subr.bf16.mxu0 %v2361_v44  ;;  %v16497_v61 = vpop.eup %16496  ;;  %v1864_v33 = vmul.f32 1.442695, %v1673_v34  ;;  %v1695_v22 = vmin.f32 %v18390_v10, 0.0  ;;  %v20545_v1 = vpack.c.bf16 %v18125_v59, %v18092_v0  ;;  %v20546_v59 = vld [vmem:[#allocation32_spill] sm:$0xff] }
 0x26f   : > { %20542 = vst [vmem:[#allocation28_spill] sm:$0xff] %v18383_v46  ;;  %v18396_v16 = vpop.f32.mrb[83].mxu0  ;;  %v18400_v46 = vadd.f32 %v18087_v17, %v17807_v47  ;;  %16506 = vpow2.f32 %v1884_v40  ;;  %vm1522_vm15 = vcmp.gt.f32.partialorder %v18258_v39, 0.0  ;;  %vm1544_vm0 = vcmp.gt.f32.partialorder %v18266_v13, 0.0  ;;  %2752 = vmatmul.mubr.bf16.gmra.mrb[56].mxu1 %v14816_v56  ;;  %v14819_v56 = vld [vmem:[%s20396_s3 + $0x30] ss:$8 sps:$4 sm:$0xff]  }
 0x270   : > { %2937 = vmatpush1.bf16.msra.mxu0 %v20545_v1  ;;  %v1700_v49 = vmin.f32 %v18394_v2, 0.0  ;;  %v12719_v12 = vadd.f32 -1.0, %v16495_v60  ;;  %v12741_v17 = vadd.f32 -1.0, %v16497_v61  ;;  %16508 = vpow2.f32 %v1852_v29  ;;  %12866 = vmatprep.mubr.msk.bf16.mxu1 %vm2638_vm4, %v14817_v15 }
 0x271   : > { %v1678_v21 = vmin.f32 %v18400_v46, 0.0  ;;  %vm1511_vm1 = vcmp.gt.f32.partialorder %v18181_v36, 0.0  ;;  %16510 = vpow2.f32 %v1896_v51  ;;  %v1908_v40 = vmul.f32 1.442695, %v1695_v22 }
 0x272   : > { %v1918_v0 = vmul.f32 1.442695, %v1700_v49  ;;  %v18414_v11 = vadd.f32 %v20546_v59, %v17586_v62  ;;  %v18421_v29 = vadd.f32 -1.0, %v16493_v7  ;;  %vm1517_vm2 = vcmp.gt.f32.partialorder %v18249_v14, 0.0  ;;  %v14820_v7 = vld [vmem:[%s20396_s3 + $0x44] ss:$8 sps:$4 sm:$0xff]  }
 0x273   : > { %16512 = vpow2.f32 %v1864_v33  ;;  %v1874_v15 = vmul.f32 1.442695, %v1678_v21  ;;  %v2219_v51 = vsel %vm1499_vm10, %v18058_v18, %v18293_v48  ;;  %vm1528_vm3 = vcmp.gt.f32.partialorder %v18297_v20, 0.0  ;;  %v20547_v33 = vld [vmem:[#allocation33_spill] sm:$0xff] }
 0x274   : > { %v18419_v34 = vpop.f32.mrb[84].mxu0  ;;  %vm1550_vm5 = vcmp.gt.f32.partialorder %v18333_v4, 0.0  ;;  %16514 = vpow2.f32 %v1918_v0  ;;  %v18434_v44 = vadd.f32 %v18096_v23, %v17929_v24  ;;  %v16499_v61 = vpop.eup %16498  ;;  %v18444_v18 = vsel %vm1522_vm15, %v18258_v39, %v12719_v12 }
 0x275   : > { %v18428_v22 = vpop.f32.mrb[85].mxu0  ;;  %v18449_v48 = vsel %vm1544_vm0, %v18266_v13, %v12741_v17  ;;  %v2225_v23 = vsel %vm1505_vm12, %v18138_v28, %v12702_v53  ;;  %v18456_v1 = vadd.f32 %v20547_v33, %v17565_v3  ;;  %v16501_v21 = vpop.eup %16500  ;;  %v12725_v0 = vadd.f32 -1.0, %v16499_v61 }
 0x276   : > { %v18439_v60 = vpop.f32.mrb[86].mxu0  ;;  %16516 = vpow2.f32 %v1874_v15  ;;  %v1701_v39 = vmin.f32 %v18414_v11, 0.0  ;;  %v2357_v12 = vpack.c.bf16 %v2225_v23, %v2219_v51  ;;  %vm1533_vm6 = vcmp.gt.f32.partialorder %v18234_v31, 0.0 }
 0x277   : > { %v18458_v49 = vpop.f32.mrb[87].mxu0  ;;  %v16503_v59 = vpop.eup %16502  ;;  %16518 = vpow2.f32 %v1908_v40  ;;  %v1706_v13 = vmin.f32 %v18456_v1, 0.0  ;;  %v18465_v28 = vadd.f32 %v18111_v32, %v17807_v47  ;;  %v2241_v53 = vsel %vm1521_vm13, %v18067_v54, %v18304_v6  ;;  %2762 = vmatmul.mubr.bf16.gmra.mrb[60].mxu1 %v14819_v56  ;;  %v20549_v56 = vld [vmem:[#allocation34_spill] sm:$0xff]  ;;  %v20553_v54 = vld [vmem:[#allocation36_spill] sm:$0xff] }
 0x278   : > { %v16505_v17 = vpop.eup %16504  ;;  %vm1539_vm7 = vcmp.gt.f32.partialorder %v18273_v50, 0.0  ;;  %v18475_v15 = vsel %vm1528_vm3, %v18297_v20, %v12725_v0  ;;  %v12747_v40 = vadd.f32 -1.0, %v16503_v59  ;;  %v1679_v51 = vmin.f32 %v18434_v44, 0.0  ;;  %3167 = vmatprep.subr.bf16.mxu1 %v2357_v12  ;;  %12867 = vmatprep.mubr.msk.bf16.mxu1 %vm2638_vm4, %v14820_v7  ;;  %v14822_v12 = vld [vmem:[%s20396_s3 + $0x40] ss:$8 sps:$4 sm:$0xff]  }
 0x279   : > { %v2247_v32 = vsel %vm1527_vm14, %v18172_v38, %v12724_v19  ;;  %v16507_v61 = vpop.eup %16506  ;;  %v12714_v23 = vadd.f32 -1.0, %v16501_v21  ;;  %v1930_v6 = vmul.f32 1.442695, %v1706_v13  ;;  %v1684_v33 = vmin.f32 %v18465_v28, 0.0 }
 0x27a   : > { %v20548_v20 = vpack.c.bf16 %v18208_v52, %v18177_v41  ;;  %v18491_v0 = vsel %vm1550_vm5, %v18333_v4, %v12747_v40  ;;  %v1920_v38 = vmul.f32 1.442695, %v1701_v39  ;;  %v2367_v19 = vpack.c.bf16 %v2247_v32, %v2241_v53  ;;  %v16509_v41 = vpop.eup %16508  ;;  %v14823_v39 = vld [vmem:[%s20396_s3 + $0x54] ss:$8 sps:$4 sm:$0xff]  }
 0x27b   : > { %v18495_v21 = vadd.f32 %v20549_v56, %v17586_v62  ;;  %16520 = vpow2.f32 %v1930_v6  ;;  %v1886_v7 = vmul.f32 1.442695, %v1684_v33  ;;  %v18506_v4 = vadd.f32 %v18118_v8, %v17929_v24  ;;  %v16511_v53 = vpop.eup %16510  ;;  %v20552_v8 = vld [vmem:[#allocation35_spill] sm:$0xff] }
 0x27c   : > { %3168 = vmatpush1.bf16.msra.mxu1 %v20548_v20  ;;  %v18500_v59 = vpop.f32.mrb[88].mxu0  ;;  %v12730_v40 = vadd.f32 -1.0, %v16505_v17  ;;  %v12736_v32 = vadd.f32 -1.0, %v16507_v61  ;;  %v1876_v20 = vmul.f32 1.442695, %v1679_v51  ;;  %2938 = vmatprep.subr.bf16.mxu0 %v2367_v19  ;;  %v20551_v6 = vpack.c.bf16 %v18230_v58, %v18203_v30 }
 0x27d   : > { %v18511_v13 = vpop.f32.mrb[89].mxu0  ;;  %v16513_v52 = vpop.eup %16512  ;;  %16522 = vpow2.f32 %v1886_v7  ;;  %v18520_v33 = vadd.f32 %v20552_v8, %v17565_v3  ;;  %v2231_v17 = vsel %vm1511_vm1, %v18181_v36, %v18421_v29  ;;  %vm1556_vm8 = vcmp.gt.f32.partialorder %v18394_v2, 0.0 }
 0x27e   : > { %20550 = vst [vmem:[#allocation29_spill] sm:$0xff] %v18511_v13  ;;  %v18513_v56 = vpop.f32.mrb[90].mxu0  ;;  %2939 = vmatpush1.bf16.msra.mxu0 %v20551_v6  ;;  %v18524_v13 = vadd.f32 %v20553_v54, %v17586_v62  ;;  %v16515_v61 = vpop.eup %16514  ;;  %16524 = vpow2.f32 %v1920_v38  ;;  %v1707_v30 = vmin.f32 %v18495_v21, 0.0  ;;  %v2237_v58 = vsel %vm1517_vm2, %v18249_v14, %v12714_v23 }
 0x27f   : > { %v18530_v51 = vpop.f32.mrb[91].mxu0  ;;  %v18537_v19 = vadd.f32 -1.0, %v16509_v41  ;;  %vm1534_vm9 = vcmp.gt.f32.partialorder %v18400_v46, 0.0  ;;  %v1685_v54 = vmin.f32 %v18506_v4, 0.0  ;;  %v1712_v36 = vmin.f32 %v18520_v33, 0.0  ;;  %2772 = vmatmul.mubr.bf16.gmra.mrb[64].mxu1 %v14822_v12 }
 0x280   : > { %v16517_v29 = vpop.eup %16516  ;;  %v18542_v7 = vadd.f32 -1.0, %v16511_v53  ;;  %16526 = vpow2.f32 %v1876_v20  ;;  %vm1562_vm10 = vcmp.gt.f32.partialorder %v18456_v1, 0.0  ;;  %v2363_v38 = vpack.c.bf16 %v2237_v58, %v2231_v17  ;;  %12868 = vmatprep.mubr.msk.bf16.mxu1 %vm2638_vm4, %v14823_v39  ;;  %v20554_v20 = vld [vmem:[#allocation37_spill] sm:$0xff] }
 0x281   : > { %v16519_v6 = vpop.eup %16518  ;;  %v12753_v8 = vadd.f32 -1.0, %v16515_v61  ;;  %vm1540_vm11 = vcmp.gt.f32.partialorder %v18465_v28, 0.0  ;;  %v1942_v14 = vmul.f32 1.442695, %v1712_v36  ;;  %v1713_v23 = vmin.f32 %v18524_v13, 0.0 }
 0x282   : > { %vm1523_vm12 = vcmp.gt.f32.partialorder %v18286_v55, 0.0  ;;  %vm1529_vm13 = vcmp.gt.f32.partialorder %v18353_v5, 0.0  ;;  %v18550_v41 = vadd.f32 -1.0, %v16513_v52  ;;  %v1932_v53 = vmul.f32 1.442695, %v1707_v30  ;;  %3169 = vmatprep.subr.bf16.mxu1 %v2363_v38 }
 0x283   : > { %v18554_v12 = vadd.f32 %v20554_v20, %v17565_v3  ;;  %v2253_v17 = vsel %vm1533_vm6, %v18234_v31, %v12730_v40  ;;  %v14825_v39 = vld [vmem:[%s20396_s3 + $0x50] ss:$8 sps:$4 sm:$0xff]   ;;  %v12731_v58 = vadd.f32 -1.0, %v16517_v29  ;;  %v1888_v36 = vmul.f32 1.442695, %v1685_v54 }
 0x284   : > { %v18562_v61 = vpop.f32.mrb[92].mxu0  ;;  %16528 = vpow2.f32 %v1942_v14  ;;  %v2259_v52 = vsel %vm1539_vm7, %v18273_v50, %v12736_v32  ;;  %v20555_v30 = vpack.c.bf16 %v18337_v35, %v18315_v9  ;;  %v14826_v31 = vld [vmem:[%s20396_s3 + $0x64] ss:$8 sps:$4 sm:$0xff]   ;;  %v18575_v38 = vadd.f32 -1.0, %v16519_v6 }
 0x285   : > { %v18573_v40 = vpop.f32.mrb[93].mxu0  ;;  %v1718_v29 = vmin.f32 %v18554_v12, 0.0  ;;  %v2373_v54 = vpack.c.bf16 %v2259_v52, %v2253_v17  ;;  %v16521_v20 = vpop.eup %16520  ;;  %v18583_v50 = vsel %vm1556_vm8, %v18394_v2, %v12753_v8  ;;  %v1944_v9 = vmul.f32 1.442695, %v1713_v23  ;;  %v20557_v52 = vld [vmem:[#allocation38_spill] sm:$0xff] }
 0x286   : > { %3170 = vmatpush1.bf16.msra.mxu1 %v20555_v30  ;;  %v18578_v14 = vpop.f32.mrb[94].mxu0  ;;  %v18587_v35 = vadd.f32 %v18150_v63, %v17807_v47  ;;  %vm1545_vm14 = vcmp.gt.f32.partialorder %v18320_v57, 0.0  ;;  %vm1551_vm15 = vcmp.gt.f32.partialorder %v18390_v10, 0.0  ;;  %v12759_v6 = vadd.f32 -1.0, %v16521_v20 }
 0x287   : > { %v18589_v32 = vpop.f32.mrb[95].mxu0  ;;  %v1954_v17 = vmul.f32 1.442695, %v1718_v29  ;;  %2940 = vmatprep.subr.bf16.mxu0 %v2373_v54  ;;  %v18595_v30 = vadd.f32 %v20557_v52, %v17586_v62  ;;  %v18599_v2 = vadd.f32 %v18162_v25, %v17807_v47  ;;  %v16523_v8 = vpop.eup %16522  ;;  %v18604_v63 = vsel %vm1534_vm9, %v18400_v46, %v12731_v58  ;;  %v20559_v54 = vld [vmem:[#allocation39_spill] sm:$0xff]  ;;  %2782 = vmatmul.mubr.bf16.gmra.mrb[68].mxu1 %v14825_v39 }
 0x288   : > { %20556 = vst [vmem:[#allocation57_spill] sm:$0xff] %v18589_v32  ;;  %16530 = vpow2.f32 %v1932_v53  ;;  %v20558_v23 = vpack.c.bf16 %v18380_v45, %v18343_v43  ;;  %v1690_v29 = vmin.f32 %v18587_v35, 0.0  ;;  %v18612_v20 = vadd.f32 %v20559_v54, %v17565_v3  ;;  %v16525_v52 = vpop.eup %16524  ;;  %12869 = vmatprep.mubr.msk.bf16.mxu1 %vm2638_vm4, %v14826_v31  ;;  %v14828_v31 = vld [vmem:[%s20396_s3 + $0x60] ss:$8 sps:$4 sm:$0xff]  }
 0x289   : > { %v18617_v25 = vsel %vm1562_vm10, %v18456_v1, %v12759_v6  ;;  %v12737_v32 = vadd.f32 -1.0, %v16523_v8  ;;  %16532 = vpow2.f32 %v1954_v17  ;;  %v18621_v46 = vadd.f32 %v18157_v27, %v17929_v24 }
 0x28a   : > { %2941 = vmatpush1.bf16.msra.mxu0 %v20558_v23  ;;  %16534 = vpow2.f32 %v1888_v36  ;;  %vm1568_vm0 = vcmp.gt.f32.partialorder %v18520_v33, 0.0  ;;  %v1898_v45 = vmul.f32 1.442695, %v1690_v29  ;;  %v16527_v53 = vpop.eup %16526  ;;  %v1719_v27 = vmin.f32 %v18595_v30, 0.0  ;;  %v20560_v29 = vld [vmem:[#allocation40_spill] sm:$0xff] }
 0x28b   : > { %v18630_v1 = vsel %vm1540_vm11, %v18465_v28, %v12737_v32  ;;  %16536 = vpow2.f32 %v1944_v9  ;;  %v1696_v39 = vmin.f32 %v18599_v2, 0.0  ;;  %v18634_v58 = vadd.f32 -1.0, %v16525_v52  ;;  %v14829_v28 = vld [vmem:[%s20396_s3 + $0x74] ss:$8 sps:$4 sm:$0xff]  }
 0x28c   : > { %16538 = vpow2.f32 %v1898_v45  ;;  %v1724_v6 = vmin.f32 %v18612_v20, 0.0  ;;  %v1691_v9 = vmin.f32 %v18621_v46, 0.0  ;;  %v18648_v17 = vadd.f32 %v18168_v37, %v17929_v24 }
 0x28d   : > { %v1910_v32 = vmul.f32 1.442695, %v1696_v39  ;;  %v18652_v54 = vadd.f32 %v20560_v29, %v17586_v62  ;;  %v2243_v52 = vsel %vm1523_vm12, %v18286_v55, %v18537_v19  ;;  %v2249_v45 = vsel %vm1529_vm13, %v18353_v5, %v18550_v41  ;;  %v20561_v19 = vld [vmem:[#allocation41_spill] sm:$0xff] }
 0x28e   : > { %v16529_v8 = vpop.eup %16528  ;;  %v1966_v23 = vmul.f32 1.442695, %v1724_v6  ;;  %v18662_v39 = vadd.f32 -1.0, %v16527_v53  ;;  %v1956_v37 = vmul.f32 1.442695, %v1719_v27  ;;  %vm1557_vm1 = vcmp.gt.f32.partialorder %v18414_v11, 0.0 }
 0x28f   : > { %16540 = vpow2.f32 %v1910_v32  ;;  %v12765_v6 = vadd.f32 -1.0, %v16529_v8  ;;  %vm1574_vm2 = vcmp.gt.f32.partialorder %v18554_v12, 0.0  ;;  %v1697_v29 = vmin.f32 %v18648_v17, 0.0  ;;  %2792 = vmatmul.mubr.bf16.gmra.mrb[72].mxu1 %v14828_v31 }
 0x290   : > { %vm1563_vm3 = vcmp.gt.f32.partialorder %v18495_v21, 0.0  ;;  %v1900_v36 = vmul.f32 1.442695, %v1691_v9  ;;  %16542 = vpow2.f32 %v1966_v23  ;;  %v2369_v55 = vpack.c.bf16 %v2249_v45, %v2243_v52  ;;  %12870 = vmatprep.mubr.msk.bf16.mxu1 %vm2638_vm4, %v14829_v28  ;;  %v14832_v23 = vld [vmem:[%s20396_s3 + $0x84] ss:$8 sps:$4 sm:$0xff]  }
 0x291   : > { %v18670_v43 = vadd.f32 %v20561_v19, %v17565_v3  ;;  %vm1546_vm5 = vcmp.gt.f32.partialorder %v18587_v35, 0.0  ;;  %v1725_v41 = vmin.f32 %v18652_v54, 0.0  ;;  %v2265_v53 = vsel %vm1545_vm14, %v18320_v57, %v18542_v7  ;;  %v14831_v57 = vld [vmem:[%s20396_s3 + $0x70] ss:$8 sps:$4 sm:$0xff]  }
 0x292   : > { %v16531_v5 = vpop.eup %16530  ;;  %v2271_v27 = vsel %vm1551_vm15, %v18390_v10, %v18575_v38  ;;  %vm1535_vm6 = vcmp.gt.f32.partialorder %v18434_v44, 0.0  ;;  %vm1541_vm7 = vcmp.gt.f32.partialorder %v18506_v4, 0.0  ;;  %16544 = vpow2.f32 %v1956_v37  ;;  %3171 = vmatprep.subr.bf16.mxu1 %v2369_v55  ;;  %v20563_v37 = vld [vmem:[#allocation42_spill] sm:$0xff]  ;;  %v20566_v19 = vld [vmem:[#allocation45_spill] sm:$0xff] }
 0x293   : > { %v16533_v9 = vpop.eup %16532  ;;  %vm1552_vm8 = vcmp.gt.f32.partialorder %v18599_v2, 0.0  ;;  %v1730_v31 = vmin.f32 %v18670_v43, 0.0  ;;  %v2379_v32 = vpack.c.bf16 %v2271_v27, %v2265_v53  ;;  %v18693_v10 = vsel %vm1568_vm0, %v18520_v33, %v12765_v6  ;;  %v20564_v33 = vld [vmem:[#allocation43_spill] sm:$0xff]  ;;  %v20567_v27 = vld [vmem:[#allocation58_spill] sm:$0xff] }
 0x294   : > { %v16535_v7 = vpop.eup %16534  ;;  %v12771_v38 = vadd.f32 -1.0, %v16533_v9  ;;  %v1912_v28 = vmul.f32 1.442695, %v1697_v29  ;;  %v20562_v8 = vpack.c.bf16 %v18475_v15, %v18444_v18  ;;  %16546 = vpow2.f32 %v1900_v36 }
 0x295   : > { %v16537_v52 = vpop.eup %16536  ;;  %v1978_v45 = vmul.f32 1.442695, %v1730_v31  ;;  %2942 = vmatprep.subr.bf16.mxu0 %v2379_v32  ;;  %v18703_v55 = vadd.f32 %v20563_v37, %v17586_v62  ;;  %v18707_v6 = vadd.f32 %v20564_v33, %v17565_v3  ;;  %v1968_v15 = vmul.f32 1.442695, %v1725_v41 }
 0x296   : > { %3172 = vmatpush1.bf16.msra.mxu1 %v20562_v8  ;;  %v16539_v29 = vpop.eup %16538  ;;  %v18712_v18 = vsel %vm1574_vm2, %v18554_v12, %v12771_v38  ;;  %v20565_v36 = vpack.c.bf16 %v18491_v0, %v18449_v48  ;;  %v18719_v53 = vadd.f32 %v20566_v19, %v17565_v3  ;;  %v18723_v9 = vadd.f32 %v20567_v27, %v17807_v47  ;;  %v20568_v12 = vld [vmem:[#allocation44_spill] sm:$0xff] }
 0x297   : > { %v2390_v31 = vpack.c.bf16 %v18712_v18, %v18693_v10  ;;  %v12743_v32 = vadd.f32 -1.0, %v16539_v29  ;;  %vm1580_vm9 = vcmp.gt.f32.partialorder %v18612_v20, 0.0  ;;  %16548 = vpow2.f32 %v1978_v45  ;;  %2802 = vmatmul.mubr.bf16.gmra.mrb[76].mxu1 %v14831_v57 }
 0x298   : > { %2943 = vmatpush1.bf16.msra.mxu0 %v20565_v36  ;;  %v18730_v41 = vadd.f32 %v20568_v12, %v17586_v62  ;;  %v12760_v48 = vadd.f32 -1.0, %v16531_v5  ;;  %v12738_v0 = vadd.f32 -1.0, %v16535_v7  ;;  %v1736_v38 = vmin.f32 %v18707_v6, 0.0  ;;  %12871 = vmatprep.mubr.msk.bf16.mxu1 %vm2638_vm4, %v14832_v23 }
 0x299   : > { %v16541_v8 = vpop.eup %16540  ;;  %v18733_v37 = vadd.f32 -1.0, %v16537_v52  ;;  %16550 = vpow2.f32 %v1912_v28  ;;  %v1731_v33 = vmin.f32 %v18703_v55, 0.0  ;;  %v1742_v36 = vmin.f32 %v18719_v53, 0.0 }
 0x29a   : > { %v18740_v45 = vsel %vm1546_vm5, %v18587_v35, %v12743_v32  ;;  %v12749_v29 = vadd.f32 -1.0, %v16541_v8  ;;  %v1990_v19 = vmul.f32 1.442695, %v1736_v38  ;;  %v1702_v5 = vmin.f32 %v18723_v9, 0.0  ;;  %v16543_v7 = vpop.eup %16542 }
 0x29b   : > { %16552 = vpow2.f32 %v1968_v15  ;;  %v1737_v28 = vmin.f32 %v18730_v41, 0.0  ;;  %v2002_v52 = vmul.f32 1.442695, %v1742_v36  ;;  %v2277_v57 = vsel %vm1557_vm1, %v18414_v11, %v18634_v58  ;;  %v14834_v15 = vld [vmem:[%s20396_s3 + $0x80] ss:$8 sps:$4 sm:$0xff]  }
 0x29c   : > { %v18752_v35 = vsel %vm1552_vm8, %v18599_v2, %v12749_v29  ;;  %16554 = vpow2.f32 %v1990_v19  ;;  %v1922_v27 = vmul.f32 1.442695, %v1702_v5  ;;  %v2283_v23 = vsel %vm1563_vm3, %v18495_v21, %v12760_v48  ;;  %v16545_v32 = vpop.eup %16544  ;;  %v14835_v2 = vld [vmem:[%s20396_s3 + $0x94] ss:$8 sps:$4 sm:$0xff]  }
 0x29d   : > { %v2380_v12 = vpack.c.bf16 %v18752_v35, %v18740_v45  ;;  %vm1586_vm10 = vcmp.gt.f32.partialorder %v18670_v43, 0.0  ;;  %v1980_v11 = vmul.f32 1.442695, %v1731_v33  ;;  %v2385_v58 = vpack.c.bf16 %v2283_v23, %v2277_v57  ;;  %v20569_v29 = vld [vmem:[#allocation46_spill] sm:$0xff] }
 0x29e   : > { %vm1569_vm11 = vcmp.gt.f32.partialorder %v18524_v13, 0.0  ;;  %v12777_v38 = vadd.f32 -1.0, %v16543_v7  ;;  %16556 = vpow2.f32 %v2002_v52  ;;  %v2255_v21 = vsel %vm1535_vm6, %v18434_v44, %v18662_v39  ;;  %v16547_v8 = vpop.eup %16546  ;;  %v20570_v44 = vld [vmem:[#allocation59_spill] sm:$0xff] }
 0x29f   : > { %v2261_v48 = vsel %vm1541_vm7, %v18506_v4, %v12738_v0  ;;  %vm1575_vm12 = vcmp.gt.f32.partialorder %v18595_v30, 0.0  ;;  %v1992_v33 = vmul.f32 1.442695, %v1737_v28  ;;  %16558 = vpow2.f32 %v1922_v27  ;;  %2944 = vmatprep.subr.bf16.mxu0 %v2385_v58  ;;  %v20572_v0 = vld [vmem:[#allocation60_spill] sm:$0xff]  ;;  %v20573_v28 = vld [vmem:[#allocation61_spill] sm:$0xff]  ;;  %2812 = vmatmul.mubr.bf16.gmra.mrb[80].mxu1 %v14834_v15 }
 0x2a0   : > { %v2375_v36 = vpack.c.bf16 %v2261_v48, %v2255_v21  ;;  %v18777_v19 = vadd.f32 %v20569_v29, %v17586_v62  ;;  %v12772_v5 = vadd.f32 -1.0, %v16545_v32  ;;  %vm1547_vm13 = vcmp.gt.f32.partialorder %v18621_v46, 0.0  ;;  %v20576_v21 = vld [vmem:[#allocation48_spill] sm:$0xff]  ;;  %12872 = vmatprep.mubr.msk.bf16.mxu1 %vm2638_vm4, %v14835_v2 }
 0x2a1   : > { %v18782_v39 = vadd.f32 %v20570_v44, %v17929_v24  ;;  %v20571_v4 = vpack.c.bf16 %v18617_v25, %v18583_v50  ;;  %v18789_v7 = vadd.f32 %v20572_v0, %v17807_v47  ;;  %v18793_v52 = vadd.f32 %v20573_v28, %v17929_v24  ;;  %v16549_v57 = vpop.eup %16548  ;;  %v20574_v50 = vld [vmem:[#allocation47_spill] sm:$0xff] }
 0x2a2   : > { %vm1553_vm14 = vcmp.gt.f32.partialorder %v18648_v17, 0.0  ;;  %16560 = vpow2.f32 %v1980_v11  ;;  %vm1592_vm15 = vcmp.gt.f32.partialorder %v18707_v6, 0.0  ;;  %3173 = vmatprep.subr.bf16.mxu1 %v2375_v36  ;;  %v1743_v27 = vmin.f32 %v18777_v19, 0.0 }
 0x2a3   : > { %2945 = vmatpush1.bf16.msra.mxu0 %v20571_v4  ;;  %v18800_v25 = vadd.f32 %v20574_v50, %v17565_v3  ;;  %v18805_v23 = vsel %vm1580_vm9, %v18612_v20, %v12777_v38  ;;  %v12783_v32 = vadd.f32 -1.0, %v16549_v57  ;;  %v1703_v58 = vmin.f32 %v18782_v39, 0.0  ;;  %v16551_v36 = vpop.eup %16550  ;;  %v14838_v50 = vld [vmem:[%s20396_s3 + $0xa4] ss:$8 sps:$4 sm:$0xff]  }
 0x2a4   : > { %v20575_v11 = vpack.c.bf16 %v18630_v1, %v18604_v63  ;;  %v18813_v48 = vadd.f32 %v20576_v21, %v17586_v62  ;;  %v12744_v15 = vadd.f32 -1.0, %v16547_v8  ;;  %16562 = vpow2.f32 %v1992_v33  ;;  %v20577_v1 = vld [vmem:[#allocation49_spill] sm:$0xff] }
 0x2a5   : > { %v2004_v29 = vmul.f32 1.442695, %v1743_v27  ;;  %v1708_v20 = vmin.f32 %v18789_v7, 0.0  ;;  %v18820_v38 = vsel %vm1586_vm10, %v18670_v43, %v12783_v32  ;;  %v1924_v44 = vmul.f32 1.442695, %v1703_v58  ;;  %v16553_v0 = vpop.eup %16552 }
 0x2a6   : > { %3174 = vmatpush1.bf16.msra.mxu1 %v20575_v11  ;;  %v1709_v63 = vmin.f32 %v18793_v52, 0.0  ;;  %v18825_v4 = vadd.f32 %v20577_v1, %v17565_v3  ;;  %v2396_v2 = vpack.c.bf16 %v18820_v38, %v18805_v23  ;;  %v1748_v33 = vmin.f32 %v18800_v25, 0.0  ;;  %v14837_v43 = vld [vmem:[%s20396_s3 + $0x90] ss:$8 sps:$4 sm:$0xff]   ;;  %v16555_v28 = vpop.eup %16554  ;;  %v19013_v38 = vld [vmem:[%s20396_s3 + $0xd4] ss:$8 sps:$4 sm:$0xff]  }
 0x2a7   : > { %16564 = vpow2.f32 %v2004_v29  ;;  %v1934_v8 = vmul.f32 1.442695, %v1708_v20  ;;  %vm1598_vm0 = vcmp.gt.f32.partialorder %v18719_v53, 0.0  ;;  %v1749_v27 = vmin.f32 %v18813_v48, 0.0  ;;  %2822 = vmatmul.mubr.bf16.gmra.mrb[84].mxu1 %v14837_v43 }
 0x2a8   : > { %16566 = vpow2.f32 %v1924_v44  ;;  %v1936_v57 = vmul.f32 1.442695, %v1709_v63  ;;  %v12789_v32 = vadd.f32 -1.0, %v16555_v28  ;;  %vm1558_vm1 = vcmp.gt.f32.partialorder %v18723_v9, 0.0  ;;  %v16557_v11 = vpop.eup %16556  ;;  %12873 = vmatprep.mubr.msk.bf16.mxu1 %vm2638_vm4, %v14838_v50  ;;  %v20579_v50 = vld [vmem:[#allocation51_spill] sm:$0xff] }
 0x2a9   : > { %16568 = vpow2.f32 %v1934_v8  ;;  %v2014_v58 = vmul.f32 1.442695, %v1748_v33  ;;  %v12750_v21 = vadd.f32 -1.0, %v16551_v36  ;;  %v18839_v29 = vadd.f32 -1.0, %v16553_v0  ;;  %v16559_v44 = vpop.eup %16558 }
 0x2aa   : > { %16570 = vpow2.f32 %v1936_v57  ;;  %v1754_v20 = vmin.f32 %v18825_v4, 0.0  ;;  %v18845_v63 = vsel %vm1592_vm15, %v18707_v6, %v12789_v32  ;;  %v12795_v1 = vadd.f32 -1.0, %v16557_v11 }
 0x2ab   : > { %16572 = vpow2.f32 %v2014_v58  ;;  %v2289_v8 = vsel %vm1569_vm11, %v18524_v13, %v18733_v37  ;;  %v12755_v36 = vadd.f32 -1.0, %v16559_v44  ;;  %v2016_v0 = vmul.f32 1.442695, %v1749_v27  ;;  %v20578_v58 = vld [vmem:[#allocation50_spill] sm:$0xff] }
 0x2ac   : > { %v2026_v33 = vmul.f32 1.442695, %v1754_v20  ;;  %v2295_v28 = vsel %vm1575_vm12, %v18595_v30, %v12772_v5  ;;  %v16561_v57 = vpop.eup %16560  ;;  %v18858_v6 = vsel %vm1598_vm0, %v18719_v53, %v12795_v1  ;;  %v18862_v13 = vadd.f32 %v20578_v58, %v17586_v62  ;;  %v14840_v30 = vld [vmem:[%s20396_s3 + $0xa0] ss:$8 sps:$4 sm:$0xff]   ;;  %v20581_v20 = vld [vmem:[#allocation52_spill] sm:$0xff] }
 0x2ad   : > { %v2391_v32 = vpack.c.bf16 %v2295_v28, %v2289_v8  ;;  %v2267_v37 = vsel %vm1547_vm13, %v18621_v46, %v12744_v15  ;;  %vm1581_vm2 = vcmp.gt.f32.partialorder %v18652_v54, 0.0  ;;  %vm1587_vm3 = vcmp.gt.f32.partialorder %v18703_v55, 0.0  ;;  %v18880_v46 = vld [vmem:[%s20396_s3 + $0xb4] ss:$8 sps:$4 sm:$0xff]   ;;  %v20582_v1 = vld [vmem:[#allocation27_spill] sm:$0xff] }
 0x2ae   : > { %v2402_v53 = vpack.c.bf16 %v18858_v6, %v18845_v63  ;;  %16574 = vpow2.f32 %v2026_v33  ;;  %v2273_v5 = vsel %vm1553_vm14, %v18648_v17, %v12750_v21  ;;  %v16563_v15 = vpop.eup %16562  ;;  %vm1564_vm5 = vcmp.gt.f32.partialorder %v18789_v7, 0.0  ;;  %v20580_v17 = vld [vmem:[#allocation55_spill] sm:$0xff] }
 0x2af   : > { %2946 = vmatprep.subr.bf16.mxu0 %v2391_v32  ;;  %v1755_v43 = vmin.f32 %v18862_v13, 0.0  ;;  %v2381_v27 = vpack.c.bf16 %v2273_v5, %v2267_v37  ;;  %v18886_v11 = vadd.f32 %v20579_v50, %v17565_v3  ;;  %vm1593_vm6 = vcmp.gt.f32.partialorder %v18730_v41, 0.0  ;;  %2832 = vmatmul.mubr.bf16.gmra.mrb[88].mxu1 %v14840_v30 }
 0x2b0   : > { %vm1599_vm7 = vcmp.gt.f32.partialorder %v18777_v19, 0.0  ;;  %2947 = vmatpush1.bf16.msra.mxu0 %v2390_v31  ;;  %v18895_v21 = vadd.f32 %v20580_v17, %v17807_v47  ;;  %v18899_v44 = vadd.f32 %v20581_v20, %v17586_v62  ;;  %v18903_v8 = vadd.f32 %v20582_v1, %v17929_v24  ;;  %12874 = vmatprep.mubr.msk.bf16.mxu1 %vm2638_vm4, %v18880_v46 }
 0x2b1   : > { %v16565_v33 = vpop.eup %16564  ;;  %v12784_v28 = vadd.f32 -1.0, %v16561_v57  ;;  %16576 = vpow2.f32 %v2016_v0  ;;  %v2028_v32 = vmul.f32 1.442695, %v1755_v43  ;;  %3175 = vmatprep.subr.bf16.mxu1 %v2381_v27  ;;  %v1760_v10 = vmin.f32 %v18886_v11, 0.0 }
 0x2b2   : > { %v16567_v18 = vpop.eup %16566  ;;  %v18909_v31 = vsel %vm1558_vm1, %v18723_v9, %v12755_v36  ;;  %vm1559_vm8 = vcmp.gt.f32.partialorder %v18782_v39, 0.0  ;;  %vm1604_vm9 = vcmp.gt.f32.partialorder %v18800_v25, 0.0  ;;  %vm1610_vm10 = vcmp.gt.f32.partialorder %v18825_v4, 0.0  ;;  %3176 = vmatpush1.bf16.msra.mxu1 %v2380_v12  ;;  %v20583_v36 = vld [vmem:[#allocation53_spill] sm:$0xff] }
 0x2b3   : > { %v1714_v58 = vmin.f32 %v18895_v21, 0.0  ;;  %v16569_v0 = vpop.eup %16568  ;;  %vm1565_vm11 = vcmp.gt.f32.partialorder %v18793_v52, 0.0  ;;  %16578 = vpow2.f32 %v2028_v32  ;;  %v2038_v57 = vmul.f32 1.442695, %v1760_v10 }
 0x2b4   : > { %v1761_v9 = vmin.f32 %v18899_v44, 0.0  ;;  %v18922_v37 = vadd.f32 %v20583_v36, %v17565_v3  ;;  %v16571_v5 = vpop.eup %16570  ;;  %v12761_v43 = vadd.f32 -1.0, %v16569_v0  ;;  %v1715_v50 = vmin.f32 %v18903_v8, 0.0  ;;  %v18934_v3 = vld [vmem:[%s20396_s3 + $0xb0] ss:$8 sps:$4 sm:$0xff]  }
 0x2b5   : > { %v1946_v27 = vmul.f32 1.442695, %v1714_v58  ;;  %v18927_v45 = vadd.f32 %v18307_v42, %v17807_v47  ;;  %v16573_v35 = vpop.eup %16572  ;;  %v12790_v12 = vadd.f32 -1.0, %v16563_v15  ;;  %v12796_v17 = vadd.f32 -1.0, %v16565_v33  ;;  %v18944_v15 = vld [vmem:[%s20396_s3 + $0xc4] ss:$8 sps:$4 sm:$0xff]  }
 0x2b6   : > { %16580 = vpow2.f32 %v2038_v57  ;;  %v2040_v20 = vmul.f32 1.442695, %v1761_v9  ;;  %v18939_v30 = vsel %vm1564_vm5, %v18789_v7, %v12761_v43  ;;  %v12801_v42 = vadd.f32 -1.0, %v16573_v35  ;;  %v20585_v35 = vld [vmem:[#allocation26_spill] sm:$0xff] }
 0x2b7   : > { %16582 = vpow2.f32 %v1946_v27  ;;  %v1948_v1 = vmul.f32 1.442695, %v1715_v50  ;;  %v12756_v33 = vadd.f32 -1.0, %v16567_v18  ;;  %v2386_v32 = vpack.c.bf16 %v18939_v30, %v18909_v31  ;;  %v20584_v27 = vld [vmem:[#allocation54_spill] sm:$0xff]  ;;  %2842 = vmatmul.mubr.bf16.gmra.mrb[92].mxu1 %v18934_v3 }
 0x2b8   : > { %16584 = vpow2.f32 %v2040_v20  ;;  %v1766_v10 = vmin.f32 %v18922_v37, 0.0  ;;  %v16575_v58 = vpop.eup %16574  ;;  %v12762_v0 = vadd.f32 -1.0, %v16571_v5  ;;  %v18952_v7 = vsel %vm1604_vm9, %v18800_v25, %v12801_v42  ;;  %12875 = vmatprep.mubr.msk.bf16.mxu1 %vm2638_vm4, %v18944_v15 }
 0x2b9   : > { %16586 = vpow2.f32 %v1948_v1  ;;  %v1720_v57 = vmin.f32 %v18927_v45, 0.0  ;;  %vm1605_vm12 = vcmp.gt.f32.partialorder %v18813_v48, 0.0  ;;  %v12807_v9 = vadd.f32 -1.0, %v16575_v58 }
 0x2ba   : > { %vm1611_vm13 = vcmp.gt.f32.partialorder %v18862_v13, 0.0  ;;  %v2050_v18 = vmul.f32 1.442695, %v1766_v10  ;;  %v2301_v36 = vsel %vm1581_vm2, %v18652_v54, %v18839_v29  ;;  %v2307_v5 = vsel %vm1587_vm3, %v18703_v55, %v12784_v28 }
 0x2bb   : > { %v1958_v25 = vmul.f32 1.442695, %v1720_v57  ;;  %v2397_v43 = vpack.c.bf16 %v2307_v5, %v2301_v36  ;;  %v18966_v50 = vadd.f32 %v20584_v27, %v17586_v62  ;;  %v18970_v20 = vadd.f32 %v20585_v35, %v17929_v24  ;;  %v16577_v42 = vpop.eup %16576  ;;  %v20586_v57 = vld [vmem:[#allocation56_spill] sm:$0xff] }
 0x2bc   : > { %v18975_v1 = vsel %vm1610_vm10, %v18825_v4, %v12807_v9  ;;  %16588 = vpow2.f32 %v2050_v18  ;;  %v2313_v54 = vsel %vm1593_vm6, %v18730_v41, %v12790_v12  ;;  %v2319_v62 = vsel %vm1599_vm7, %v18777_v19, %v12796_v17  ;;  %v19001_v12 = vld [vmem:[%s20396_s3 + $0xc0] ss:$8 sps:$4 sm:$0xff]  }
 0x2bd   : > { %v2408_v55 = vpack.c.bf16 %v18975_v1, %v18952_v7  ;;  %vm1616_vm14 = vcmp.gt.f32.partialorder %v18886_v11, 0.0  ;;  %16590 = vpow2.f32 %v1958_v25  ;;  %2948 = vmatprep.subr.bf16.mxu0 %v2397_v43  ;;  %v1767_v4 = vmin.f32 %v18966_v50, 0.0  ;;  %v16579_v29 = vpop.eup %16578 }
 0x2be   : > { %vm1570_vm15 = vcmp.gt.f32.partialorder %v18895_v21, 0.0  ;;  %v1721_v41 = vmin.f32 %v18970_v20, 0.0  ;;  %2949 = vmatpush1.bf16.msra.mxu0 %v2396_v2  ;;  %v2403_v19 = vpack.c.bf16 %v2319_v62, %v2313_v54  ;;  %v2279_v28 = vsel %vm1559_vm8, %v18782_v39, %v12756_v33 }
 0x2bf   : > { %v12802_v17 = vadd.f32 -1.0, %v16577_v42  ;;  %v2052_v10 = vmul.f32 1.442695, %v1767_v4  ;;  %v2285_v58 = vsel %vm1565_vm11, %v18793_v52, %v12762_v0  ;;  %v19008_v23 = vadd.f32 %v18362_v26, %v17807_v47  ;;  %v20587_v52 = vld [vmem:[#allocation28_spill] sm:$0xff]  ;;  %2852 = vmatmul.mubr.bf16.gmra.mrb[96].mxu1 %v19001_v12 }
 0x2c0   : > { %v16581_v39 = vpop.eup %16580  ;;  %vm1617_vm0 = vcmp.gt.f32.partialorder %v18899_v44, 0.0  ;;  %v1960_v2 = vmul.f32 1.442695, %v1721_v41  ;;  %2950 = vmatprep.subr.bf16.mxu0 %v2403_v19  ;;  %v2387_v33 = vpack.c.bf16 %v2285_v58, %v2279_v28  ;;  %v19018_v9 = vadd.f32 %v20586_v57, %v17929_v24  ;;  %12876 = vmatprep.mubr.msk.bf16.mxu1 %vm2638_vm4, %v19013_v38 }
 0x2c1   : > { %v19022_v0 = vadd.f32 %v20587_v52, %v17807_v47  ;;  %v16583_v26 = vpop.eup %16582  ;;  %v12808_v18 = vadd.f32 -1.0, %v16579_v29  ;;  %v12813_v36 = vadd.f32 -1.0, %v16581_v39  ;;  %vm1571_vm1 = vcmp.gt.f32.partialorder %v18903_v8, 0.0 }
 0x2c2   : > { %16592 = vpow2.f32 %v2052_v10  ;;  %v1726_v5 = vmin.f32 %v19008_v23, 0.0  ;;  %v16585_v25 = vpop.eup %16584  ;;  %vm1622_vm2 = vcmp.gt.f32.partialorder %v18922_v37, 0.0  ;;  %vm1576_vm3 = vcmp.gt.f32.partialorder %v18927_v45, 0.0  ;;  %2951 = vmatpush1.bf16.msra.mxu0 %v2402_v53  ;;  %3177 = vmatprep.subr.bf16.mxu1 %v2387_v33 }
 0x2c3   : > { %16594 = vpow2.f32 %v1960_v2  ;;  %v1727_v43 = vmin.f32 %v19018_v9, 0.0  ;;  %v16587_v27 = vpop.eup %16586  ;;  %v12767_v35 = vadd.f32 -1.0, %v16583_v26  ;;  %vm1623_vm5 = vcmp.gt.f32.partialorder %v18966_v50, 0.0  ;;  %3178 = vmatpush1.bf16.msra.mxu1 %v2386_v32 }
 0x2c4   : > { %v1970_v42 = vmul.f32 1.442695, %v1726_v5  ;;  %v19039_v54 = vsel %vm1616_vm14, %v18886_v11, %v12813_v36  ;;  %vm1577_vm6 = vcmp.gt.f32.partialorder %v18970_v20, 0.0  ;;  %v1732_v6 = vmin.f32 %v19022_v0, 0.0 }
 0x2c5   : > { %v1972_v63 = vmul.f32 1.442695, %v1727_v43  ;;  %v19046_v53 = vadd.f32 %v18396_v16, %v17929_v24  ;;  %v2325_v31 = vsel %vm1605_vm12, %v18813_v48, %v12802_v17  ;;  %v2331_v11 = vsel %vm1611_vm13, %v18862_v13, %v12808_v18  ;;  %v19063_v16 = vld [vmem:[%s20396_s3 + $0xd0] ss:$8 sps:$4 sm:$0xff]  }
 0x2c6   : > { %16596 = vpow2.f32 %v1970_v42  ;;  %v16589_v30 = vpop.eup %16588  ;;  %v1982_v32 = vmul.f32 1.442695, %v1732_v6  ;;  %v2409_v62 = vpack.c.bf16 %v2331_v11, %v2325_v31  ;;  %v19058_v4 = vadd.f32 %v18419_v34, %v17807_v47  ;;  %v19074_v34 = vld [vmem:[%s20396_s3 + $0xe4] ss:$8 sps:$4 sm:$0xff]   ;;  %v20588_v43 = vld [vmem:[#allocation29_spill] sm:$0xff] }
 0x2c7   : > { %16598 = vpow2.f32 %v1972_v63  ;;  %v16591_v48 = vpop.eup %16590  ;;  %v19068_v13 = vsel %vm1570_vm15, %v18895_v21, %v12767_v35  ;;  %v12814_v29 = vadd.f32 -1.0, %v16585_v25  ;;  %v12819_v41 = vadd.f32 -1.0, %v16589_v30  ;;  %2862 = vmatmul.mubr.bf16.gmra.mrb[100].mxu1 %v19063_v16  ;;  %v14861_v63 = vld [vmem:[#allocation7 + $0x604] ss:$16 sps:$4 sm:$0xff]  }
 0x2c8   : > { %v1733_v19 = vmin.f32 %v19046_v53, 0.0  ;;  %v12768_v28 = vadd.f32 -1.0, %v16587_v27  ;;  %v12773_v17 = vadd.f32 -1.0, %v16591_v48  ;;  %16600 = vpow2.f32 %v1982_v32  ;;  %2952 = vmatprep.subr.bf16.mxu0 %v2409_v62  ;;  %12877 = vmatprep.mubr.msk.bf16.mxu1 %vm2638_vm4, %v19074_v34  ;;  %v14859_v32 = vld [vmem:[#allocation7 + $0x600] ss:$16 sps:$4 sm:$0xff]  }
 0x2c9   : > { %v1738_v10 = vmin.f32 %v19058_v4, 0.0  ;;  %v2342_v21 = vsel %vm1622_vm2, %v18922_v37, %v12819_v41  ;;  %2953 = vmatpush1.bf16.msra.mxu0 %v2408_v55  ;;  %v19085_v39 = vadd.f32 %v18428_v22, %v17929_v24  ;;  %v19093_v52 = vadd.f32 %v18439_v60, %v17807_v47 }
 0x2ca   : > { %v1984_v58 = vmul.f32 1.442695, %v1733_v19  ;;  %v2414_v2 = vpack.c.bf16 %v2342_v21, %v19039_v54  ;;  %v2296_v33 = vsel %vm1576_vm3, %v18927_v45, %v12773_v17  ;;  %v2337_v22 = vsel %vm1617_vm0, %v18899_v44, %v12814_v29  ;;  %v19138_v54 = vld [vmem:[%s20396_s3 + $0xf4] ss:$8 sps:$4 sm:$0xff]  }
 0x2cb   : > { %v1994_v57 = vmul.f32 1.442695, %v1738_v10  ;;  %v2392_v26 = vpack.c.bf16 %v2296_v33, %v19068_v13  ;;  %v1739_v7 = vmin.f32 %v19085_v39, 0.0  ;;  %v2291_v45 = vsel %vm1571_vm1, %v18903_v8, %v12768_v28  ;;  %v19165_v33 = vld [vmem:[%s20396_s3] ss:$8 sps:$4 sm:$0xff]  }
 0x2cc   : > { %v16593_v37 = vpop.eup %16592  ;;  %16602 = vpow2.f32 %v1984_v58  ;;  %v1744_v60 = vmin.f32 %v19093_v52, 0.0  ;;  %v19107_v5 = vadd.f32 %v18458_v49, %v17929_v24  ;;  %v19111_v44 = vadd.f32 %v18500_v59, %v17807_v47  ;;  %v19126_v49 = vld [vmem:[%s20396_s3 + $0xe0] ss:$8 sps:$4 sm:$0xff]  }
 0x2cd   : > { %v16595_v1 = vpop.eup %16594  ;;  %v12820_v55 = vadd.f32 -1.0, %v16593_v37  ;;  %16604 = vpow2.f32 %v1994_v57  ;;  %v1996_v36 = vmul.f32 1.442695, %v1739_v7  ;;  %vm1582_vm7 = vcmp.gt.f32.partialorder %v19008_v23, 0.0  ;;  %v14876_v7 = vld [vmem:[#allocation7 + $0x644] ss:$16 sps:$4 sm:$0xff]  }
 0x2ce   : > { %v12774_v18 = vadd.f32 -1.0, %v16595_v1  ;;  %v2006_v25 = vmul.f32 1.442695, %v1744_v60  ;;  %v19121_v27 = vadd.f32 %v20588_v43, %v17929_v24  ;;  %v1745_v30 = vmin.f32 %v19107_v5, 0.0 }
 0x2cf   : > { %v2343_v8 = vsel %vm1623_vm5, %v18966_v50, %v12820_v55  ;;  %16606 = vpow2.f32 %v1996_v36  ;;  %v19133_v50 = vadd.f32 %v18513_v56, %v17807_v47  ;;  %vm1583_vm8 = vcmp.gt.f32.partialorder %v19018_v9, 0.0  ;;  %2872 = vmatmul.mubr.bf16.gmra.mrb[104].mxu1 %v19126_v49  ;;  %v19200_v36 = vld [vmem:[%s20396_s3 + $0x104] ss:$8 sps:$4 sm:$0xff]  }
 0x2d0   : > { %v16597_v59 = vpop.eup %16596  ;;  %v2415_v35 = vpack.c.bf16 %v2343_v8, %v2337_v22  ;;  %v2297_v42 = vsel %vm1577_vm6, %v18970_v20, %v12774_v18  ;;  %16608 = vpow2.f32 %v2006_v25  ;;  %vm1588_vm9 = vcmp.gt.f32.partialorder %v19022_v0, 0.0  ;;  %v14867_v20 = vld [vmem:[#allocation7 + $0x624] ss:$16 sps:$4 sm:$0xff]   ;;  %12878 = vmatprep.mubr.msk.bf16.mxu1 %vm2638_vm4, %v19138_v54 }
 0x2d1   : > { %v16599_v6 = vpop.eup %16598  ;;  %v12779_v31 = vadd.f32 -1.0, %v16597_v59  ;;  %v2393_v11 = vpack.c.bf16 %v2297_v42, %v2291_v45  ;;  %vm1589_vm10 = vcmp.gt.f32.partialorder %v19046_v53, 0.0  ;;  %v1750_v56 = vmin.f32 %v19111_v44, 0.0  ;;  %v19180_v22 = vld [vmem:[%s20396_s3 + $0x14] ss:$8 sps:$4 sm:$0xff]  }
 0x2d2   : > { %2954 = vmatprep.subr.bf16.mxu0 %v2415_v35  ;;  %v16601_v62 = vpop.eup %16600  ;;  %v12780_v48 = vadd.f32 -1.0, %v16599_v6  ;;  %v2008_v13 = vmul.f32 1.442695, %v1745_v30  ;;  %v1751_v29 = vmin.f32 %v19121_v27, 0.0  ;;  %v1756_v17 = vmin.f32 %v19133_v50, 0.0 }
 0x2d3   : > { %3179 = vmatprep.subr.bf16.mxu1 %v2393_v11  ;;  %2955 = vmatpush1.bf16.msra.mxu0 %v2414_v2  ;;  %v2302_v41 = vsel %vm1582_vm7, %v19008_v23, %v12779_v31  ;;  %v12785_v19 = vadd.f32 -1.0, %v16601_v62  ;;  %v2018_v28 = vmul.f32 1.442695, %v1750_v56  ;;  %v19152_v21 = vadd.f32 %v18530_v51, %v17929_v24  ;;  %v14874_v35 = vld [vmem:[#allocation7 + $0x640] ss:$16 sps:$4 sm:$0xff]  }
 0x2d4   : > { %3180 = vmatpush1.bf16.msra.mxu1 %v2392_v26  ;;  %4863 = vmatprep.subr.bf16.mxu0 %v14861_v63  ;;  %16610 = vpow2.f32 %v2008_v13  ;;  %v2020_v10 = vmul.f32 1.442695, %v1751_v29  ;;  %v19156_v58 = vadd.f32 %v18562_v61, %v17807_v47  ;;  %v2030_v51 = vmul.f32 1.442695, %v1756_v17  ;;  %v20589_v31 = vld [vmem:[#allocation57_spill] sm:$0xff] }
 0x2d5   : > { %v2308_v23 = vsel %vm1588_vm9, %v19022_v0, %v12785_v19  ;;  %16612 = vpow2.f32 %v2018_v28  ;;  %v19170_v61 = vadd.f32 %v18573_v40, %v17929_v24  ;;  %v2303_v0 = vsel %vm1583_vm8, %v19018_v9, %v12780_v48  ;;  %v14865_v40 = vld [vmem:[#allocation7 + $0x620] ss:$16 sps:$4 sm:$0xff]   ;;  %v14879_v30 = vld [vmem:[#allocation7 + $0x664] ss:$16 sps:$4 sm:$0xff]  }
 0x2d6   : > { %v16603_v2 = vpop.eup %16602  ;;  %2965 = vmatmul.mubr.bf16.vlgmr.msra.gmra.mrb[96].mxu0 %v19165_v33  ;;  %v2398_v37 = vpack.c.bf16 %v2308_v23, %v2302_v41  ;;  %16614 = vpow2.f32 %v2020_v10  ;;  %vm1594_vm11 = vcmp.gt.f32.partialorder %v19058_v4, 0.0  ;;  %v1757_v55 = vmin.f32 %v19152_v21, 0.0  ;;  %v19189_v9 = vld [vmem:[%s20396_s3 + $0xf0] ss:$8 sps:$4 sm:$0xff]  }
 0x2d7   : > { %v16605_v57 = vpop.eup %16604  ;;  %v12786_v26 = vadd.f32 -1.0, %v16603_v2  ;;  %12884 = vmatprep.mubr.msk.bf16.mxu0 %vm2638_vm4, %v19180_v22  ;;  %4864 = vmatpush1.bf16.msra.mxu0 %v14859_v32  ;;  %16616 = vpow2.f32 %v2030_v51  ;;  %vm1600_vm12 = vcmp.gt.f32.partialorder %v19093_v52, 0.0  ;;  %v1762_v60 = vmin.f32 %v19156_v58, 0.0  ;;  %v14877_v62 = vld [vmem:[#allocation7 + $0x660] ss:$16 sps:$4 sm:$0xff]  }
 0x2d8   : > { %v12791_v1 = vadd.f32 -1.0, %v16605_v57  ;;  %4865 = vmatprep.subr.bf16.mxu0 %v14867_v20  ;;  %v1763_v18 = vmin.f32 %v19170_v61, 0.0  ;;  %v2032_v43 = vmul.f32 1.442695, %v1757_v55  ;;  %v19204_v59 = vadd.f32 %v18578_v14, %v17807_v47  ;;  %2882 = vmatmul.mubr.bf16.gmra.mrb[108].mxu1 %v19189_v9  ;;  %v14885_v41 = vld [vmem:[#allocation7 + $0x684] ss:$16 sps:$4 sm:$0xff]  }
 0x2d9   : > { %v2309_v45 = vsel %vm1589_vm10, %v19046_v53, %v12786_v26  ;;  %v16607_v8 = vpop.eup %16606  ;;  %v2042_v63 = vmul.f32 1.442695, %v1762_v60  ;;  %v19211_v11 = vadd.f32 %v20589_v31, %v17929_v24  ;;  %vm1595_vm13 = vcmp.gt.f32.partialorder %v19085_v39, 0.0  ;;  %12879 = vmatprep.mubr.msk.bf16.mxu1 %vm2638_vm4, %v19200_v36 }
 0x2da   : > { %v2399_v25 = vpack.c.bf16 %v2309_v45, %v2303_v0  ;;  %v16609_v42 = vpop.eup %16608  ;;  %v2314_v53 = vsel %vm1594_vm11, %v19058_v4, %v12791_v1  ;;  %v2044_v6 = vmul.f32 1.442695, %v1763_v18  ;;  %v12792_v32 = vadd.f32 -1.0, %v16607_v8  ;;  %v19222_v4 = vld [vmem:[%s20396_s3 + $0x10] ss:$8 sps:$4 sm:$0xff]  }
 0x2db   : > { %4866 = vmatpush1.bf16.msra.mxu0 %v14865_v40  ;;  %v12797_v56 = vadd.f32 -1.0, %v16609_v42  ;;  %16618 = vpow2.f32 %v2032_v43  ;;  %v1768_v47 = vmin.f32 %v19204_v59, 0.0  ;;  %v1769_v14 = vmin.f32 %v19211_v11, 0.0  ;;  %v19254_v40 = vld [vmem:[%s20396_s3 + $0x114] ss:$8 sps:$4 sm:$0xff]  }
 0x2dc   : > { %3181 = vmatprep.subr.bf16.mxu1 %v2399_v25  ;;  %4867 = vmatprep.subr.bf16.mxu0 %v14876_v7  ;;  %16620 = vpow2.f32 %v2042_v63  ;;  %vm1601_vm14 = vcmp.gt.f32.partialorder %v19107_v5, 0.0  ;;  %vm1606_vm15 = vcmp.gt.f32.partialorder %v19111_v44, 0.0  ;;  %v2315_v17 = vsel %vm1595_vm13, %v19085_v39, %v12792_v32  ;;  %v19248_v39 = vld [vmem:[%s20396_s3 + $0x100] ss:$8 sps:$4 sm:$0xff]  }
 0x2dd   : > { %3182 = vmatpush1.bf16.msra.mxu1 %v2398_v37  ;;  %v2320_v24 = vsel %vm1600_vm12, %v19093_v52, %v12797_v56  ;;  %16622 = vpow2.f32 %v2044_v6  ;;  %v2054_v20 = vmul.f32 1.442695, %v1768_v47  ;;  %v19230_v52 = vld [vmem:[%s20396_s3 + $0x24] ss:$8 sps:$4 sm:$0xff]   ;;  %v2056_v29 = vmul.f32 1.442695, %v1769_v14 }
 0x2de   : > { %2975 = vmatmul.mubr.bf16.gmra.mrb[100].mxu0 %v19222_v4  ;;  %v16611_v48 = vpop.eup %16610  ;;  %v2404_v13 = vpack.c.bf16 %v2320_v24, %v2314_v53  ;;  %vm1612_vm0 = vcmp.gt.f32.partialorder %v19133_v50, 0.0  ;;  %vm1607_vm1 = vcmp.gt.f32.partialorder %v19121_v27, 0.0  ;;  %v14883_v7 = vld [vmem:[#allocation7 + $0x680] ss:$16 sps:$4 sm:$0xff]   ;;  %vm1613_vm2 = vcmp.gt.f32.partialorder %v19152_v21, 0.0 }
 0x2df   : > { %12885 = vmatprep.mubr.msk.bf16.mxu0 %vm2638_vm4, %v19230_v52  ;;  %v16613_v19 = vpop.eup %16612  ;;  %v12798_v28 = vadd.f32 -1.0, %v16611_v48  ;;  %16624 = vpow2.f32 %v2054_v20  ;;  %4868 = vmatpush1.bf16.msra.mxu0 %v14874_v35  ;;  %v19261_v45 = vld [vmem:[%s20396_s3 + $0x20] ss:$8 sps:$4 sm:$0xff]   ;;  %vm1618_vm3 = vcmp.gt.f32.partialorder %v19156_v58, 0.0  ;;  %vm1619_vm5 = vcmp.gt.f32.partialorder %v19170_v61, 0.0 }
 0x2e0   : > { %v16615_v10 = vpop.eup %16614  ;;  %v12803_v2 = vadd.f32 -1.0, %v16613_v19  ;;  %16626 = vpow2.f32 %v2056_v29  ;;  %4869 = vmatprep.subr.bf16.mxu0 %v14879_v30  ;;  %2892 = vmatmul.mubr.bf16.gmra.mrb[112].mxu1 %v19248_v39  ;;  %v14889_v35 = vld [vmem:[#allocation7 + $0x6a0] ss:$16 sps:$4 sm:$0xff]   ;;  %vm1624_vm6 = vcmp.gt.f32.partialorder %v19204_v59, 0.0  ;;  %vm1625_vm7 = vcmp.gt.f32.partialorder %v19211_v11, 0.0 }
 0x2e1   : > { %v16617_v23 = vpop.eup %16616  ;;  %v2321_v51 = vsel %vm1601_vm14, %v19107_v5, %v12798_v28  ;;  %v12804_v37 = vadd.f32 -1.0, %v16615_v10  ;;  %12880 = vmatprep.mubr.msk.bf16.mxu1 %vm2638_vm4, %v19254_v40  ;;  %v19288_v56 = vld [vmem:[%s20396_s3 + $0x110] ss:$8 sps:$4 sm:$0xff]   ;;  %v19294_v14 = vld [vmem:[%s20396_s3 + $0x124] ss:$8 sps:$4 sm:$0xff]  }
 0x2e2   : > { %v2326_v57 = vsel %vm1606_vm15, %v19111_v44, %v12803_v2  ;;  %v12809_v26 = vadd.f32 -1.0, %v16617_v23  ;;  %v2405_v0 = vpack.c.bf16 %v2321_v51, %v2315_v17  ;;  %v14891_v44 = vld [vmem:[#allocation7 + $0x6a4] ss:$16 sps:$4 sm:$0xff]   ;;  %v14895_v24 = vld [vmem:[#allocation7 + $0x6c0] ss:$16 sps:$4 sm:$0xff]  }
 0x2e3   : > { %4870 = vmatpush1.bf16.msra.mxu0 %v14877_v62  ;;  %v2327_v8 = vsel %vm1607_vm1, %v19121_v27, %v12804_v37  ;;  %v14897_v27 = vld [vmem:[#allocation7 + $0x6c4] ss:$16 sps:$4 sm:$0xff]   ;;  %v14882_v29 = vld [vmem:[#allocation7 + $0x60c] ss:$16 sps:$4 sm:$0xff]   ;;  %v14907_v17 = vld [vmem:[#allocation7 + $0x700] ss:$16 sps:$4 sm:$0xff]  }
 0x2e4   : > { %v2332_v5 = vsel %vm1612_vm0, %v19133_v50, %v12809_v26  ;;  %3183 = vmatprep.subr.bf16.mxu1 %v2405_v0  ;;  %4871 = vmatprep.subr.bf16.mxu0 %v14885_v41  ;;  %v19267_v50 = vld [vmem:[%s20396_s3 + $0x34] ss:$8 sps:$4 sm:$0xff]   ;;  %v19300_v48 = vld [vmem:[%s20396_s3 + $0x30] ss:$8 sps:$4 sm:$0xff]   ;;  %v19317_v19 = vld [vmem:[%s20396_s3 + $0x120] ss:$8 sps:$4 sm:$0xff]  }
 0x2e5   : > { %v16619_v1 = vpop.eup %16618  ;;  %v2410_v55 = vpack.c.bf16 %v2332_v5, %v2326_v57  ;;  %3184 = vmatpush1.bf16.msra.mxu1 %v2404_v13  ;;  %v14903_v20 = vld [vmem:[#allocation7 + $0x6e4] ss:$16 sps:$4 sm:$0xff]   ;;  %v14901_v41 = vld [vmem:[#allocation7 + $0x6e0] ss:$16 sps:$4 sm:$0xff]  }
 0x2e6   : > { %2985 = vmatmul.mubr.bf16.gmra.mrb[104].mxu0 %v19261_v45  ;;  %v16621_v60 = vpop.eup %16620  ;;  %v12810_v18 = vadd.f32 -1.0, %v16619_v1  ;;  %v19307_v13 = vld [vmem:[%s20396_s3 + $0x44] ss:$8 sps:$4 sm:$0xff]   ;;  %v19322_v28 = vld [vmem:[%s20396_s3 + $0x134] ss:$8 sps:$4 sm:$0xff]  }
 0x2e7   : > { %12886 = vmatprep.mubr.msk.bf16.mxu0 %vm2638_vm4, %v19267_v50  ;;  %v16623_v25 = vpop.eup %16622  ;;  %v12815_v43 = vadd.f32 -1.0, %v16621_v60  ;;  %4872 = vmatpush1.bf16.msra.mxu0 %v14883_v7  ;;  %v14915_v10 = vld [vmem:[#allocation7 + $0x724] ss:$16 sps:$4 sm:$0xff]   ;;  %v14913_v51 = vld [vmem:[#allocation7 + $0x720] ss:$16 sps:$4 sm:$0xff]  }
 0x2e8   : > { %v12816_v42 = vadd.f32 -1.0, %v16623_v25  ;;  %v2333_v53 = vsel %vm1613_vm2, %v19152_v21, %v12810_v18  ;;  %4873 = vmatprep.subr.bf16.mxu0 %v14891_v44  ;;  %2902 = vmatmul.mubr.bf16.gmra.mrb[116].mxu1 %v19288_v56  ;;  %v19327_v2 = vld [vmem:[%s20396_s3 + $0x40] ss:$8 sps:$4 sm:$0xff]   ;;  %v19333_v23 = vld [vmem:[%s20396_s3 + $0x54] ss:$8 sps:$4 sm:$0xff]  }
 0x2e9   : > { %v16625_v63 = vpop.eup %16624  ;;  %v2411_v6 = vpack.c.bf16 %v2333_v53, %v2327_v8  ;;  %v2338_v30 = vsel %vm1618_vm3, %v19156_v58, %v12815_v43  ;;  %12881 = vmatprep.mubr.msk.bf16.mxu1 %vm2638_vm4, %v19294_v14  ;;  %v14921_v57 = vld [vmem:[#allocation7 + $0x744] ss:$16 sps:$4 sm:$0xff]   ;;  %v14919_v26 = vld [vmem:[#allocation7 + $0x740] ss:$16 sps:$4 sm:$0xff]   ;;  %v14880_v60 = vld [vmem:[#allocation7 + $0x608] ss:$16 sps:$4 sm:$0xff]  }
 0x2ea   : > { %v16627_v31 = vpop.eup %16626  ;;  %v12821_v32 = vadd.f32 -1.0, %v16625_v63  ;;  %v2339_v21 = vsel %vm1619_vm5, %v19170_v61, %v12816_v42  ;;  %v19343_v37 = vld [vmem:[%s20396_s3 + $0x130] ss:$8 sps:$4 sm:$0xff]   ;;  %v19354_v5 = vld [vmem:[%s20396_s3 + $0x64] ss:$8 sps:$4 sm:$0xff]  }
 0x2eb   : > { %v12822_v47 = vadd.f32 -1.0, %v16627_v31  ;;  %3185 = vmatprep.subr.bf16.mxu1 %v2411_v6  ;;  %4874 = vmatpush1.bf16.msra.mxu0 %v14889_v35  ;;  %v14924_v0 = vld [vmem:[#allocation7 + $0x764] ss:$16 sps:$4 sm:$0xff]   ;;  %v14922_v1 = vld [vmem:[#allocation7 + $0x760] ss:$16 sps:$4 sm:$0xff]  }
 0x2ec   : > { %v2344_v58 = vsel %vm1624_vm6, %v19204_v59, %v12821_v32  ;;  %3186 = vmatpush1.bf16.msra.mxu1 %v2410_v55  ;;  %4875 = vmatprep.subr.bf16.mxu0 %v14897_v27  ;;  %v19348_v7 = vld [vmem:[%s20396_s3 + $0x50] ss:$8 sps:$4 sm:$0xff]   ;;  %v16705_v44 = vld [vmem:[%s20396_s3 + $0x4] ss:$8 sps:$4 sm:$0xff]   ;;  %v19366_v25 = vld [vmem:[%s20396_s3 + $0x60] ss:$8 sps:$4 sm:$0xff]  }
 0x2ed   : > { %v2416_v62 = vpack.c.bf16 %v2344_v58, %v2338_v30  ;;  %v2345_v61 = vsel %vm1625_vm7, %v19211_v11, %v12822_v47  ;;  %v14909_v11 = vld [vmem:[#allocation7 + $0x704] ss:$16 sps:$4 sm:$0xff]   ;;  %v14888_v18 = vld [vmem:[#allocation7 + $0x62c] ss:$16 sps:$4 sm:$0xff]   ;;  %v14925_v8 = vld [vmem:[#allocation7 + $0x780] ss:$16 sps:$4 sm:$0xff]  }
 0x2ee   : > { %2995 = vmatmul.mubr.bf16.gmra.mrb[108].mxu0 %v19300_v48  ;;  %v2417_v59 = vpack.c.bf16 %v2345_v61, %v2339_v21  ;;  %v14927_v55 = vld [vmem:[#allocation7 + $0x784] ss:$16 sps:$4 sm:$0xff]   ;;  %v14886_v42 = vld [vmem:[#allocation7 + $0x628] ss:$16 sps:$4 sm:$0xff]   ;;  %v14894_v53 = vld [vmem:[#allocation7 + $0x64c] ss:$16 sps:$4 sm:$0xff]  }
 0x2ef   : > { %12887 = vmatprep.mubr.msk.bf16.mxu0 %vm2638_vm4, %v19307_v13  ;;  %4876 = vmatpush1.bf16.msra.mxu0 %v14895_v24  ;;  %v14933_v43 = vld [vmem:[#allocation7 + $0x7a4] ss:$16 sps:$4 sm:$0xff]   ;;  %v14931_v27 = vld [vmem:[#allocation7 + $0x7a0] ss:$16 sps:$4 sm:$0xff]   ;;  %v14892_v6 = vld [vmem:[#allocation7 + $0x648] ss:$16 sps:$4 sm:$0xff]  }
 0x2f0   : > { %3187 = vmatprep.subr.bf16.mxu1 %v2417_v59  ;;  %4877 = vmatprep.subr.bf16.mxu0 %v14903_v20  ;;  %v19372_v35 = vld [vmem:[%s20396_s3 + $0x74] ss:$8 sps:$4 sm:$0xff]   ;;  %v19388_v32 = vld [vmem:[%s20396_s3 + $0x84] ss:$8 sps:$4 sm:$0xff]  }
 0x2f1   : > { %3188 = vmatpush1.bf16.msra.mxu1 %v2416_v62  ;;  %v14936_v63 = vld [vmem:[#allocation7 + $0x7c4] ss:$16 sps:$4 sm:$0xff]   ;;  %v14900_v31 = vld [vmem:[#allocation7 + $0x66c] ss:$16 sps:$4 sm:$0xff]   ;;  %v14934_v30 = vld [vmem:[#allocation7 + $0x7c0] ss:$16 sps:$4 sm:$0xff]  }
 0x2f2   : > { %5082 = vmatprep.subr.bf16.mxu1 %v14882_v29  ;;  %2912 = vmatmul.mubr.bf16.gmra.mrb[120].mxu1 %v19317_v19  ;;  %v14898_v47 = vld [vmem:[#allocation7 + $0x668] ss:$16 sps:$4 sm:$0xff]   ;;  %v14906_v21 = vld [vmem:[#allocation7 + $0x68c] ss:$16 sps:$4 sm:$0xff]   ;;  %v14940_v24 = vld [vmem:[#allocation7 + $0x7e0] ss:$16 sps:$4 sm:$0xff]  }
 0x2f3   : > { %4878 = vmatpush1.bf16.msra.mxu0 %v14901_v41  ;;  %12882 = vmatprep.mubr.msk.bf16.mxu1 %vm2638_vm4, %v19322_v28  ;;  %v14954_v58 = vld [vmem:[#allocation7 + $0x804] ss:$16 sps:$4 sm:$0xff]   ;;  %v14904_v20 = vld [vmem:[#allocation7 + $0x688] ss:$16 sps:$4 sm:$0xff]   ;;  %v14912_v62 = vld [vmem:[#allocation7 + $0x6ac] ss:$16 sps:$4 sm:$0xff]  }
 0x2f4   : > { %4879 = vmatprep.subr.bf16.mxu0 %v14909_v11  ;;  %v14910_v61 = vld [vmem:[#allocation7 + $0x6a8] ss:$16 sps:$4 sm:$0xff]   ;;  %v14918_v59 = vld [vmem:[#allocation7 + $0x6cc] ss:$16 sps:$4 sm:$0xff]  }
 0x2f5   : > { %v14916_v29 = vld [vmem:[#allocation7 + $0x6c8] ss:$16 sps:$4 sm:$0xff]   ;;  %v14930_v41 = vld [vmem:[#allocation7 + $0x6ec] ss:$16 sps:$4 sm:$0xff]  }
 0x2f6   : > { %3005 = vmatmul.mubr.bf16.gmra.mrb[112].mxu0 %v19327_v2  ;;  %v19414_v11 = vld [vmem:[%s20396_s3 + $0x90] ss:$8 sps:$4 sm:$0xff]  }
 0x2f7   : > { %12888 = vmatprep.mubr.msk.bf16.mxu0 %vm2638_vm4, %v19333_v23  ;;  %4880 = vmatpush1.bf16.msra.mxu0 %v14907_v17  ;;  %v14939_v17 = vld [vmem:[#allocation7 + $0x70c] ss:$16 sps:$4 sm:$0xff]  }
 0x2f8   : > { %4881 = vmatprep.subr.bf16.mxu0 %v14915_v10  ;;  %v14937_v10 = vld [vmem:[#allocation7 + $0x708] ss:$16 sps:$4 sm:$0xff]  }
 0x2fa   : > { %2922 = vmatmul.mubr.bf16.gmra.mrb[124].mxu1 %v19343_v37 }
 0x2fb   : > { %4882 = vmatpush1.bf16.msra.mxu0 %v14913_v51  ;;  %12903 = vmatprep.mubr.msk.bf16.mxu1 %vm2638_vm4, %v16705_v44  ;;  %v14945_v51 = vld [vmem:[#allocation7 + $0x72c] ss:$16 sps:$4 sm:$0xff]  }
 0x2fc   : > { %4883 = vmatprep.subr.bf16.mxu0 %v14921_v57  ;;  %v19430_v57 = vld [vmem:[%s20396_s3 + $0xa0] ss:$8 sps:$4 sm:$0xff]  }
 0x2fd   : > { %v14969_v44 = vld [vmem:[#allocation7 + $0x7ac] ss:$16 sps:$4 sm:$0xff]  }
 0x2fe   : > { %3015 = vmatmul.mubr.bf16.gmra.mrb[116].mxu0 %v19348_v7 }
 0x2ff   : > { %12889 = vmatprep.mubr.msk.bf16.mxu0 %vm2638_vm4, %v19354_v5  ;;  %4884 = vmatpush1.bf16.msra.mxu0 %v14919_v26  ;;  %v14946_v26 = vld [vmem:[#allocation7 + $0x748] ss:$16 sps:$4 sm:$0xff]  }
 0x300   : > { %4885 = vmatprep.subr.bf16.mxu0 %v14924_v0  ;;  %v14951_v0 = vld [vmem:[#allocation7 + $0x76c] ss:$16 sps:$4 sm:$0xff]  }
 0x302   : > { %3198 = vmatmul.mubr.bf16.vlgmr.msra.gmra.mrb[128].mxu1 %v19165_v33  ;;  %v19382_v33 = vld [vmem:[%s20396_s3 + $0x70] ss:$8 sps:$4 sm:$0xff]  }
 0x303   : > { %4886 = vmatpush1.bf16.msra.mxu0 %v14922_v1  ;;  %5083 = vmatpush1.bf16.msra.mxu1 %v14880_v60 }
 0x304   : > { %4887 = vmatprep.subr.bf16.mxu0 %v14927_v55  ;;  %12904 = vmatprep.mubr.msk.bf16.mxu1 %vm2638_vm4, %v19180_v22  ;;  %v14942_v22 = vld [vmem:[#allocation7 + $0x7e4] ss:$16 sps:$4 sm:$0xff]  }
 0x305   : > { %5084 = vmatprep.subr.bf16.mxu1 %v14888_v18 }
 0x306   : > { %3025 = vmatmul.mubr.bf16.gmra.mrb[120].mxu0 %v19366_v25 }
 0x307   : > { %12890 = vmatprep.mubr.msk.bf16.mxu0 %vm2638_vm4, %v19372_v35  ;;  %4888 = vmatpush1.bf16.msra.mxu0 %v14925_v8  ;;  %v14976_v8 = vld [vmem:[#allocation7 + $0x7c8] ss:$16 sps:$4 sm:$0xff]  }
 0x308   : > { %4889 = vmatprep.subr.bf16.mxu0 %v14933_v43  ;;  %5085 = vmatpush1.bf16.msra.mxu1 %v14886_v42  ;;  %v14990_v43 = vld [vmem:[#allocation7 + $0x7ec] ss:$16 sps:$4 sm:$0xff]  }
 0x309   : > { %5086 = vmatprep.subr.bf16.mxu1 %v14894_v53  ;;  %v14996_v53 = vld [vmem:[#allocation7 + $0x80c] ss:$16 sps:$4 sm:$0xff]  }
 0x30a   : > { %3208 = vmatmul.mubr.bf16.gmra.mrb[132].mxu1 %v19222_v4  ;;  %v19398_v4 = vld [vmem:[%s20396_s3 + $0x80] ss:$8 sps:$4 sm:$0xff]  }
 0x30b   : > { %4890 = vmatpush1.bf16.msra.mxu0 %v14931_v27  ;;  %12905 = vmatprep.mubr.msk.bf16.mxu1 %vm2638_vm4, %v19230_v52  ;;  %v19404_v52 = vld [vmem:[%s20396_s3 + $0x94] ss:$8 sps:$4 sm:$0xff]  }
 0x30c   : > { %4891 = vmatprep.subr.bf16.mxu0 %v14936_v63  ;;  %5087 = vmatpush1.bf16.msra.mxu1 %v14892_v6 }
 0x30d   : > { %5088 = vmatprep.subr.bf16.mxu1 %v14900_v31 }
 0x30e   : > { %3035 = vmatmul.mubr.bf16.gmra.mrb[124].mxu0 %v19382_v33 }
 0x30f   : > { %12891 = vmatprep.mubr.msk.bf16.mxu0 %vm2638_vm4, %v19388_v32  ;;  %4892 = vmatpush1.bf16.msra.mxu0 %v14934_v30 }
 0x310   : > { %4893 = vmatprep.subr.bf16.mxu0 %v14942_v22  ;;  %5089 = vmatpush1.bf16.msra.mxu1 %v14898_v47 }
 0x311   : > { %5090 = vmatprep.subr.bf16.mxu1 %v14906_v21 }
 0x312   : > { %3218 = vmatmul.mubr.bf16.gmra.mrb[136].mxu1 %v19261_v45  ;;  %v19420_v45 = vld [vmem:[%s20396_s3 + $0xa4] ss:$8 sps:$4 sm:$0xff]  }
 0x313   : > { %4894 = vmatpush1.bf16.msra.mxu0 %v14940_v24  ;;  %12906 = vmatprep.mubr.msk.bf16.mxu1 %vm2638_vm4, %v19267_v50  ;;  %v14928_v50 = vld [vmem:[#allocation7 + $0x6e8] ss:$16 sps:$4 sm:$0xff]  }
 0x314   : > { %4936 = vmatprep.subr.bf16.mxu0 %v14954_v58  ;;  %5091 = vmatpush1.bf16.msra.mxu1 %v14904_v20 }
 0x315   : > { %5092 = vmatprep.subr.bf16.mxu1 %v14912_v62 }
 0x316   : > { %3045 = vmatmul.mubr.bf16.gmra.mrb[128].mxu0 %v19398_v4 }
 0x317   : > { %12892 = vmatprep.mubr.msk.bf16.mxu0 %vm2638_vm4, %v19404_v52 }
 0x318   : > { %5093 = vmatpush1.bf16.msra.mxu1 %v14910_v61 }
 0x319   : > { %5094 = vmatprep.subr.bf16.mxu1 %v14918_v59  ;;  %v16715_v59 = vld [vmem:[%s20396_s3 + $0xb4] ss:$8 sps:$4 sm:$0xff]  }
 0x31a   : > { %3228 = vmatmul.mubr.bf16.gmra.mrb[140].mxu1 %v19300_v48  ;;  %v14943_v48 = vld [vmem:[#allocation7 + $0x728] ss:$16 sps:$4 sm:$0xff]  }
 0x31b   : > { %12907 = vmatprep.mubr.msk.bf16.mxu1 %vm2638_vm4, %v19307_v13  ;;  %v14948_v13 = vld [vmem:[#allocation7 + $0x74c] ss:$16 sps:$4 sm:$0xff]  }
 0x31c   : > { %5095 = vmatpush1.bf16.msra.mxu1 %v14916_v29 }
 0x31d   : > { %5096 = vmatprep.subr.bf16.mxu1 %v14930_v41 }
 0x31e   : > { %3055 = vmatmul.mubr.bf16.gmra.mrb[132].mxu0 %v19414_v11 }
 0x31f   : > { %12893 = vmatprep.mubr.msk.bf16.mxu0 %vm2638_vm4, %v19420_v45 }
 0x320   : > { %5097 = vmatpush1.bf16.msra.mxu1 %v14928_v50 }
 0x321   : > { %5098 = vmatprep.subr.bf16.mxu1 %v14939_v17  ;;  %v16716_v17 = vld [vmem:[%s20396_s3 + $0xb0] ss:$8 sps:$4 sm:$0xff]  }
 0x322   : > { %3238 = vmatmul.mubr.bf16.gmra.mrb[144].mxu1 %v19327_v2  ;;  %v14957_v2 = vld [vmem:[#allocation7 + $0x78c] ss:$16 sps:$4 sm:$0xff]  }
 0x323   : > { %12908 = vmatprep.mubr.msk.bf16.mxu1 %vm2638_vm4, %v19333_v23  ;;  %v14955_v23 = vld [vmem:[#allocation7 + $0x788] ss:$16 sps:$4 sm:$0xff]  }
 0x324   : > { %5099 = vmatpush1.bf16.msra.mxu1 %v14937_v10 }
 0x325   : > { %5100 = vmatprep.subr.bf16.mxu1 %v14945_v51  ;;  %v16717_v51 = vld [vmem:[%s20396_s3 + $0xc4] ss:$8 sps:$4 sm:$0xff]  }
 0x326   : > { %3065 = vmatmul.mubr.bf16.gmra.mrb[136].mxu0 %v19430_v57 }
 0x327   : > { %12894 = vmatprep.mubr.msk.bf16.mxu0 %vm2638_vm4, %v18880_v46  ;;  %v14949_v46 = vld [vmem:[#allocation7 + $0x768] ss:$16 sps:$4 sm:$0xff]  }
 0x328   : > { %5101 = vmatpush1.bf16.msra.mxu1 %v14943_v48 }
 0x329   : > { %5102 = vmatprep.subr.bf16.mxu1 %v14948_v13 }
 0x32a   : > { %3248 = vmatmul.mubr.bf16.gmra.mrb[148].mxu1 %v19348_v7 }
 0x32b   : > { %12909 = vmatprep.mubr.msk.bf16.mxu1 %vm2638_vm4, %v19354_v5  ;;  %v14978_v5 = vld [vmem:[#allocation7 + $0x7cc] ss:$16 sps:$4 sm:$0xff]  }
 0x32c   : > { %5103 = vmatpush1.bf16.msra.mxu1 %v14946_v26 }
 0x32d   : > { %5104 = vmatprep.subr.bf16.mxu1 %v14951_v0 }
 0x32e   : > { %3075 = vmatmul.mubr.bf16.gmra.mrb[140].mxu0 %v18934_v3 }
 0x32f   : > { %12895 = vmatprep.mubr.msk.bf16.mxu0 %vm2638_vm4, %v18944_v15  ;;  %v14967_v15 = vld [vmem:[#allocation7 + $0x7a8] ss:$16 sps:$4 sm:$0xff]  }
 0x330   : > { %5105 = vmatpush1.bf16.msra.mxu1 %v14949_v46 }
 0x331   : > { %5106 = vmatprep.subr.bf16.mxu1 %v14957_v2 }
 0x332   : > { %3258 = vmatmul.mubr.bf16.gmra.mrb[152].mxu1 %v19366_v25  ;;  %v2733_v3 = vpop.f32.mrb[48].mxu1 }
 0x333   : > { %12910 = vmatprep.mubr.msk.bf16.mxu1 %vm2638_vm4, %v19372_v35  ;;  %v2735_v7 = vpop.f32.mrb[49].mxu1  ;;  %v14988_v35 = vld [vmem:[#allocation7 + $0x7e8] ss:$16 sps:$4 sm:$0xff]  }
 0x334   : > { %5107 = vmatpush1.bf16.msra.mxu1 %v14955_v23  ;;  %v2737_v1 = vpop.f32.mrb[50].mxu1 }
 0x335   : > { %5108 = vmatprep.subr.bf16.mxu1 %v14969_v44  ;;  %v19450_v55 = vpack.c.bf16 %v2737_v1, %v2733_v3  ;;  %v2739_v60 = vpop.f32.mrb[51].mxu1 }
 0x336   : > { %3085 = vmatmul.mubr.bf16.gmra.mrb[144].mxu0 %v19001_v12  ;;  %v19452_v18 = vpack.c.bf16 %v2739_v60, %v2735_v7 }
 0x337   : > { %12896 = vmatprep.mubr.msk.bf16.mxu0 %vm2638_vm4, %v19013_v38 }
 0x338   : > { %5109 = vmatpush1.bf16.msra.mxu1 %v14967_v15 }
 0x339   : > { %5110 = vmatprep.subr.bf16.mxu1 %v14978_v5 }
 0x33a   : > { %3268 = vmatmul.mubr.bf16.gmra.mrb[156].mxu1 %v19382_v33  ;;  %v2743_v25 = vpop.f32.mrb[52].mxu1 }
 0x33b   : > { %12911 = vmatprep.mubr.msk.bf16.mxu1 %vm2638_vm4, %v19388_v32  ;;  %v2745_v42 = vpop.f32.mrb[53].mxu1 }
 0x33c   : > { %5111 = vmatpush1.bf16.msra.mxu1 %v14976_v8  ;;  %v2747_v27 = vpop.f32.mrb[54].mxu1  ;;  %v14952_v8 = vld [vmem:[#allocation7 + $0x800] ss:$16 sps:$4 sm:$0xff]  }
 0x33d   : > { %5112 = vmatprep.subr.bf16.mxu1 %v14990_v43  ;;  %v19460_v63 = vpack.c.bf16 %v2747_v27, %v2743_v25  ;;  %v2749_v6 = vpop.f32.mrb[55].mxu1  ;;  %v14960_v43 = vld [vmem:[#allocation7 + $0x824] ss:$16 sps:$4 sm:$0xff]  }
 0x33e   : > { %3095 = vmatmul.mubr.bf16.gmra.mrb[148].mxu0 %v19063_v16  ;;  %v19462_v31 = vpack.c.bf16 %v2749_v6, %v2745_v42 }
 0x33f   : > { %12897 = vmatprep.mubr.msk.bf16.mxu0 %vm2638_vm4, %v19074_v34 }
 0x340   : > { %5113 = vmatpush1.bf16.msra.mxu1 %v14988_v35  ;;  %v14963_v35 = vld [vmem:[#allocation7 + $0x844] ss:$16 sps:$4 sm:$0xff]  }
 0x341   : > { %5155 = vmatprep.subr.bf16.mxu1 %v14996_v53 }
 0x342   : > { %3278 = vmatmul.mubr.bf16.gmra.mrb[160].mxu1 %v19398_v4  ;;  %v2753_v30 = vpop.f32.mrb[56].mxu1 }
 0x343   : > { %12912 = vmatprep.mubr.msk.bf16.mxu1 %vm2638_vm4, %v19404_v52  ;;  %v2755_v33 = vpop.f32.mrb[57].mxu1 }
 0x344   : > { %v2757_v22 = vpop.f32.mrb[58].mxu1 }
 0x345   : > { %v19470_v32 = vpack.c.bf16 %v2757_v22, %v2753_v30  ;;  %v2759_v47 = vpop.f32.mrb[59].mxu1  ;;  %v14961_v30 = vld [vmem:[#allocation7 + $0x840] ss:$16 sps:$4 sm:$0xff]  }
 0x346   : > { %3105 = vmatmul.mubr.bf16.gmra.mrb[152].mxu0 %v19126_v49  ;;  %v19472_v21 = vpack.c.bf16 %v2759_v47, %v2755_v33  ;;  %v14966_v33 = vld [vmem:[#allocation7 + $0x864] ss:$16 sps:$4 sm:$0xff]  }
 0x347   : > { %12898 = vmatprep.mubr.msk.bf16.mxu0 %vm2638_vm4, %v19138_v54  ;;  %v14972_v47 = vld [vmem:[#allocation7 + $0x884] ss:$16 sps:$4 sm:$0xff]  }
 0x34a   : > { %3288 = vmatmul.mubr.bf16.gmra.mrb[164].mxu1 %v19414_v11  ;;  %v2763_v24 = vpop.f32.mrb[60].mxu1 }
 0x34b   : > { %12913 = vmatprep.mubr.msk.bf16.mxu1 %vm2638_vm4, %v19420_v45  ;;  %v2765_v58 = vpop.f32.mrb[61].mxu1 }
 0x34c   : > { %v2767_v20 = vpop.f32.mrb[62].mxu1 }
 0x34d   : > { %v19480_v62 = vpack.c.bf16 %v2767_v20, %v2763_v24  ;;  %v2769_v4 = vpop.f32.mrb[63].mxu1 }
 0x34e   : > { %3115 = vmatmul.mubr.bf16.gmra.mrb[156].mxu0 %v19189_v9  ;;  %v19482_v52 = vpack.c.bf16 %v2769_v4, %v2765_v58 }
 0x34f   : > { %12899 = vmatprep.mubr.msk.bf16.mxu0 %vm2638_vm4, %v19200_v36 }
 0x352   : > { %3298 = vmatmul.mubr.bf16.gmra.mrb[168].mxu1 %v19430_v57  ;;  %v2773_v61 = vpop.f32.mrb[64].mxu1 }
 0x353   : > { %12914 = vmatprep.mubr.msk.bf16.mxu1 %vm2638_vm4, %v16715_v59  ;;  %v2775_v29 = vpop.f32.mrb[65].mxu1  ;;  %v14975_v59 = vld [vmem:[#allocation7 + $0x8a4] ss:$16 sps:$4 sm:$0xff]  }
 0x354   : > { %v2777_v41 = vpop.f32.mrb[66].mxu1 }
 0x355   : > { %v19492_v11 = vpack.c.bf16 %v2777_v41, %v2773_v61  ;;  %v2779_v45 = vpop.f32.mrb[67].mxu1  ;;  %v14970_v61 = vld [vmem:[#allocation7 + $0x880] ss:$16 sps:$4 sm:$0xff]   ;;  %v14981_v41 = vld [vmem:[#allocation7 + $0x8c4] ss:$16 sps:$4 sm:$0xff]  }
 0x356   : > { %3125 = vmatmul.mubr.bf16.gmra.mrb[160].mxu0 %v19248_v39  ;;  %v19494_v50 = vpack.c.bf16 %v2779_v45, %v2775_v29 }
 0x357   : > { %12900 = vmatprep.mubr.msk.bf16.mxu0 %vm2638_vm4, %v19254_v40 }
 0x35a   : > { %3308 = vmatmul.mubr.bf16.gmra.mrb[172].mxu1 %v16716_v17  ;;  %v2783_v10 = vpop.f32.mrb[68].mxu1 }
 0x35b   : > { %12915 = vmatprep.mubr.msk.bf16.mxu1 %vm2638_vm4, %v16717_v51  ;;  %v2785_v57 = vpop.f32.mrb[69].mxu1 }
 0x35c   : > { %v2787_v48 = vpop.f32.mrb[70].mxu1 }
 0x35d   : > { %v19506_v13 = vpack.c.bf16 %v2787_v48, %v2783_v10  ;;  %v2789_v26 = vpop.f32.mrb[71].mxu1  ;;  %v14984_v48 = vld [vmem:[#allocation7 + $0x8e4] ss:$16 sps:$4 sm:$0xff]  }
 0x35e   : > { %3135 = vmatmul.mubr.bf16.gmra.mrb[164].mxu0 %v19288_v56  ;;  %v19508_v0 = vpack.c.bf16 %v2789_v26, %v2785_v57  ;;  %v14979_v57 = vld [vmem:[#allocation7 + $0x8c0] ss:$16 sps:$4 sm:$0xff]  }
 0x35f   : > { %12901 = vmatprep.mubr.msk.bf16.mxu0 %vm2638_vm4, %v19294_v14 }
 0x362   : > { %3318 = vmatmul.mubr.bf16.gmra.mrb[176].mxu1 %v19001_v12  ;;  %v2793_v46 = vpop.f32.mrb[72].mxu1 }
 0x363   : > { %12916 = vmatprep.mubr.msk.bf16.mxu1 %vm2638_vm4, %v19013_v38  ;;  %v2795_v2 = vpop.f32.mrb[73].mxu1 }
 0x364   : > { %v2797_v23 = vpop.f32.mrb[74].mxu1 }
 0x365   : > { %v19516_v44 = vpack.c.bf16 %v2797_v23, %v2793_v46  ;;  %v2799_v3 = vpop.f32.mrb[75].mxu1  ;;  %v14987_v46 = vld [vmem:[#allocation7 + $0x904] ss:$16 sps:$4 sm:$0xff]  }
 0x366   : > { %3145 = vmatmul.mubr.bf16.gmra.mrb[168].mxu0 %v19317_v19  ;;  %v19518_v15 = vpack.c.bf16 %v2799_v3, %v2795_v2 }
 0x367   : > { %12902 = vmatprep.mubr.msk.bf16.mxu0 %vm2638_vm4, %v19322_v28 }
 0x36a   : > { %3328 = vmatmul.mubr.bf16.gmra.mrb[180].mxu1 %v19063_v16  ;;  %v2803_v7 = vpop.f32.mrb[76].mxu1 }
 0x36b   : > { %12917 = vmatprep.mubr.msk.bf16.mxu1 %vm2638_vm4, %v19074_v34  ;;  %v2805_v12 = vpop.f32.mrb[77].mxu1  ;;  %v14958_v34 = vld [vmem:[#allocation7 + $0x820] ss:$16 sps:$4 sm:$0xff]  }
 0x36c   : > { %v2807_v5 = vpop.f32.mrb[78].mxu1 }
 0x36d   : > { %v19525_v38 = vpack.c.bf16 %v2807_v5, %v2803_v7  ;;  %v2809_v1 = vpop.f32.mrb[79].mxu1  ;;  %v14993_v5 = vld [vmem:[#allocation7 + $0x924] ss:$16 sps:$4 sm:$0xff]  }
 0x36e   : > { %3155 = vmatmul.mubr.bf16.gmra.mrb[172].mxu0 %v19343_v37  ;;  %v19527_v60 = vpack.c.bf16 %v2809_v1, %v2805_v12  ;;  %v14985_v12 = vld [vmem:[#allocation7 + $0x900] ss:$16 sps:$4 sm:$0xff]  }
 0x36f   : > { %4895 = vmatprep.mubr.bf16.mxu0 %v19494_v50 }
 0x372   : > { %3338 = vmatmul.mubr.bf16.gmra.mrb[184].mxu1 %v19126_v49  ;;  %v2813_v16 = vpop.f32.mrb[80].mxu1 }
 0x373   : > { %12918 = vmatprep.mubr.msk.bf16.mxu1 %vm2638_vm4, %v19138_v54  ;;  %v2815_v25 = vpop.f32.mrb[81].mxu1  ;;  %v14964_v54 = vld [vmem:[#allocation7 + $0x860] ss:$16 sps:$4 sm:$0xff]  }
 0x374   : > { %v2817_v42 = vpop.f32.mrb[82].mxu1 }
 0x375   : > { %v19534_v53 = vpack.c.bf16 %v2817_v42, %v2813_v16  ;;  %v2819_v27 = vpop.f32.mrb[83].mxu1  ;;  %v15005_v42 = vld [vmem:[#allocation7 + $0x964] ss:$16 sps:$4 sm:$0xff]  }
 0x376   : > { %4896 = vmatmul.mubr.bf16.vlgmr.msra.gmra.mrb[176].mxu0 %v19492_v11  ;;  %v19536_v6 = vpack.c.bf16 %v2819_v27, %v2815_v25 }
 0x377   : > { %4905 = vmatprep.mubr.bf16.mxu0 %v19508_v0  ;;  %4937 = vmatpush1.bf16.msra.mxu0 %v14952_v8  ;;  %v14999_v8 = vld [vmem:[#allocation7 + $0x944] ss:$16 sps:$4 sm:$0xff]  }
 0x378   : > { %4938 = vmatprep.subr.bf16.mxu0 %v14960_v43 }
 0x37a   : > { %3348 = vmatmul.mubr.bf16.gmra.mrb[188].mxu1 %v19189_v9  ;;  %v2823_v49 = vpop.f32.mrb[84].mxu1 }
 0x37b   : > { %4939 = vmatpush1.bf16.msra.mxu0 %v14958_v34  ;;  %12919 = vmatprep.mubr.msk.bf16.mxu1 %vm2638_vm4, %v19200_v36  ;;  %v2825_v22 = vpop.f32.mrb[85].mxu1  ;;  %v14973_v36 = vld [vmem:[#allocation7 + $0x8a0] ss:$16 sps:$4 sm:$0xff]  }
 0x37c   : > { %4940 = vmatprep.subr.bf16.mxu0 %v14963_v35  ;;  %v2827_v24 = vpop.f32.mrb[86].mxu1  ;;  %v14997_v35 = vld [vmem:[#allocation7 + $0x940] ss:$16 sps:$4 sm:$0xff]  }
 0x37d   : > { %v19543_v58 = vpack.c.bf16 %v2827_v24, %v2823_v49  ;;  %v2829_v20 = vpop.f32.mrb[87].mxu1  ;;  %v15002_v24 = vld [vmem:[#allocation7 + $0x82c] ss:$16 sps:$4 sm:$0xff]  }
 0x37e   : > { %4906 = vmatmul.mubr.bf16.gmra.mrb[180].mxu0 %v19506_v13  ;;  %v19545_v4 = vpack.c.bf16 %v2829_v20, %v2825_v22  ;;  %v15009_v20 = vld [vmem:[#allocation7 + $0x980] ss:$16 sps:$4 sm:$0xff]  }
 0x37f   : > { %4915 = vmatprep.mubr.bf16.mxu0 %v19518_v15  ;;  %4941 = vmatpush1.bf16.msra.mxu0 %v14961_v30  ;;  %v15011_v30 = vld [vmem:[#allocation7 + $0x984] ss:$16 sps:$4 sm:$0xff]  }
 0x380   : > { %4942 = vmatprep.subr.bf16.mxu0 %v14966_v33 }
 0x382   : > { %3358 = vmatmul.mubr.bf16.gmra.mrb[192].mxu1 %v19248_v39  ;;  %v2833_v9 = vpop.f32.mrb[88].mxu1 }
 0x383   : > { %4943 = vmatpush1.bf16.msra.mxu0 %v14964_v54  ;;  %12920 = vmatprep.mubr.msk.bf16.mxu1 %vm2638_vm4, %v19254_v40  ;;  %v2835_v29 = vpop.f32.mrb[89].mxu1  ;;  %v14982_v40 = vld [vmem:[#allocation7 + $0x8e0] ss:$16 sps:$4 sm:$0xff]  }
 0x384   : > { %4944 = vmatprep.subr.bf16.mxu0 %v14972_v47  ;;  %v2837_v45 = vpop.f32.mrb[90].mxu1  ;;  %v14994_v47 = vld [vmem:[#allocation7 + $0x808] ss:$16 sps:$4 sm:$0xff]  }
 0x385   : > { %v19552_v17 = vpack.c.bf16 %v2837_v45, %v2833_v9  ;;  %v2839_v10 = vpop.f32.mrb[91].mxu1 }
 0x386   : > { %4916 = vmatmul.mubr.bf16.gmra.mrb[184].mxu0 %v19516_v44  ;;  %v19554_v51 = vpack.c.bf16 %v2839_v10, %v2835_v29  ;;  %v15015_v29 = vld [vmem:[#allocation7 + $0x9a0] ss:$16 sps:$4 sm:$0xff]   ;;  %v15023_v10 = vld [vmem:[#allocation7 + $0x9c4] ss:$16 sps:$4 sm:$0xff]  }
 0x387   : > { %4925 = vmatprep.mubr.bf16.mxu0 %v19527_v60  ;;  %4945 = vmatpush1.bf16.msra.mxu0 %v14970_v61  ;;  %v15000_v61 = vld [vmem:[#allocation7 + $0x828] ss:$16 sps:$4 sm:$0xff]  }
 0x388   : > { %4946 = vmatprep.subr.bf16.mxu0 %v14975_v59 }
 0x38a   : > { %3368 = vmatmul.mubr.bf16.gmra.mrb[196].mxu1 %v19288_v56  ;;  %v2843_v39 = vpop.f32.mrb[92].mxu1 }
 0x38b   : > { %4947 = vmatpush1.bf16.msra.mxu0 %v14973_v36  ;;  %12921 = vmatprep.mubr.msk.bf16.mxu1 %vm2638_vm4, %v19294_v14  ;;  %v2845_v26 = vpop.f32.mrb[93].mxu1  ;;  %v14991_v14 = vld [vmem:[#allocation7 + $0x920] ss:$16 sps:$4 sm:$0xff]   ;;  %v15008_v36 = vld [vmem:[#allocation7 + $0x84c] ss:$16 sps:$4 sm:$0xff]  }
 0x38c   : > { %4948 = vmatprep.subr.bf16.mxu0 %v14981_v41  ;;  %v2847_v2 = vpop.f32.mrb[94].mxu1 }
 0x38d   : > { %v19560_v23 = vpack.c.bf16 %v2847_v2, %v2843_v39  ;;  %v2849_v3 = vpop.f32.mrb[95].mxu1  ;;  %v15014_v2 = vld [vmem:[#allocation7 + $0x86c] ss:$16 sps:$4 sm:$0xff]  }
 0x38e   : > { %4926 = vmatmul.mubr.bf16.gmra.mrb[188].mxu0 %v19525_v38  ;;  %v19562_v7 = vpack.c.bf16 %v2849_v3, %v2845_v26  ;;  %v15006_v26 = vld [vmem:[#allocation7 + $0x848] ss:$16 sps:$4 sm:$0xff]   ;;  %v15021_v3 = vld [vmem:[#allocation7 + $0x9c0] ss:$16 sps:$4 sm:$0xff]  }
 0x38f   : > { %4949 = vmatpush1.bf16.msra.mxu0 %v14979_v57 }
 0x390   : > { %4950 = vmatprep.subr.bf16.mxu0 %v14984_v48 }
 0x392   : > { %3378 = vmatmul.mubr.bf16.gmra.mrb[200].mxu1 %v19317_v19  ;;  %v2853_v56 = vpop.f32.mrb[96].mxu1 }
 0x393   : > { %4951 = vmatpush1.bf16.msra.mxu0 %v14982_v40  ;;  %12922 = vmatprep.mubr.msk.bf16.mxu1 %vm2638_vm4, %v19322_v28  ;;  %v2855_v1 = vpop.f32.mrb[97].mxu1  ;;  %v15003_v28 = vld [vmem:[#allocation7 + $0x960] ss:$16 sps:$4 sm:$0xff]  }
 0x394   : > { %4952 = vmatprep.subr.bf16.mxu0 %v14987_v46  ;;  %v2857_v43 = vpop.f32.mrb[98].mxu1 }
 0x395   : > { %v19567_v16 = vpack.c.bf16 %v2857_v43, %v2853_v56  ;;  %v2859_v34 = vpop.f32.mrb[99].mxu1 }
 0x396   : > { %v19569_v25 = vpack.c.bf16 %v2859_v34, %v2855_v1  ;;  %v15020_v1 = vld [vmem:[#allocation7 + $0x88c] ss:$16 sps:$4 sm:$0xff]  }
 0x397   : > { %4953 = vmatpush1.bf16.msra.mxu0 %v14985_v12  ;;  %20590 = vst [vmem:[#allocation30_spill] sm:$0xff] %v19567_v16  ;;  %v15029_v12 = vld [vmem:[#allocation7 + $0x9e4] ss:$16 sps:$4 sm:$0xff]   ;;  %v15158_v16 = vld [vmem:[#allocation7 + $0xb6c] ss:$16 sps:$4 sm:$0xff]  }
 0x398   : > { %4954 = vmatprep.subr.bf16.mxu0 %v14993_v5  ;;  %20591 = vst [vmem:[#allocation31_spill] sm:$0xff] %v19569_v25  ;;  %v15012_v5 = vld [vmem:[#allocation7 + $0x868] ss:$16 sps:$4 sm:$0xff]  }
 0x39a   : > { %3388 = vmatmul.mubr.bf16.gmra.mrb[204].mxu1 %v19343_v37  ;;  %v2863_v19 = vpop.f32.mrb[100].mxu1  ;;  %v15017_v37 = vld [vmem:[#allocation7 + $0x9a4] ss:$16 sps:$4 sm:$0xff]  }
 0x39b   : > { %4955 = vmatpush1.bf16.msra.mxu0 %v14991_v14  ;;  %5114 = vmatprep.mubr.bf16.mxu1 %v19494_v50  ;;  %v2865_v27 = vpop.f32.mrb[101].mxu1 }
 0x39c   : > { %4956 = vmatprep.subr.bf16.mxu0 %v14999_v8  ;;  %v2867_v33 = vpop.f32.mrb[102].mxu1  ;;  %v15027_v8 = vld [vmem:[#allocation7 + $0x9e0] ss:$16 sps:$4 sm:$0xff]  }
 0x39d   : > { %v19573_v49 = vpack.c.bf16 %v2867_v33, %v2863_v19  ;;  %v2869_v54 = vpop.f32.mrb[103].mxu1 }
 0x39e   : > { %v19575_v22 = vpack.c.bf16 %v2869_v54, %v2865_v27 }
 0x39f   : > { %4957 = vmatpush1.bf16.msra.mxu0 %v14997_v35  ;;  %20592 = vst [vmem:[#allocation32_spill] sm:$0xff] %v19573_v49  ;;  %v15035_v35 = vld [vmem:[#allocation7 + $0xa04] ss:$16 sps:$4 sm:$0xff]  }
 0x3a0   : > { %4958 = vmatprep.subr.bf16.mxu0 %v15005_v42  ;;  %20593 = vst [vmem:[#allocation33_spill] sm:$0xff] %v19575_v22 }
 0x3a2   : > { %5115 = vmatmul.mubr.bf16.vlgmr.msra.gmra.mrb[208].mxu1 %v19492_v11  ;;  %v2873_v50 = vpop.f32.mrb[104].mxu1 }
 0x3a3   : > { %4959 = vmatpush1.bf16.msra.mxu0 %v15003_v28  ;;  %5156 = vmatpush1.bf16.msra.mxu1 %v14994_v47  ;;  %v2875_v9 = vpop.f32.mrb[105].mxu1  ;;  %v15026_v47 = vld [vmem:[#allocation7 + $0x8ac] ss:$16 sps:$4 sm:$0xff]  }
 0x3a4   : > { %4960 = vmatprep.subr.bf16.mxu0 %v15011_v30  ;;  %5124 = vmatprep.mubr.bf16.mxu1 %v19508_v0  ;;  %v2877_v45 = vpop.f32.mrb[106].mxu1  ;;  %v15018_v30 = vld [vmem:[#allocation7 + $0x888] ss:$16 sps:$4 sm:$0xff]  }
 0x3a5   : > { %5157 = vmatprep.subr.bf16.mxu1 %v15002_v24  ;;  %v19579_v48 = vpack.c.bf16 %v2877_v45, %v2873_v50  ;;  %v2879_v39 = vpop.f32.mrb[107].mxu1  ;;  %v15024_v24 = vld [vmem:[#allocation7 + $0x8a8] ss:$16 sps:$4 sm:$0xff]  }
 0x3a6   : > { %v19583_v0 = vpack.c.bf16 %v2879_v39, %v2875_v9  ;;  %v15030_v45 = vld [vmem:[#allocation7 + $0x8c8] ss:$16 sps:$4 sm:$0xff]  }
 0x3a7   : > { %4961 = vmatpush1.bf16.msra.mxu0 %v15009_v20  ;;  %20594 = vst [vmem:[#allocation34_spill] sm:$0xff] %v19579_v48  ;;  %5158 = vmatpush1.bf16.msra.mxu1 %v15000_v61 }
 0x3a8   : > { %4962 = vmatprep.subr.bf16.mxu0 %v15017_v37  ;;  %20595 = vst [vmem:[#allocation35_spill] sm:$0xff] %v19583_v0  ;;  %5159 = vmatprep.subr.bf16.mxu1 %v15008_v36  ;;  %v15032_v37 = vld [vmem:[#allocation7 + $0x8cc] ss:$16 sps:$4 sm:$0xff]   ;;  %v15123_v0 = vld [vmem:[#allocation7 + $0xbe0] ss:$16 sps:$4 sm:$0xff]  }
 0x3a9   : > { %v2966_v59 = vpop.f32.mrb[96].mxu0 }
 0x3aa   : > { %v2968_v41 = vpop.f32.mrb[97].mxu0  ;;  %5125 = vmatmul.mubr.bf16.gmra.mrb[212].mxu1 %v19506_v13 }
 0x3ab   : > { %v2970_v57 = vpop.f32.mrb[98].mxu0  ;;  %4963 = vmatpush1.bf16.msra.mxu0 %v15015_v29  ;;  %5160 = vmatpush1.bf16.msra.mxu1 %v15006_v26  ;;  %v2883_v14 = vpop.f32.mrb[108].mxu1 }
 0x3ac   : > { %v19581_v11 = vpack.c.bf16 %v2970_v57, %v2966_v59  ;;  %v2972_v40 = vpop.f32.mrb[99].mxu0  ;;  %4964 = vmatprep.subr.bf16.mxu0 %v15023_v10  ;;  %5134 = vmatprep.mubr.bf16.mxu1 %v19518_v15  ;;  %v2885_v34 = vpop.f32.mrb[109].mxu1 }
 0x3ad   : > { %v19585_v46 = vpack.c.bf16 %v2972_v40, %v2968_v41  ;;  %5161 = vmatprep.subr.bf16.mxu1 %v15014_v2  ;;  %v2887_v19 = vpop.f32.mrb[110].mxu1  ;;  %v15036_v40 = vld [vmem:[#allocation7 + $0x8e8] ss:$16 sps:$4 sm:$0xff]   ;;  %v15044_v2 = vld [vmem:[#allocation7 + $0x90c] ss:$16 sps:$4 sm:$0xff]  }
 0x3ae   : > { %v19591_v13 = vpack.c.bf16 %v2887_v19, %v2883_v14  ;;  %v2889_v15 = vpop.f32.mrb[111].mxu1 }
 0x3af   : > { %4965 = vmatpush1.bf16.msra.mxu0 %v15021_v3  ;;  %5162 = vmatpush1.bf16.msra.mxu1 %v15012_v5  ;;  %v19595_v54 = vpack.c.bf16 %v2889_v15, %v2885_v34 }
 0x3b0   : > { %4966 = vmatprep.subr.bf16.mxu0 %v15029_v12  ;;  %20596 = vst [vmem:[#allocation36_spill] sm:$0xff] %v19591_v13  ;;  %5163 = vmatprep.subr.bf16.mxu1 %v15020_v1  ;;  %v15134_v13 = vld [vmem:[#allocation7 + $0xaec] ss:$16 sps:$4 sm:$0xff]  }
 0x3b1   : > { %v2976_v56 = vpop.f32.mrb[100].mxu0  ;;  %20597 = vst [vmem:[#allocation37_spill] sm:$0xff] %v19595_v54  ;;  %v15146_v54 = vld [vmem:[#allocation7 + $0xb2c] ss:$16 sps:$4 sm:$0xff]  }
 0x3b2   : > { %v2978_v43 = vpop.f32.mrb[101].mxu0  ;;  %5135 = vmatmul.mubr.bf16.gmra.mrb[216].mxu1 %v19516_v44 }
 0x3b3   : > { %v2980_v42 = vpop.f32.mrb[102].mxu0  ;;  %4967 = vmatpush1.bf16.msra.mxu0 %v15027_v8  ;;  %5164 = vmatpush1.bf16.msra.mxu1 %v15018_v30  ;;  %v2893_v61 = vpop.f32.mrb[112].mxu1  ;;  %v15056_v30 = vld [vmem:[#allocation7 + $0x94c] ss:$16 sps:$4 sm:$0xff]  }
 0x3b4   : > { %v19589_v28 = vpack.c.bf16 %v2980_v42, %v2976_v56  ;;  %v2982_v27 = vpop.f32.mrb[103].mxu0  ;;  %5009 = vmatprep.subr.bf16.mxu0 %v15035_v35  ;;  %5144 = vmatprep.mubr.bf16.mxu1 %v19527_v60  ;;  %v2895_v9 = vpop.f32.mrb[113].mxu1  ;;  %v15038_v60 = vld [vmem:[#allocation7 + $0x8ec] ss:$16 sps:$4 sm:$0xff]  }
 0x3b5   : > { %v19593_v33 = vpack.c.bf16 %v2982_v27, %v2978_v43  ;;  %5165 = vmatprep.subr.bf16.mxu1 %v15026_v47  ;;  %v2897_v41 = vpop.f32.mrb[114].mxu1  ;;  %v15042_v43 = vld [vmem:[#allocation7 + $0x908] ss:$16 sps:$4 sm:$0xff]   ;;  %v15050_v42 = vld [vmem:[#allocation7 + $0x92c] ss:$16 sps:$4 sm:$0xff]  }
 0x3b6   : > { %v19603_v44 = vpack.c.bf16 %v2897_v41, %v2893_v61  ;;  %v2899_v57 = vpop.f32.mrb[115].mxu1  ;;  %v15048_v27 = vld [vmem:[#allocation7 + $0x928] ss:$16 sps:$4 sm:$0xff]   ;;  %v15033_v41 = vld [vmem:[#allocation7 + $0xa00] ss:$16 sps:$4 sm:$0xff]  }
 0x3b7   : > { %5166 = vmatpush1.bf16.msra.mxu1 %v15024_v24  ;;  %v19605_v39 = vpack.c.bf16 %v2899_v57, %v2895_v9  ;;  %v15054_v9 = vld [vmem:[#allocation7 + $0x948] ss:$16 sps:$4 sm:$0xff]  }
 0x3b8   : > { %20598 = vst [vmem:[#allocation38_spill] sm:$0xff] %v19603_v44  ;;  %5167 = vmatprep.subr.bf16.mxu1 %v15032_v37 }
 0x3b9   : > { %v2986_v20 = vpop.f32.mrb[104].mxu0  ;;  %20599 = vst [vmem:[#allocation39_spill] sm:$0xff] %v19605_v39 }
 0x3ba   : > { %v2988_v50 = vpop.f32.mrb[105].mxu0  ;;  %5145 = vmatmul.mubr.bf16.gmra.mrb[220].mxu1 %v19525_v38 }
 0x3bb   : > { %v2990_v59 = vpop.f32.mrb[106].mxu0  ;;  %5168 = vmatpush1.bf16.msra.mxu1 %v15030_v45  ;;  %v2903_v12 = vpop.f32.mrb[116].mxu1 }
 0x3bc   : > { %v19599_v36 = vpack.c.bf16 %v2990_v59, %v2986_v20  ;;  %v2992_v29 = vpop.f32.mrb[107].mxu0  ;;  %5169 = vmatprep.subr.bf16.mxu1 %v15038_v60  ;;  %v2905_v56 = vpop.f32.mrb[117].mxu1  ;;  %v15062_v60 = vld [vmem:[#allocation7 + $0x96c] ss:$16 sps:$4 sm:$0xff]  }
 0x3bd   : > { %v19601_v10 = vpack.c.bf16 %v2992_v29, %v2988_v50  ;;  %v2907_v8 = vpop.f32.mrb[118].mxu1 }
 0x3be   : > { %v19612_v35 = vpack.c.bf16 %v2907_v8, %v2903_v12  ;;  %v2909_v38 = vpop.f32.mrb[119].mxu1  ;;  %v15068_v12 = vld [vmem:[#allocation7 + $0x98c] ss:$16 sps:$4 sm:$0xff]  }
 0x3bf   : > { %5170 = vmatpush1.bf16.msra.mxu1 %v15036_v40  ;;  %v19614_v19 = vpack.c.bf16 %v2909_v38, %v2905_v56  ;;  %v15041_v40 = vld [vmem:[#allocation7 + $0xa24] ss:$16 sps:$4 sm:$0xff]  }
 0x3c0   : > { %20600 = vst [vmem:[#allocation40_spill] sm:$0xff] %v19612_v35  ;;  %5171 = vmatprep.subr.bf16.mxu1 %v15044_v2  ;;  %v15060_v2 = vld [vmem:[#allocation7 + $0x968] ss:$16 sps:$4 sm:$0xff]   ;;  %v15047_v56 = vld [vmem:[#allocation7 + $0xa44] ss:$16 sps:$4 sm:$0xff]  }
 0x3c1   : > { %v2996_v26 = vpop.f32.mrb[108].mxu0  ;;  %20601 = vst [vmem:[#allocation41_spill] sm:$0xff] %v19614_v19 }
 0x3c2   : > { %v2998_v3 = vpop.f32.mrb[109].mxu0 }
 0x3c3   : > { %v3000_v5 = vpop.f32.mrb[110].mxu0  ;;  %5172 = vmatpush1.bf16.msra.mxu1 %v15042_v43 }
 0x3c4   : > { %v19608_v14 = vpack.c.bf16 %v3000_v5, %v2996_v26  ;;  %v3002_v1 = vpop.f32.mrb[111].mxu0  ;;  %5173 = vmatprep.subr.bf16.mxu1 %v15050_v42 }
 0x3c5   : > { %v19610_v34 = vpack.c.bf16 %v3002_v1, %v2998_v3  ;;  %v2913_v24 = vpop.f32.mrb[120].mxu1  ;;  %v15039_v3 = vld [vmem:[#allocation7 + $0xa20] ss:$16 sps:$4 sm:$0xff]  }
 0x3c6   : > { %v2915_v37 = vpop.f32.mrb[121].mxu1 }
 0x3c7   : > { %5174 = vmatpush1.bf16.msra.mxu1 %v15048_v27  ;;  %v2917_v59 = vpop.f32.mrb[122].mxu1  ;;  %v15066_v27 = vld [vmem:[#allocation7 + $0x988] ss:$16 sps:$4 sm:$0xff]  }
 0x3c8   : > { %v19618_v45 = vpack.c.bf16 %v2917_v59, %v2913_v24  ;;  %v2919_v57 = vpop.f32.mrb[123].mxu1  ;;  %5175 = vmatprep.subr.bf16.mxu1 %v15056_v30  ;;  %v15053_v59 = vld [vmem:[#allocation7 + $0xa64] ss:$16 sps:$4 sm:$0xff]  }
 0x3c9   : > { %v3006_v15 = vpop.f32.mrb[112].mxu0  ;;  %v19620_v26 = vpack.c.bf16 %v2919_v57, %v2915_v37  ;;  %v15074_v37 = vld [vmem:[#allocation7 + $0x9ac] ss:$16 sps:$4 sm:$0xff]  }
 0x3ca   : > { %v3008_v47 = vpop.f32.mrb[113].mxu0  ;;  %20602 = vst [vmem:[#allocation42_spill] sm:$0xff] %v19618_v45  ;;  %v15080_v57 = vld [vmem:[#allocation7 + $0x9cc] ss:$16 sps:$4 sm:$0xff]  }
 0x3cb   : > { %v3010_v20 = vpop.f32.mrb[114].mxu0  ;;  %20603 = vst [vmem:[#allocation43_spill] sm:$0xff] %v19620_v26  ;;  %5176 = vmatpush1.bf16.msra.mxu1 %v15054_v9  ;;  %v15089_v26 = vld [vmem:[#allocation7 + $0xb24] ss:$16 sps:$4 sm:$0xff]  }
 0x3cc   : > { %v19616_v50 = vpack.c.bf16 %v3010_v20, %v3006_v15  ;;  %v3012_v61 = vpop.f32.mrb[115].mxu0  ;;  %5177 = vmatprep.subr.bf16.mxu1 %v15062_v60 }
 0x3cd   : > { %v3425_v29 = vpack.c.bf16 %v3012_v61, %v3008_v47  ;;  %v2923_v1 = vpop.f32.mrb[124].mxu1  ;;  %v15045_v47 = vld [vmem:[#allocation7 + $0xa40] ss:$16 sps:$4 sm:$0xff]  }
 0x3ce   : > { %v2925_v43 = vpop.f32.mrb[125].mxu1 }
 0x3cf   : > { %4968 = vmatprep.mubr.bf16.mxu0 %v3425_v29  ;;  %5187 = vmatprep.mubr.bf16.mxu1 %v3425_v29  ;;  %v2927_v42 = vpop.f32.mrb[126].mxu1  ;;  %v15072_v29 = vld [vmem:[#allocation7 + $0x9a8] ss:$16 sps:$4 sm:$0xff]  }
 0x3d0   : > { %4969 = vmatmul.mubr.bf16.vlgmr.msra.gmra.mrb[176].mxu0 %v19616_v50  ;;  %5178 = vmatpush1.bf16.msra.mxu1 %v15060_v2  ;;  %v19625_v24 = vpack.c.bf16 %v2927_v42, %v2923_v1  ;;  %v2929_v20 = vpop.f32.mrb[127].mxu1  ;;  %v15078_v1 = vld [vmem:[#allocation7 + $0x9c8] ss:$16 sps:$4 sm:$0xff]  }
 0x3d1   : > { %5010 = vmatpush1.bf16.msra.mxu0 %v15033_v41  ;;  %v3016_v5 = vpop.f32.mrb[116].mxu0  ;;  %5179 = vmatprep.subr.bf16.mxu1 %v15068_v12  ;;  %v19629_v9 = vpack.c.bf16 %v2929_v20, %v2925_v43  ;;  %v15051_v41 = vld [vmem:[#allocation7 + $0xa60] ss:$16 sps:$4 sm:$0xff]   ;;  %v15065_v20 = vld [vmem:[#allocation7 + $0xaa4] ss:$16 sps:$4 sm:$0xff]  }
 0x3d2   : > { %5011 = vmatprep.subr.bf16.mxu0 %v15041_v40  ;;  %v3018_v8 = vpop.f32.mrb[117].mxu0  ;;  %20604 = vst [vmem:[#allocation45_spill] sm:$0xff] %v19625_v24  ;;  %v15059_v40 = vld [vmem:[#allocation7 + $0xa84] ss:$16 sps:$4 sm:$0xff]  }
 0x3d3   : > { %v3020_v38 = vpop.f32.mrb[118].mxu0  ;;  %20605 = vst [vmem:[#allocation58_spill] sm:$0xff] %v19629_v9 }
 0x3d4   : > { %v19623_v15 = vpack.c.bf16 %v3020_v38, %v3016_v5  ;;  %v3022_v30 = vpop.f32.mrb[119].mxu0  ;;  %5180 = vmatpush1.bf16.msra.mxu1 %v15066_v27  ;;  %v15057_v38 = vld [vmem:[#allocation7 + $0xa80] ss:$16 sps:$4 sm:$0xff]  }
 0x3d5   : > { %5012 = vmatpush1.bf16.msra.mxu0 %v15039_v3  ;;  %v19627_v61 = vpack.c.bf16 %v3022_v30, %v3018_v8  ;;  %5181 = vmatprep.subr.bf16.mxu1 %v15074_v37  ;;  %v3199_v2 = vpop.f32.mrb[128].mxu1  ;;  %v15086_v30 = vld [vmem:[#allocation7 + $0x9ec] ss:$16 sps:$4 sm:$0xff]  }
 0x3d6   : > { %5013 = vmatprep.subr.bf16.mxu0 %v15047_v56  ;;  %v3201_v12 = vpop.f32.mrb[129].mxu1 }
 0x3d7   : > { %4978 = vmatprep.mubr.bf16.mxu0 %v19627_v61  ;;  %v3203_v56 = vpop.f32.mrb[130].mxu1 }
 0x3d8   : > { %4979 = vmatmul.mubr.bf16.gmra.mrb[180].mxu0 %v19623_v15  ;;  %5182 = vmatpush1.bf16.msra.mxu1 %v15072_v29  ;;  %v19635_v42 = vpack.c.bf16 %v3203_v56, %v3199_v2  ;;  %v3205_v27 = vpop.f32.mrb[131].mxu1  ;;  %v15063_v29 = vld [vmem:[#allocation7 + $0xaa0] ss:$16 sps:$4 sm:$0xff]   ;;  %v15090_v56 = vld [vmem:[#allocation7 + $0xa08] ss:$16 sps:$4 sm:$0xff]  }
 0x3d9   : > { %5014 = vmatpush1.bf16.msra.mxu0 %v15045_v47  ;;  %v3026_v60 = vpop.f32.mrb[120].mxu0  ;;  %5183 = vmatprep.subr.bf16.mxu1 %v15080_v57  ;;  %v19639_v37 = vpack.c.bf16 %v3205_v27, %v3201_v12  ;;  %v15071_v57 = vld [vmem:[#allocation7 + $0xac4] ss:$16 sps:$4 sm:$0xff]   ;;  %v15069_v27 = vld [vmem:[#allocation7 + $0xac0] ss:$16 sps:$4 sm:$0xff]  }
 0x3da   : > { %5015 = vmatprep.subr.bf16.mxu0 %v15053_v59  ;;  %v3028_v3 = vpop.f32.mrb[121].mxu0  ;;  %v15084_v59 = vld [vmem:[#allocation7 + $0x9e8] ss:$16 sps:$4 sm:$0xff]  }
 0x3db   : > { %v3030_v5 = vpop.f32.mrb[122].mxu0 }
 0x3dc   : > { %v19633_v8 = vpack.c.bf16 %v3030_v5, %v3026_v60  ;;  %v3032_v43 = vpop.f32.mrb[123].mxu0  ;;  %5184 = vmatpush1.bf16.msra.mxu1 %v15078_v1 }
 0x3dd   : > { %5016 = vmatpush1.bf16.msra.mxu0 %v15051_v41  ;;  %v19637_v47 = vpack.c.bf16 %v3032_v43, %v3028_v3  ;;  %5185 = vmatprep.subr.bf16.mxu1 %v15086_v30  ;;  %v15092_v41 = vld [vmem:[#allocation7 + $0xa0c] ss:$16 sps:$4 sm:$0xff]   ;;  %v3209_v2 = vpop.f32.mrb[132].mxu1 }
 0x3de   : > { %5017 = vmatprep.subr.bf16.mxu0 %v15059_v40  ;;  %v3211_v5 = vpop.f32.mrb[133].mxu1  ;;  %v15098_v30 = vld [vmem:[#allocation7 + $0xa2c] ss:$16 sps:$4 sm:$0xff]  }
 0x3df   : > { %4988 = vmatprep.mubr.bf16.mxu0 %v19637_v47  ;;  %v3213_v12 = vpop.f32.mrb[134].mxu1 }
 0x3e0   : > { %4989 = vmatmul.mubr.bf16.gmra.mrb[184].mxu0 %v19633_v8  ;;  %5186 = vmatpush1.bf16.msra.mxu1 %v15084_v59  ;;  %v19645_v24 = vpack.c.bf16 %v3213_v12, %v3209_v2  ;;  %v15096_v59 = vld [vmem:[#allocation7 + $0xa28] ss:$16 sps:$4 sm:$0xff]   ;;  %v15083_v2 = vld [vmem:[#allocation7 + $0xb04] ss:$16 sps:$4 sm:$0xff]  }
 0x3e1   : > { %5018 = vmatpush1.bf16.msra.mxu0 %v15057_v38  ;;  %v3036_v60 = vpop.f32.mrb[124].mxu0  ;;  %v3215_v38 = vpop.f32.mrb[135].mxu1  ;;  %5228 = vmatprep.subr.bf16.mxu1 %v15092_v41  ;;  %v15102_v12 = vld [vmem:[#allocation7 + $0xa48] ss:$16 sps:$4 sm:$0xff]  }
 0x3e2   : > { %5019 = vmatprep.subr.bf16.mxu0 %v15065_v20  ;;  %v3038_v3 = vpop.f32.mrb[125].mxu0  ;;  %v15077_v20 = vld [vmem:[#allocation7 + $0xae4] ss:$16 sps:$4 sm:$0xff]   ;;  %v19649_v45 = vpack.c.bf16 %v3215_v38, %v3211_v5 }
 0x3e3   : > { %v3040_v40 = vpop.f32.mrb[126].mxu0  ;;  %5188 = vmatmul.mubr.bf16.vlgmr.msra.gmra.mrb[208].mxu1 %v19616_v50 }
 0x3e4   : > { %v19643_v43 = vpack.c.bf16 %v3040_v40, %v3036_v60  ;;  %v3042_v1 = vpop.f32.mrb[127].mxu0  ;;  %5197 = vmatprep.mubr.bf16.mxu1 %v19627_v61  ;;  %5229 = vmatpush1.bf16.msra.mxu1 %v15090_v56  ;;  %v15104_v60 = vld [vmem:[#allocation7 + $0xa4c] ss:$16 sps:$4 sm:$0xff]   ;;  %v15081_v56 = vld [vmem:[#allocation7 + $0xb00] ss:$16 sps:$4 sm:$0xff]  }
 0x3e5   : > { %5020 = vmatpush1.bf16.msra.mxu0 %v15063_v29  ;;  %v19647_v9 = vpack.c.bf16 %v3042_v1, %v3038_v3  ;;  %v15075_v29 = vld [vmem:[#allocation7 + $0xae0] ss:$16 sps:$4 sm:$0xff]   ;;  %5230 = vmatprep.subr.bf16.mxu1 %v15098_v30  ;;  %v3219_v3 = vpop.f32.mrb[136].mxu1  ;;  %v15110_v30 = vld [vmem:[#allocation7 + $0xa6c] ss:$16 sps:$4 sm:$0xff]  }
 0x3e6   : > { %5021 = vmatprep.subr.bf16.mxu0 %v15071_v57  ;;  %v3221_v5 = vpop.f32.mrb[137].mxu1 }
 0x3e7   : > { %4998 = vmatprep.mubr.bf16.mxu0 %v19647_v9  ;;  %v3223_v50 = vpop.f32.mrb[138].mxu1 }
 0x3e8   : > { %4999 = vmatmul.mubr.bf16.gmra.mrb[188].mxu0 %v19643_v43  ;;  %5231 = vmatpush1.bf16.msra.mxu1 %v15096_v59  ;;  %v3225_v38 = vpop.f32.mrb[139].mxu1  ;;  %v15108_v59 = vld [vmem:[#allocation7 + $0xa68] ss:$16 sps:$4 sm:$0xff]  }
 0x3e9   : > { %5022 = vmatpush1.bf16.msra.mxu0 %v15069_v27  ;;  %v3046_v41 = vpop.f32.mrb[128].mxu0  ;;  %v19657_v27 = vpack.c.bf16 %v3223_v50, %v3219_v3  ;;  %5232 = vmatprep.subr.bf16.mxu1 %v15104_v60  ;;  %v19661_v35 = vpack.c.bf16 %v3225_v38, %v3221_v5  ;;  %v15095_v60 = vld [vmem:[#allocation7 + $0xb44] ss:$16 sps:$4 sm:$0xff]  }
 0x3ea   : > { %5023 = vmatprep.subr.bf16.mxu0 %v15077_v20  ;;  %v3048_v57 = vpop.f32.mrb[129].mxu0 }
 0x3eb   : > { %v3050_v40 = vpop.f32.mrb[130].mxu0  ;;  %5198 = vmatmul.mubr.bf16.gmra.mrb[212].mxu1 %v19623_v15 }
 0x3ec   : > { %v19655_v1 = vpack.c.bf16 %v3050_v40, %v3046_v41  ;;  %v3052_v61 = vpop.f32.mrb[131].mxu0  ;;  %5207 = vmatprep.mubr.bf16.mxu1 %v19637_v47  ;;  %5233 = vmatpush1.bf16.msra.mxu1 %v15102_v12  ;;  %v15116_v41 = vld [vmem:[#allocation7 + $0xa8c] ss:$16 sps:$4 sm:$0xff]   ;;  %v15093_v47 = vld [vmem:[#allocation7 + $0xb40] ss:$16 sps:$4 sm:$0xff]  }
 0x3ed   : > { %5024 = vmatpush1.bf16.msra.mxu0 %v15075_v29  ;;  %v19659_v20 = vpack.c.bf16 %v3052_v61, %v3048_v57  ;;  %v15087_v29 = vld [vmem:[#allocation7 + $0xb20] ss:$16 sps:$4 sm:$0xff]   ;;  %5234 = vmatprep.subr.bf16.mxu1 %v15110_v30  ;;  %v3229_v40 = vpop.f32.mrb[140].mxu1  ;;  %v15114_v61 = vld [vmem:[#allocation7 + $0xa88] ss:$16 sps:$4 sm:$0xff]  }
 0x3ee   : > { %5025 = vmatprep.subr.bf16.mxu0 %v15083_v2  ;;  %v3231_v50 = vpop.f32.mrb[141].mxu1  ;;  %v15122_v30 = vld [vmem:[#allocation7 + $0xaac] ss:$16 sps:$4 sm:$0xff]  }
 0x3ef   : > { %v3233_v5 = vpop.f32.mrb[142].mxu1 }
 0x3f0   : > { %5235 = vmatpush1.bf16.msra.mxu1 %v15108_v59  ;;  %v19667_v12 = vpack.c.bf16 %v3233_v5, %v3229_v40  ;;  %v15120_v59 = vld [vmem:[#allocation7 + $0xaa8] ss:$16 sps:$4 sm:$0xff]  }
 0x3f1   : > { %5026 = vmatpush1.bf16.msra.mxu0 %v15081_v56  ;;  %v3056_v3 = vpop.f32.mrb[132].mxu0  ;;  %v3235_v56 = vpop.f32.mrb[143].mxu1  ;;  %5236 = vmatprep.subr.bf16.mxu1 %v15116_v41  ;;  %v15107_v41 = vld [vmem:[#allocation7 + $0xb84] ss:$16 sps:$4 sm:$0xff]  }
 0x3f2   : > { %5027 = vmatprep.subr.bf16.mxu0 %v15089_v26  ;;  %v3058_v57 = vpop.f32.mrb[133].mxu0  ;;  %v15101_v26 = vld [vmem:[#allocation7 + $0xb64] ss:$16 sps:$4 sm:$0xff]   ;;  %v19671_v44 = vpack.c.bf16 %v3235_v56, %v3231_v50 }
 0x3f3   : > { %v3060_v2 = vpop.f32.mrb[134].mxu0  ;;  %5208 = vmatmul.mubr.bf16.gmra.mrb[216].mxu1 %v19633_v8 }
 0x3f4   : > { %v19665_v38 = vpack.c.bf16 %v3060_v2, %v3056_v3  ;;  %v3062_v15 = vpop.f32.mrb[135].mxu0  ;;  %5217 = vmatprep.mubr.bf16.mxu1 %v19647_v9  ;;  %5237 = vmatpush1.bf16.msra.mxu1 %v15114_v61  ;;  %v15128_v3 = vld [vmem:[#allocation7 + $0xacc] ss:$16 sps:$4 sm:$0xff]   ;;  %v15105_v9 = vld [vmem:[#allocation7 + $0xb80] ss:$16 sps:$4 sm:$0xff]  }
 0x3f5   : > { %5028 = vmatpush1.bf16.msra.mxu0 %v15087_v29  ;;  %v19669_v19 = vpack.c.bf16 %v3062_v15, %v3058_v57  ;;  %v15099_v29 = vld [vmem:[#allocation7 + $0xb60] ss:$16 sps:$4 sm:$0xff]   ;;  %5238 = vmatprep.subr.bf16.mxu1 %v15122_v30  ;;  %v3239_v2 = vpop.f32.mrb[144].mxu1  ;;  %v15126_v15 = vld [vmem:[#allocation7 + $0xac8] ss:$16 sps:$4 sm:$0xff]  }
 0x3f6   : > { %5029 = vmatprep.subr.bf16.mxu0 %v15095_v60  ;;  %v3241_v5 = vpop.f32.mrb[145].mxu1 }
 0x3f7   : > { %v3243_v50 = vpop.f32.mrb[146].mxu1 }
 0x3f8   : > { %5239 = vmatpush1.bf16.msra.mxu1 %v15120_v59  ;;  %v19677_v61 = vpack.c.bf16 %v3243_v50, %v3239_v2  ;;  %v15132_v59 = vld [vmem:[#allocation7 + $0xae8] ss:$16 sps:$4 sm:$0xff]   ;;  %v15119_v2 = vld [vmem:[#allocation7 + $0xbc4] ss:$16 sps:$4 sm:$0xff]  }
 0x3f9   : > { %5030 = vmatpush1.bf16.msra.mxu0 %v15093_v47  ;;  %v3066_v40 = vpop.f32.mrb[136].mxu0  ;;  %v3245_v47 = vpop.f32.mrb[147].mxu1  ;;  %5240 = vmatprep.subr.bf16.mxu1 %v15128_v3 }
 0x3fa   : > { %5031 = vmatprep.subr.bf16.mxu0 %v15101_v26  ;;  %v3068_v57 = vpop.f32.mrb[137].mxu0  ;;  %v15113_v26 = vld [vmem:[#allocation7 + $0xba4] ss:$16 sps:$4 sm:$0xff]   ;;  %v3427_v39 = vpack.c.bf16 %v3245_v47, %v3241_v5 }
 0x3fb   : > { %v3070_v60 = vpop.f32.mrb[138].mxu0  ;;  %5218 = vmatmul.mubr.bf16.gmra.mrb[220].mxu1 %v19643_v43 }
 0x3fc   : > { %v19675_v56 = vpack.c.bf16 %v3070_v60, %v3066_v40  ;;  %v3072_v8 = vpop.f32.mrb[139].mxu0  ;;  %5241 = vmatpush1.bf16.msra.mxu1 %v15126_v15  ;;  %5041 = vmatprep.mubr.bf16.mxu0 %v3427_v39  ;;  %v15111_v40 = vld [vmem:[#allocation7 + $0xba0] ss:$16 sps:$4 sm:$0xff]  }
 0x3fd   : > { %5032 = vmatpush1.bf16.msra.mxu0 %v15099_v29  ;;  %v19679_v30 = vpack.c.bf16 %v3072_v8, %v3068_v57  ;;  %5260 = vmatprep.mubr.bf16.mxu1 %v3427_v39  ;;  %v15140_v29 = vld [vmem:[#allocation7 + $0xb0c] ss:$16 sps:$4 sm:$0xff]   ;;  %v3249_v50 = vpop.f32.mrb[148].mxu1  ;;  %v15138_v8 = vld [vmem:[#allocation7 + $0xb08] ss:$16 sps:$4 sm:$0xff]  }
 0x3fe   : > { %20606 = vst [vmem:[#allocation44_spill] sm:$0xff] %v19675_v56  ;;  %5033 = vmatprep.subr.bf16.mxu0 %v15107_v41  ;;  %5242 = vmatprep.subr.bf16.mxu1 %v15134_v13  ;;  %v3251_v57 = vpop.f32.mrb[149].mxu1  ;;  %v15117_v15 = vld [vmem:[#allocation7 + $0xbc0] ss:$16 sps:$4 sm:$0xff]   ;;  %v15125_v13 = vld [vmem:[#allocation7 + $0xbe4] ss:$16 sps:$4 sm:$0xff]  }
 0x3ff   : > { %v3253_v5 = vpop.f32.mrb[150].mxu1  ;;  %v15182_v56 = vld [vmem:[#allocation7 + $0xbec] ss:$16 sps:$4 sm:$0xff]  }
 0x400   : > { %5243 = vmatpush1.bf16.msra.mxu1 %v15132_v59  ;;  %v3255_v39 = vpop.f32.mrb[151].mxu1  ;;  %v15144_v59 = vld [vmem:[#allocation7 + $0xb28] ss:$16 sps:$4 sm:$0xff]  }
 0x401   : > { %5034 = vmatpush1.bf16.msra.mxu0 %v15105_v9  ;;  %v3076_v60 = vpop.f32.mrb[140].mxu0  ;;  %v19684_v9 = vpack.c.bf16 %v3253_v5, %v3249_v50  ;;  %5244 = vmatprep.subr.bf16.mxu1 %v15140_v29  ;;  %v19688_v48 = vpack.c.bf16 %v3255_v39, %v3251_v57 }
 0x402   : > { %5035 = vmatprep.subr.bf16.mxu0 %v15113_v26  ;;  %v3078_v3 = vpop.f32.mrb[141].mxu0 }
 0x403   : > { %v3080_v41 = vpop.f32.mrb[142].mxu0 }
 0x404   : > { %v19682_v47 = vpack.c.bf16 %v3080_v41, %v3076_v60  ;;  %v3082_v43 = vpop.f32.mrb[143].mxu0  ;;  %5245 = vmatpush1.bf16.msra.mxu1 %v15138_v8  ;;  %v15152_v60 = vld [vmem:[#allocation7 + $0xb4c] ss:$16 sps:$4 sm:$0xff]   ;;  %v15129_v8 = vld [vmem:[#allocation7] ss:$16 sps:$4 sm:$0xff]  }
 0x405   : > { %5036 = vmatpush1.bf16.msra.mxu0 %v15111_v40  ;;  %v19686_v26 = vpack.c.bf16 %v3082_v43, %v3078_v3  ;;  %5246 = vmatprep.subr.bf16.mxu1 %v15146_v54  ;;  %v15131_v40 = vld [vmem:[#allocation7 + $0x4] ss:$16 sps:$4 sm:$0xff]   ;;  %v3259_v50 = vpop.f32.mrb[152].mxu1  ;;  %v15150_v43 = vld [vmem:[#allocation7 + $0xb48] ss:$16 sps:$4 sm:$0xff]  }
 0x406   : > { %20607 = vst [vmem:[#allocation46_spill] sm:$0xff] %v19682_v47  ;;  %5037 = vmatprep.subr.bf16.mxu0 %v15119_v2  ;;  %v3261_v49 = vpop.f32.mrb[153].mxu1  ;;  %v15170_v47 = vld [vmem:[#allocation7 + $0xbac] ss:$16 sps:$4 sm:$0xff]  }
 0x407   : > { %20608 = vst [vmem:[#allocation59_spill] sm:$0xff] %v19686_v26  ;;  %v3263_v3 = vpop.f32.mrb[154].mxu1 }
 0x408   : > { %5247 = vmatpush1.bf16.msra.mxu1 %v15144_v59  ;;  %v19692_v39 = vpack.c.bf16 %v3263_v3, %v3259_v50  ;;  %v15156_v59 = vld [vmem:[#allocation7 + $0xb68] ss:$16 sps:$4 sm:$0xff]  }
 0x409   : > { %5038 = vmatpush1.bf16.msra.mxu0 %v15117_v15  ;;  %v3086_v41 = vpop.f32.mrb[144].mxu0  ;;  %v3265_v15 = vpop.f32.mrb[155].mxu1  ;;  %5248 = vmatprep.subr.bf16.mxu1 %v15152_v60 }
 0x40a   : > { %5039 = vmatprep.subr.bf16.mxu0 %v15125_v13  ;;  %v3088_v5 = vpop.f32.mrb[145].mxu0  ;;  %v15137_v13 = vld [vmem:[#allocation7 + $0x24] ss:$16 sps:$4 sm:$0xff]   ;;  %v19696_v22 = vpack.c.bf16 %v3265_v15, %v3261_v49 }
 0x40b   : > { %v3090_v29 = vpop.f32.mrb[146].mxu0 }
 0x40c   : > { %v19690_v2 = vpack.c.bf16 %v3090_v29, %v3086_v41  ;;  %v3092_v57 = vpop.f32.mrb[147].mxu0  ;;  %5249 = vmatpush1.bf16.msra.mxu1 %v15150_v43  ;;  %v15135_v41 = vld [vmem:[#allocation7 + $0x20] ss:$16 sps:$4 sm:$0xff]   ;;  %v15143_v29 = vld [vmem:[#allocation7 + $0x44] ss:$16 sps:$4 sm:$0xff]  }
 0x40d   : > { %5040 = vmatpush1.bf16.msra.mxu0 %v15123_v0  ;;  %v19694_v54 = vpack.c.bf16 %v3092_v57, %v3088_v5  ;;  %v15164_v0 = vld [vmem:[#allocation7 + $0xb8c] ss:$16 sps:$4 sm:$0xff]   ;;  %v3269_v60 = vpop.f32.mrb[156].mxu1  ;;  %5250 = vmatprep.subr.bf16.mxu1 %v15158_v16  ;;  %v15162_v57 = vld [vmem:[#allocation7 + $0xb88] ss:$16 sps:$4 sm:$0xff]  }
 0x40e   : > { %20609 = vst [vmem:[#allocation60_spill] sm:$0xff] %v19690_v2  ;;  %6261 = vmatprep.subr.bf16.mxu0 %v15131_v40  ;;  %v3271_v40 = vpop.f32.mrb[157].mxu1 }
 0x40f   : > { %20610 = vst [vmem:[#allocation61_spill] sm:$0xff] %v19694_v54  ;;  %v3273_v49 = vpop.f32.mrb[158].mxu1 }
 0x410   : > { %5042 = vmatmul.mubr.bf16.vlgmr.msra.gmra.mrb[176].mxu0 %v19677_v61  ;;  %5251 = vmatpush1.bf16.msra.mxu1 %v15156_v59  ;;  %v19702_v2 = vpack.c.bf16 %v3273_v49, %v3269_v60  ;;  %v3275_v54 = vpop.f32.mrb[159].mxu1  ;;  %v15168_v59 = vld [vmem:[#allocation7 + $0xba8] ss:$16 sps:$4 sm:$0xff]  }
 0x411   : > { %6262 = vmatpush1.bf16.msra.mxu0 %v15129_v8  ;;  %5051 = vmatprep.mubr.bf16.mxu0 %v19688_v48  ;;  %v3096_v50 = vpop.f32.mrb[148].mxu0  ;;  %v15141_v8 = vld [vmem:[#allocation7 + $0x40] ss:$16 sps:$4 sm:$0xff]   ;;  %v19706_v16 = vpack.c.bf16 %v3275_v54, %v3271_v40  ;;  %v15174_v40 = vld [vmem:[#allocation7 + $0xbc8] ss:$16 sps:$4 sm:$0xff]  }
 0x412   : > { %6263 = vmatprep.subr.bf16.mxu0 %v15137_v13  ;;  %v3098_v5 = vpop.f32.mrb[149].mxu0  ;;  %5252 = vmatprep.subr.bf16.mxu1 %v15164_v0  ;;  %v15149_v13 = vld [vmem:[#allocation7 + $0x64] ss:$16 sps:$4 sm:$0xff]  }
 0x413   : > { %v3100_v3 = vpop.f32.mrb[150].mxu0 }
 0x414   : > { %v19700_v15 = vpack.c.bf16 %v3100_v3, %v3096_v50  ;;  %v3102_v43 = vpop.f32.mrb[151].mxu0  ;;  %5253 = vmatpush1.bf16.msra.mxu1 %v15162_v57  ;;  %v15147_v50 = vld [vmem:[#allocation7 + $0x60] ss:$16 sps:$4 sm:$0xff]   ;;  %v15155_v3 = vld [vmem:[#allocation7 + $0x84] ss:$16 sps:$4 sm:$0xff]  }
 0x415   : > { %6264 = vmatpush1.bf16.msra.mxu0 %v15135_v41  ;;  %v19704_v25 = vpack.c.bf16 %v3102_v43, %v3098_v5  ;;  %v15176_v41 = vld [vmem:[#allocation7 + $0xbcc] ss:$16 sps:$4 sm:$0xff]   ;;  %v3279_v0 = vpop.f32.mrb[160].mxu1  ;;  %5254 = vmatprep.subr.bf16.mxu1 %v15170_v47 }
 0x416   : > { %20611 = vst [vmem:[#allocation47_spill] sm:$0xff] %v19700_v15  ;;  %6265 = vmatprep.subr.bf16.mxu0 %v15143_v29  ;;  %v3281_v29 = vpop.f32.mrb[161].mxu1 }
 0x417   : > { %20612 = vst [vmem:[#allocation48_spill] sm:$0xff] %v19704_v25  ;;  %v3283_v54 = vpop.f32.mrb[162].mxu1 }
 0x418   : > { %5052 = vmatmul.mubr.bf16.gmra.mrb[180].mxu0 %v19684_v9  ;;  %5255 = vmatpush1.bf16.msra.mxu1 %v15168_v59  ;;  %v19712_v15 = vpack.c.bf16 %v3283_v54, %v3279_v0  ;;  %v3285_v25 = vpop.f32.mrb[163].mxu1  ;;  %v15180_v59 = vld [vmem:[#allocation7 + $0xbe8] ss:$16 sps:$4 sm:$0xff]  }
 0x419   : > { %6266 = vmatpush1.bf16.msra.mxu0 %v15141_v8  ;;  %5061 = vmatprep.mubr.bf16.mxu0 %v19696_v22  ;;  %v3106_v60 = vpop.f32.mrb[152].mxu0  ;;  %v15153_v8 = vld [vmem:[#allocation7 + $0x80] ss:$16 sps:$4 sm:$0xff]   ;;  %v19716_v47 = vpack.c.bf16 %v3285_v25, %v3281_v29 }
 0x41a   : > { %6267 = vmatprep.subr.bf16.mxu0 %v15149_v13  ;;  %v3108_v5 = vpop.f32.mrb[153].mxu0  ;;  %20614 = vst [vmem:[#allocation50_spill] sm:$0xff] %v19712_v15  ;;  %5256 = vmatprep.subr.bf16.mxu1 %v15176_v41  ;;  %v15161_v13 = vld [vmem:[#allocation7 + $0xa4] ss:$16 sps:$4 sm:$0xff]  }
 0x41b   : > { %v3110_v49 = vpop.f32.mrb[154].mxu0 }
 0x41c   : > { %v19710_v43 = vpack.c.bf16 %v3110_v49, %v3106_v60  ;;  %v3112_v57 = vpop.f32.mrb[155].mxu0  ;;  %5257 = vmatpush1.bf16.msra.mxu1 %v15174_v40  ;;  %v15159_v60 = vld [vmem:[#allocation7 + $0xa0] ss:$16 sps:$4 sm:$0xff]   ;;  %v15167_v49 = vld [vmem:[#allocation7 + $0xc4] ss:$16 sps:$4 sm:$0xff]  }
 0x41d   : > { %6268 = vmatpush1.bf16.msra.mxu0 %v15147_v50  ;;  %v19714_v26 = vpack.c.bf16 %v3112_v57, %v3108_v5  ;;  %v15188_v50 = vld [vmem:[#allocation7 + $0xc] ss:$16 sps:$4 sm:$0xff]   ;;  %v3289_v41 = vpop.f32.mrb[164].mxu1  ;;  %5258 = vmatprep.subr.bf16.mxu1 %v15182_v56  ;;  %v15165_v40 = vld [vmem:[#allocation7 + $0xc0] ss:$16 sps:$4 sm:$0xff]  }
 0x41e   : > { %20613 = vst [vmem:[#allocation49_spill] sm:$0xff] %v19710_v43  ;;  %6269 = vmatprep.subr.bf16.mxu0 %v15155_v3  ;;  %v3291_v3 = vpop.f32.mrb[165].mxu1  ;;  %v15186_v56 = vld [vmem:[#allocation7 + $0x8] ss:$16 sps:$4 sm:$0xff]  }
 0x41f   : > { %20615 = vst [vmem:[#allocation51_spill] sm:$0xff] %v19714_v26  ;;  %v3293_v25 = vpop.f32.mrb[166].mxu1 }
 0x420   : > { %5062 = vmatmul.mubr.bf16.gmra.mrb[184].mxu0 %v19692_v39  ;;  %5259 = vmatpush1.bf16.msra.mxu1 %v15180_v59  ;;  %v3295_v43 = vpop.f32.mrb[167].mxu1  ;;  %v15194_v59 = vld [vmem:[#allocation7 + $0x2c] ss:$16 sps:$4 sm:$0xff]  }
 0x421   : > { %6270 = vmatpush1.bf16.msra.mxu0 %v15153_v8  ;;  %5071 = vmatprep.mubr.bf16.mxu0 %v19706_v16  ;;  %v3116_v0 = vpop.f32.mrb[156].mxu0  ;;  %v19722_v8 = vpack.c.bf16 %v3293_v25, %v3289_v41  ;;  %v19726_v15 = vpack.c.bf16 %v3295_v43, %v3291_v3  ;;  %v15192_v41 = vld [vmem:[#allocation7 + $0x28] ss:$16 sps:$4 sm:$0xff]   ;;  %v15200_v3 = vld [vmem:[#allocation7 + $0x4c] ss:$16 sps:$4 sm:$0xff]  }
 0x422   : > { %6271 = vmatprep.subr.bf16.mxu0 %v15161_v13  ;;  %v3118_v5 = vpop.f32.mrb[157].mxu0  ;;  %6480 = vmatprep.subr.bf16.mxu1 %v15188_v50  ;;  %v15173_v13 = vld [vmem:[#allocation7 + $0xe4] ss:$16 sps:$4 sm:$0xff]  }
 0x423   : > { %v3120_v54 = vpop.f32.mrb[158].mxu0  ;;  %20617 = vst [vmem:[#allocation52_spill] sm:$0xff] %v19722_v8  ;;  %5261 = vmatmul.mubr.bf16.vlgmr.msra.gmra.mrb[208].mxu1 %v19677_v61  ;;  %v15179_v50 = vld [vmem:[#allocation7 + $0x104] ss:$16 sps:$4 sm:$0xff]   ;;  %v15206_v8 = vld [vmem:[#allocation7 + $0x6c] ss:$16 sps:$4 sm:$0xff]  }
 0x424   : > { %v19720_v29 = vpack.c.bf16 %v3120_v54, %v3116_v0  ;;  %v3122_v57 = vpop.f32.mrb[159].mxu0  ;;  %5270 = vmatprep.mubr.bf16.mxu1 %v19688_v48  ;;  %6481 = vmatpush1.bf16.msra.mxu1 %v15186_v56  ;;  %v15177_v48 = vld [vmem:[#allocation7 + $0x100] ss:$16 sps:$4 sm:$0xff]  }
 0x425   : > { %6272 = vmatpush1.bf16.msra.mxu0 %v15159_v60  ;;  %v19724_v26 = vpack.c.bf16 %v3122_v57, %v3118_v5  ;;  %v15171_v60 = vld [vmem:[#allocation7 + $0xe0] ss:$16 sps:$4 sm:$0xff]   ;;  %6482 = vmatprep.subr.bf16.mxu1 %v15194_v59  ;;  %v15198_v59 = vld [vmem:[#allocation7 + $0x48] ss:$16 sps:$4 sm:$0xff]  }
 0x426   : > { %20616 = vst [vmem:[#allocation55_spill] sm:$0xff] %v19720_v29  ;;  %6273 = vmatprep.subr.bf16.mxu0 %v15167_v49  ;;  %v3299_v49 = vpop.f32.mrb[168].mxu1 }
 0x427   : > { %20618 = vst [vmem:[#allocation27_spill] sm:$0xff] %v19724_v26  ;;  %v3301_v5 = vpop.f32.mrb[169].mxu1 }
 0x428   : > { %5072 = vmatmul.mubr.bf16.gmra.mrb[188].mxu0 %v19702_v2  ;;  %v3303_v54 = vpop.f32.mrb[170].mxu1  ;;  %6483 = vmatpush1.bf16.msra.mxu1 %v15192_v41 }
 0x429   : > { %6274 = vmatpush1.bf16.msra.mxu0 %v15165_v40  ;;  %6293 = vmatprep.mubr.bf16.mxu0 %v19452_v18  ;;  %v3126_v0 = vpop.f32.mrb[160].mxu0  ;;  %v19734_v40 = vpack.c.bf16 %v3303_v54, %v3299_v49  ;;  %v3305_v29 = vpop.f32.mrb[171].mxu1  ;;  %v15191_v49 = vld [vmem:[#allocation7 + $0x144] ss:$16 sps:$4 sm:$0xff]  }
 0x42a   : > { %6275 = vmatprep.subr.bf16.mxu0 %v15173_v13  ;;  %v3128_v43 = vpop.f32.mrb[161].mxu0  ;;  %v15185_v13 = vld [vmem:[#allocation7 + $0x124] ss:$16 sps:$4 sm:$0xff]   ;;  %v19738_v56 = vpack.c.bf16 %v3305_v29, %v3301_v5  ;;  %6484 = vmatprep.subr.bf16.mxu1 %v15200_v3  ;;  %v15212_v29 = vld [vmem:[#allocation7 + $0x8c] ss:$16 sps:$4 sm:$0xff]  }
 0x42b   : > { %v3130_v61 = vpop.f32.mrb[162].mxu0  ;;  %5271 = vmatmul.mubr.bf16.gmra.mrb[212].mxu1 %v19684_v9  ;;  %v15189_v3 = vld [vmem:[#allocation7 + $0x140] ss:$16 sps:$4 sm:$0xff]  }
 0x42c   : > { %v19732_v25 = vpack.c.bf16 %v3130_v61, %v3126_v0  ;;  %v3132_v57 = vpop.f32.mrb[163].mxu0  ;;  %5280 = vmatprep.mubr.bf16.mxu1 %v19696_v22  ;;  %6485 = vmatpush1.bf16.msra.mxu1 %v15198_v59  ;;  %v15204_v61 = vld [vmem:[#allocation7 + $0x68] ss:$16 sps:$4 sm:$0xff]  }
 0x42d   : > { %6276 = vmatpush1.bf16.msra.mxu0 %v15171_v60  ;;  %v19736_v26 = vpack.c.bf16 %v3132_v57, %v3128_v43  ;;  %v15183_v60 = vld [vmem:[#allocation7 + $0x120] ss:$16 sps:$4 sm:$0xff]   ;;  %v3309_v43 = vpop.f32.mrb[172].mxu1  ;;  %6486 = vmatprep.subr.bf16.mxu1 %v15206_v8  ;;  %v15210_v8 = vld [vmem:[#allocation7 + $0x88] ss:$16 sps:$4 sm:$0xff]  }
 0x42e   : > { %20619 = vst [vmem:[#allocation53_spill] sm:$0xff] %v19732_v25  ;;  %6277 = vmatprep.subr.bf16.mxu0 %v15179_v50  ;;  %v3311_v41 = vpop.f32.mrb[173].mxu1 }
 0x42f   : > { %20620 = vst [vmem:[#allocation54_spill] sm:$0xff] %v19736_v26  ;;  %v3313_v54 = vpop.f32.mrb[174].mxu1  ;;  %v15218_v26 = vld [vmem:[#allocation7 + $0xac] ss:$16 sps:$4 sm:$0xff]  }
 0x430   : > { %v19744_v22 = vpack.c.bf16 %v3313_v54, %v3309_v43  ;;  %6487 = vmatpush1.bf16.msra.mxu1 %v15204_v61  ;;  %v15203_v43 = vld [vmem:[#allocation7 + $0x184] ss:$16 sps:$4 sm:$0xff]  }
 0x431   : > { %6278 = vmatpush1.bf16.msra.mxu0 %v15177_v48  ;;  %v3136_v0 = vpop.f32.mrb[164].mxu0  ;;  %v3315_v48 = vpop.f32.mrb[175].mxu1  ;;  %6488 = vmatprep.subr.bf16.mxu1 %v15212_v29  ;;  %v15201_v29 = vld [vmem:[#allocation7 + $0x180] ss:$16 sps:$4 sm:$0xff]  }
 0x432   : > { %6279 = vmatprep.subr.bf16.mxu0 %v15185_v13  ;;  %v3138_v50 = vpop.f32.mrb[165].mxu0  ;;  %v15197_v13 = vld [vmem:[#allocation7 + $0x164] ss:$16 sps:$4 sm:$0xff]   ;;  %v19748_v59 = vpack.c.bf16 %v3315_v48, %v3311_v41  ;;  %v15224_v41 = vld [vmem:[#allocation7 + $0xcc] ss:$16 sps:$4 sm:$0xff]  }
 0x433   : > { %v3140_v5 = vpop.f32.mrb[166].mxu0  ;;  %5281 = vmatmul.mubr.bf16.gmra.mrb[216].mxu1 %v19692_v39 }
 0x434   : > { %v19742_v57 = vpack.c.bf16 %v3140_v5, %v3136_v0  ;;  %v3142_v9 = vpop.f32.mrb[167].mxu0  ;;  %5290 = vmatprep.mubr.bf16.mxu1 %v19706_v16  ;;  %6489 = vmatpush1.bf16.msra.mxu1 %v15210_v8  ;;  %v15216_v5 = vld [vmem:[#allocation7 + $0xa8] ss:$16 sps:$4 sm:$0xff]  }
 0x435   : > { %6280 = vmatpush1.bf16.msra.mxu0 %v15183_v60  ;;  %v19746_v25 = vpack.c.bf16 %v3142_v9, %v3138_v50  ;;  %v15195_v60 = vld [vmem:[#allocation7 + $0x160] ss:$16 sps:$4 sm:$0xff]   ;;  %v3319_v50 = vpop.f32.mrb[176].mxu1  ;;  %6490 = vmatprep.subr.bf16.mxu1 %v15218_v26  ;;  %v15222_v26 = vld [vmem:[#allocation7 + $0xc8] ss:$16 sps:$4 sm:$0xff]  }
 0x436   : > { %20621 = vst [vmem:[#allocation26_spill] sm:$0xff] %v19742_v57  ;;  %6281 = vmatprep.subr.bf16.mxu0 %v15191_v49  ;;  %v3321_v61 = vpop.f32.mrb[177].mxu1 }
 0x437   : > { %20622 = vst [vmem:[#allocation56_spill] sm:$0xff] %v19746_v25  ;;  %v3323_v9 = vpop.f32.mrb[178].mxu1  ;;  %v15230_v25 = vld [vmem:[#allocation7 + $0xec] ss:$16 sps:$4 sm:$0xff]  }
 0x438   : > { %v19754_v16 = vpack.c.bf16 %v3323_v9, %v3319_v50  ;;  %6491 = vmatpush1.bf16.msra.mxu1 %v15216_v5  ;;  %v15215_v50 = vld [vmem:[#allocation7 + $0x1c4] ss:$16 sps:$4 sm:$0xff]  }
 0x439   : > { %6282 = vmatpush1.bf16.msra.mxu0 %v15189_v3  ;;  %v3146_v0 = vpop.f32.mrb[168].mxu0  ;;  %v3325_v3 = vpop.f32.mrb[179].mxu1  ;;  %6492 = vmatprep.subr.bf16.mxu1 %v15224_v41  ;;  %v15213_v41 = vld [vmem:[#allocation7 + $0x1c0] ss:$16 sps:$4 sm:$0xff]  }
 0x43a   : > { %6283 = vmatprep.subr.bf16.mxu0 %v15197_v13  ;;  %v3148_v49 = vpop.f32.mrb[169].mxu0  ;;  %20624 = vst [vmem:[#allocation29_spill] sm:$0xff] %v19754_v16  ;;  %v15209_v13 = vld [vmem:[#allocation7 + $0x1a4] ss:$16 sps:$4 sm:$0xff]   ;;  %v19758_v8 = vpack.c.bf16 %v3325_v3, %v3321_v61  ;;  %v15236_v61 = vld [vmem:[#allocation7 + $0x10c] ss:$16 sps:$4 sm:$0xff]  }
 0x43b   : > { %v3150_v54 = vpop.f32.mrb[170].mxu0  ;;  %5291 = vmatmul.mubr.bf16.gmra.mrb[220].mxu1 %v19702_v2  ;;  %v15219_v16 = vld [vmem:[#allocation7 + $0x1e0] ss:$16 sps:$4 sm:$0xff]  }
 0x43c   : > { %v19752_v48 = vpack.c.bf16 %v3150_v54, %v3146_v0  ;;  %v3152_v39 = vpop.f32.mrb[171].mxu0  ;;  %6512 = vmatprep.mubr.bf16.mxu1 %v19452_v18  ;;  %6493 = vmatpush1.bf16.msra.mxu1 %v15222_v26  ;;  %v15228_v54 = vld [vmem:[#allocation7 + $0xe8] ss:$16 sps:$4 sm:$0xff]  }
 0x43d   : > { %6284 = vmatpush1.bf16.msra.mxu0 %v15195_v60  ;;  %v19756_v57 = vpack.c.bf16 %v3152_v39, %v3148_v49  ;;  %v15207_v60 = vld [vmem:[#allocation7 + $0x1a0] ss:$16 sps:$4 sm:$0xff]   ;;  %v3329_v49 = vpop.f32.mrb[180].mxu1  ;;  %6494 = vmatprep.subr.bf16.mxu1 %v15230_v25  ;;  %v15234_v25 = vld [vmem:[#allocation7 + $0x108] ss:$16 sps:$4 sm:$0xff]  }
 0x43e   : > { %20623 = vst [vmem:[#allocation28_spill] sm:$0xff] %v19752_v48  ;;  %6285 = vmatprep.subr.bf16.mxu0 %v15203_v43  ;;  %v3331_v5 = vpop.f32.mrb[181].mxu1 }
 0x43f   : > { %20625 = vst [vmem:[#allocation57_spill] sm:$0xff] %v19756_v57  ;;  %v3333_v39 = vpop.f32.mrb[182].mxu1  ;;  %v15242_v57 = vld [vmem:[#allocation7 + $0x12c] ss:$16 sps:$4 sm:$0xff]  }
 0x440   : > { %v19764_v18 = vpack.c.bf16 %v3333_v39, %v3329_v49  ;;  %6495 = vmatpush1.bf16.msra.mxu1 %v15228_v54  ;;  %v15248_v39 = vld [vmem:[#allocation7 + $0x14c] ss:$16 sps:$4 sm:$0xff]  }
 0x441   : > { %6286 = vmatpush1.bf16.msra.mxu0 %v15201_v29  ;;  %v3156_v0 = vpop.f32.mrb[172].mxu0  ;;  %v3335_v29 = vpop.f32.mrb[183].mxu1  ;;  %6496 = vmatprep.subr.bf16.mxu1 %v15236_v61 }
 0x442   : > { %6287 = vmatprep.subr.bf16.mxu0 %v15209_v13  ;;  %v3158_v43 = vpop.f32.mrb[173].mxu0  ;;  %v15221_v13 = vld [vmem:[#allocation7 + $0x1e4] ss:$16 sps:$4 sm:$0xff]   ;;  %v19768_v26 = vpack.c.bf16 %v3335_v29, %v3331_v5  ;;  %v15254_v29 = vld [vmem:[#allocation7 + $0x16c] ss:$16 sps:$4 sm:$0xff]  }
 0x443   : > { %v3160_v9 = vpop.f32.mrb[174].mxu0  ;;  %v15233_v5 = vld [vmem:[#allocation7 + $0x224] ss:$16 sps:$4 sm:$0xff]  }
 0x444   : > { %v19762_v3 = vpack.c.bf16 %v3160_v9, %v3156_v0  ;;  %v3162_v2 = vpop.f32.mrb[175].mxu0  ;;  %v15227_v0 = vld [vmem:[#allocation7 + $0x204] ss:$16 sps:$4 sm:$0xff]   ;;  %6497 = vmatpush1.bf16.msra.mxu1 %v15234_v25  ;;  %v15240_v9 = vld [vmem:[#allocation7 + $0x128] ss:$16 sps:$4 sm:$0xff]  }
 0x445   : > { %6288 = vmatpush1.bf16.msra.mxu0 %v15207_v60  ;;  %v19766_v48 = vpack.c.bf16 %v3162_v2, %v3158_v43  ;;  %v3339_v60 = vpop.f32.mrb[184].mxu1  ;;  %6498 = vmatprep.subr.bf16.mxu1 %v15242_v57  ;;  %v15231_v57 = vld [vmem:[#allocation7 + $0x220] ss:$16 sps:$4 sm:$0xff]   ;;  %v15252_v25 = vld [vmem:[#allocation7 + $0x168] ss:$16 sps:$4 sm:$0xff]  }
 0x446   : > { %20626 = vst [vmem:[#allocation62_spill] sm:$0xff] %v19762_v3  ;;  %6289 = vmatprep.subr.bf16.mxu0 %v15215_v50  ;;  %v3341_v49 = vpop.f32.mrb[185].mxu1  ;;  %v15225_v50 = vld [vmem:[#allocation7 + $0x200] ss:$16 sps:$4 sm:$0xff]  }
 0x447   : > { %20627 = vst [vmem:[#allocation63_spill] sm:$0xff] %v19766_v48  ;;  %v3343_v43 = vpop.f32.mrb[186].mxu1  ;;  %v15257_v48 = vld [vmem:[#allocation7 + $0x2a4] ss:$16 sps:$4 sm:$0xff]  }
 0x448   : > { %v19770_v2 = vpack.c.bf16 %v3343_v43, %v3339_v60  ;;  %v3345_v54 = vpop.f32.mrb[187].mxu1  ;;  %6499 = vmatpush1.bf16.msra.mxu1 %v15240_v9  ;;  %v15260_v60 = vld [vmem:[#allocation7 + $0x18c] ss:$16 sps:$4 sm:$0xff]  }
 0x449   : > { %6290 = vmatpush1.bf16.msra.mxu0 %v15213_v41  ;;  %v19772_v61 = vpack.c.bf16 %v3345_v54, %v3341_v49  ;;  %v15246_v41 = vld [vmem:[#allocation7 + $0x148] ss:$16 sps:$4 sm:$0xff]   ;;  %6500 = vmatprep.subr.bf16.mxu1 %v15248_v39  ;;  %v15237_v49 = vld [vmem:[#allocation7 + $0x240] ss:$16 sps:$4 sm:$0xff]   ;;  %v15245_v54 = vld [vmem:[#allocation7 + $0x264] ss:$16 sps:$4 sm:$0xff]  }
 0x44a   : > { %6291 = vmatprep.subr.bf16.mxu0 %v15221_v13 }
 0x44c   : > { %6501 = vmatpush1.bf16.msra.mxu1 %v15246_v41  ;;  %v15243_v41 = vld [vmem:[#allocation7 + $0x260] ss:$16 sps:$4 sm:$0xff]  }
 0x44d   : > { %6292 = vmatpush1.bf16.msra.mxu0 %v15219_v16  ;;  %v15239_v16 = vld [vmem:[#allocation7 + $0x244] ss:$16 sps:$4 sm:$0xff]   ;;  %v3349_v13 = vpop.f32.mrb[188].mxu1  ;;  %6502 = vmatprep.subr.bf16.mxu1 %v15254_v29 }
 0x44e   : > { %6334 = vmatprep.subr.bf16.mxu0 %v15227_v0  ;;  %v3351_v0 = vpop.f32.mrb[189].mxu1  ;;  %v15251_v29 = vld [vmem:[#allocation7 + $0x284] ss:$16 sps:$4 sm:$0xff]  }
 0x44f   : > { %v3353_v9 = vpop.f32.mrb[190].mxu1 }
 0x450   : > { %6294 = vmatmul.mubr.bf16.vlgmr.msra.gmra.mrb[176].mxu0 %v19450_v55  ;;  %v19776_v43 = vpack.c.bf16 %v3353_v9, %v3349_v13  ;;  %v3355_v39 = vpop.f32.mrb[191].mxu1  ;;  %6503 = vmatpush1.bf16.msra.mxu1 %v15252_v25  ;;  %v15264_v13 = vld [vmem:[#allocation7 + $0x1a8] ss:$16 sps:$4 sm:$0xff]   ;;  %v15272_v9 = vld [vmem:[#allocation7 + $0x1cc] ss:$16 sps:$4 sm:$0xff]  }
 0x451   : > { %6303 = vmatprep.mubr.bf16.mxu0 %v19462_v31  ;;  %6335 = vmatpush1.bf16.msra.mxu0 %v15225_v50  ;;  %v19778_v3 = vpack.c.bf16 %v3355_v39, %v3351_v0  ;;  %v15258_v50 = vld [vmem:[#allocation7 + $0x188] ss:$16 sps:$4 sm:$0xff]   ;;  %v15249_v0 = vld [vmem:[#allocation7 + $0x280] ss:$16 sps:$4 sm:$0xff]  }
 0x452   : > { %6336 = vmatprep.subr.bf16.mxu0 %v15233_v5  ;;  %20628 = vst [vmem:[#allocation64_spill] sm:$0xff] %v19776_v43  ;;  %6504 = vmatprep.subr.bf16.mxu1 %v15260_v60  ;;  %v15266_v5 = vld [vmem:[#allocation7 + $0x1ac] ss:$16 sps:$4 sm:$0xff]  }
 0x454   : > { %6505 = vmatpush1.bf16.msra.mxu1 %v15258_v50  ;;  %v15255_v50 = vld [vmem:[#allocation7 + $0x2a0] ss:$16 sps:$4 sm:$0xff]  }
 0x455   : > { %6337 = vmatpush1.bf16.msra.mxu0 %v15231_v57  ;;  %v3359_v57 = vpop.f32.mrb[192].mxu1  ;;  %6506 = vmatprep.subr.bf16.mxu1 %v15266_v5  ;;  %v15263_v5 = vld [vmem:[#allocation7 + $0x2c4] ss:$16 sps:$4 sm:$0xff]  }
 0x456   : > { %6338 = vmatprep.subr.bf16.mxu0 %v15239_v16  ;;  %v3361_v16 = vpop.f32.mrb[193].mxu1 }
 0x457   : > { %v3363_v25 = vpop.f32.mrb[194].mxu1 }
 0x458   : > { %6304 = vmatmul.mubr.bf16.gmra.mrb[180].mxu0 %v19460_v63  ;;  %v19782_v39 = vpack.c.bf16 %v3363_v25, %v3359_v57  ;;  %v3365_v60 = vpop.f32.mrb[195].mxu1  ;;  %6507 = vmatpush1.bf16.msra.mxu1 %v15264_v13  ;;  %v15276_v57 = vld [vmem:[#allocation7 + $0x1e8] ss:$16 sps:$4 sm:$0xff]   ;;  %v15284_v25 = vld [vmem:[#allocation7 + $0x20c] ss:$16 sps:$4 sm:$0xff]  }
 0x459   : > { %6313 = vmatprep.mubr.bf16.mxu0 %v19472_v21  ;;  %6339 = vmatpush1.bf16.msra.mxu0 %v15237_v49  ;;  %v19784_v43 = vpack.c.bf16 %v3365_v60, %v3361_v16  ;;  %v15270_v49 = vld [vmem:[#allocation7 + $0x1c8] ss:$16 sps:$4 sm:$0xff]   ;;  %v15261_v16 = vld [vmem:[#allocation7 + $0x2c0] ss:$16 sps:$4 sm:$0xff]  }
 0x45a   : > { %6340 = vmatprep.subr.bf16.mxu0 %v15245_v54  ;;  %20629 = vst [vmem:[#allocation65_spill] sm:$0xff] %v19782_v39  ;;  %6508 = vmatprep.subr.bf16.mxu1 %v15272_v9  ;;  %v15278_v54 = vld [vmem:[#allocation7 + $0x1ec] ss:$16 sps:$4 sm:$0xff]   ;;  %v15269_v39 = vld [vmem:[#allocation7 + $0x2e4] ss:$16 sps:$4 sm:$0xff]  }
 0x45b   : > { %20630 = vst [vmem:[#allocation66_spill] sm:$0xff] %v19784_v43 }
 0x45c   : > { %6509 = vmatpush1.bf16.msra.mxu1 %v15270_v49  ;;  %v15267_v49 = vld [vmem:[#allocation7 + $0x2e0] ss:$16 sps:$4 sm:$0xff]  }
 0x45d   : > { %6341 = vmatpush1.bf16.msra.mxu0 %v15243_v41  ;;  %v3369_v41 = vpop.f32.mrb[196].mxu1  ;;  %6510 = vmatprep.subr.bf16.mxu1 %v15278_v54  ;;  %v15275_v54 = vld [vmem:[#allocation7 + $0x304] ss:$16 sps:$4 sm:$0xff]  }
 0x45e   : > { %6342 = vmatprep.subr.bf16.mxu0 %v15251_v29  ;;  %v3371_v29 = vpop.f32.mrb[197].mxu1 }
 0x45f   : > { %v3373_v13 = vpop.f32.mrb[198].mxu1 }
 0x460   : > { %6314 = vmatmul.mubr.bf16.gmra.mrb[184].mxu0 %v19470_v32  ;;  %v19788_v60 = vpack.c.bf16 %v3373_v13, %v3369_v41  ;;  %v3375_v9 = vpop.f32.mrb[199].mxu1  ;;  %6511 = vmatpush1.bf16.msra.mxu1 %v15276_v57 }
 0x461   : > { %6323 = vmatprep.mubr.bf16.mxu0 %v19482_v52  ;;  %6343 = vmatpush1.bf16.msra.mxu0 %v15249_v0  ;;  %v19790_v43 = vpack.c.bf16 %v3375_v9, %v3371_v29  ;;  %v15282_v0 = vld [vmem:[#allocation7 + $0x208] ss:$16 sps:$4 sm:$0xff]   ;;  %v15296_v29 = vld [vmem:[#allocation7 + $0x24c] ss:$16 sps:$4 sm:$0xff]   ;;  %v15281_v9 = vld [vmem:[#allocation7 + $0x324] ss:$16 sps:$4 sm:$0xff]  }
 0x462   : > { %6344 = vmatprep.subr.bf16.mxu0 %v15257_v48  ;;  %20631 = vst [vmem:[#allocation67_spill] sm:$0xff] %v19788_v60  ;;  %6553 = vmatprep.subr.bf16.mxu1 %v15284_v25  ;;  %v15290_v48 = vld [vmem:[#allocation7 + $0x22c] ss:$16 sps:$4 sm:$0xff]   ;;  %v15273_v25 = vld [vmem:[#allocation7 + $0x300] ss:$16 sps:$4 sm:$0xff]  }
 0x463   : > { %6513 = vmatmul.mubr.bf16.vlgmr.msra.gmra.mrb[208].mxu1 %v19450_v55  ;;  %v15294_v55 = vld [vmem:[#allocation7 + $0x248] ss:$16 sps:$4 sm:$0xff]   ;;  %v15302_v60 = vld [vmem:[#allocation7 + $0x26c] ss:$16 sps:$4 sm:$0xff]  }
 0x464   : > { %6522 = vmatprep.mubr.bf16.mxu1 %v19462_v31  ;;  %6554 = vmatpush1.bf16.msra.mxu1 %v15282_v0  ;;  %v15279_v31 = vld [vmem:[#allocation7 + $0x320] ss:$16 sps:$4 sm:$0xff]   ;;  %v15287_v0 = vld [vmem:[#allocation7 + $0x344] ss:$16 sps:$4 sm:$0xff]  }
 0x465   : > { %6345 = vmatpush1.bf16.msra.mxu0 %v15255_v50  ;;  %v3379_v50 = vpop.f32.mrb[200].mxu1  ;;  %6555 = vmatprep.subr.bf16.mxu1 %v15290_v48 }
 0x466   : > { %6346 = vmatprep.subr.bf16.mxu0 %v15263_v5  ;;  %v15288_v5 = vld [vmem:[#allocation7 + $0x228] ss:$16 sps:$4 sm:$0xff]   ;;  %v3381_v41 = vpop.f32.mrb[201].mxu1 }
 0x467   : > { %v3383_v57 = vpop.f32.mrb[202].mxu1 }
 0x468   : > { %6324 = vmatmul.mubr.bf16.gmra.mrb[188].mxu0 %v19480_v62  ;;  %v19796_v13 = vpack.c.bf16 %v3383_v57, %v3379_v50  ;;  %6556 = vmatpush1.bf16.msra.mxu1 %v15288_v5  ;;  %v15285_v5 = vld [vmem:[#allocation7 + $0x340] ss:$16 sps:$4 sm:$0xff]  }
 0x469   : > { %6347 = vmatpush1.bf16.msra.mxu0 %v15261_v16  ;;  %6366 = vmatprep.mubr.bf16.mxu0 %v19585_v46  ;;  %v3385_v16 = vpop.f32.mrb[203].mxu1 }
 0x46a   : > { %6348 = vmatprep.subr.bf16.mxu0 %v15269_v39  ;;  %v19798_v39 = vpack.c.bf16 %v3385_v16, %v3381_v41  ;;  %6557 = vmatprep.subr.bf16.mxu1 %v15296_v29  ;;  %v15308_v41 = vld [vmem:[#allocation7 + $0x28c] ss:$16 sps:$4 sm:$0xff]  }
 0x46b   : > { %6523 = vmatmul.mubr.bf16.gmra.mrb[212].mxu1 %v19460_v63  ;;  %v15306_v63 = vld [vmem:[#allocation7 + $0x288] ss:$16 sps:$4 sm:$0xff]  }
 0x46c   : > { %6532 = vmatprep.mubr.bf16.mxu1 %v19472_v21  ;;  %6558 = vmatpush1.bf16.msra.mxu1 %v15294_v55  ;;  %v15291_v21 = vld [vmem:[#allocation7 + $0x360] ss:$16 sps:$4 sm:$0xff]   ;;  %v15299_v55 = vld [vmem:[#allocation7 + $0x384] ss:$16 sps:$4 sm:$0xff]  }
 0x46d   : > { %6349 = vmatpush1.bf16.msra.mxu0 %v15267_v49  ;;  %v3389_v48 = vpop.f32.mrb[204].mxu1  ;;  %v15300_v49 = vld [vmem:[#allocation7 + $0x268] ss:$16 sps:$4 sm:$0xff]   ;;  %6559 = vmatprep.subr.bf16.mxu1 %v15302_v60 }
 0x46e   : > { %6350 = vmatprep.subr.bf16.mxu0 %v15275_v54  ;;  %v3391_v50 = vpop.f32.mrb[205].mxu1  ;;  %v15312_v60 = vld [vmem:[#allocation7 + $0x2a8] ss:$16 sps:$4 sm:$0xff]  }
 0x46f   : > { %v3393_v54 = vpop.f32.mrb[206].mxu1 }
 0x470   : > { %v19802_v57 = vpack.c.bf16 %v3393_v54, %v3389_v48  ;;  %v3395_v29 = vpop.f32.mrb[207].mxu1  ;;  %6560 = vmatpush1.bf16.msra.mxu1 %v15300_v49  ;;  %v15305_v48 = vld [vmem:[#allocation7 + $0x3a4] ss:$16 sps:$4 sm:$0xff]   ;;  %v15318_v49 = vld [vmem:[#allocation7 + $0x2c8] ss:$16 sps:$4 sm:$0xff]  }
 0x471   : > { %6351 = vmatpush1.bf16.msra.mxu0 %v15273_v25  ;;  %v15293_v25 = vld [vmem:[#allocation7 + $0x364] ss:$16 sps:$4 sm:$0xff]   ;;  %v19804_v16 = vpack.c.bf16 %v3395_v29, %v3391_v50  ;;  %6561 = vmatprep.subr.bf16.mxu1 %v15308_v41  ;;  %v15326_v50 = vld [vmem:[#allocation7 + $0x2ec] ss:$16 sps:$4 sm:$0xff]   ;;  %v15303_v54 = vld [vmem:[#allocation7 + $0x3a0] ss:$16 sps:$4 sm:$0xff]  }
 0x472   : > { %6352 = vmatprep.subr.bf16.mxu0 %v15281_v9  ;;  %v15314_v9 = vld [vmem:[#allocation7 + $0x2ac] ss:$16 sps:$4 sm:$0xff]   ;;  %v15311_v41 = vld [vmem:[#allocation7 + $0x3c4] ss:$16 sps:$4 sm:$0xff]  }
 0x473   : > { %6533 = vmatmul.mubr.bf16.gmra.mrb[216].mxu1 %v19470_v32  ;;  %v15324_v32 = vld [vmem:[#allocation7 + $0x2e8] ss:$16 sps:$4 sm:$0xff]   ;;  %v15317_v29 = vld [vmem:[#allocation7 + $0x3e4] ss:$16 sps:$4 sm:$0xff]  }
 0x474   : > { %6542 = vmatprep.mubr.bf16.mxu1 %v19482_v52  ;;  %6562 = vmatpush1.bf16.msra.mxu1 %v15306_v63  ;;  %v15332_v52 = vld [vmem:[#allocation7 + $0x30c] ss:$16 sps:$4 sm:$0xff]  }
 0x475   : > { %6353 = vmatpush1.bf16.msra.mxu0 %v15279_v31  ;;  %6563 = vmatprep.subr.bf16.mxu1 %v15314_v9  ;;  %v15320_v31 = vld [vmem:[#allocation7 + $0x2cc] ss:$16 sps:$4 sm:$0xff]   ;;  %v15315_v9 = vld [vmem:[#allocation7 + $0x3e0] ss:$16 sps:$4 sm:$0xff]  }
 0x476   : > { %6354 = vmatprep.subr.bf16.mxu0 %v15287_v0  ;;  %v15297_v0 = vld [vmem:[#allocation7 + $0x380] ss:$16 sps:$4 sm:$0xff]   ;;  %v15338_v63 = vld [vmem:[#allocation7 + $0x32c] ss:$16 sps:$4 sm:$0xff]  }
 0x478   : > { %6564 = vmatpush1.bf16.msra.mxu1 %v15312_v60  ;;  %v15329_v60 = vld [vmem:[#allocation7 + $0x424] ss:$16 sps:$4 sm:$0xff]  }
 0x479   : > { %6355 = vmatpush1.bf16.msra.mxu0 %v15285_v5  ;;  %6565 = vmatprep.subr.bf16.mxu1 %v15320_v31  ;;  %v15309_v5 = vld [vmem:[#allocation7 + $0x3c0] ss:$16 sps:$4 sm:$0xff]   ;;  %v15342_v31 = vld [vmem:[#allocation7 + $0x348] ss:$16 sps:$4 sm:$0xff]  }
 0x47a   : > { %6356 = vmatprep.subr.bf16.mxu0 %v15293_v25  ;;  %v15330_v25 = vld [vmem:[#allocation7 + $0x308] ss:$16 sps:$4 sm:$0xff]  }
 0x47b   : > { %6543 = vmatmul.mubr.bf16.gmra.mrb[220].mxu1 %v19480_v62  ;;  %v15336_v62 = vld [vmem:[#allocation7 + $0x328] ss:$16 sps:$4 sm:$0xff]  }
 0x47c   : > { %6566 = vmatpush1.bf16.msra.mxu1 %v15318_v49  ;;  %6585 = vmatprep.mubr.bf16.mxu1 %v19585_v46  ;;  %v15321_v46 = vld [vmem:[#allocation7 + $0x400] ss:$16 sps:$4 sm:$0xff]   ;;  %v15335_v49 = vld [vmem:[#allocation7 + $0x444] ss:$16 sps:$4 sm:$0xff]  }
 0x47d   : > { %6357 = vmatpush1.bf16.msra.mxu0 %v15291_v21  ;;  %6567 = vmatprep.subr.bf16.mxu1 %v15326_v50  ;;  %v15323_v21 = vld [vmem:[#allocation7 + $0x404] ss:$16 sps:$4 sm:$0xff]   ;;  %v15348_v50 = vld [vmem:[#allocation7 + $0x368] ss:$16 sps:$4 sm:$0xff]  }
 0x47e   : > { %6358 = vmatprep.subr.bf16.mxu0 %v15299_v55  ;;  %v15344_v55 = vld [vmem:[#allocation7 + $0x34c] ss:$16 sps:$4 sm:$0xff]  }
 0x480   : > { %6568 = vmatpush1.bf16.msra.mxu1 %v15324_v32  ;;  %v15341_v32 = vld [vmem:[#allocation7 + $0x464] ss:$16 sps:$4 sm:$0xff]  }
 0x481   : > { %6359 = vmatpush1.bf16.msra.mxu0 %v15297_v0  ;;  %6569 = vmatprep.subr.bf16.mxu1 %v15332_v52  ;;  %v15350_v0 = vld [vmem:[#allocation7 + $0x36c] ss:$16 sps:$4 sm:$0xff]   ;;  %v15354_v52 = vld [vmem:[#allocation7 + $0x388] ss:$16 sps:$4 sm:$0xff]  }
 0x482   : > { %6360 = vmatprep.subr.bf16.mxu0 %v15305_v48  ;;  %v15327_v48 = vld [vmem:[#allocation7 + $0x420] ss:$16 sps:$4 sm:$0xff]  }
 0x484   : > { %6570 = vmatpush1.bf16.msra.mxu1 %v15330_v25  ;;  %v15347_v25 = vld [vmem:[#allocation7 + $0x484] ss:$16 sps:$4 sm:$0xff]  }
 0x485   : > { %6361 = vmatpush1.bf16.msra.mxu0 %v15303_v54  ;;  %6571 = vmatprep.subr.bf16.mxu1 %v15338_v63  ;;  %v15356_v54 = vld [vmem:[#allocation7 + $0x38c] ss:$16 sps:$4 sm:$0xff]   ;;  %v15360_v63 = vld [vmem:[#allocation7 + $0x3a8] ss:$16 sps:$4 sm:$0xff]  }
 0x486   : > { %6362 = vmatprep.subr.bf16.mxu0 %v15311_v41  ;;  %v15333_v41 = vld [vmem:[#allocation7 + $0x440] ss:$16 sps:$4 sm:$0xff]  }
 0x488   : > { %6572 = vmatpush1.bf16.msra.mxu1 %v15336_v62  ;;  %v15353_v62 = vld [vmem:[#allocation7 + $0x4a4] ss:$16 sps:$4 sm:$0xff]  }
 0x489   : > { %6363 = vmatpush1.bf16.msra.mxu0 %v15309_v5  ;;  %6573 = vmatprep.subr.bf16.mxu1 %v15344_v55  ;;  %v15362_v5 = vld [vmem:[#allocation7 + $0x3ac] ss:$16 sps:$4 sm:$0xff]   ;;  %v15366_v55 = vld [vmem:[#allocation7 + $0x3c8] ss:$16 sps:$4 sm:$0xff]  }
 0x48a   : > { %6364 = vmatprep.subr.bf16.mxu0 %v15317_v29  ;;  %v15339_v29 = vld [vmem:[#allocation7 + $0x460] ss:$16 sps:$4 sm:$0xff]  }
 0x48c   : > { %6574 = vmatpush1.bf16.msra.mxu1 %v15342_v31  ;;  %v15359_v31 = vld [vmem:[#allocation7 + $0x4c4] ss:$16 sps:$4 sm:$0xff]  }
 0x48d   : > { %6365 = vmatpush1.bf16.msra.mxu0 %v15315_v9  ;;  %6575 = vmatprep.subr.bf16.mxu1 %v15350_v0  ;;  %v15368_v9 = vld [vmem:[#allocation7 + $0x3cc] ss:$16 sps:$4 sm:$0xff]   ;;  %v15372_v0 = vld [vmem:[#allocation7 + $0x3e8] ss:$16 sps:$4 sm:$0xff]  }
 0x48e   : > { %6407 = vmatprep.subr.bf16.mxu0 %v15323_v21  ;;  %v15345_v21 = vld [vmem:[#allocation7 + $0x480] ss:$16 sps:$4 sm:$0xff]  }
 0x490   : > { %6367 = vmatmul.mubr.bf16.vlgmr.msra.gmra.mrb[176].mxu0 %v19581_v11  ;;  %6576 = vmatpush1.bf16.msra.mxu1 %v15348_v50  ;;  %v15365_v50 = vld [vmem:[#allocation7 + $0x4e4] ss:$16 sps:$4 sm:$0xff]  }
 0x491   : > { %6376 = vmatprep.mubr.bf16.mxu0 %v19593_v33  ;;  %6408 = vmatpush1.bf16.msra.mxu0 %v15321_v46  ;;  %v15374_v46 = vld [vmem:[#allocation7 + $0x3ec] ss:$16 sps:$4 sm:$0xff]  }
 0x492   : > { %6409 = vmatprep.subr.bf16.mxu0 %v15329_v60  ;;  %6577 = vmatprep.subr.bf16.mxu1 %v15356_v54  ;;  %v15351_v60 = vld [vmem:[#allocation7 + $0x4a0] ss:$16 sps:$4 sm:$0xff]   ;;  %v15378_v54 = vld [vmem:[#allocation7 + $0x408] ss:$16 sps:$4 sm:$0xff]  }
 0x494   : > { %6578 = vmatpush1.bf16.msra.mxu1 %v15354_v52  ;;  %v15371_v52 = vld [vmem:[#allocation7 + $0x504] ss:$16 sps:$4 sm:$0xff]  }
 0x495   : > { %6410 = vmatpush1.bf16.msra.mxu0 %v15327_v48  ;;  %6579 = vmatprep.subr.bf16.mxu1 %v15362_v5  ;;  %v15380_v48 = vld [vmem:[#allocation7 + $0x40c] ss:$16 sps:$4 sm:$0xff]   ;;  %v15384_v5 = vld [vmem:[#allocation7 + $0x428] ss:$16 sps:$4 sm:$0xff]  }
 0x496   : > { %6411 = vmatprep.subr.bf16.mxu0 %v15335_v49  ;;  %v15357_v49 = vld [vmem:[#allocation7 + $0x4c0] ss:$16 sps:$4 sm:$0xff]  }
 0x498   : > { %6377 = vmatmul.mubr.bf16.gmra.mrb[180].mxu0 %v19589_v28  ;;  %6580 = vmatpush1.bf16.msra.mxu1 %v15360_v63  ;;  %v15377_v63 = vld [vmem:[#allocation7 + $0x524] ss:$16 sps:$4 sm:$0xff]  }
 0x499   : > { %6386 = vmatprep.mubr.bf16.mxu0 %v19601_v10  ;;  %6412 = vmatpush1.bf16.msra.mxu0 %v15333_v41  ;;  %v15386_v41 = vld [vmem:[#allocation7 + $0x42c] ss:$16 sps:$4 sm:$0xff]  }
 0x49a   : > { %6413 = vmatprep.subr.bf16.mxu0 %v15341_v32  ;;  %6581 = vmatprep.subr.bf16.mxu1 %v15368_v9  ;;  %v15363_v32 = vld [vmem:[#allocation7 + $0x4e0] ss:$16 sps:$4 sm:$0xff]   ;;  %v15390_v9 = vld [vmem:[#allocation7 + $0x448] ss:$16 sps:$4 sm:$0xff]  }
 0x49c   : > { %6582 = vmatpush1.bf16.msra.mxu1 %v15366_v55  ;;  %v15383_v55 = vld [vmem:[#allocation7 + $0x544] ss:$16 sps:$4 sm:$0xff]  }
 0x49d   : > { %6414 = vmatpush1.bf16.msra.mxu0 %v15339_v29  ;;  %6583 = vmatprep.subr.bf16.mxu1 %v15374_v46  ;;  %v15392_v29 = vld [vmem:[#allocation7 + $0x44c] ss:$16 sps:$4 sm:$0xff]   ;;  %v15381_v46 = vld [vmem:[#allocation7 + $0x540] ss:$16 sps:$4 sm:$0xff]  }
 0x49e   : > { %6415 = vmatprep.subr.bf16.mxu0 %v15347_v25  ;;  %v15369_v25 = vld [vmem:[#allocation7 + $0x500] ss:$16 sps:$4 sm:$0xff]  }
 0x4a0   : > { %6387 = vmatmul.mubr.bf16.gmra.mrb[184].mxu0 %v19599_v36  ;;  %6584 = vmatpush1.bf16.msra.mxu1 %v15372_v0  ;;  %v15410_v0 = vld [vmem:[#allocation7 + $0x4ac] ss:$16 sps:$4 sm:$0xff]  }
 0x4a1   : > { %6396 = vmatprep.mubr.bf16.mxu0 %v19610_v34  ;;  %6416 = vmatpush1.bf16.msra.mxu0 %v15345_v21  ;;  %v15398_v21 = vld [vmem:[#allocation7 + $0x46c] ss:$16 sps:$4 sm:$0xff]  }
 0x4a2   : > { %6417 = vmatprep.subr.bf16.mxu0 %v15353_v62  ;;  %6626 = vmatprep.subr.bf16.mxu1 %v15380_v48  ;;  %v15375_v62 = vld [vmem:[#allocation7 + $0x520] ss:$16 sps:$4 sm:$0xff]  }
 0x4a3   : > { %6586 = vmatmul.mubr.bf16.vlgmr.msra.gmra.mrb[208].mxu1 %v19581_v11  ;;  %v15396_v11 = vld [vmem:[#allocation7 + $0x468] ss:$16 sps:$4 sm:$0xff]   ;;  %v15387_v48 = vld [vmem:[#allocation7 + $0x560] ss:$16 sps:$4 sm:$0xff]  }
 0x4a4   : > { %6595 = vmatprep.mubr.bf16.mxu1 %v19593_v33  ;;  %6627 = vmatpush1.bf16.msra.mxu1 %v15378_v54  ;;  %v15404_v33 = vld [vmem:[#allocation7 + $0x48c] ss:$16 sps:$4 sm:$0xff]   ;;  %v15401_v54 = vld [vmem:[#allocation7 + $0x5a4] ss:$16 sps:$4 sm:$0xff]  }
 0x4a5   : > { %6418 = vmatpush1.bf16.msra.mxu0 %v15351_v60  ;;  %6628 = vmatprep.subr.bf16.mxu1 %v15386_v41  ;;  %v15389_v60 = vld [vmem:[#allocation7 + $0x564] ss:$16 sps:$4 sm:$0xff]   ;;  %v15414_v41 = vld [vmem:[#allocation7 + $0x4c8] ss:$16 sps:$4 sm:$0xff]  }
 0x4a6   : > { %6419 = vmatprep.subr.bf16.mxu0 %v15359_v31  ;;  %v15402_v31 = vld [vmem:[#allocation7 + $0x488] ss:$16 sps:$4 sm:$0xff]  }
 0x4a8   : > { %6397 = vmatmul.mubr.bf16.gmra.mrb[188].mxu0 %v19608_v14  ;;  %6629 = vmatpush1.bf16.msra.mxu1 %v15384_v5  ;;  %v15407_v5 = vld [vmem:[#allocation7 + $0x5c4] ss:$16 sps:$4 sm:$0xff]  }
 0x4a9   : > { %6420 = vmatpush1.bf16.msra.mxu0 %v15357_v49  ;;  %6439 = vmatprep.mubr.bf16.mxu0 %v19639_v37  ;;  %v15395_v49 = vld [vmem:[#allocation7 + $0x584] ss:$16 sps:$4 sm:$0xff]  }
 0x4aa   : > { %6421 = vmatprep.subr.bf16.mxu0 %v15365_v50  ;;  %6630 = vmatprep.subr.bf16.mxu1 %v15392_v29  ;;  %v15393_v50 = vld [vmem:[#allocation7 + $0x580] ss:$16 sps:$4 sm:$0xff]  }
 0x4ab   : > { %6596 = vmatmul.mubr.bf16.gmra.mrb[212].mxu1 %v19589_v28  ;;  %v15408_v28 = vld [vmem:[#allocation7 + $0x4a8] ss:$16 sps:$4 sm:$0xff]   ;;  %v15405_v29 = vld [vmem:[#allocation7 + $0x5c0] ss:$16 sps:$4 sm:$0xff]  }
 0x4ac   : > { %6605 = vmatprep.mubr.bf16.mxu1 %v19601_v10  ;;  %6631 = vmatpush1.bf16.msra.mxu1 %v15390_v9  ;;  %v15416_v10 = vld [vmem:[#allocation7 + $0x4cc] ss:$16 sps:$4 sm:$0xff]  }
 0x4ad   : > { %6422 = vmatpush1.bf16.msra.mxu0 %v15363_v32  ;;  %6632 = vmatprep.subr.bf16.mxu1 %v15398_v21  ;;  %v15422_v32 = vld [vmem:[#allocation7 + $0x4ec] ss:$16 sps:$4 sm:$0xff]   ;;  %v15411_v21 = vld [vmem:[#allocation7 + $0x5e0] ss:$16 sps:$4 sm:$0xff]  }
 0x4ae   : > { %6423 = vmatprep.subr.bf16.mxu0 %v15371_v52  ;;  %v15399_v52 = vld [vmem:[#allocation7 + $0x5a0] ss:$16 sps:$4 sm:$0xff]   ;;  %v15434_v9 = vld [vmem:[#allocation7 + $0x52c] ss:$16 sps:$4 sm:$0xff]  }
 0x4b0   : > { %6633 = vmatpush1.bf16.msra.mxu1 %v15396_v11  ;;  %v15425_v11 = vld [vmem:[#allocation7 + $0xc24] ss:$16 sps:$4 sm:$0xff]  }
 0x4b1   : > { %6424 = vmatpush1.bf16.msra.mxu0 %v15369_v25  ;;  %6634 = vmatprep.subr.bf16.mxu1 %v15404_v33  ;;  %v15413_v25 = vld [vmem:[#allocation7 + $0x5e4] ss:$16 sps:$4 sm:$0xff]   ;;  %v15438_v33 = vld [vmem:[#allocation7 + $0x548] ss:$16 sps:$4 sm:$0xff]  }
 0x4b2   : > { %6425 = vmatprep.subr.bf16.mxu0 %v15377_v63  ;;  %v15426_v63 = vld [vmem:[#allocation7 + $0x508] ss:$16 sps:$4 sm:$0xff]  }
 0x4b3   : > { %6606 = vmatmul.mubr.bf16.gmra.mrb[216].mxu1 %v19599_v36  ;;  %v15420_v36 = vld [vmem:[#allocation7 + $0x4e8] ss:$16 sps:$4 sm:$0xff]  }
 0x4b4   : > { %6615 = vmatprep.mubr.bf16.mxu1 %v19610_v34  ;;  %6635 = vmatpush1.bf16.msra.mxu1 %v15402_v31  ;;  %v15428_v34 = vld [vmem:[#allocation7 + $0x50c] ss:$16 sps:$4 sm:$0xff]   ;;  %v15431_v31 = vld [vmem:[#allocation7 + $0xc44] ss:$16 sps:$4 sm:$0xff]  }
 0x4b5   : > { %6426 = vmatpush1.bf16.msra.mxu0 %v15375_v62  ;;  %6636 = vmatprep.subr.bf16.mxu1 %v15410_v0  ;;  %v15419_v62 = vld [vmem:[#allocation7 + $0xc04] ss:$16 sps:$4 sm:$0xff]   ;;  %v15444_v0 = vld [vmem:[#allocation7 + $0x568] ss:$16 sps:$4 sm:$0xff]  }
 0x4b6   : > { %6427 = vmatprep.subr.bf16.mxu0 %v15383_v55  ;;  %v15440_v55 = vld [vmem:[#allocation7 + $0x54c] ss:$16 sps:$4 sm:$0xff]  }
 0x4b8   : > { %6637 = vmatpush1.bf16.msra.mxu1 %v15408_v28  ;;  %v15437_v28 = vld [vmem:[#allocation7 + $0xc64] ss:$16 sps:$4 sm:$0xff]  }
 0x4b9   : > { %6428 = vmatpush1.bf16.msra.mxu0 %v15381_v46  ;;  %6638 = vmatprep.subr.bf16.mxu1 %v15416_v10  ;;  %v15446_v46 = vld [vmem:[#allocation7 + $0x56c] ss:$16 sps:$4 sm:$0xff]   ;;  %v15450_v10 = vld [vmem:[#allocation7 + $0x588] ss:$16 sps:$4 sm:$0xff]  }
 0x4ba   : > { %6429 = vmatprep.subr.bf16.mxu0 %v15389_v60  ;;  %v15423_v60 = vld [vmem:[#allocation7 + $0xc20] ss:$16 sps:$4 sm:$0xff]  }
 0x4bb   : > { %6616 = vmatmul.mubr.bf16.gmra.mrb[220].mxu1 %v19608_v14  ;;  %v15432_v14 = vld [vmem:[#allocation7 + $0x528] ss:$16 sps:$4 sm:$0xff]  }
 0x4bc   : > { %6639 = vmatpush1.bf16.msra.mxu1 %v15414_v41  ;;  %6658 = vmatprep.mubr.bf16.mxu1 %v19639_v37  ;;  %v15417_v37 = vld [vmem:[#allocation7 + $0xc00] ss:$16 sps:$4 sm:$0xff]   ;;  %v15443_v41 = vld [vmem:[#allocation7 + $0xc84] ss:$16 sps:$4 sm:$0xff]  }
 0x4bd   : > { %6430 = vmatpush1.bf16.msra.mxu0 %v15387_v48  ;;  %6640 = vmatprep.subr.bf16.mxu1 %v15422_v32  ;;  %v15452_v48 = vld [vmem:[#allocation7 + $0x58c] ss:$16 sps:$4 sm:$0xff]   ;;  %v15456_v32 = vld [vmem:[#allocation7 + $0x5a8] ss:$16 sps:$4 sm:$0xff]  }
 0x4be   : > { %6431 = vmatprep.subr.bf16.mxu0 %v15395_v49  ;;  %v15429_v49 = vld [vmem:[#allocation7 + $0xc40] ss:$16 sps:$4 sm:$0xff]  }
 0x4c0   : > { %6641 = vmatpush1.bf16.msra.mxu1 %v15420_v36  ;;  %v15449_v36 = vld [vmem:[#allocation7 + $0xca4] ss:$16 sps:$4 sm:$0xff]  }
 0x4c1   : > { %6432 = vmatpush1.bf16.msra.mxu0 %v15393_v50  ;;  %6642 = vmatprep.subr.bf16.mxu1 %v15428_v34  ;;  %v15458_v50 = vld [vmem:[#allocation7 + $0x5ac] ss:$16 sps:$4 sm:$0xff]   ;;  %v15462_v34 = vld [vmem:[#allocation7 + $0x5c8] ss:$16 sps:$4 sm:$0xff]  }
 0x4c2   : > { %6433 = vmatprep.subr.bf16.mxu0 %v15401_v54  ;;  %v15435_v54 = vld [vmem:[#allocation7 + $0xc60] ss:$16 sps:$4 sm:$0xff]  }
 0x4c4   : > { %6643 = vmatpush1.bf16.msra.mxu1 %v15426_v63  ;;  %v15455_v63 = vld [vmem:[#allocation7 + $0xcc4] ss:$16 sps:$4 sm:$0xff]  }
 0x4c5   : > { %6434 = vmatpush1.bf16.msra.mxu0 %v15399_v52  ;;  %6644 = vmatprep.subr.bf16.mxu1 %v15434_v9  ;;  %v15464_v52 = vld [vmem:[#allocation7 + $0x5cc] ss:$16 sps:$4 sm:$0xff]   ;;  %v15468_v9 = vld [vmem:[#allocation7 + $0x5e8] ss:$16 sps:$4 sm:$0xff]  }
 0x4c6   : > { %6435 = vmatprep.subr.bf16.mxu0 %v15407_v5  ;;  %v15441_v5 = vld [vmem:[#allocation7 + $0xc80] ss:$16 sps:$4 sm:$0xff]  }
 0x4c8   : > { %6645 = vmatpush1.bf16.msra.mxu1 %v15432_v14  ;;  %v15461_v14 = vld [vmem:[#allocation7 + $0xce4] ss:$16 sps:$4 sm:$0xff]  }
 0x4c9   : > { %6436 = vmatpush1.bf16.msra.mxu0 %v15405_v29  ;;  %6646 = vmatprep.subr.bf16.mxu1 %v15440_v55  ;;  %v15470_v29 = vld [vmem:[#allocation7 + $0x5ec] ss:$16 sps:$4 sm:$0xff]   ;;  %v15474_v55 = vld [vmem:[#allocation7 + $0xc08] ss:$16 sps:$4 sm:$0xff]  }
 0x4ca   : > { %6437 = vmatprep.subr.bf16.mxu0 %v15413_v25  ;;  %v15447_v25 = vld [vmem:[#allocation7 + $0xca0] ss:$16 sps:$4 sm:$0xff]  }
 0x4cc   : > { %6647 = vmatpush1.bf16.msra.mxu1 %v15438_v33  ;;  %v15467_v33 = vld [vmem:[#allocation7 + $0xd04] ss:$16 sps:$4 sm:$0xff]  }
 0x4cd   : > { %6438 = vmatpush1.bf16.msra.mxu0 %v15411_v21  ;;  %6648 = vmatprep.subr.bf16.mxu1 %v15446_v46  ;;  %v15476_v21 = vld [vmem:[#allocation7 + $0xc0c] ss:$16 sps:$4 sm:$0xff]   ;;  %v15480_v46 = vld [vmem:[#allocation7 + $0xc28] ss:$16 sps:$4 sm:$0xff]  }
 0x4ce   : > { %7852 = vmatprep.subr.bf16.mxu0 %v15419_v62  ;;  %v15453_v62 = vld [vmem:[#allocation7 + $0xcc0] ss:$16 sps:$4 sm:$0xff]  }
 0x4d0   : > { %6440 = vmatmul.mubr.bf16.vlgmr.msra.gmra.mrb[176].mxu0 %v19635_v42  ;;  %6649 = vmatpush1.bf16.msra.mxu1 %v15444_v0  ;;  %v15473_v0 = vld [vmem:[#allocation7 + $0xd24] ss:$16 sps:$4 sm:$0xff]  }
 0x4d1   : > { %6449 = vmatprep.mubr.bf16.mxu0 %v19649_v45  ;;  %7853 = vmatpush1.bf16.msra.mxu0 %v15417_v37  ;;  %v15482_v37 = vld [vmem:[#allocation7 + $0xc2c] ss:$16 sps:$4 sm:$0xff]  }
 0x4d2   : > { %7854 = vmatprep.subr.bf16.mxu0 %v15425_v11  ;;  %6650 = vmatprep.subr.bf16.mxu1 %v15452_v48  ;;  %v15459_v11 = vld [vmem:[#allocation7 + $0xce0] ss:$16 sps:$4 sm:$0xff]   ;;  %v15486_v48 = vld [vmem:[#allocation7 + $0xc48] ss:$16 sps:$4 sm:$0xff]  }
 0x4d4   : > { %6651 = vmatpush1.bf16.msra.mxu1 %v15450_v10  ;;  %v15479_v10 = vld [vmem:[#allocation7 + $0xd44] ss:$16 sps:$4 sm:$0xff]  }
 0x4d5   : > { %7855 = vmatpush1.bf16.msra.mxu0 %v15423_v60  ;;  %6652 = vmatprep.subr.bf16.mxu1 %v15458_v50  ;;  %v15488_v60 = vld [vmem:[#allocation7 + $0xc4c] ss:$16 sps:$4 sm:$0xff]   ;;  %v15477_v50 = vld [vmem:[#allocation7 + $0xd40] ss:$16 sps:$4 sm:$0xff]  }
 0x4d6   : > { %7856 = vmatprep.subr.bf16.mxu0 %v15431_v31  ;;  %v15465_v31 = vld [vmem:[#allocation7 + $0xd00] ss:$16 sps:$4 sm:$0xff]  }
 0x4d8   : > { %6450 = vmatmul.mubr.bf16.gmra.mrb[180].mxu0 %v19645_v24  ;;  %6653 = vmatpush1.bf16.msra.mxu1 %v15456_v32  ;;  %v15506_v32 = vld [vmem:[#allocation7 + $0xcac] ss:$16 sps:$4 sm:$0xff]  }
 0x4d9   : > { %6459 = vmatprep.mubr.bf16.mxu0 %v19661_v35  ;;  %7857 = vmatpush1.bf16.msra.mxu0 %v15429_v49  ;;  %v15494_v49 = vld [vmem:[#allocation7 + $0xc6c] ss:$16 sps:$4 sm:$0xff]  }
 0x4da   : > { %7858 = vmatprep.subr.bf16.mxu0 %v15437_v28  ;;  %6654 = vmatprep.subr.bf16.mxu1 %v15464_v52  ;;  %v15471_v28 = vld [vmem:[#allocation7 + $0xd20] ss:$16 sps:$4 sm:$0xff]  }
 0x4db   : > { %v15483_v52 = vld [vmem:[#allocation7 + $0xd60] ss:$16 sps:$4 sm:$0xff]  }
 0x4dc   : > { %6655 = vmatpush1.bf16.msra.mxu1 %v15462_v34  ;;  %v15497_v34 = vld [vmem:[#allocation7 + $0xda4] ss:$16 sps:$4 sm:$0xff]  }
 0x4dd   : > { %7859 = vmatpush1.bf16.msra.mxu0 %v15435_v54  ;;  %6656 = vmatprep.subr.bf16.mxu1 %v15470_v29  ;;  %v15485_v54 = vld [vmem:[#allocation7 + $0xd64] ss:$16 sps:$4 sm:$0xff]   ;;  %v15510_v29 = vld [vmem:[#allocation7 + $0xcc8] ss:$16 sps:$4 sm:$0xff]  }
 0x4de   : > { %7860 = vmatprep.subr.bf16.mxu0 %v15443_v41  ;;  %v15498_v41 = vld [vmem:[#allocation7 + $0xc88] ss:$16 sps:$4 sm:$0xff]  }
 0x4e0   : > { %6460 = vmatmul.mubr.bf16.gmra.mrb[184].mxu0 %v19657_v27  ;;  %6657 = vmatpush1.bf16.msra.mxu1 %v15468_v9  ;;  %v15503_v9 = vld [vmem:[#allocation7 + $0xdc4] ss:$16 sps:$4 sm:$0xff]  }
 0x4e1   : > { %6469 = vmatprep.mubr.bf16.mxu0 %v19671_v44  ;;  %7861 = vmatpush1.bf16.msra.mxu0 %v15441_v5  ;;  %v15491_v5 = vld [vmem:[#allocation7 + $0xd84] ss:$16 sps:$4 sm:$0xff]  }
 0x4e2   : > { %7862 = vmatprep.subr.bf16.mxu0 %v15449_v36  ;;  %8071 = vmatprep.subr.bf16.mxu1 %v15476_v21  ;;  %v15489_v36 = vld [vmem:[#allocation7 + $0xd80] ss:$16 sps:$4 sm:$0xff]  }
 0x4e3   : > { %6659 = vmatmul.mubr.bf16.vlgmr.msra.gmra.mrb[208].mxu1 %v19635_v42  ;;  %v15500_v42 = vld [vmem:[#allocation7 + $0xc8c] ss:$16 sps:$4 sm:$0xff]   ;;  %v15501_v21 = vld [vmem:[#allocation7 + $0xdc0] ss:$16 sps:$4 sm:$0xff]  }
 0x4e4   : > { %6668 = vmatprep.mubr.bf16.mxu1 %v19649_v45  ;;  %8072 = vmatpush1.bf16.msra.mxu1 %v15474_v55  ;;  %v15492_v45 = vld [vmem:[#allocation7 + $0xc68] ss:$16 sps:$4 sm:$0xff]   ;;  %v15530_v55 = vld [vmem:[#allocation7 + $0xd2c] ss:$16 sps:$4 sm:$0xff]  }
 0x4e5   : > { %7863 = vmatpush1.bf16.msra.mxu0 %v15447_v25  ;;  %8073 = vmatprep.subr.bf16.mxu1 %v15482_v37  ;;  %v15518_v25 = vld [vmem:[#allocation7 + $0xcec] ss:$16 sps:$4 sm:$0xff]   ;;  %v15507_v37 = vld [vmem:[#allocation7 + $0xde0] ss:$16 sps:$4 sm:$0xff]  }
 0x4e6   : > { %7864 = vmatprep.subr.bf16.mxu0 %v15455_v63  ;;  %v15495_v63 = vld [vmem:[#allocation7 + $0xda0] ss:$16 sps:$4 sm:$0xff]  }
 0x4e8   : > { %6470 = vmatmul.mubr.bf16.gmra.mrb[188].mxu0 %v19667_v12  ;;  %8074 = vmatpush1.bf16.msra.mxu1 %v15480_v46  ;;  %v15521_v46 = vld [vmem:[#allocation7 + $0xe24] ss:$16 sps:$4 sm:$0xff]  }
 0x4e9   : > { %7865 = vmatpush1.bf16.msra.mxu0 %v15453_v62  ;;  %7884 = vmatprep.mubr.bf16.mxu0 %v19536_v6  ;;  %v15509_v62 = vld [vmem:[#allocation7 + $0xde4] ss:$16 sps:$4 sm:$0xff]  }
 0x4ea   : > { %7866 = vmatprep.subr.bf16.mxu0 %v15461_v14  ;;  %8075 = vmatprep.subr.bf16.mxu1 %v15488_v60  ;;  %v15522_v14 = vld [vmem:[#allocation7 + $0xd08] ss:$16 sps:$4 sm:$0xff]  }
 0x4eb   : > { %6669 = vmatmul.mubr.bf16.gmra.mrb[212].mxu1 %v19645_v24  ;;  %v15512_v24 = vld [vmem:[#allocation7 + $0xccc] ss:$16 sps:$4 sm:$0xff]   ;;  %v15534_v60 = vld [vmem:[#allocation7 + $0xd48] ss:$16 sps:$4 sm:$0xff]  }
 0x4ec   : > { %6678 = vmatprep.mubr.bf16.mxu1 %v19661_v35  ;;  %8076 = vmatpush1.bf16.msra.mxu1 %v15486_v48  ;;  %v15504_v35 = vld [vmem:[#allocation7 + $0xca8] ss:$16 sps:$4 sm:$0xff]   ;;  %v15527_v48 = vld [vmem:[#allocation7 + $0xe44] ss:$16 sps:$4 sm:$0xff]  }
 0x4ed   : > { %7867 = vmatpush1.bf16.msra.mxu0 %v15459_v11  ;;  %8077 = vmatprep.subr.bf16.mxu1 %v15494_v49  ;;  %v15515_v11 = vld [vmem:[#allocation7 + $0xe04] ss:$16 sps:$4 sm:$0xff]   ;;  %v15540_v49 = vld [vmem:[#allocation7 + $0xd68] ss:$16 sps:$4 sm:$0xff]  }
 0x4ee   : > { %7868 = vmatprep.subr.bf16.mxu0 %v15467_v33  ;;  %v15536_v33 = vld [vmem:[#allocation7 + $0xd4c] ss:$16 sps:$4 sm:$0xff]  }
 0x4f0   : > { %8078 = vmatpush1.bf16.msra.mxu1 %v15492_v45  ;;  %v15533_v45 = vld [vmem:[#allocation7 + $0xe64] ss:$16 sps:$4 sm:$0xff]  }
 0x4f1   : > { %7869 = vmatpush1.bf16.msra.mxu0 %v15465_v31  ;;  %8079 = vmatprep.subr.bf16.mxu1 %v15500_v42  ;;  %v15542_v31 = vld [vmem:[#allocation7 + $0xd6c] ss:$16 sps:$4 sm:$0xff]   ;;  %v15546_v42 = vld [vmem:[#allocation7 + $0xd88] ss:$16 sps:$4 sm:$0xff]  }
 0x4f2   : > { %7870 = vmatprep.subr.bf16.mxu0 %v15473_v0  ;;  %v15519_v0 = vld [vmem:[#allocation7 + $0xe20] ss:$16 sps:$4 sm:$0xff]  }
 0x4f3   : > { %6679 = vmatmul.mubr.bf16.gmra.mrb[216].mxu1 %v19657_v27  ;;  %v15524_v27 = vld [vmem:[#allocation7 + $0xd0c] ss:$16 sps:$4 sm:$0xff]  }
 0x4f4   : > { %6688 = vmatprep.mubr.bf16.mxu1 %v19671_v44  ;;  %8080 = vmatpush1.bf16.msra.mxu1 %v15498_v41  ;;  %v15516_v44 = vld [vmem:[#allocation7 + $0xce8] ss:$16 sps:$4 sm:$0xff]   ;;  %v15539_v41 = vld [vmem:[#allocation7 + $0xe84] ss:$16 sps:$4 sm:$0xff]  }
 0x4f5   : > { %7871 = vmatpush1.bf16.msra.mxu0 %v15471_v28  ;;  %8081 = vmatprep.subr.bf16.mxu1 %v15506_v32  ;;  %v15548_v28 = vld [vmem:[#allocation7 + $0xd8c] ss:$16 sps:$4 sm:$0xff]   ;;  %v15552_v32 = vld [vmem:[#allocation7 + $0xda8] ss:$16 sps:$4 sm:$0xff]  }
 0x4f6   : > { %7872 = vmatprep.subr.bf16.mxu0 %v15479_v10  ;;  %v15525_v10 = vld [vmem:[#allocation7 + $0xe40] ss:$16 sps:$4 sm:$0xff]  }
 0x4f8   : > { %8082 = vmatpush1.bf16.msra.mxu1 %v15504_v35  ;;  %v15545_v35 = vld [vmem:[#allocation7 + $0xea4] ss:$16 sps:$4 sm:$0xff]  }
 0x4f9   : > { %7873 = vmatpush1.bf16.msra.mxu0 %v15477_v50  ;;  %8083 = vmatprep.subr.bf16.mxu1 %v15512_v24  ;;  %v15554_v50 = vld [vmem:[#allocation7 + $0xdac] ss:$16 sps:$4 sm:$0xff]   ;;  %v15558_v24 = vld [vmem:[#allocation7 + $0xdc8] ss:$16 sps:$4 sm:$0xff]  }
 0x4fa   : > { %7874 = vmatprep.subr.bf16.mxu0 %v15485_v54  ;;  %v15531_v54 = vld [vmem:[#allocation7 + $0xe60] ss:$16 sps:$4 sm:$0xff]  }
 0x4fb   : > { %6689 = vmatmul.mubr.bf16.gmra.mrb[220].mxu1 %v19667_v12  ;;  %v15528_v12 = vld [vmem:[#allocation7 + $0xd28] ss:$16 sps:$4 sm:$0xff]  }
 0x4fc   : > { %8084 = vmatpush1.bf16.msra.mxu1 %v15510_v29  ;;  %8103 = vmatprep.mubr.bf16.mxu1 %v19536_v6  ;;  %v15513_v6 = vld [vmem:[#allocation7 + $0xe00] ss:$16 sps:$4 sm:$0xff]   ;;  %v15551_v29 = vld [vmem:[#allocation7 + $0xec4] ss:$16 sps:$4 sm:$0xff]  }
 0x4fd   : > { %7875 = vmatpush1.bf16.msra.mxu0 %v15483_v52  ;;  %8085 = vmatprep.subr.bf16.mxu1 %v15518_v25  ;;  %v15560_v52 = vld [vmem:[#allocation7 + $0xdcc] ss:$16 sps:$4 sm:$0xff]   ;;  %v15564_v25 = vld [vmem:[#allocation7 + $0xde8] ss:$16 sps:$4 sm:$0xff]  }
 0x4fe   : > { %7876 = vmatprep.subr.bf16.mxu0 %v15491_v5  ;;  %v15537_v5 = vld [vmem:[#allocation7 + $0xe80] ss:$16 sps:$4 sm:$0xff]  }
 0x500   : > { %8086 = vmatpush1.bf16.msra.mxu1 %v15516_v44  ;;  %v15557_v44 = vld [vmem:[#allocation7 + $0xee4] ss:$16 sps:$4 sm:$0xff]  }
 0x501   : > { %7877 = vmatpush1.bf16.msra.mxu0 %v15489_v36  ;;  %8087 = vmatprep.subr.bf16.mxu1 %v15524_v27  ;;  %v15566_v36 = vld [vmem:[#allocation7 + $0xdec] ss:$16 sps:$4 sm:$0xff]   ;;  %v15570_v27 = vld [vmem:[#allocation7 + $0xe08] ss:$16 sps:$4 sm:$0xff]  }
 0x502   : > { %7878 = vmatprep.subr.bf16.mxu0 %v15497_v34  ;;  %v15543_v34 = vld [vmem:[#allocation7 + $0xea0] ss:$16 sps:$4 sm:$0xff]  }
 0x504   : > { %8088 = vmatpush1.bf16.msra.mxu1 %v15522_v14  ;;  %v15563_v14 = vld [vmem:[#allocation7 + $0xf04] ss:$16 sps:$4 sm:$0xff]  }
 0x505   : > { %7879 = vmatpush1.bf16.msra.mxu0 %v15495_v63  ;;  %8089 = vmatprep.subr.bf16.mxu1 %v15530_v55  ;;  %v15572_v63 = vld [vmem:[#allocation7 + $0xe0c] ss:$16 sps:$4 sm:$0xff]   ;;  %v15576_v55 = vld [vmem:[#allocation7 + $0xe28] ss:$16 sps:$4 sm:$0xff]  }
 0x506   : > { %7880 = vmatprep.subr.bf16.mxu0 %v15503_v9  ;;  %v15549_v9 = vld [vmem:[#allocation7 + $0xec0] ss:$16 sps:$4 sm:$0xff]  }
 0x508   : > { %8090 = vmatpush1.bf16.msra.mxu1 %v15528_v12  ;;  %v15569_v12 = vld [vmem:[#allocation7 + $0xf24] ss:$16 sps:$4 sm:$0xff]  }
 0x509   : > { %7881 = vmatpush1.bf16.msra.mxu0 %v15501_v21  ;;  %8091 = vmatprep.subr.bf16.mxu1 %v15536_v33  ;;  %v15578_v21 = vld [vmem:[#allocation7 + $0xe2c] ss:$16 sps:$4 sm:$0xff]   ;;  %v15582_v33 = vld [vmem:[#allocation7 + $0xe48] ss:$16 sps:$4 sm:$0xff]  }
 0x50a   : > { %7882 = vmatprep.subr.bf16.mxu0 %v15509_v62  ;;  %v15555_v62 = vld [vmem:[#allocation7 + $0xee0] ss:$16 sps:$4 sm:$0xff]  }
 0x50c   : > { %8092 = vmatpush1.bf16.msra.mxu1 %v15534_v60  ;;  %v15575_v60 = vld [vmem:[#allocation7 + $0xf44] ss:$16 sps:$4 sm:$0xff]  }
 0x50d   : > { %7883 = vmatpush1.bf16.msra.mxu0 %v15507_v37  ;;  %8093 = vmatprep.subr.bf16.mxu1 %v15542_v31  ;;  %v15584_v37 = vld [vmem:[#allocation7 + $0xe4c] ss:$16 sps:$4 sm:$0xff]   ;;  %v15573_v31 = vld [vmem:[#allocation7 + $0xf40] ss:$16 sps:$4 sm:$0xff]  }
 0x50e   : > { %7925 = vmatprep.subr.bf16.mxu0 %v15515_v11  ;;  %v15561_v11 = vld [vmem:[#allocation7 + $0xf00] ss:$16 sps:$4 sm:$0xff]  }
 0x510   : > { %7885 = vmatmul.mubr.bf16.vlgmr.msra.gmra.mrb[176].mxu0 %v19534_v53  ;;  %8094 = vmatpush1.bf16.msra.mxu1 %v15540_v49  ;;  %v15602_v49 = vld [vmem:[#allocation7 + $0xeac] ss:$16 sps:$4 sm:$0xff]  }
 0x511   : > { %7894 = vmatprep.mubr.bf16.mxu0 %v19545_v4  ;;  %7926 = vmatpush1.bf16.msra.mxu0 %v15513_v6  ;;  %v15590_v6 = vld [vmem:[#allocation7 + $0xe6c] ss:$16 sps:$4 sm:$0xff]  }
 0x512   : > { %7927 = vmatprep.subr.bf16.mxu0 %v15521_v46  ;;  %8095 = vmatprep.subr.bf16.mxu1 %v15548_v28  ;;  %v15567_v46 = vld [vmem:[#allocation7 + $0xf20] ss:$16 sps:$4 sm:$0xff]  }
 0x513   : > { %v15579_v28 = vld [vmem:[#allocation7 + $0xf60] ss:$16 sps:$4 sm:$0xff]  }
 0x514   : > { %8096 = vmatpush1.bf16.msra.mxu1 %v15546_v42  ;;  %v15593_v42 = vld [vmem:[#allocation7 + $0xfa4] ss:$16 sps:$4 sm:$0xff]  }
 0x515   : > { %7928 = vmatpush1.bf16.msra.mxu0 %v15519_v0  ;;  %8097 = vmatprep.subr.bf16.mxu1 %v15554_v50  ;;  %v15581_v0 = vld [vmem:[#allocation7 + $0xf64] ss:$16 sps:$4 sm:$0xff]   ;;  %v15606_v50 = vld [vmem:[#allocation7 + $0xec8] ss:$16 sps:$4 sm:$0xff]  }
 0x516   : > { %7929 = vmatprep.subr.bf16.mxu0 %v15527_v48  ;;  %v15594_v48 = vld [vmem:[#allocation7 + $0xe88] ss:$16 sps:$4 sm:$0xff]  }
 0x518   : > { %7895 = vmatmul.mubr.bf16.gmra.mrb[180].mxu0 %v19543_v58  ;;  %8098 = vmatpush1.bf16.msra.mxu1 %v15552_v32  ;;  %v15599_v32 = vld [vmem:[#allocation7 + $0xfc4] ss:$16 sps:$4 sm:$0xff]  }
 0x519   : > { %7904 = vmatprep.mubr.bf16.mxu0 %v19554_v51  ;;  %7930 = vmatpush1.bf16.msra.mxu0 %v15525_v10  ;;  %v15587_v10 = vld [vmem:[#allocation7 + $0xf84] ss:$16 sps:$4 sm:$0xff]  }
 0x51a   : > { %7931 = vmatprep.subr.bf16.mxu0 %v15533_v45  ;;  %8099 = vmatprep.subr.bf16.mxu1 %v15560_v52  ;;  %v15585_v45 = vld [vmem:[#allocation7 + $0xf80] ss:$16 sps:$4 sm:$0xff]  }
 0x51b   : > { %v15597_v52 = vld [vmem:[#allocation7 + $0xfc0] ss:$16 sps:$4 sm:$0xff]  }
 0x51c   : > { %8100 = vmatpush1.bf16.msra.mxu1 %v15558_v24  ;;  %v15626_v24 = vld [vmem:[#allocation7 + $0xf2c] ss:$16 sps:$4 sm:$0xff]  }
 0x51d   : > { %7932 = vmatpush1.bf16.msra.mxu0 %v15531_v54  ;;  %8101 = vmatprep.subr.bf16.mxu1 %v15566_v36  ;;  %v15614_v54 = vld [vmem:[#allocation7 + $0xeec] ss:$16 sps:$4 sm:$0xff]   ;;  %v15603_v36 = vld [vmem:[#allocation7 + $0xfe0] ss:$16 sps:$4 sm:$0xff]  }
 0x51e   : > { %7933 = vmatprep.subr.bf16.mxu0 %v15539_v41  ;;  %v15591_v41 = vld [vmem:[#allocation7 + $0xfa0] ss:$16 sps:$4 sm:$0xff]  }
 0x520   : > { %7905 = vmatmul.mubr.bf16.gmra.mrb[184].mxu0 %v19552_v17  ;;  %8102 = vmatpush1.bf16.msra.mxu1 %v15564_v25  ;;  %v15617_v25 = vld [vmem:[#allocation7 + $0x1024] ss:$16 sps:$4 sm:$0xff]  }
 0x521   : > { %7914 = vmatprep.mubr.bf16.mxu0 %v19562_v7  ;;  %7934 = vmatpush1.bf16.msra.mxu0 %v15537_v5  ;;  %v15605_v5 = vld [vmem:[#allocation7 + $0xfe4] ss:$16 sps:$4 sm:$0xff]  }
 0x522   : > { %7935 = vmatprep.subr.bf16.mxu0 %v15545_v35  ;;  %8144 = vmatprep.subr.bf16.mxu1 %v15572_v63  ;;  %v15618_v35 = vld [vmem:[#allocation7 + $0xf08] ss:$16 sps:$4 sm:$0xff]  }
 0x523   : > { %8104 = vmatmul.mubr.bf16.vlgmr.msra.gmra.mrb[208].mxu1 %v19534_v53  ;;  %v15588_v53 = vld [vmem:[#allocation7 + $0xe68] ss:$16 sps:$4 sm:$0xff]  }
 0x524   : > { %8113 = vmatprep.mubr.bf16.mxu1 %v19545_v4  ;;  %8145 = vmatpush1.bf16.msra.mxu1 %v15570_v27  ;;  %v15596_v4 = vld [vmem:[#allocation7 + $0xe8c] ss:$16 sps:$4 sm:$0xff]   ;;  %v15630_v63 = vld [vmem:[#allocation7 + $0xf48] ss:$16 sps:$4 sm:$0xff]   ;;  %v15623_v27 = vld [vmem:[#allocation7 + $0x1044] ss:$16 sps:$4 sm:$0xff]  }
 0x525   : > { %7936 = vmatpush1.bf16.msra.mxu0 %v15543_v34  ;;  %8146 = vmatprep.subr.bf16.mxu1 %v15578_v21  ;;  %v15611_v34 = vld [vmem:[#allocation7 + $0x1004] ss:$16 sps:$4 sm:$0xff]   ;;  %v15636_v21 = vld [vmem:[#allocation7 + $0xf68] ss:$16 sps:$4 sm:$0xff]  }
 0x526   : > { %7937 = vmatprep.subr.bf16.mxu0 %v15551_v29  ;;  %v15632_v29 = vld [vmem:[#allocation7 + $0xf4c] ss:$16 sps:$4 sm:$0xff]  }
 0x528   : > { %7915 = vmatmul.mubr.bf16.gmra.mrb[188].mxu0 %v19560_v23  ;;  %8147 = vmatpush1.bf16.msra.mxu1 %v15576_v55  ;;  %v15629_v55 = vld [vmem:[#allocation7 + $0x1064] ss:$16 sps:$4 sm:$0xff]  }
 0x529   : > { %7938 = vmatpush1.bf16.msra.mxu0 %v15549_v9  ;;  %7957 = vmatprep.mubr.bf16.mxu0 %v19659_v20  ;;  %v15638_v9 = vld [vmem:[#allocation7 + $0xf6c] ss:$16 sps:$4 sm:$0xff]  }
 0x52a   : > { %7939 = vmatprep.subr.bf16.mxu0 %v15557_v44  ;;  %8148 = vmatprep.subr.bf16.mxu1 %v15584_v37  ;;  %v15615_v44 = vld [vmem:[#allocation7 + $0x1020] ss:$16 sps:$4 sm:$0xff]   ;;  %v15642_v37 = vld [vmem:[#allocation7 + $0xf88] ss:$16 sps:$4 sm:$0xff]  }
 0x52b   : > { %8114 = vmatmul.mubr.bf16.gmra.mrb[212].mxu1 %v19543_v58  ;;  %v15600_v58 = vld [vmem:[#allocation7 + $0xea8] ss:$16 sps:$4 sm:$0xff]  }
 0x52c   : > { %8123 = vmatprep.mubr.bf16.mxu1 %v19554_v51  ;;  %8149 = vmatpush1.bf16.msra.mxu1 %v15582_v33  ;;  %v15608_v51 = vld [vmem:[#allocation7 + $0xecc] ss:$16 sps:$4 sm:$0xff]   ;;  %v15635_v33 = vld [vmem:[#allocation7 + $0x1084] ss:$16 sps:$4 sm:$0xff]  }
 0x52d   : > { %7940 = vmatpush1.bf16.msra.mxu0 %v15555_v62  ;;  %8150 = vmatprep.subr.bf16.mxu1 %v15590_v6  ;;  %v15644_v62 = vld [vmem:[#allocation7 + $0xf8c] ss:$16 sps:$4 sm:$0xff]   ;;  %v15648_v6 = vld [vmem:[#allocation7 + $0xfa8] ss:$16 sps:$4 sm:$0xff]  }
 0x52e   : > { %7941 = vmatprep.subr.bf16.mxu0 %v15563_v14  ;;  %v15621_v14 = vld [vmem:[#allocation7 + $0x1040] ss:$16 sps:$4 sm:$0xff]  }
 0x530   : > { %8151 = vmatpush1.bf16.msra.mxu1 %v15588_v53  ;;  %v15641_v53 = vld [vmem:[#allocation7 + $0x10a4] ss:$16 sps:$4 sm:$0xff]  }
 0x531   : > { %7942 = vmatpush1.bf16.msra.mxu0 %v15561_v11  ;;  %8152 = vmatprep.subr.bf16.mxu1 %v15596_v4  ;;  %v15650_v11 = vld [vmem:[#allocation7 + $0xfac] ss:$16 sps:$4 sm:$0xff]   ;;  %v15654_v4 = vld [vmem:[#allocation7 + $0xfc8] ss:$16 sps:$4 sm:$0xff]  }
 0x532   : > { %7943 = vmatprep.subr.bf16.mxu0 %v15569_v12  ;;  %v15627_v12 = vld [vmem:[#allocation7 + $0x1060] ss:$16 sps:$4 sm:$0xff]  }
 0x533   : > { %8124 = vmatmul.mubr.bf16.gmra.mrb[216].mxu1 %v19552_v17  ;;  %v15612_v17 = vld [vmem:[#allocation7 + $0xee8] ss:$16 sps:$4 sm:$0xff]  }
 0x534   : > { %8133 = vmatprep.mubr.bf16.mxu1 %v19562_v7  ;;  %8153 = vmatpush1.bf16.msra.mxu1 %v15594_v48  ;;  %v15620_v7 = vld [vmem:[#allocation7 + $0xf0c] ss:$16 sps:$4 sm:$0xff]  }
 0x535   : > { %7944 = vmatpush1.bf16.msra.mxu0 %v15567_v46  ;;  %8154 = vmatprep.subr.bf16.mxu1 %v15602_v49  ;;  %v15656_v46 = vld [vmem:[#allocation7 + $0xfcc] ss:$16 sps:$4 sm:$0xff]   ;;  %v15639_v49 = vld [vmem:[#allocation7 + $0x10a0] ss:$16 sps:$4 sm:$0xff]  }
 0x536   : > { %7945 = vmatprep.subr.bf16.mxu0 %v15575_v60  ;;  %v15633_v60 = vld [vmem:[#allocation7 + $0x1080] ss:$16 sps:$4 sm:$0xff]  }
 0x537   : > { %v20633_v48 = vld [vmem:[#allocation59_spill] sm:$0xff] }
 0x538   : > { %8155 = vmatpush1.bf16.msra.mxu1 %v15600_v58  ;;  %v15668_v58 = vld [vmem:[#allocation7 + $0x100c] ss:$16 sps:$4 sm:$0xff]  }
 0x539   : > { %7946 = vmatpush1.bf16.msra.mxu0 %v15573_v31  ;;  %8156 = vmatprep.subr.bf16.mxu1 %v15608_v51  ;;  %v20632_v31 = vld [vmem:[#allocation44_spill] sm:$0xff]  ;;  %v15645_v51 = vld [vmem:[#allocation7 + $0x10c0] ss:$16 sps:$4 sm:$0xff]  }
 0x53a   : > { %7947 = vmatprep.subr.bf16.mxu0 %v15581_v0  ;;  %v15662_v0 = vld [vmem:[#allocation7 + $0xfec] ss:$16 sps:$4 sm:$0xff]  }
 0x53b   : > { %8134 = vmatmul.mubr.bf16.gmra.mrb[220].mxu1 %v19560_v23  ;;  %v15624_v23 = vld [vmem:[#allocation7 + $0xf28] ss:$16 sps:$4 sm:$0xff]  }
 0x53c   : > { %8157 = vmatpush1.bf16.msra.mxu1 %v15606_v50  ;;  %8176 = vmatprep.mubr.bf16.mxu1 %v19659_v20  ;;  %v15609_v20 = vld [vmem:[#allocation7 + $0x1000] ss:$16 sps:$4 sm:$0xff]   ;;  %v20634_v50 = vld [vmem:[#allocation46_spill] sm:$0xff] }
 0x53d   : > { %7948 = vmatpush1.bf16.msra.mxu0 %v15579_v28  ;;  %8158 = vmatprep.subr.bf16.mxu1 %v15614_v54  ;;  %v15647_v28 = vld [vmem:[#allocation7 + $0x10c4] ss:$16 sps:$4 sm:$0xff]   ;;  %v15674_v54 = vld [vmem:[#allocation7 + $0x102c] ss:$16 sps:$4 sm:$0xff]  }
 0x53e   : > { %7949 = vmatprep.subr.bf16.mxu0 %v15587_v10  ;;  %v15660_v10 = vld [vmem:[#allocation7 + $0xfe8] ss:$16 sps:$4 sm:$0xff]  }
 0x540   : > { %8159 = vmatpush1.bf16.msra.mxu1 %v15612_v17  ;;  %v15672_v17 = vld [vmem:[#allocation7 + $0x1028] ss:$16 sps:$4 sm:$0xff]  }
 0x541   : > { %7950 = vmatpush1.bf16.msra.mxu0 %v15585_v45  ;;  %8160 = vmatprep.subr.bf16.mxu1 %v15620_v7  ;;  %v15653_v45 = vld [vmem:[#allocation7 + $0x10e4] ss:$16 sps:$4 sm:$0xff]   ;;  %v15680_v7 = vld [vmem:[#allocation7 + $0x104c] ss:$16 sps:$4 sm:$0xff]  }
 0x542   : > { %7951 = vmatprep.subr.bf16.mxu0 %v15593_v42  ;;  %v15666_v42 = vld [vmem:[#allocation7 + $0x1008] ss:$16 sps:$4 sm:$0xff]  }
 0x544   : > { %8161 = vmatpush1.bf16.msra.mxu1 %v15618_v35  ;;  %v15678_v35 = vld [vmem:[#allocation7 + $0x1048] ss:$16 sps:$4 sm:$0xff]  }
 0x545   : > { %7952 = vmatpush1.bf16.msra.mxu0 %v15591_v41  ;;  %8162 = vmatprep.subr.bf16.mxu1 %v15626_v24  ;;  %v15651_v41 = vld [vmem:[#allocation7 + $0x10e0] ss:$16 sps:$4 sm:$0xff]   ;;  %v15686_v24 = vld [vmem:[#allocation7 + $0x106c] ss:$16 sps:$4 sm:$0xff]  }
 0x546   : > { %7953 = vmatprep.subr.bf16.mxu0 %v15599_v32  ;;  %v15659_v32 = vld [vmem:[#allocation7 + $0x1104] ss:$16 sps:$4 sm:$0xff]  }
 0x548   : > { %8163 = vmatpush1.bf16.msra.mxu1 %v15624_v23  ;;  %v15669_v23 = vld [vmem:[#allocation7 + $0x1140] ss:$16 sps:$4 sm:$0xff]  }
 0x549   : > { %7954 = vmatpush1.bf16.msra.mxu0 %v15597_v52  ;;  %8164 = vmatprep.subr.bf16.mxu1 %v15632_v29  ;;  %v15657_v52 = vld [vmem:[#allocation7 + $0x1100] ss:$16 sps:$4 sm:$0xff]   ;;  %v15677_v29 = vld [vmem:[#allocation7 + $0x1164] ss:$16 sps:$4 sm:$0xff]  }
 0x54a   : > { %7955 = vmatprep.subr.bf16.mxu0 %v15605_v5  ;;  %v15665_v5 = vld [vmem:[#allocation7 + $0x1124] ss:$16 sps:$4 sm:$0xff]  }
 0x54c   : > { %8165 = vmatpush1.bf16.msra.mxu1 %v15630_v63  ;;  %v15675_v63 = vld [vmem:[#allocation7 + $0x1160] ss:$16 sps:$4 sm:$0xff]  }
 0x54d   : > { %7956 = vmatpush1.bf16.msra.mxu0 %v15603_v36  ;;  %8166 = vmatprep.subr.bf16.mxu1 %v15638_v9  ;;  %v15663_v36 = vld [vmem:[#allocation7 + $0x1120] ss:$16 sps:$4 sm:$0xff]   ;;  %v15683_v9 = vld [vmem:[#allocation7 + $0x1184] ss:$16 sps:$4 sm:$0xff]  }
 0x54e   : > { %7998 = vmatprep.subr.bf16.mxu0 %v15611_v34  ;;  %v15671_v34 = vld [vmem:[#allocation7 + $0x1144] ss:$16 sps:$4 sm:$0xff]  }
 0x550   : > { %7958 = vmatmul.mubr.bf16.vlgmr.msra.gmra.mrb[176].mxu0 %v19655_v1  ;;  %8167 = vmatpush1.bf16.msra.mxu1 %v15636_v21  ;;  %v15702_v21 = vld [vmem:[#allocation7 + $0x10c8] ss:$16 sps:$4 sm:$0xff]  }
 0x551   : > { %7967 = vmatprep.mubr.bf16.mxu0 %v19669_v19  ;;  %7999 = vmatpush1.bf16.msra.mxu0 %v15609_v20  ;;  %v15690_v20 = vld [vmem:[#allocation7 + $0x1088] ss:$16 sps:$4 sm:$0xff]  }
 0x552   : > { %8000 = vmatprep.subr.bf16.mxu0 %v15617_v25  ;;  %8168 = vmatprep.subr.bf16.mxu1 %v15644_v62  ;;  %v15698_v25 = vld [vmem:[#allocation7 + $0x10ac] ss:$16 sps:$4 sm:$0xff]  }
 0x553   : > { %v15710_v62 = vld [vmem:[#allocation7 + $0x10ec] ss:$16 sps:$4 sm:$0xff]  }
 0x554   : > { %8169 = vmatpush1.bf16.msra.mxu1 %v15642_v37  ;;  %v15708_v37 = vld [vmem:[#allocation7 + $0x10e8] ss:$16 sps:$4 sm:$0xff]  }
 0x555   : > { %8001 = vmatpush1.bf16.msra.mxu0 %v15615_v44  ;;  %8170 = vmatprep.subr.bf16.mxu1 %v15650_v11  ;;  %v15681_v44 = vld [vmem:[#allocation7 + $0x1180] ss:$16 sps:$4 sm:$0xff]   ;;  %v15716_v11 = vld [vmem:[#allocation7 + $0x110c] ss:$16 sps:$4 sm:$0xff]  }
 0x556   : > { %8002 = vmatprep.subr.bf16.mxu0 %v15623_v27  ;;  %v15689_v27 = vld [vmem:[#allocation7 + $0x11a4] ss:$16 sps:$4 sm:$0xff]  }
 0x558   : > { %7968 = vmatmul.mubr.bf16.gmra.mrb[180].mxu0 %v19665_v38  ;;  %8171 = vmatpush1.bf16.msra.mxu1 %v15648_v6  ;;  %v15714_v6 = vld [vmem:[#allocation7 + $0x1108] ss:$16 sps:$4 sm:$0xff]  }
 0x559   : > { %7977 = vmatprep.mubr.bf16.mxu0 %v19679_v30  ;;  %8003 = vmatpush1.bf16.msra.mxu0 %v15621_v14  ;;  %v15687_v14 = vld [vmem:[#allocation7 + $0x11a0] ss:$16 sps:$4 sm:$0xff]  }
 0x55a   : > { %8004 = vmatprep.subr.bf16.mxu0 %v15629_v55  ;;  %8172 = vmatprep.subr.bf16.mxu1 %v15656_v46  ;;  %v15695_v55 = vld [vmem:[#allocation7 + $0x11c4] ss:$16 sps:$4 sm:$0xff]   ;;  %v15722_v46 = vld [vmem:[#allocation7 + $0x112c] ss:$16 sps:$4 sm:$0xff]  }
 0x55c   : > { %8173 = vmatpush1.bf16.msra.mxu1 %v15654_v4  ;;  %v15720_v4 = vld [vmem:[#allocation7 + $0x1128] ss:$16 sps:$4 sm:$0xff]  }
 0x55d   : > { %8005 = vmatpush1.bf16.msra.mxu0 %v15627_v12  ;;  %8174 = vmatprep.subr.bf16.mxu1 %v15662_v0  ;;  %v15693_v12 = vld [vmem:[#allocation7 + $0x11c0] ss:$16 sps:$4 sm:$0xff]   ;;  %v15713_v0 = vld [vmem:[#allocation7 + $0x1224] ss:$16 sps:$4 sm:$0xff]  }
 0x55e   : > { %8006 = vmatprep.subr.bf16.mxu0 %v15635_v33  ;;  %v15701_v33 = vld [vmem:[#allocation7 + $0x11e4] ss:$16 sps:$4 sm:$0xff]  }
 0x560   : > { %7978 = vmatmul.mubr.bf16.gmra.mrb[184].mxu0 %v20632_v31  ;;  %8175 = vmatpush1.bf16.msra.mxu1 %v15660_v10  ;;  %v15711_v10 = vld [vmem:[#allocation7 + $0x1220] ss:$16 sps:$4 sm:$0xff]  }
 0x561   : > { %7987 = vmatprep.mubr.bf16.mxu0 %v20633_v48  ;;  %8007 = vmatpush1.bf16.msra.mxu0 %v15633_v60  ;;  %v15699_v60 = vld [vmem:[#allocation7 + $0x11e0] ss:$16 sps:$4 sm:$0xff]  }
 0x562   : > { %8008 = vmatprep.subr.bf16.mxu0 %v15641_v53  ;;  %8217 = vmatprep.subr.bf16.mxu1 %v15668_v58  ;;  %v15707_v53 = vld [vmem:[#allocation7 + $0x1204] ss:$16 sps:$4 sm:$0xff]  }
 0x563   : > { %8177 = vmatmul.mubr.bf16.vlgmr.msra.gmra.mrb[208].mxu1 %v19655_v1  ;;  %v15692_v1 = vld [vmem:[#allocation7 + $0x108c] ss:$16 sps:$4 sm:$0xff]   ;;  %v15719_v58 = vld [vmem:[#allocation7 + $0x1244] ss:$16 sps:$4 sm:$0xff]  }
 0x564   : > { %8186 = vmatprep.mubr.bf16.mxu1 %v19669_v19  ;;  %8218 = vmatpush1.bf16.msra.mxu1 %v15666_v42  ;;  %v15684_v19 = vld [vmem:[#allocation7 + $0x1068] ss:$16 sps:$4 sm:$0xff]   ;;  %v15717_v42 = vld [vmem:[#allocation7 + $0x1240] ss:$16 sps:$4 sm:$0xff]  }
 0x565   : > { %8009 = vmatpush1.bf16.msra.mxu0 %v15639_v49  ;;  %8219 = vmatprep.subr.bf16.mxu1 %v15674_v54  ;;  %v20635_v49 = vld [vmem:[#allocation50_spill] sm:$0xff] }
 0x566   : > { %8010 = vmatprep.subr.bf16.mxu0 %v15647_v28  ;;  %v15734_v28 = vld [vmem:[#allocation7 + $0x116c] ss:$16 sps:$4 sm:$0xff]   ;;  %v15738_v54 = vld [vmem:[#allocation7 + $0x1188] ss:$16 sps:$4 sm:$0xff]  }
 0x568   : > { %7988 = vmatmul.mubr.bf16.gmra.mrb[188].mxu0 %v20634_v50  ;;  %8220 = vmatpush1.bf16.msra.mxu1 %v15672_v17  ;;  %v15723_v17 = vld [vmem:[#allocation7 + $0x1260] ss:$16 sps:$4 sm:$0xff]  }
 0x569   : > { %8011 = vmatpush1.bf16.msra.mxu0 %v15645_v51  ;;  %8030 = vmatprep.mubr.bf16.mxu0 %v19716_v47  ;;  %v15732_v51 = vld [vmem:[#allocation7 + $0x1168] ss:$16 sps:$4 sm:$0xff]  }
 0x56a   : > { %8012 = vmatprep.subr.bf16.mxu0 %v15653_v45  ;;  %8221 = vmatprep.subr.bf16.mxu1 %v15680_v7  ;;  %v15740_v45 = vld [vmem:[#allocation7 + $0x118c] ss:$16 sps:$4 sm:$0xff]   ;;  %v15731_v7 = vld [vmem:[#allocation7 + $0x1284] ss:$16 sps:$4 sm:$0xff]  }
 0x56b   : > { %8187 = vmatmul.mubr.bf16.gmra.mrb[212].mxu1 %v19665_v38  ;;  %v15696_v38 = vld [vmem:[#allocation7 + $0x10a8] ss:$16 sps:$4 sm:$0xff]  }
 0x56c   : > { %8196 = vmatprep.mubr.bf16.mxu1 %v19679_v30  ;;  %8222 = vmatpush1.bf16.msra.mxu1 %v15678_v35  ;;  %v15704_v30 = vld [vmem:[#allocation7 + $0x10cc] ss:$16 sps:$4 sm:$0xff]   ;;  %v15729_v35 = vld [vmem:[#allocation7 + $0x1280] ss:$16 sps:$4 sm:$0xff]  }
 0x56d   : > { %8013 = vmatpush1.bf16.msra.mxu0 %v15651_v41  ;;  %8223 = vmatprep.subr.bf16.mxu1 %v15686_v24  ;;  %v20636_v41 = vld [vmem:[#allocation52_spill] sm:$0xff] }
 0x56e   : > { %8014 = vmatprep.subr.bf16.mxu0 %v15659_v32  ;;  %v15746_v32 = vld [vmem:[#allocation7 + $0x11ac] ss:$16 sps:$4 sm:$0xff]   ;;  %v15737_v24 = vld [vmem:[#allocation7 + $0x12a4] ss:$16 sps:$4 sm:$0xff]  }
 0x570   : > { %8224 = vmatpush1.bf16.msra.mxu1 %v15684_v19  ;;  %v15735_v19 = vld [vmem:[#allocation7 + $0x12a0] ss:$16 sps:$4 sm:$0xff]  }
 0x571   : > { %8015 = vmatpush1.bf16.msra.mxu0 %v15657_v52  ;;  %8225 = vmatprep.subr.bf16.mxu1 %v15692_v1  ;;  %v15744_v52 = vld [vmem:[#allocation7 + $0x11a8] ss:$16 sps:$4 sm:$0xff]   ;;  %v15743_v1 = vld [vmem:[#allocation7 + $0x12c4] ss:$16 sps:$4 sm:$0xff]  }
 0x572   : > { %8016 = vmatprep.subr.bf16.mxu0 %v15665_v5  ;;  %v15752_v5 = vld [vmem:[#allocation7 + $0x11cc] ss:$16 sps:$4 sm:$0xff]  }
 0x573   : > { %8197 = vmatmul.mubr.bf16.gmra.mrb[216].mxu1 %v20632_v31  ;;  %v15728_v31 = vld [vmem:[#allocation7 + $0x114c] ss:$16 sps:$4 sm:$0xff]  }
 0x574   : > { %8206 = vmatprep.mubr.bf16.mxu1 %v20633_v48  ;;  %8226 = vmatpush1.bf16.msra.mxu1 %v15690_v20  ;;  %v15726_v48 = vld [vmem:[#allocation7 + $0x1148] ss:$16 sps:$4 sm:$0xff]   ;;  %v15741_v20 = vld [vmem:[#allocation7 + $0x12c0] ss:$16 sps:$4 sm:$0xff]  }
 0x575   : > { %8017 = vmatpush1.bf16.msra.mxu0 %v15663_v36  ;;  %8227 = vmatprep.subr.bf16.mxu1 %v15698_v25  ;;  %v15750_v36 = vld [vmem:[#allocation7 + $0x11c8] ss:$16 sps:$4 sm:$0xff]   ;;  %v15749_v25 = vld [vmem:[#allocation7 + $0x12e4] ss:$16 sps:$4 sm:$0xff]  }
 0x576   : > { %8018 = vmatprep.subr.bf16.mxu0 %v15671_v34  ;;  %v15758_v34 = vld [vmem:[#allocation7 + $0x11ec] ss:$16 sps:$4 sm:$0xff]  }
 0x578   : > { %8228 = vmatpush1.bf16.msra.mxu1 %v15696_v38  ;;  %v20637_v38 = vld [vmem:[#allocation31_spill] sm:$0xff] }
 0x579   : > { %8019 = vmatpush1.bf16.msra.mxu0 %v15669_v23  ;;  %8229 = vmatprep.subr.bf16.mxu1 %v15704_v30  ;;  %v15756_v23 = vld [vmem:[#allocation7 + $0x11e8] ss:$16 sps:$4 sm:$0xff]   ;;  %v15747_v30 = vld [vmem:[#allocation7 + $0x12e0] ss:$16 sps:$4 sm:$0xff]  }
 0x57a   : > { %8020 = vmatprep.subr.bf16.mxu0 %v15677_v29  ;;  %v15764_v29 = vld [vmem:[#allocation7 + $0x120c] ss:$16 sps:$4 sm:$0xff]  }
 0x57b   : > { %8207 = vmatmul.mubr.bf16.gmra.mrb[220].mxu1 %v20634_v50  ;;  %v15725_v50 = vld [vmem:[#allocation7 + $0x1264] ss:$16 sps:$4 sm:$0xff]  }
 0x57c   : > { %8230 = vmatpush1.bf16.msra.mxu1 %v15702_v21  ;;  %8249 = vmatprep.mubr.bf16.mxu1 %v19716_v47  ;;  %v15705_v47 = vld [vmem:[#allocation7 + $0x1200] ss:$16 sps:$4 sm:$0xff]   ;;  %v15776_v21 = vld [vmem:[#allocation7 + $0x124c] ss:$16 sps:$4 sm:$0xff]  }
 0x57d   : > { %8021 = vmatpush1.bf16.msra.mxu0 %v15675_v63  ;;  %8231 = vmatprep.subr.bf16.mxu1 %v15710_v62  ;;  %v15762_v63 = vld [vmem:[#allocation7 + $0x1208] ss:$16 sps:$4 sm:$0xff]   ;;  %v15753_v62 = vld [vmem:[#allocation7 + $0x1300] ss:$16 sps:$4 sm:$0xff]  }
 0x57e   : > { %8022 = vmatprep.subr.bf16.mxu0 %v15683_v9  ;;  %v15770_v9 = vld [vmem:[#allocation7 + $0x122c] ss:$16 sps:$4 sm:$0xff]  }
 0x580   : > { %8232 = vmatpush1.bf16.msra.mxu1 %v15708_v37  ;;  %v15782_v37 = vld [vmem:[#allocation7 + $0x126c] ss:$16 sps:$4 sm:$0xff]  }
 0x581   : > { %8023 = vmatpush1.bf16.msra.mxu0 %v15681_v44  ;;  %8233 = vmatprep.subr.bf16.mxu1 %v15716_v11  ;;  %v15755_v44 = vld [vmem:[#allocation7 + $0x1304] ss:$16 sps:$4 sm:$0xff]   ;;  %v15759_v11 = vld [vmem:[#allocation7 + $0x1320] ss:$16 sps:$4 sm:$0xff]  }
 0x582   : > { %8024 = vmatprep.subr.bf16.mxu0 %v15689_v27  ;;  %v15768_v27 = vld [vmem:[#allocation7 + $0x1228] ss:$16 sps:$4 sm:$0xff]  }
 0x584   : > { %8234 = vmatpush1.bf16.msra.mxu1 %v15714_v6  ;;  %v15765_v6 = vld [vmem:[#allocation7 + $0x1340] ss:$16 sps:$4 sm:$0xff]  }
 0x585   : > { %8025 = vmatpush1.bf16.msra.mxu0 %v15687_v14  ;;  %8235 = vmatprep.subr.bf16.mxu1 %v15722_v46  ;;  %v15761_v14 = vld [vmem:[#allocation7 + $0x1324] ss:$16 sps:$4 sm:$0xff]  }
 0x586   : > { %8026 = vmatprep.subr.bf16.mxu0 %v15695_v55  ;;  %v15774_v55 = vld [vmem:[#allocation7 + $0x1248] ss:$16 sps:$4 sm:$0xff]   ;;  %v15773_v46 = vld [vmem:[#allocation7 + $0x1364] ss:$16 sps:$4 sm:$0xff]  }
 0x588   : > { %8236 = vmatpush1.bf16.msra.mxu1 %v15720_v4  ;;  %v15771_v4 = vld [vmem:[#allocation7 + $0x1360] ss:$16 sps:$4 sm:$0xff]  }
 0x589   : > { %8027 = vmatpush1.bf16.msra.mxu0 %v15693_v12  ;;  %8237 = vmatprep.subr.bf16.mxu1 %v15728_v31  ;;  %v15767_v12 = vld [vmem:[#allocation7 + $0x1344] ss:$16 sps:$4 sm:$0xff]  }
 0x58a   : > { %8028 = vmatprep.subr.bf16.mxu0 %v15701_v33  ;;  %v15788_v33 = vld [vmem:[#allocation7 + $0x128c] ss:$16 sps:$4 sm:$0xff]   ;;  %v15779_v31 = vld [vmem:[#allocation7 + $0x1384] ss:$16 sps:$4 sm:$0xff]  }
 0x58c   : > { %8238 = vmatpush1.bf16.msra.mxu1 %v15726_v48  ;;  %v15785_v48 = vld [vmem:[#allocation7 + $0x13a4] ss:$16 sps:$4 sm:$0xff]  }
 0x58d   : > { %8029 = vmatpush1.bf16.msra.mxu0 %v15699_v60  ;;  %8239 = vmatprep.subr.bf16.mxu1 %v15734_v28  ;;  %v15786_v60 = vld [vmem:[#allocation7 + $0x1288] ss:$16 sps:$4 sm:$0xff]   ;;  %v15806_v28 = vld [vmem:[#allocation7 + $0x12ec] ss:$16 sps:$4 sm:$0xff]  }
 0x58e   : > { %9475 = vmatprep.subr.bf16.mxu0 %v15707_v53  ;;  %v15794_v53 = vld [vmem:[#allocation7 + $0x12ac] ss:$16 sps:$4 sm:$0xff]  }
 0x590   : > { %8031 = vmatmul.mubr.bf16.vlgmr.msra.gmra.mrb[176].mxu0 %v20635_v49  ;;  %8240 = vmatpush1.bf16.msra.mxu1 %v15732_v51  ;;  %v15789_v51 = vld [vmem:[#allocation7 + $0x13c0] ss:$16 sps:$4 sm:$0xff]  }
 0x591   : > { %8040 = vmatprep.mubr.bf16.mxu0 %v19726_v15  ;;  %9476 = vmatpush1.bf16.msra.mxu0 %v15705_v47  ;;  %v15800_v47 = vld [vmem:[#allocation7 + $0x12cc] ss:$16 sps:$4 sm:$0xff]  }
 0x592   : > { %9477 = vmatprep.subr.bf16.mxu0 %v15713_v0  ;;  %8241 = vmatprep.subr.bf16.mxu1 %v15740_v45  ;;  %v15777_v0 = vld [vmem:[#allocation7 + $0x1380] ss:$16 sps:$4 sm:$0xff]   ;;  %v15797_v45 = vld [vmem:[#allocation7 + $0x13e4] ss:$16 sps:$4 sm:$0xff]  }
 0x594   : > { %8242 = vmatpush1.bf16.msra.mxu1 %v15738_v54  ;;  %v15795_v54 = vld [vmem:[#allocation7 + $0x13e0] ss:$16 sps:$4 sm:$0xff]  }
 0x595   : > { %9478 = vmatpush1.bf16.msra.mxu0 %v15711_v10  ;;  %8243 = vmatprep.subr.bf16.mxu1 %v15746_v32  ;;  %v15783_v10 = vld [vmem:[#allocation7 + $0x13a0] ss:$16 sps:$4 sm:$0xff]   ;;  %v15824_v32 = vld [vmem:[#allocation7 + $0x134c] ss:$16 sps:$4 sm:$0xff]  }
 0x596   : > { %9479 = vmatprep.subr.bf16.mxu0 %v15719_v58  ;;  %v15791_v58 = vld [vmem:[#allocation7 + $0x13c4] ss:$16 sps:$4 sm:$0xff]  }
 0x598   : > { %8041 = vmatmul.mubr.bf16.gmra.mrb[180].mxu0 %v20636_v41  ;;  %8244 = vmatpush1.bf16.msra.mxu1 %v15744_v52  ;;  %v15822_v52 = vld [vmem:[#allocation7 + $0x1348] ss:$16 sps:$4 sm:$0xff]  }
 0x599   : > { %8050 = vmatprep.mubr.bf16.mxu0 %v19738_v56  ;;  %9480 = vmatpush1.bf16.msra.mxu0 %v15717_v42  ;;  %v15810_v42 = vld [vmem:[#allocation7 + $0x1308] ss:$16 sps:$4 sm:$0xff]  }
 0x59a   : > { %9481 = vmatprep.subr.bf16.mxu0 %v15725_v50  ;;  %8245 = vmatprep.subr.bf16.mxu1 %v15752_v5  ;;  %v15818_v50 = vld [vmem:[#allocation7 + $0x132c] ss:$16 sps:$4 sm:$0xff]  }
 0x59b   : > { %v20638_v5 = vld [vmem:[#allocation30_spill] sm:$0xff] }
 0x59c   : > { %8246 = vmatpush1.bf16.msra.mxu1 %v15750_v36  ;;  %v15807_v36 = vld [vmem:[#allocation7 + $0x1420] ss:$16 sps:$4 sm:$0xff]  }
 0x59d   : > { %9482 = vmatpush1.bf16.msra.mxu0 %v15723_v17  ;;  %8247 = vmatprep.subr.bf16.mxu1 %v15758_v34  ;;  %v15801_v17 = vld [vmem:[#allocation7 + $0x1400] ss:$16 sps:$4 sm:$0xff]   ;;  %v15815_v34 = vld [vmem:[#allocation7 + $0x1444] ss:$16 sps:$4 sm:$0xff]  }
 0x59e   : > { %9483 = vmatprep.subr.bf16.mxu0 %v15731_v7  ;;  %v15809_v7 = vld [vmem:[#allocation7 + $0x1424] ss:$16 sps:$4 sm:$0xff]  }
 0x5a0   : > { %8051 = vmatmul.mubr.bf16.gmra.mrb[184].mxu0 %v19734_v40  ;;  %8248 = vmatpush1.bf16.msra.mxu1 %v15756_v23  ;;  %v15813_v23 = vld [vmem:[#allocation7 + $0x1440] ss:$16 sps:$4 sm:$0xff]  }
 0x5a1   : > { %8060 = vmatprep.mubr.bf16.mxu0 %v19748_v59  ;;  %9484 = vmatpush1.bf16.msra.mxu0 %v15729_v35  ;;  %v15830_v35 = vld [vmem:[#allocation7 + $0x136c] ss:$16 sps:$4 sm:$0xff]  }
 0x5a2   : > { %9485 = vmatprep.subr.bf16.mxu0 %v15737_v24  ;;  %9694 = vmatprep.subr.bf16.mxu1 %v15764_v29  ;;  %v20639_v24 = vld [vmem:[#allocation33_spill] sm:$0xff] }
 0x5a3   : > { %8250 = vmatmul.mubr.bf16.vlgmr.msra.gmra.mrb[208].mxu1 %v20635_v49  ;;  %v15798_v49 = vld [vmem:[#allocation7 + $0x12c8] ss:$16 sps:$4 sm:$0xff]   ;;  %v15821_v29 = vld [vmem:[#allocation7 + $0x1464] ss:$16 sps:$4 sm:$0xff]  }
 0x5a4   : > { %8259 = vmatprep.mubr.bf16.mxu1 %v19726_v15  ;;  %9695 = vmatpush1.bf16.msra.mxu1 %v15762_v63  ;;  %v15780_v15 = vld [vmem:[#allocation7 + $0x1268] ss:$16 sps:$4 sm:$0xff]   ;;  %v15842_v63 = vld [vmem:[#allocation7 + $0x13ac] ss:$16 sps:$4 sm:$0xff]  }
 0x5a5   : > { %9486 = vmatpush1.bf16.msra.mxu0 %v15735_v19  ;;  %9696 = vmatprep.subr.bf16.mxu1 %v15770_v9  ;;  %v15828_v19 = vld [vmem:[#allocation7 + $0x1368] ss:$16 sps:$4 sm:$0xff]   ;;  %v20641_v9 = vld [vmem:[#allocation35_spill] sm:$0xff] }
 0x5a6   : > { %9487 = vmatprep.subr.bf16.mxu0 %v15743_v1  ;;  %v15836_v1 = vld [vmem:[#allocation7 + $0x138c] ss:$16 sps:$4 sm:$0xff]  }
 0x5a8   : > { %8061 = vmatmul.mubr.bf16.gmra.mrb[188].mxu0 %v19744_v22  ;;  %9697 = vmatpush1.bf16.msra.mxu1 %v15768_v27  ;;  %v15848_v27 = vld [vmem:[#allocation7 + $0x13cc] ss:$16 sps:$4 sm:$0xff]  }
 0x5a9   : > { %9488 = vmatpush1.bf16.msra.mxu0 %v15741_v20  ;;  %9507 = vmatprep.mubr.bf16.mxu0 %v20637_v38  ;;  %v15834_v20 = vld [vmem:[#allocation7 + $0x1388] ss:$16 sps:$4 sm:$0xff]  }
 0x5aa   : > { %9489 = vmatprep.subr.bf16.mxu0 %v15749_v25  ;;  %9698 = vmatprep.subr.bf16.mxu1 %v15776_v21  ;;  %v20640_v25 = vld [vmem:[#allocation32_spill] sm:$0xff]  ;;  %v15825_v21 = vld [vmem:[#allocation7 + $0x1480] ss:$16 sps:$4 sm:$0xff]  }
 0x5ab   : > { %8260 = vmatmul.mubr.bf16.gmra.mrb[212].mxu1 %v20636_v41  ;;  %v15803_v41 = vld [vmem:[#allocation7 + $0x1404] ss:$16 sps:$4 sm:$0xff]  }
 0x5ac   : > { %8269 = vmatprep.mubr.bf16.mxu1 %v19738_v56  ;;  %9699 = vmatpush1.bf16.msra.mxu1 %v15774_v55  ;;  %v15792_v56 = vld [vmem:[#allocation7 + $0x12a8] ss:$16 sps:$4 sm:$0xff]  }
 0x5ad   : > { %9490 = vmatpush1.bf16.msra.mxu0 %v15747_v30  ;;  %9700 = vmatprep.subr.bf16.mxu1 %v15782_v37  ;;  %v15827_v30 = vld [vmem:[#allocation7 + $0x1484] ss:$16 sps:$4 sm:$0xff]   ;;  %v15854_v37 = vld [vmem:[#allocation7 + $0x13ec] ss:$16 sps:$4 sm:$0xff]  }
 0x5ae   : > { %9491 = vmatprep.subr.bf16.mxu0 %v15755_v44  ;;  %v15840_v44 = vld [vmem:[#allocation7 + $0x13a8] ss:$16 sps:$4 sm:$0xff]  }
 0x5af   : > { %v20642_v55 = vld [vmem:[#allocation34_spill] sm:$0xff] }
 0x5b0   : > { %9701 = vmatpush1.bf16.msra.mxu1 %v15780_v15  ;;  %v15839_v15 = vld [vmem:[#allocation7 + $0x14c4] ss:$16 sps:$4 sm:$0xff]  }
 0x5b1   : > { %9492 = vmatpush1.bf16.msra.mxu0 %v15753_v62  ;;  %9702 = vmatprep.subr.bf16.mxu1 %v15788_v33  ;;  %v15833_v62 = vld [vmem:[#allocation7 + $0x14a4] ss:$16 sps:$4 sm:$0xff]   ;;  %v15852_v33 = vld [vmem:[#allocation7 + $0x13e8] ss:$16 sps:$4 sm:$0xff]  }
 0x5b2   : > { %9493 = vmatprep.subr.bf16.mxu0 %v15761_v14  ;;  %v15846_v14 = vld [vmem:[#allocation7 + $0x13c8] ss:$16 sps:$4 sm:$0xff]  }
 0x5b3   : > { %8270 = vmatmul.mubr.bf16.gmra.mrb[216].mxu1 %v19734_v40  ;;  %v15804_v40 = vld [vmem:[#allocation7 + $0x12e8] ss:$16 sps:$4 sm:$0xff]  }
 0x5b4   : > { %8279 = vmatprep.mubr.bf16.mxu1 %v19748_v59  ;;  %9703 = vmatpush1.bf16.msra.mxu1 %v15786_v60  ;;  %v15812_v59 = vld [vmem:[#allocation7 + $0x130c] ss:$16 sps:$4 sm:$0xff]   ;;  %v15845_v60 = vld [vmem:[#allocation7 + $0x14e4] ss:$16 sps:$4 sm:$0xff]  }
 0x5b5   : > { %9494 = vmatpush1.bf16.msra.mxu0 %v15759_v11  ;;  %9704 = vmatprep.subr.bf16.mxu1 %v15794_v53  ;;  %v20643_v11 = vld [vmem:[#allocation37_spill] sm:$0xff]  ;;  %v15858_v53 = vld [vmem:[#allocation7 + $0x1408] ss:$16 sps:$4 sm:$0xff]  }
 0x5b6   : > { %9495 = vmatprep.subr.bf16.mxu0 %v15767_v12  ;;  %v15831_v12 = vld [vmem:[#allocation7 + $0x14a0] ss:$16 sps:$4 sm:$0xff]  }
 0x5b8   : > { %9705 = vmatpush1.bf16.msra.mxu1 %v15792_v56  ;;  %v20645_v56 = vld [vmem:[#allocation61_spill] sm:$0xff] }
 0x5b9   : > { %9496 = vmatpush1.bf16.msra.mxu0 %v15765_v6  ;;  %9706 = vmatprep.subr.bf16.mxu1 %v15800_v47  ;;  %v15860_v6 = vld [vmem:[#allocation7 + $0x140c] ss:$16 sps:$4 sm:$0xff]   ;;  %v15843_v47 = vld [vmem:[#allocation7 + $0x14e0] ss:$16 sps:$4 sm:$0xff]  }
 0x5ba   : > { %9497 = vmatprep.subr.bf16.mxu0 %v15773_v46  ;;  %v15837_v46 = vld [vmem:[#allocation7 + $0x14c0] ss:$16 sps:$4 sm:$0xff]  }
 0x5bb   : > { %8280 = vmatmul.mubr.bf16.gmra.mrb[220].mxu1 %v19744_v22  ;;  %v15816_v22 = vld [vmem:[#allocation7 + $0x1328] ss:$16 sps:$4 sm:$0xff]  }
 0x5bc   : > { %9707 = vmatpush1.bf16.msra.mxu1 %v15798_v49  ;;  %9726 = vmatprep.mubr.bf16.mxu1 %v20637_v38  ;;  %v15819_v38 = vld [vmem:[#allocation7 + $0x1460] ss:$16 sps:$4 sm:$0xff]   ;;  %v15872_v49 = vld [vmem:[#allocation7 + $0x144c] ss:$16 sps:$4 sm:$0xff]  }
 0x5bd   : > { %9498 = vmatpush1.bf16.msra.mxu0 %v15771_v4  ;;  %9708 = vmatprep.subr.bf16.mxu1 %v15806_v28  ;;  %v20644_v4 = vld [vmem:[#allocation36_spill] sm:$0xff]  ;;  %v15849_v28 = vld [vmem:[#allocation7 + $0x1500] ss:$16 sps:$4 sm:$0xff]  }
 0x5be   : > { %9499 = vmatprep.subr.bf16.mxu0 %v15779_v31  ;;  %v15866_v31 = vld [vmem:[#allocation7 + $0x142c] ss:$16 sps:$4 sm:$0xff]  }
 0x5c0   : > { %9709 = vmatpush1.bf16.msra.mxu1 %v15804_v40  ;;  %v15878_v40 = vld [vmem:[#allocation7 + $0x146c] ss:$16 sps:$4 sm:$0xff]  }
 0x5c1   : > { %9500 = vmatpush1.bf16.msra.mxu0 %v15777_v0  ;;  %9710 = vmatprep.subr.bf16.mxu1 %v15812_v59  ;;  %v15851_v0 = vld [vmem:[#allocation7 + $0x1504] ss:$16 sps:$4 sm:$0xff]   ;;  %v15855_v59 = vld [vmem:[#allocation7 + $0x1520] ss:$16 sps:$4 sm:$0xff]  }
 0x5c2   : > { %9501 = vmatprep.subr.bf16.mxu0 %v15785_v48  ;;  %v15864_v48 = vld [vmem:[#allocation7 + $0x1428] ss:$16 sps:$4 sm:$0xff]  }
 0x5c4   : > { %9711 = vmatpush1.bf16.msra.mxu1 %v15810_v42  ;;  %v15884_v42 = vld [vmem:[#allocation7 + $0x148c] ss:$16 sps:$4 sm:$0xff]  }
 0x5c5   : > { %9502 = vmatpush1.bf16.msra.mxu0 %v15783_v10  ;;  %9712 = vmatprep.subr.bf16.mxu1 %v15818_v50  ;;  %v15857_v10 = vld [vmem:[#allocation7 + $0x1524] ss:$16 sps:$4 sm:$0xff]   ;;  %v15861_v50 = vld [vmem:[#allocation7 + $0x1540] ss:$16 sps:$4 sm:$0xff]  }
 0x5c6   : > { %9503 = vmatprep.subr.bf16.mxu0 %v15791_v58  ;;  %v15870_v58 = vld [vmem:[#allocation7 + $0x1448] ss:$16 sps:$4 sm:$0xff]  }
 0x5c8   : > { %9713 = vmatpush1.bf16.msra.mxu1 %v15816_v22  ;;  %v15890_v22 = vld [vmem:[#allocation7 + $0x14ac] ss:$16 sps:$4 sm:$0xff]  }
 0x5c9   : > { %9504 = vmatpush1.bf16.msra.mxu0 %v15789_v51  ;;  %9714 = vmatprep.subr.bf16.mxu1 %v15824_v32  ;;  %v15863_v51 = vld [vmem:[#allocation7 + $0x1544] ss:$16 sps:$4 sm:$0xff]   ;;  %v15867_v32 = vld [vmem:[#allocation7 + $0x1560] ss:$16 sps:$4 sm:$0xff]  }
 0x5ca   : > { %9505 = vmatprep.subr.bf16.mxu0 %v15797_v45  ;;  %v15876_v45 = vld [vmem:[#allocation7 + $0x1468] ss:$16 sps:$4 sm:$0xff]  }
 0x5cc   : > { %9715 = vmatpush1.bf16.msra.mxu1 %v15822_v52  ;;  %v15896_v52 = vld [vmem:[#allocation7 + $0x14cc] ss:$16 sps:$4 sm:$0xff]  }
 0x5cd   : > { %9506 = vmatpush1.bf16.msra.mxu0 %v15795_v54  ;;  %9716 = vmatprep.subr.bf16.mxu1 %v15830_v35  ;;  %v15869_v54 = vld [vmem:[#allocation7 + $0x1564] ss:$16 sps:$4 sm:$0xff]  }
 0x5ce   : > { %9548 = vmatprep.subr.bf16.mxu0 %v15803_v41  ;;  %v15882_v41 = vld [vmem:[#allocation7 + $0x1488] ss:$16 sps:$4 sm:$0xff]   ;;  %v15881_v35 = vld [vmem:[#allocation7 + $0x15a4] ss:$16 sps:$4 sm:$0xff]  }
 0x5d0   : > { %9508 = vmatmul.mubr.bf16.vlgmr.msra.gmra.mrb[176].mxu0 %v20638_v5  ;;  %9717 = vmatpush1.bf16.msra.mxu1 %v15828_v19  ;;  %v15887_v19 = vld [vmem:[#allocation7 + $0x15c4] ss:$16 sps:$4 sm:$0xff]  }
 0x5d1   : > { %9517 = vmatprep.mubr.bf16.mxu0 %v20639_v24  ;;  %9549 = vmatpush1.bf16.msra.mxu0 %v15801_v17  ;;  %v15875_v17 = vld [vmem:[#allocation7 + $0x1584] ss:$16 sps:$4 sm:$0xff]  }
 0x5d2   : > { %9550 = vmatprep.subr.bf16.mxu0 %v15809_v7  ;;  %9718 = vmatprep.subr.bf16.mxu1 %v15836_v1  ;;  %v15888_v7 = vld [vmem:[#allocation7 + $0x14a8] ss:$16 sps:$4 sm:$0xff]  }
 0x5d3   : > { %v15900_v1 = vld [vmem:[#allocation7 + $0x14e8] ss:$16 sps:$4 sm:$0xff]  }
 0x5d4   : > { %9719 = vmatpush1.bf16.msra.mxu1 %v15834_v20  ;;  %v15893_v20 = vld [vmem:[#allocation7 + $0x15e4] ss:$16 sps:$4 sm:$0xff]  }
 0x5d5   : > { %9551 = vmatpush1.bf16.msra.mxu0 %v15807_v36  ;;  %9720 = vmatprep.subr.bf16.mxu1 %v15842_v63  ;;  %v15902_v36 = vld [vmem:[#allocation7 + $0x14ec] ss:$16 sps:$4 sm:$0xff]  }
 0x5d6   : > { %9552 = vmatprep.subr.bf16.mxu0 %v15815_v34  ;;  %v15879_v34 = vld [vmem:[#allocation7 + $0x15a0] ss:$16 sps:$4 sm:$0xff]   ;;  %v15914_v63 = vld [vmem:[#allocation7 + $0x152c] ss:$16 sps:$4 sm:$0xff]  }
 0x5d8   : > { %9518 = vmatmul.mubr.bf16.gmra.mrb[180].mxu0 %v20640_v25  ;;  %9721 = vmatpush1.bf16.msra.mxu1 %v15840_v44  ;;  %v15920_v44 = vld [vmem:[#allocation7 + $0x154c] ss:$16 sps:$4 sm:$0xff]  }
 0x5d9   : > { %9527 = vmatprep.mubr.bf16.mxu0 %v20641_v9  ;;  %9553 = vmatpush1.bf16.msra.mxu0 %v15813_v23  ;;  %v15908_v23 = vld [vmem:[#allocation7 + $0x150c] ss:$16 sps:$4 sm:$0xff]  }
 0x5da   : > { %9554 = vmatprep.subr.bf16.mxu0 %v15821_v29  ;;  %9722 = vmatprep.subr.bf16.mxu1 %v15848_v27  ;;  %v15885_v29 = vld [vmem:[#allocation7 + $0x15c0] ss:$16 sps:$4 sm:$0xff]  }
 0x5db   : > { %v15897_v27 = vld [vmem:[#allocation7 + $0x1600] ss:$16 sps:$4 sm:$0xff]  }
 0x5dc   : > { %9723 = vmatpush1.bf16.msra.mxu1 %v15846_v14  ;;  %v20646_v14 = vld [vmem:[#allocation60_spill] sm:$0xff] }
 0x5dd   : > { %9555 = vmatpush1.bf16.msra.mxu0 %v15819_v38  ;;  %9724 = vmatprep.subr.bf16.mxu1 %v15854_v37  ;;  %v15899_v38 = vld [vmem:[#allocation7 + $0x1604] ss:$16 sps:$4 sm:$0xff]  }
 0x5de   : > { %9556 = vmatprep.subr.bf16.mxu0 %v15827_v30  ;;  %v15912_v30 = vld [vmem:[#allocation7 + $0x1528] ss:$16 sps:$4 sm:$0xff]  }
 0x5df   : > { %v20647_v37 = vld [vmem:[#allocation48_spill] sm:$0xff] }
 0x5e0   : > { %9528 = vmatmul.mubr.bf16.gmra.mrb[184].mxu0 %v20642_v55  ;;  %9725 = vmatpush1.bf16.msra.mxu1 %v15852_v33  ;;  %v15932_v33 = vld [vmem:[#allocation7 + $0x158c] ss:$16 sps:$4 sm:$0xff]  }
 0x5e1   : > { %9537 = vmatprep.mubr.bf16.mxu0 %v20643_v11  ;;  %9557 = vmatpush1.bf16.msra.mxu0 %v15825_v21  ;;  %v15905_v21 = vld [vmem:[#allocation7 + $0x1624] ss:$16 sps:$4 sm:$0xff]  }
 0x5e2   : > { %9558 = vmatprep.subr.bf16.mxu0 %v15833_v62  ;;  %9767 = vmatprep.subr.bf16.mxu1 %v15860_v6  ;;  %v15918_v62 = vld [vmem:[#allocation7 + $0x1548] ss:$16 sps:$4 sm:$0xff]   ;;  %v15909_v6 = vld [vmem:[#allocation7 + $0x1640] ss:$16 sps:$4 sm:$0xff]  }
 0x5e3   : > { %9727 = vmatmul.mubr.bf16.vlgmr.msra.gmra.mrb[208].mxu1 %v20638_v5  ;;  %v15873_v5 = vld [vmem:[#allocation7 + $0x1580] ss:$16 sps:$4 sm:$0xff]  }
 0x5e4   : > { %9736 = vmatprep.mubr.bf16.mxu1 %v20639_v24  ;;  %9768 = vmatpush1.bf16.msra.mxu1 %v15858_v53  ;;  %v15894_v24 = vld [vmem:[#allocation7 + $0x14c8] ss:$16 sps:$4 sm:$0xff]   ;;  %v20648_v53 = vld [vmem:[#allocation47_spill] sm:$0xff] }
 0x5e5   : > { %9559 = vmatpush1.bf16.msra.mxu0 %v15831_v12  ;;  %9769 = vmatprep.subr.bf16.mxu1 %v15866_v31  ;;  %v15911_v12 = vld [vmem:[#allocation7 + $0x1644] ss:$16 sps:$4 sm:$0xff]  }
 0x5e6   : > { %9560 = vmatprep.subr.bf16.mxu0 %v15839_v15  ;;  %v15924_v15 = vld [vmem:[#allocation7 + $0x1568] ss:$16 sps:$4 sm:$0xff]   ;;  %v20649_v31 = vld [vmem:[#allocation51_spill] sm:$0xff] }
 0x5e8   : > { %9538 = vmatmul.mubr.bf16.gmra.mrb[188].mxu0 %v20644_v4  ;;  %9770 = vmatpush1.bf16.msra.mxu1 %v15864_v48  ;;  %v15944_v48 = vld [vmem:[#allocation7 + $0x15cc] ss:$16 sps:$4 sm:$0xff]  }
 0x5e9   : > { %9561 = vmatpush1.bf16.msra.mxu0 %v15837_v46  ;;  %9580 = vmatprep.mubr.bf16.mxu0 %v20645_v56  ;;  %v15917_v46 = vld [vmem:[#allocation7 + $0x1664] ss:$16 sps:$4 sm:$0xff]  }
 0x5ea   : > { %9562 = vmatprep.subr.bf16.mxu0 %v15845_v60  ;;  %9771 = vmatprep.subr.bf16.mxu1 %v15872_v49  ;;  %v15930_v60 = vld [vmem:[#allocation7 + $0x1588] ss:$16 sps:$4 sm:$0xff]   ;;  %v15921_v49 = vld [vmem:[#allocation7 + $0x1680] ss:$16 sps:$4 sm:$0xff]  }
 0x5eb   : > { %9737 = vmatmul.mubr.bf16.gmra.mrb[212].mxu1 %v20640_v25  ;;  %v15906_v25 = vld [vmem:[#allocation7 + $0x1508] ss:$16 sps:$4 sm:$0xff]  }
 0x5ec   : > { %9746 = vmatprep.mubr.bf16.mxu1 %v20641_v9  ;;  %9772 = vmatpush1.bf16.msra.mxu1 %v15870_v58  ;;  %v15891_v9 = vld [vmem:[#allocation7 + $0x15e0] ss:$16 sps:$4 sm:$0xff]  }
 0x5ed   : > { %9563 = vmatpush1.bf16.msra.mxu0 %v15843_v47  ;;  %9773 = vmatprep.subr.bf16.mxu1 %v15878_v40  ;;  %v15923_v47 = vld [vmem:[#allocation7 + $0x1684] ss:$16 sps:$4 sm:$0xff]   ;;  %v15950_v40 = vld [vmem:[#allocation7 + $0x15ec] ss:$16 sps:$4 sm:$0xff]  }
 0x5ee   : > { %9564 = vmatprep.subr.bf16.mxu0 %v15851_v0  ;;  %v15936_v0 = vld [vmem:[#allocation7 + $0x15a8] ss:$16 sps:$4 sm:$0xff]   ;;  %v20650_v58 = vld [vmem:[#allocation49_spill] sm:$0xff] }
 0x5f0   : > { %9774 = vmatpush1.bf16.msra.mxu1 %v15876_v45  ;;  %v15935_v45 = vld [vmem:[#allocation7 + $0x16c4] ss:$16 sps:$4 sm:$0xff]  }
 0x5f1   : > { %9565 = vmatpush1.bf16.msra.mxu0 %v15849_v28  ;;  %9775 = vmatprep.subr.bf16.mxu1 %v15884_v42  ;;  %v15929_v28 = vld [vmem:[#allocation7 + $0x16a4] ss:$16 sps:$4 sm:$0xff]   ;;  %v15948_v42 = vld [vmem:[#allocation7 + $0x15e8] ss:$16 sps:$4 sm:$0xff]  }
 0x5f2   : > { %9566 = vmatprep.subr.bf16.mxu0 %v15857_v10  ;;  %v15942_v10 = vld [vmem:[#allocation7 + $0x15c8] ss:$16 sps:$4 sm:$0xff]  }
 0x5f3   : > { %9747 = vmatmul.mubr.bf16.gmra.mrb[216].mxu1 %v20642_v55  ;;  %v15926_v55 = vld [vmem:[#allocation7 + $0x156c] ss:$16 sps:$4 sm:$0xff]  }
 0x5f4   : > { %9756 = vmatprep.mubr.bf16.mxu1 %v20643_v11  ;;  %9776 = vmatpush1.bf16.msra.mxu1 %v15882_v41  ;;  %v15903_v11 = vld [vmem:[#allocation7 + $0x1620] ss:$16 sps:$4 sm:$0xff]   ;;  %v15941_v41 = vld [vmem:[#allocation7 + $0x16e4] ss:$16 sps:$4 sm:$0xff]  }
 0x5f5   : > { %9567 = vmatpush1.bf16.msra.mxu0 %v15855_v59  ;;  %9777 = vmatprep.subr.bf16.mxu1 %v15890_v22  ;;  %v20651_v59 = vld [vmem:[#allocation27_spill] sm:$0xff]  ;;  %v15954_v22 = vld [vmem:[#allocation7 + $0x1608] ss:$16 sps:$4 sm:$0xff]  }
 0x5f6   : > { %9568 = vmatprep.subr.bf16.mxu0 %v15863_v51  ;;  %v15927_v51 = vld [vmem:[#allocation7 + $0x16a0] ss:$16 sps:$4 sm:$0xff]  }
 0x5f8   : > { %9778 = vmatpush1.bf16.msra.mxu1 %v15888_v7  ;;  %v15939_v7 = vld [vmem:[#allocation7 + $0x16e0] ss:$16 sps:$4 sm:$0xff]  }
 0x5f9   : > { %9569 = vmatpush1.bf16.msra.mxu0 %v15861_v50  ;;  %9779 = vmatprep.subr.bf16.mxu1 %v15896_v52  ;;  %v15956_v50 = vld [vmem:[#allocation7 + $0x160c] ss:$16 sps:$4 sm:$0xff]   ;;  %v15947_v52 = vld [vmem:[#allocation7 + $0x1704] ss:$16 sps:$4 sm:$0xff]  }
 0x5fa   : > { %9570 = vmatprep.subr.bf16.mxu0 %v15869_v54  ;;  %v15933_v54 = vld [vmem:[#allocation7 + $0x16c0] ss:$16 sps:$4 sm:$0xff]  }
 0x5fb   : > { %9757 = vmatmul.mubr.bf16.gmra.mrb[220].mxu1 %v20644_v4  ;;  %v15938_v4 = vld [vmem:[#allocation7 + $0x15ac] ss:$16 sps:$4 sm:$0xff]  }
 0x5fc   : > { %9780 = vmatpush1.bf16.msra.mxu1 %v15894_v24  ;;  %9799 = vmatprep.mubr.bf16.mxu1 %v20645_v56  ;;  %v15915_v56 = vld [vmem:[#allocation7 + $0x1660] ss:$16 sps:$4 sm:$0xff]  }
 0x5fd   : > { %9571 = vmatpush1.bf16.msra.mxu0 %v15867_v32  ;;  %9781 = vmatprep.subr.bf16.mxu1 %v15902_v36  ;;  %v20652_v32 = vld [vmem:[#allocation55_spill] sm:$0xff] }
 0x5fe   : > { %9572 = vmatprep.subr.bf16.mxu0 %v15875_v17  ;;  %v15962_v17 = vld [vmem:[#allocation7 + $0x162c] ss:$16 sps:$4 sm:$0xff]   ;;  %v15945_v24 = vld [vmem:[#allocation7 + $0x1700] ss:$16 sps:$4 sm:$0xff]   ;;  %v15953_v36 = vld [vmem:[#allocation7 + $0x1724] ss:$16 sps:$4 sm:$0xff]  }
 0x600   : > { %9782 = vmatpush1.bf16.msra.mxu1 %v15900_v1  ;;  %v15951_v1 = vld [vmem:[#allocation7 + $0x1720] ss:$16 sps:$4 sm:$0xff]  }
 0x601   : > { %9573 = vmatpush1.bf16.msra.mxu0 %v15873_v5  ;;  %9783 = vmatprep.subr.bf16.mxu1 %v15908_v23  ;;  %v15960_v5 = vld [vmem:[#allocation7 + $0x1628] ss:$16 sps:$4 sm:$0xff]   ;;  %v15959_v23 = vld [vmem:[#allocation7 + $0x1744] ss:$16 sps:$4 sm:$0xff]  }
 0x602   : > { %9574 = vmatprep.subr.bf16.mxu0 %v15881_v35  ;;  %v15968_v35 = vld [vmem:[#allocation7 + $0x164c] ss:$16 sps:$4 sm:$0xff]  }
 0x604   : > { %9784 = vmatpush1.bf16.msra.mxu1 %v15906_v25  ;;  %v15957_v25 = vld [vmem:[#allocation7 + $0x1740] ss:$16 sps:$4 sm:$0xff]  }
 0x605   : > { %9575 = vmatpush1.bf16.msra.mxu0 %v15879_v34  ;;  %9785 = vmatprep.subr.bf16.mxu1 %v15914_v63  ;;  %v15966_v34 = vld [vmem:[#allocation7 + $0x1648] ss:$16 sps:$4 sm:$0xff]   ;;  %v15965_v63 = vld [vmem:[#allocation7 + $0x1764] ss:$16 sps:$4 sm:$0xff]  }
 0x606   : > { %9576 = vmatprep.subr.bf16.mxu0 %v15887_v19  ;;  %v15974_v19 = vld [vmem:[#allocation7 + $0x166c] ss:$16 sps:$4 sm:$0xff]  }
 0x608   : > { %9786 = vmatpush1.bf16.msra.mxu1 %v15912_v30  ;;  %v15963_v30 = vld [vmem:[#allocation7 + $0x1760] ss:$16 sps:$4 sm:$0xff]  }
 0x609   : > { %9577 = vmatpush1.bf16.msra.mxu0 %v15885_v29  ;;  %9787 = vmatprep.subr.bf16.mxu1 %v15920_v44  ;;  %v15972_v29 = vld [vmem:[#allocation7 + $0x1668] ss:$16 sps:$4 sm:$0xff]   ;;  %v15971_v44 = vld [vmem:[#allocation7 + $0x1784] ss:$16 sps:$4 sm:$0xff]  }
 0x60a   : > { %9578 = vmatprep.subr.bf16.mxu0 %v15893_v20  ;;  %v15980_v20 = vld [vmem:[#allocation7 + $0x168c] ss:$16 sps:$4 sm:$0xff]  }
 0x60c   : > { %9788 = vmatpush1.bf16.msra.mxu1 %v15918_v62  ;;  %v15969_v62 = vld [vmem:[#allocation7 + $0x1780] ss:$16 sps:$4 sm:$0xff]  }
 0x60d   : > { %9579 = vmatpush1.bf16.msra.mxu0 %v15891_v9  ;;  %9789 = vmatprep.subr.bf16.mxu1 %v15926_v55  ;;  %v15978_v9 = vld [vmem:[#allocation7 + $0x1688] ss:$16 sps:$4 sm:$0xff]  }
 0x60e   : > { %9621 = vmatprep.subr.bf16.mxu0 %v15899_v38  ;;  %v15986_v38 = vld [vmem:[#allocation7 + $0x16ac] ss:$16 sps:$4 sm:$0xff]   ;;  %v15990_v55 = vld [vmem:[#allocation7 + $0x16c8] ss:$16 sps:$4 sm:$0xff]  }
 0x610   : > { %9581 = vmatmul.mubr.bf16.vlgmr.msra.gmra.mrb[176].mxu0 %v20646_v14  ;;  %9790 = vmatpush1.bf16.msra.mxu1 %v15924_v15  ;;  %v15996_v15 = vld [vmem:[#allocation7 + $0x16e8] ss:$16 sps:$4 sm:$0xff]  }
 0x611   : > { %9590 = vmatprep.mubr.bf16.mxu0 %v20647_v37  ;;  %9622 = vmatpush1.bf16.msra.mxu0 %v15897_v27  ;;  %v15984_v27 = vld [vmem:[#allocation7 + $0x16a8] ss:$16 sps:$4 sm:$0xff]  }
 0x612   : > { %9623 = vmatprep.subr.bf16.mxu0 %v15905_v21  ;;  %9791 = vmatprep.subr.bf16.mxu1 %v15932_v33  ;;  %v15992_v21 = vld [vmem:[#allocation7 + $0x16cc] ss:$16 sps:$4 sm:$0xff]  }
 0x613   : > { %v16004_v33 = vld [vmem:[#allocation7 + $0x170c] ss:$16 sps:$4 sm:$0xff]  }
 0x614   : > { %9792 = vmatpush1.bf16.msra.mxu1 %v15930_v60  ;;  %v16002_v60 = vld [vmem:[#allocation7 + $0x1708] ss:$16 sps:$4 sm:$0xff]  }
 0x615   : > { %9624 = vmatpush1.bf16.msra.mxu0 %v15903_v11  ;;  %9793 = vmatprep.subr.bf16.mxu1 %v15938_v4  ;;  %v15975_v11 = vld [vmem:[#allocation7 + $0x17a0] ss:$16 sps:$4 sm:$0xff]  }
 0x616   : > { %9625 = vmatprep.subr.bf16.mxu0 %v15911_v12  ;;  %v15983_v12 = vld [vmem:[#allocation7 + $0x17c4] ss:$16 sps:$4 sm:$0xff]   ;;  %v15987_v4 = vld [vmem:[#allocation7 + $0x17e0] ss:$16 sps:$4 sm:$0xff]  }
 0x618   : > { %9591 = vmatmul.mubr.bf16.gmra.mrb[180].mxu0 %v20648_v53  ;;  %9794 = vmatpush1.bf16.msra.mxu1 %v15936_v0  ;;  %v16001_v0 = vld [vmem:[#allocation7 + $0x1824] ss:$16 sps:$4 sm:$0xff]  }
 0x619   : > { %9600 = vmatprep.mubr.bf16.mxu0 %v20649_v31  ;;  %9626 = vmatpush1.bf16.msra.mxu0 %v15909_v6  ;;  %v15981_v6 = vld [vmem:[#allocation7 + $0x17c0] ss:$16 sps:$4 sm:$0xff]  }
 0x61a   : > { %9627 = vmatprep.subr.bf16.mxu0 %v15917_v46  ;;  %9795 = vmatprep.subr.bf16.mxu1 %v15944_v48  ;;  %v15989_v46 = vld [vmem:[#allocation7 + $0x17e4] ss:$16 sps:$4 sm:$0xff]   ;;  %v16014_v48 = vld [vmem:[#allocation7 + $0x1748] ss:$16 sps:$4 sm:$0xff]  }
 0x61c   : > { %9796 = vmatpush1.bf16.msra.mxu1 %v15942_v10  ;;  %v15999_v10 = vld [vmem:[#allocation7 + $0x1820] ss:$16 sps:$4 sm:$0xff]  }
 0x61d   : > { %9628 = vmatpush1.bf16.msra.mxu0 %v15915_v56  ;;  %9797 = vmatprep.subr.bf16.mxu1 %v15950_v40  ;;  %v16008_v56 = vld [vmem:[#allocation7 + $0x1728] ss:$16 sps:$4 sm:$0xff]  }
 0x61e   : > { %9629 = vmatprep.subr.bf16.mxu0 %v15923_v47  ;;  %v16016_v47 = vld [vmem:[#allocation7 + $0x174c] ss:$16 sps:$4 sm:$0xff]   ;;  %v16020_v40 = vld [vmem:[#allocation7 + $0x1768] ss:$16 sps:$4 sm:$0xff]  }
 0x620   : > { %9601 = vmatmul.mubr.bf16.gmra.mrb[184].mxu0 %v20650_v58  ;;  %9798 = vmatpush1.bf16.msra.mxu1 %v15948_v42  ;;  %v16026_v42 = vld [vmem:[#allocation7 + $0x1788] ss:$16 sps:$4 sm:$0xff]  }
 0x621   : > { %9610 = vmatprep.mubr.bf16.mxu0 %v20651_v59  ;;  %9630 = vmatpush1.bf16.msra.mxu0 %v15921_v49  ;;  %v20653_v49 = vld [vmem:[#allocation29_spill] sm:$0xff] }
 0x622   : > { %9631 = vmatprep.subr.bf16.mxu0 %v15929_v28  ;;  %9840 = vmatprep.subr.bf16.mxu1 %v15956_v50  ;;  %v16022_v28 = vld [vmem:[#allocation7 + $0x176c] ss:$16 sps:$4 sm:$0xff]  }
 0x623   : > { %9800 = vmatmul.mubr.bf16.vlgmr.msra.gmra.mrb[208].mxu1 %v20646_v14  ;;  %v15977_v14 = vld [vmem:[#allocation7 + $0x17a4] ss:$16 sps:$4 sm:$0xff]   ;;  %v16034_v50 = vld [vmem:[#allocation7 + $0x17ac] ss:$16 sps:$4 sm:$0xff]  }
 0x624   : > { %9809 = vmatprep.mubr.bf16.mxu1 %v20647_v37  ;;  %9841 = vmatpush1.bf16.msra.mxu1 %v15954_v22  ;;  %v15998_v37 = vld [vmem:[#allocation7 + $0x16ec] ss:$16 sps:$4 sm:$0xff]   ;;  %v16032_v22 = vld [vmem:[#allocation7 + $0x17a8] ss:$16 sps:$4 sm:$0xff]  }
 0x625   : > { %9632 = vmatpush1.bf16.msra.mxu0 %v15927_v51  ;;  %9842 = vmatprep.subr.bf16.mxu1 %v15962_v17  ;;  %v16005_v51 = vld [vmem:[#allocation7 + $0x1840] ss:$16 sps:$4 sm:$0xff]  }
 0x626   : > { %9633 = vmatprep.subr.bf16.mxu0 %v15935_v45  ;;  %v16013_v45 = vld [vmem:[#allocation7 + $0x1864] ss:$16 sps:$4 sm:$0xff]   ;;  %v16017_v17 = vld [vmem:[#allocation7 + $0x1880] ss:$16 sps:$4 sm:$0xff]  }
 0x628   : > { %9611 = vmatmul.mubr.bf16.gmra.mrb[188].mxu0 %v20652_v32  ;;  %9843 = vmatpush1.bf16.msra.mxu1 %v15960_v5  ;;  %v16046_v5 = vld [vmem:[#allocation7 + $0x17ec] ss:$16 sps:$4 sm:$0xff]  }
 0x629   : > { %9634 = vmatpush1.bf16.msra.mxu0 %v15933_v54  ;;  %9653 = vmatprep.mubr.bf16.mxu0 %v19758_v8  ;;  %v16011_v54 = vld [vmem:[#allocation7 + $0x1860] ss:$16 sps:$4 sm:$0xff]  }
 0x62a   : > { %9635 = vmatprep.subr.bf16.mxu0 %v15941_v41  ;;  %9844 = vmatprep.subr.bf16.mxu1 %v15968_v35  ;;  %v16019_v41 = vld [vmem:[#allocation7 + $0x1884] ss:$16 sps:$4 sm:$0xff]   ;;  %v16023_v35 = vld [vmem:[#allocation7 + $0x18a0] ss:$16 sps:$4 sm:$0xff]  }
 0x62b   : > { %9810 = vmatmul.mubr.bf16.gmra.mrb[212].mxu1 %v20648_v53  ;;  %v16010_v53 = vld [vmem:[#allocation7 + $0x172c] ss:$16 sps:$4 sm:$0xff]  }
 0x62c   : > { %9819 = vmatprep.mubr.bf16.mxu1 %v20649_v31  ;;  %9845 = vmatpush1.bf16.msra.mxu1 %v15966_v34  ;;  %v15995_v31 = vld [vmem:[#allocation7 + $0x1804] ss:$16 sps:$4 sm:$0xff]   ;;  %v16052_v34 = vld [vmem:[#allocation7 + $0x180c] ss:$16 sps:$4 sm:$0xff]  }
 0x62d   : > { %9636 = vmatpush1.bf16.msra.mxu0 %v15939_v7  ;;  %9846 = vmatprep.subr.bf16.mxu1 %v15974_v19  ;;  %v16025_v7 = vld [vmem:[#allocation7 + $0x18a4] ss:$16 sps:$4 sm:$0xff]   ;;  %v16029_v19 = vld [vmem:[#allocation7 + $0x18c0] ss:$16 sps:$4 sm:$0xff]  }
 0x62e   : > { %9637 = vmatprep.subr.bf16.mxu0 %v15947_v52  ;;  %v16038_v52 = vld [vmem:[#allocation7 + $0x17c8] ss:$16 sps:$4 sm:$0xff]  }
 0x630   : > { %9847 = vmatpush1.bf16.msra.mxu1 %v15972_v29  ;;  %v20654_v29 = vld [vmem:[#allocation64_spill] sm:$0xff] }
 0x631   : > { %9638 = vmatpush1.bf16.msra.mxu0 %v15945_v24  ;;  %9848 = vmatprep.subr.bf16.mxu1 %v15980_v20  ;;  %v16031_v24 = vld [vmem:[#allocation7 + $0x18c4] ss:$16 sps:$4 sm:$0xff]   ;;  %v16058_v20 = vld [vmem:[#allocation7 + $0x182c] ss:$16 sps:$4 sm:$0xff]  }
 0x632   : > { %9639 = vmatprep.subr.bf16.mxu0 %v15953_v36  ;;  %v16044_v36 = vld [vmem:[#allocation7 + $0x17e8] ss:$16 sps:$4 sm:$0xff]  }
 0x633   : > { %9820 = vmatmul.mubr.bf16.gmra.mrb[216].mxu1 %v20650_v58  ;;  %v16007_v58 = vld [vmem:[#allocation7 + $0x1844] ss:$16 sps:$4 sm:$0xff]  }
 0x634   : > { %9829 = vmatprep.mubr.bf16.mxu1 %v20651_v59  ;;  %9849 = vmatpush1.bf16.msra.mxu1 %v15978_v9  ;;  %v16028_v59 = vld [vmem:[#allocation7 + $0x178c] ss:$16 sps:$4 sm:$0xff]   ;;  %v16043_v9 = vld [vmem:[#allocation7 + $0x1904] ss:$16 sps:$4 sm:$0xff]  }
 0x635   : > { %9640 = vmatpush1.bf16.msra.mxu0 %v15951_v1  ;;  %9850 = vmatprep.subr.bf16.mxu1 %v15986_v38  ;;  %v16037_v1 = vld [vmem:[#allocation7 + $0x18e4] ss:$16 sps:$4 sm:$0xff]   ;;  %v16056_v38 = vld [vmem:[#allocation7 + $0x1828] ss:$16 sps:$4 sm:$0xff]  }
 0x636   : > { %9641 = vmatprep.subr.bf16.mxu0 %v15959_v23  ;;  %v16050_v23 = vld [vmem:[#allocation7 + $0x1808] ss:$16 sps:$4 sm:$0xff]  }
 0x638   : > { %9851 = vmatpush1.bf16.msra.mxu1 %v15984_v27  ;;  %v16049_v27 = vld [vmem:[#allocation7 + $0x1924] ss:$16 sps:$4 sm:$0xff]  }
 0x639   : > { %9642 = vmatpush1.bf16.msra.mxu0 %v15957_v25  ;;  %9852 = vmatprep.subr.bf16.mxu1 %v15992_v21  ;;  %v20655_v25 = vld [vmem:[#allocation39_spill] sm:$0xff]  ;;  %v16062_v21 = vld [vmem:[#allocation7 + $0x1848] ss:$16 sps:$4 sm:$0xff]  }
 0x63a   : > { %9643 = vmatprep.subr.bf16.mxu0 %v15965_v63  ;;  %v16035_v63 = vld [vmem:[#allocation7 + $0x18e0] ss:$16 sps:$4 sm:$0xff]  }
 0x63b   : > { %9830 = vmatmul.mubr.bf16.gmra.mrb[220].mxu1 %v20652_v32  ;;  %v16040_v32 = vld [vmem:[#allocation7 + $0x17cc] ss:$16 sps:$4 sm:$0xff]  }
 0x63c   : > { %9853 = vmatpush1.bf16.msra.mxu1 %v15990_v55  ;;  %9872 = vmatprep.mubr.bf16.mxu1 %v19758_v8  ;;  %v15993_v8 = vld [vmem:[#allocation7 + $0x1800] ss:$16 sps:$4 sm:$0xff]   ;;  %v16055_v55 = vld [vmem:[#allocation7 + $0x1944] ss:$16 sps:$4 sm:$0xff]  }
 0x63d   : > { %9644 = vmatpush1.bf16.msra.mxu0 %v15963_v30  ;;  %9854 = vmatprep.subr.bf16.mxu1 %v15998_v37  ;;  %v16064_v30 = vld [vmem:[#allocation7 + $0x184c] ss:$16 sps:$4 sm:$0xff]  }
 0x63e   : > { %9645 = vmatprep.subr.bf16.mxu0 %v15971_v44  ;;  %v16041_v44 = vld [vmem:[#allocation7 + $0x1900] ss:$16 sps:$4 sm:$0xff]   ;;  %v16076_v37 = vld [vmem:[#allocation7 + $0x188c] ss:$16 sps:$4 sm:$0xff]  }
 0x640   : > { %9855 = vmatpush1.bf16.msra.mxu1 %v15996_v15  ;;  %v16074_v15 = vld [vmem:[#allocation7 + $0x1888] ss:$16 sps:$4 sm:$0xff]  }
 0x641   : > { %9646 = vmatpush1.bf16.msra.mxu0 %v15969_v62  ;;  %9856 = vmatprep.subr.bf16.mxu1 %v16004_v33  ;;  %v16070_v62 = vld [vmem:[#allocation7 + $0x186c] ss:$16 sps:$4 sm:$0xff]  }
 0x642   : > { %9647 = vmatprep.subr.bf16.mxu0 %v15977_v14  ;;  %v16047_v14 = vld [vmem:[#allocation7 + $0x1920] ss:$16 sps:$4 sm:$0xff]   ;;  %v16082_v33 = vld [vmem:[#allocation7 + $0x18ac] ss:$16 sps:$4 sm:$0xff]  }
 0x644   : > { %9857 = vmatpush1.bf16.msra.mxu1 %v16002_v60  ;;  %v16065_v60 = vld [vmem:[#allocation7 + $0x1980] ss:$16 sps:$4 sm:$0xff]  }
 0x645   : > { %9648 = vmatpush1.bf16.msra.mxu0 %v15975_v11  ;;  %9858 = vmatprep.subr.bf16.mxu1 %v16010_v53  ;;  %v16053_v11 = vld [vmem:[#allocation7 + $0x1940] ss:$16 sps:$4 sm:$0xff]   ;;  %v16073_v53 = vld [vmem:[#allocation7 + $0x19a4] ss:$16 sps:$4 sm:$0xff]  }
 0x646   : > { %9649 = vmatprep.subr.bf16.mxu0 %v15983_v12  ;;  %v16061_v12 = vld [vmem:[#allocation7 + $0x1964] ss:$16 sps:$4 sm:$0xff]  }
 0x648   : > { %9859 = vmatpush1.bf16.msra.mxu1 %v16008_v56  ;;  %v16071_v56 = vld [vmem:[#allocation7 + $0x19a0] ss:$16 sps:$4 sm:$0xff]  }
 0x649   : > { %9650 = vmatpush1.bf16.msra.mxu0 %v15981_v6  ;;  %9860 = vmatprep.subr.bf16.mxu1 %v16016_v47  ;;  %v16059_v6 = vld [vmem:[#allocation7 + $0x1960] ss:$16 sps:$4 sm:$0xff]   ;;  %v16079_v47 = vld [vmem:[#allocation7 + $0x19c4] ss:$16 sps:$4 sm:$0xff]  }
 0x64a   : > { %9651 = vmatprep.subr.bf16.mxu0 %v15989_v46  ;;  %v16067_v46 = vld [vmem:[#allocation7 + $0x1984] ss:$16 sps:$4 sm:$0xff]  }
 0x64c   : > { %9861 = vmatpush1.bf16.msra.mxu1 %v16014_v48  ;;  %v16098_v48 = vld [vmem:[#allocation7 + $0x1908] ss:$16 sps:$4 sm:$0xff]  }
 0x64d   : > { %9652 = vmatpush1.bf16.msra.mxu0 %v15987_v4  ;;  %9862 = vmatprep.subr.bf16.mxu1 %v16022_v28  ;;  %v16086_v4 = vld [vmem:[#allocation7 + $0x18c8] ss:$16 sps:$4 sm:$0xff]   ;;  %v16083_v28 = vld [vmem:[#allocation7 + $0x19e0] ss:$16 sps:$4 sm:$0xff]  }
 0x64e   : > { %11098 = vmatprep.subr.bf16.mxu0 %v15995_v31  ;;  %v16094_v31 = vld [vmem:[#allocation7 + $0x18ec] ss:$16 sps:$4 sm:$0xff]  }
 0x650   : > { %9654 = vmatmul.mubr.bf16.vlgmr.msra.gmra.mrb[176].mxu0 %v20653_v49  ;;  %9863 = vmatpush1.bf16.msra.mxu1 %v16020_v40  ;;  %v16112_v40 = vld [vmem:[#allocation7 + $0x194c] ss:$16 sps:$4 sm:$0xff]  }
 0x651   : > { %9663 = vmatprep.mubr.bf16.mxu0 %v19768_v26  ;;  %11099 = vmatpush1.bf16.msra.mxu0 %v15993_v8  ;;  %v16077_v8 = vld [vmem:[#allocation7 + $0x19c0] ss:$16 sps:$4 sm:$0xff]  }
 0x652   : > { %11100 = vmatprep.subr.bf16.mxu0 %v16001_v0  ;;  %9864 = vmatprep.subr.bf16.mxu1 %v16028_v59  ;;  %v16085_v0 = vld [vmem:[#allocation7 + $0x19e4] ss:$16 sps:$4 sm:$0xff]   ;;  %v16089_v59 = vld [vmem:[#allocation7 + $0x1a00] ss:$16 sps:$4 sm:$0xff]  }
 0x654   : > { %9865 = vmatpush1.bf16.msra.mxu1 %v16026_v42  ;;  %v20656_v42 = vld [vmem:[#allocation38_spill] sm:$0xff] }
 0x655   : > { %11101 = vmatpush1.bf16.msra.mxu0 %v15999_v10  ;;  %9866 = vmatprep.subr.bf16.mxu1 %v16034_v50  ;;  %v16091_v10 = vld [vmem:[#allocation7 + $0x1a04] ss:$16 sps:$4 sm:$0xff]   ;;  %v16118_v50 = vld [vmem:[#allocation7 + $0x196c] ss:$16 sps:$4 sm:$0xff]  }
 0x656   : > { %11102 = vmatprep.subr.bf16.mxu0 %v16007_v58  ;;  %v16104_v58 = vld [vmem:[#allocation7 + $0x1928] ss:$16 sps:$4 sm:$0xff]  }
 0x658   : > { %9664 = vmatmul.mubr.bf16.gmra.mrb[180].mxu0 %v19764_v18  ;;  %9867 = vmatpush1.bf16.msra.mxu1 %v16032_v22  ;;  %v16103_v22 = vld [vmem:[#allocation7 + $0x1a44] ss:$16 sps:$4 sm:$0xff]  }
 0x659   : > { %9673 = vmatprep.mubr.bf16.mxu0 %v19772_v61  ;;  %11103 = vmatpush1.bf16.msra.mxu0 %v16005_v51  ;;  %v16097_v51 = vld [vmem:[#allocation7 + $0x1a24] ss:$16 sps:$4 sm:$0xff]  }
 0x65a   : > { %11104 = vmatprep.subr.bf16.mxu0 %v16013_v45  ;;  %9868 = vmatprep.subr.bf16.mxu1 %v16040_v32  ;;  %v16110_v45 = vld [vmem:[#allocation7 + $0x1948] ss:$16 sps:$4 sm:$0xff]  }
 0x65b   : > { %v16116_v32 = vld [vmem:[#allocation7 + $0x1968] ss:$16 sps:$4 sm:$0xff]  }
 0x65c   : > { %9869 = vmatpush1.bf16.msra.mxu1 %v16038_v52  ;;  %v16109_v52 = vld [vmem:[#allocation7 + $0x1a64] ss:$16 sps:$4 sm:$0xff]  }
 0x65d   : > { %11105 = vmatpush1.bf16.msra.mxu0 %v16011_v54  ;;  %9870 = vmatprep.subr.bf16.mxu1 %v16046_v5  ;;  %v20657_v54 = vld [vmem:[#allocation41_spill] sm:$0xff]  ;;  %v16122_v5 = vld [vmem:[#allocation7 + $0x1988] ss:$16 sps:$4 sm:$0xff]  }
 0x65e   : > { %11106 = vmatprep.subr.bf16.mxu0 %v16019_v41  ;;  %v16095_v41 = vld [vmem:[#allocation7 + $0x1a20] ss:$16 sps:$4 sm:$0xff]  }
 0x660   : > { %9674 = vmatmul.mubr.bf16.gmra.mrb[184].mxu0 %v19770_v2  ;;  %9871 = vmatpush1.bf16.msra.mxu1 %v16044_v36  ;;  %v20659_v36 = vld [vmem:[#allocation43_spill] sm:$0xff] }
 0x661   : > { %9683 = vmatprep.mubr.bf16.mxu0 %v19778_v3  ;;  %11107 = vmatpush1.bf16.msra.mxu0 %v16017_v17  ;;  %v16124_v17 = vld [vmem:[#allocation7 + $0x198c] ss:$16 sps:$4 sm:$0xff]  }
 0x662   : > { %11108 = vmatprep.subr.bf16.mxu0 %v16025_v7  ;;  %11317 = vmatprep.subr.bf16.mxu1 %v16052_v34  ;;  %v16101_v7 = vld [vmem:[#allocation7 + $0x1a40] ss:$16 sps:$4 sm:$0xff]  }
 0x663   : > { %9873 = vmatmul.mubr.bf16.vlgmr.msra.gmra.mrb[208].mxu1 %v20653_v49  ;;  %v16106_v49 = vld [vmem:[#allocation7 + $0x192c] ss:$16 sps:$4 sm:$0xff]   ;;  %v16107_v34 = vld [vmem:[#allocation7 + $0x1a60] ss:$16 sps:$4 sm:$0xff]  }
 0x664   : > { %9882 = vmatprep.mubr.bf16.mxu1 %v19768_v26  ;;  %11318 = vmatpush1.bf16.msra.mxu1 %v16050_v23  ;;  %v16068_v26 = vld [vmem:[#allocation7 + $0x1868] ss:$16 sps:$4 sm:$0xff]   ;;  %v16136_v23 = vld [vmem:[#allocation7 + $0x19cc] ss:$16 sps:$4 sm:$0xff]  }
 0x665   : > { %11109 = vmatpush1.bf16.msra.mxu0 %v16023_v35  ;;  %11319 = vmatprep.subr.bf16.mxu1 %v16058_v20  ;;  %v20658_v35 = vld [vmem:[#allocation40_spill] sm:$0xff] }
 0x666   : > { %11110 = vmatprep.subr.bf16.mxu0 %v16031_v24  ;;  %v16130_v24 = vld [vmem:[#allocation7 + $0x19ac] ss:$16 sps:$4 sm:$0xff]   ;;  %v16121_v20 = vld [vmem:[#allocation7 + $0x1aa4] ss:$16 sps:$4 sm:$0xff]  }
 0x668   : > { %9684 = vmatmul.mubr.bf16.gmra.mrb[188].mxu0 %v20654_v29  ;;  %11320 = vmatpush1.bf16.msra.mxu1 %v16056_v38  ;;  %v20661_v38 = vld [vmem:[#allocation58_spill] sm:$0xff] }
 0x669   : > { %11111 = vmatpush1.bf16.msra.mxu0 %v16029_v19  ;;  %11130 = vmatprep.mubr.bf16.mxu0 %v20655_v25  ;;  %v16115_v19 = vld [vmem:[#allocation7 + $0x1a84] ss:$16 sps:$4 sm:$0xff]  }
 0x66a   : > { %11112 = vmatprep.subr.bf16.mxu0 %v16037_v1  ;;  %11321 = vmatprep.subr.bf16.mxu1 %v16064_v30  ;;  %v16128_v1 = vld [vmem:[#allocation7 + $0x19a8] ss:$16 sps:$4 sm:$0xff]   ;;  %v16119_v30 = vld [vmem:[#allocation7 + $0x1aa0] ss:$16 sps:$4 sm:$0xff]  }
 0x66b   : > { %9883 = vmatmul.mubr.bf16.gmra.mrb[212].mxu1 %v19764_v18  ;;  %v16080_v18 = vld [vmem:[#allocation7 + $0x18a8] ss:$16 sps:$4 sm:$0xff]  }
 0x66c   : > { %9892 = vmatprep.mubr.bf16.mxu1 %v19772_v61  ;;  %11322 = vmatpush1.bf16.msra.mxu1 %v16062_v21  ;;  %v16088_v61 = vld [vmem:[#allocation7 + $0x18cc] ss:$16 sps:$4 sm:$0xff]  }
 0x66d   : > { %11113 = vmatpush1.bf16.msra.mxu0 %v16035_v63  ;;  %11323 = vmatprep.subr.bf16.mxu1 %v16070_v62  ;;  %v20660_v63 = vld [vmem:[#allocation42_spill] sm:$0xff]  ;;  %v16125_v62 = vld [vmem:[#allocation7 + $0x1ac0] ss:$16 sps:$4 sm:$0xff]  }
 0x66e   : > { %11114 = vmatprep.subr.bf16.mxu0 %v16043_v9  ;;  %v16142_v9 = vld [vmem:[#allocation7 + $0x19ec] ss:$16 sps:$4 sm:$0xff]  }
 0x66f   : > { %v16148_v21 = vld [vmem:[#allocation7 + $0x1a0c] ss:$16 sps:$4 sm:$0xff]  }
 0x670   : > { %11324 = vmatpush1.bf16.msra.mxu1 %v16068_v26  ;;  %v20662_v26 = vld [vmem:[#allocation45_spill] sm:$0xff] }
 0x671   : > { %11115 = vmatpush1.bf16.msra.mxu0 %v16041_v44  ;;  %11325 = vmatprep.subr.bf16.mxu1 %v16076_v37  ;;  %v16127_v44 = vld [vmem:[#allocation7 + $0x1ac4] ss:$16 sps:$4 sm:$0xff]   ;;  %v16154_v37 = vld [vmem:[#allocation7 + $0x1a2c] ss:$16 sps:$4 sm:$0xff]  }
 0x672   : > { %11116 = vmatprep.subr.bf16.mxu0 %v16049_v27  ;;  %v16140_v27 = vld [vmem:[#allocation7 + $0x19e8] ss:$16 sps:$4 sm:$0xff]  }
 0x673   : > { %9893 = vmatmul.mubr.bf16.gmra.mrb[216].mxu1 %v19770_v2  ;;  %v16100_v2 = vld [vmem:[#allocation7 + $0x190c] ss:$16 sps:$4 sm:$0xff]  }
 0x674   : > { %9902 = vmatprep.mubr.bf16.mxu1 %v19778_v3  ;;  %11326 = vmatpush1.bf16.msra.mxu1 %v16074_v15  ;;  %v16092_v3 = vld [vmem:[#allocation7 + $0x18e8] ss:$16 sps:$4 sm:$0xff]   ;;  %v16139_v15 = vld [vmem:[#allocation7 + $0x1b04] ss:$16 sps:$4 sm:$0xff]  }
 0x675   : > { %11117 = vmatpush1.bf16.msra.mxu0 %v16047_v14  ;;  %11327 = vmatprep.subr.bf16.mxu1 %v16082_v33  ;;  %v16133_v14 = vld [vmem:[#allocation7 + $0x1ae4] ss:$16 sps:$4 sm:$0xff]   ;;  %v16152_v33 = vld [vmem:[#allocation7 + $0x1a28] ss:$16 sps:$4 sm:$0xff]  }
 0x676   : > { %11118 = vmatprep.subr.bf16.mxu0 %v16055_v55  ;;  %v16146_v55 = vld [vmem:[#allocation7 + $0x1a08] ss:$16 sps:$4 sm:$0xff]  }
 0x678   : > { %11328 = vmatpush1.bf16.msra.mxu1 %v16080_v18  ;;  %v16145_v18 = vld [vmem:[#allocation7 + $0x1b24] ss:$16 sps:$4 sm:$0xff]  }
 0x679   : > { %11119 = vmatpush1.bf16.msra.mxu0 %v16053_v11  ;;  %11329 = vmatprep.subr.bf16.mxu1 %v16088_v61  ;;  %v20663_v11 = vld [vmem:[#allocation54_spill] sm:$0xff] }
 0x67a   : > { %11120 = vmatprep.subr.bf16.mxu0 %v16061_v12  ;;  %v16131_v12 = vld [vmem:[#allocation7 + $0x1ae0] ss:$16 sps:$4 sm:$0xff]   ;;  %v16158_v61 = vld [vmem:[#allocation7 + $0x1a48] ss:$16 sps:$4 sm:$0xff]  }
 0x67b   : > { %9903 = vmatmul.mubr.bf16.gmra.mrb[220].mxu1 %v20654_v29  ;;  %v16113_v29 = vld [vmem:[#allocation7 + $0x1a80] ss:$16 sps:$4 sm:$0xff]  }
 0x67c   : > { %11330 = vmatpush1.bf16.msra.mxu1 %v16086_v4  ;;  %11349 = vmatprep.mubr.bf16.mxu1 %v20655_v25  ;;  %v16134_v25 = vld [vmem:[#allocation7 + $0x19c8] ss:$16 sps:$4 sm:$0xff]   ;;  %v16151_v4 = vld [vmem:[#allocation7 + $0x1b44] ss:$16 sps:$4 sm:$0xff]  }
 0x67d   : > { %11121 = vmatpush1.bf16.msra.mxu0 %v16059_v6  ;;  %11331 = vmatprep.subr.bf16.mxu1 %v16094_v31  ;;  %v16160_v6 = vld [vmem:[#allocation7 + $0x1a4c] ss:$16 sps:$4 sm:$0xff]   ;;  %v16164_v31 = vld [vmem:[#allocation7 + $0x1a68] ss:$16 sps:$4 sm:$0xff]  }
 0x67e   : > { %11122 = vmatprep.subr.bf16.mxu0 %v16067_v46  ;;  %v16137_v46 = vld [vmem:[#allocation7 + $0x1b00] ss:$16 sps:$4 sm:$0xff]  }
 0x680   : > { %11332 = vmatpush1.bf16.msra.mxu1 %v16092_v3  ;;  %v16157_v3 = vld [vmem:[#allocation7 + $0x1b64] ss:$16 sps:$4 sm:$0xff]  }
 0x681   : > { %11123 = vmatpush1.bf16.msra.mxu0 %v16065_v60  ;;  %11333 = vmatprep.subr.bf16.mxu1 %v16100_v2  ;;  %v16166_v60 = vld [vmem:[#allocation7 + $0x1a6c] ss:$16 sps:$4 sm:$0xff]   ;;  %v16170_v2 = vld [vmem:[#allocation7 + $0x1a88] ss:$16 sps:$4 sm:$0xff]  }
 0x682   : > { %11124 = vmatprep.subr.bf16.mxu0 %v16073_v53  ;;  %v16143_v53 = vld [vmem:[#allocation7 + $0x1b20] ss:$16 sps:$4 sm:$0xff]  }
 0x684   : > { %11334 = vmatpush1.bf16.msra.mxu1 %v16098_v48  ;;  %v16163_v48 = vld [vmem:[#allocation7 + $0x1b84] ss:$16 sps:$4 sm:$0xff]  }
 0x685   : > { %11125 = vmatpush1.bf16.msra.mxu0 %v16071_v56  ;;  %11335 = vmatprep.subr.bf16.mxu1 %v16106_v49  ;;  %v16172_v56 = vld [vmem:[#allocation7 + $0x1a8c] ss:$16 sps:$4 sm:$0xff]   ;;  %v16176_v49 = vld [vmem:[#allocation7 + $0x1aa8] ss:$16 sps:$4 sm:$0xff]  }
 0x686   : > { %11126 = vmatprep.subr.bf16.mxu0 %v16079_v47  ;;  %v16149_v47 = vld [vmem:[#allocation7 + $0x1b40] ss:$16 sps:$4 sm:$0xff]  }
 0x688   : > { %11336 = vmatpush1.bf16.msra.mxu1 %v16104_v58  ;;  %v16169_v58 = vld [vmem:[#allocation7 + $0x1ba4] ss:$16 sps:$4 sm:$0xff]  }
 0x689   : > { %11127 = vmatpush1.bf16.msra.mxu0 %v16077_v8  ;;  %11337 = vmatprep.subr.bf16.mxu1 %v16112_v40  ;;  %v16178_v8 = vld [vmem:[#allocation7 + $0x1aac] ss:$16 sps:$4 sm:$0xff]   ;;  %v16182_v40 = vld [vmem:[#allocation7 + $0x1ac8] ss:$16 sps:$4 sm:$0xff]  }
 0x68a   : > { %11128 = vmatprep.subr.bf16.mxu0 %v16085_v0  ;;  %v16155_v0 = vld [vmem:[#allocation7 + $0x1b60] ss:$16 sps:$4 sm:$0xff]  }
 0x68c   : > { %11338 = vmatpush1.bf16.msra.mxu1 %v16110_v45  ;;  %v16175_v45 = vld [vmem:[#allocation7 + $0x1bc4] ss:$16 sps:$4 sm:$0xff]  }
 0x68d   : > { %11129 = vmatpush1.bf16.msra.mxu0 %v16083_v28  ;;  %11339 = vmatprep.subr.bf16.mxu1 %v16118_v50  ;;  %v16184_v28 = vld [vmem:[#allocation7 + $0x1acc] ss:$16 sps:$4 sm:$0xff]  }
 0x68e   : > { %11171 = vmatprep.subr.bf16.mxu0 %v16091_v10  ;;  %v16161_v10 = vld [vmem:[#allocation7 + $0x1b80] ss:$16 sps:$4 sm:$0xff]   ;;  %v16196_v50 = vld [vmem:[#allocation7 + $0x1b0c] ss:$16 sps:$4 sm:$0xff]  }
 0x690   : > { %11131 = vmatmul.mubr.bf16.vlgmr.msra.gmra.mrb[176].mxu0 %v20656_v42  ;;  %11340 = vmatpush1.bf16.msra.mxu1 %v16116_v32  ;;  %v16202_v32 = vld [vmem:[#allocation7 + $0x1b2c] ss:$16 sps:$4 sm:$0xff]  }
 0x691   : > { %11140 = vmatprep.mubr.bf16.mxu0 %v20657_v54  ;;  %11172 = vmatpush1.bf16.msra.mxu0 %v16089_v59  ;;  %v16190_v59 = vld [vmem:[#allocation7 + $0x1aec] ss:$16 sps:$4 sm:$0xff]  }
 0x692   : > { %11173 = vmatprep.subr.bf16.mxu0 %v16097_v51  ;;  %11341 = vmatprep.subr.bf16.mxu1 %v16124_v17  ;;  %v16167_v51 = vld [vmem:[#allocation7 + $0x1ba0] ss:$16 sps:$4 sm:$0xff]  }
 0x693   : > { %v16179_v17 = vld [vmem:[#allocation7 + $0x1be0] ss:$16 sps:$4 sm:$0xff]  }
 0x694   : > { %11342 = vmatpush1.bf16.msra.mxu1 %v16122_v5  ;;  %v16208_v5 = vld [vmem:[#allocation7 + $0x1b4c] ss:$16 sps:$4 sm:$0xff]  }
 0x695   : > { %11174 = vmatpush1.bf16.msra.mxu0 %v16095_v41  ;;  %11343 = vmatprep.subr.bf16.mxu1 %v16130_v24  ;;  %v16181_v41 = vld [vmem:[#allocation7 + $0x1be4] ss:$16 sps:$4 sm:$0xff]  }
 0x696   : > { %11175 = vmatprep.subr.bf16.mxu0 %v16103_v22  ;;  %v16194_v22 = vld [vmem:[#allocation7 + $0x1b08] ss:$16 sps:$4 sm:$0xff]   ;;  %v16193_v24 = vld [vmem:[#allocation7 + $0x1c24] ss:$16 sps:$4 sm:$0xff]  }
 0x698   : > { %11141 = vmatmul.mubr.bf16.gmra.mrb[180].mxu0 %v20658_v35  ;;  %11344 = vmatpush1.bf16.msra.mxu1 %v16128_v1  ;;  %v20665_v1 = vld [vmem:[#allocation56_spill] sm:$0xff] }
 0x699   : > { %11150 = vmatprep.mubr.bf16.mxu0 %v20659_v36  ;;  %11176 = vmatpush1.bf16.msra.mxu0 %v16101_v7  ;;  %v16187_v7 = vld [vmem:[#allocation7 + $0x1c04] ss:$16 sps:$4 sm:$0xff]  }
 0x69a   : > { %11177 = vmatprep.subr.bf16.mxu0 %v16109_v52  ;;  %11345 = vmatprep.subr.bf16.mxu1 %v16136_v23  ;;  %v16200_v52 = vld [vmem:[#allocation7 + $0x1b28] ss:$16 sps:$4 sm:$0xff]   ;;  %v16191_v23 = vld [vmem:[#allocation7 + $0x1c20] ss:$16 sps:$4 sm:$0xff]  }
 0x69c   : > { %11346 = vmatpush1.bf16.msra.mxu1 %v16134_v25  ;;  %v16220_v25 = vld [vmem:[#allocation7 + $0x1b8c] ss:$16 sps:$4 sm:$0xff]  }
 0x69d   : > { %11178 = vmatpush1.bf16.msra.mxu0 %v16107_v34  ;;  %11347 = vmatprep.subr.bf16.mxu1 %v16142_v9  ;;  %v20664_v34 = vld [vmem:[#allocation53_spill] sm:$0xff] }
 0x69e   : > { %11179 = vmatprep.subr.bf16.mxu0 %v16115_v19  ;;  %v16214_v19 = vld [vmem:[#allocation7 + $0x1b6c] ss:$16 sps:$4 sm:$0xff]   ;;  %v16205_v9 = vld [vmem:[#allocation7 + $0x1c64] ss:$16 sps:$4 sm:$0xff]  }
 0x6a0   : > { %11151 = vmatmul.mubr.bf16.gmra.mrb[184].mxu0 %v20660_v63  ;;  %11348 = vmatpush1.bf16.msra.mxu1 %v16140_v27  ;;  %v20667_v27 = vld [vmem:[#allocation57_spill] sm:$0xff] }
 0x6a1   : > { %11160 = vmatprep.mubr.bf16.mxu0 %v20661_v38  ;;  %11180 = vmatpush1.bf16.msra.mxu0 %v16113_v29  ;;  %v16199_v29 = vld [vmem:[#allocation7 + $0x1c44] ss:$16 sps:$4 sm:$0xff]  }
 0x6a2   : > { %11181 = vmatprep.subr.bf16.mxu0 %v16121_v20  ;;  %11390 = vmatprep.subr.bf16.mxu1 %v16148_v21  ;;  %v16212_v20 = vld [vmem:[#allocation7 + $0x1b68] ss:$16 sps:$4 sm:$0xff]   ;;  %v16203_v21 = vld [vmem:[#allocation7 + $0x1c60] ss:$16 sps:$4 sm:$0xff]  }
 0x6a3   : > { %11350 = vmatmul.mubr.bf16.vlgmr.msra.gmra.mrb[208].mxu1 %v20656_v42  ;;  %v16188_v42 = vld [vmem:[#allocation7 + $0x1ae8] ss:$16 sps:$4 sm:$0xff]  }
 0x6a4   : > { %11359 = vmatprep.mubr.bf16.mxu1 %v20657_v54  ;;  %11391 = vmatpush1.bf16.msra.mxu1 %v16146_v55  ;;  %v16173_v54 = vld [vmem:[#allocation7 + $0x1bc0] ss:$16 sps:$4 sm:$0xff]   ;;  %v16232_v55 = vld [vmem:[#allocation7 + $0x1bcc] ss:$16 sps:$4 sm:$0xff]  }
 0x6a5   : > { %11182 = vmatpush1.bf16.msra.mxu0 %v16119_v30  ;;  %11392 = vmatprep.subr.bf16.mxu1 %v16154_v37  ;;  %v20666_v30 = vld [vmem:[#allocation26_spill] sm:$0xff] }
 0x6a6   : > { %11183 = vmatprep.subr.bf16.mxu0 %v16127_v44  ;;  %v16226_v44 = vld [vmem:[#allocation7 + $0x1bac] ss:$16 sps:$4 sm:$0xff]   ;;  %v16217_v37 = vld [vmem:[#allocation7 + $0x1ca4] ss:$16 sps:$4 sm:$0xff]  }
 0x6a8   : > { %11161 = vmatmul.mubr.bf16.gmra.mrb[188].mxu0 %v20662_v26  ;;  %11393 = vmatpush1.bf16.msra.mxu1 %v16152_v33  ;;  %v20669_v33 = vld [vmem:[#allocation63_spill] sm:$0xff] }
 0x6a9   : > { %11184 = vmatpush1.bf16.msra.mxu0 %v16125_v62  ;;  %11203 = vmatprep.mubr.bf16.mxu0 %v20663_v11  ;;  %v16211_v62 = vld [vmem:[#allocation7 + $0x1c84] ss:$16 sps:$4 sm:$0xff]  }
 0x6aa   : > { %11185 = vmatprep.subr.bf16.mxu0 %v16133_v14  ;;  %11394 = vmatprep.subr.bf16.mxu1 %v16160_v6  ;;  %v16224_v14 = vld [vmem:[#allocation7 + $0x1ba8] ss:$16 sps:$4 sm:$0xff]   ;;  %v16215_v6 = vld [vmem:[#allocation7 + $0x1ca0] ss:$16 sps:$4 sm:$0xff]  }
 0x6ab   : > { %11360 = vmatmul.mubr.bf16.gmra.mrb[212].mxu1 %v20658_v35  ;;  %v16185_v35 = vld [vmem:[#allocation7 + $0x1c00] ss:$16 sps:$4 sm:$0xff]  }
 0x6ac   : > { %11369 = vmatprep.mubr.bf16.mxu1 %v20659_v36  ;;  %11395 = vmatpush1.bf16.msra.mxu1 %v16158_v61  ;;  %v16206_v36 = vld [vmem:[#allocation7 + $0x1b48] ss:$16 sps:$4 sm:$0xff]   ;;  %v16244_v61 = vld [vmem:[#allocation7 + $0x1c0c] ss:$16 sps:$4 sm:$0xff]  }
 0x6ad   : > { %11186 = vmatpush1.bf16.msra.mxu0 %v16131_v12  ;;  %11396 = vmatprep.subr.bf16.mxu1 %v16166_v60  ;;  %v20668_v12 = vld [vmem:[#allocation28_spill] sm:$0xff]  ;;  %v16221_v60 = vld [vmem:[#allocation7 + $0x1cc0] ss:$16 sps:$4 sm:$0xff]  }
 0x6ae   : > { %11187 = vmatprep.subr.bf16.mxu0 %v16139_v15  ;;  %v16238_v15 = vld [vmem:[#allocation7 + $0x1bec] ss:$16 sps:$4 sm:$0xff]  }
 0x6b0   : > { %11397 = vmatpush1.bf16.msra.mxu1 %v16164_v31  ;;  %v20670_v31 = vld [vmem:[#allocation62_spill] sm:$0xff] }
 0x6b1   : > { %11188 = vmatpush1.bf16.msra.mxu0 %v16137_v46  ;;  %11398 = vmatprep.subr.bf16.mxu1 %v16172_v56  ;;  %v16223_v46 = vld [vmem:[#allocation7 + $0x1cc4] ss:$16 sps:$4 sm:$0xff]   ;;  %v16250_v56 = vld [vmem:[#allocation7 + $0x1c2c] ss:$16 sps:$4 sm:$0xff]  }
 0x6b2   : > { %11189 = vmatprep.subr.bf16.mxu0 %v16145_v18  ;;  %v16236_v18 = vld [vmem:[#allocation7 + $0x1be8] ss:$16 sps:$4 sm:$0xff]  }
 0x6b3   : > { %11370 = vmatmul.mubr.bf16.gmra.mrb[216].mxu1 %v20660_v63  ;;  %v16197_v63 = vld [vmem:[#allocation7 + $0x1c40] ss:$16 sps:$4 sm:$0xff]  }
 0x6b4   : > { %11379 = vmatprep.mubr.bf16.mxu1 %v20661_v38  ;;  %11399 = vmatpush1.bf16.msra.mxu1 %v16170_v2  ;;  %v16218_v38 = vld [vmem:[#allocation7 + $0x1b88] ss:$16 sps:$4 sm:$0xff]   ;;  %v16235_v2 = vld [vmem:[#allocation7 + $0x1d04] ss:$16 sps:$4 sm:$0xff]  }
 0x6b5   : > { %11190 = vmatpush1.bf16.msra.mxu0 %v16143_v53  ;;  %11400 = vmatprep.subr.bf16.mxu1 %v16178_v8  ;;  %v16229_v53 = vld [vmem:[#allocation7 + $0x1ce4] ss:$16 sps:$4 sm:$0xff]   ;;  %v16248_v8 = vld [vmem:[#allocation7 + $0x1c28] ss:$16 sps:$4 sm:$0xff]  }
 0x6b6   : > { %11191 = vmatprep.subr.bf16.mxu0 %v16151_v4  ;;  %v16242_v4 = vld [vmem:[#allocation7 + $0x1c08] ss:$16 sps:$4 sm:$0xff]  }
 0x6b8   : > { %11401 = vmatpush1.bf16.msra.mxu1 %v16176_v49  ;;  %v16241_v49 = vld [vmem:[#allocation7 + $0x1d24] ss:$16 sps:$4 sm:$0xff]  }
 0x6b9   : > { %11192 = vmatpush1.bf16.msra.mxu0 %v16149_v47  ;;  %11402 = vmatprep.subr.bf16.mxu1 %v16184_v28  ;;  %v20671_v47 = vld [vmem:[#allocation66_spill] sm:$0xff] }
 0x6ba   : > { %11193 = vmatprep.subr.bf16.mxu0 %v16157_v3  ;;  %v16227_v3 = vld [vmem:[#allocation7 + $0x1ce0] ss:$16 sps:$4 sm:$0xff]   ;;  %v16254_v28 = vld [vmem:[#allocation7 + $0x1c48] ss:$16 sps:$4 sm:$0xff]  }
 0x6bb   : > { %11380 = vmatmul.mubr.bf16.gmra.mrb[220].mxu1 %v20662_v26  ;;  %v16209_v26 = vld [vmem:[#allocation7 + $0x1c80] ss:$16 sps:$4 sm:$0xff]  }
 0x6bc   : > { %11403 = vmatpush1.bf16.msra.mxu1 %v16182_v40  ;;  %11422 = vmatprep.mubr.bf16.mxu1 %v20663_v11  ;;  %v16230_v11 = vld [vmem:[#allocation7 + $0x1bc8] ss:$16 sps:$4 sm:$0xff]   ;;  %v16247_v40 = vld [vmem:[#allocation7 + $0x1d44] ss:$16 sps:$4 sm:$0xff]  }
 0x6bd   : > { %11194 = vmatpush1.bf16.msra.mxu0 %v16155_v0  ;;  %11404 = vmatprep.subr.bf16.mxu1 %v16190_v59  ;;  %v16256_v0 = vld [vmem:[#allocation7 + $0x1c4c] ss:$16 sps:$4 sm:$0xff]   ;;  %v16260_v59 = vld [vmem:[#allocation7 + $0x1c68] ss:$16 sps:$4 sm:$0xff]  }
 0x6be   : > { %11195 = vmatprep.subr.bf16.mxu0 %v16163_v48  ;;  %v16233_v48 = vld [vmem:[#allocation7 + $0x1d00] ss:$16 sps:$4 sm:$0xff]  }
 0x6c0   : > { %11405 = vmatpush1.bf16.msra.mxu1 %v16188_v42  ;;  %v16253_v42 = vld [vmem:[#allocation7 + $0x1d64] ss:$16 sps:$4 sm:$0xff]  }
 0x6c1   : > { %11196 = vmatpush1.bf16.msra.mxu0 %v16161_v10  ;;  %11406 = vmatprep.subr.bf16.mxu1 %v16196_v50  ;;  %v16262_v10 = vld [vmem:[#allocation7 + $0x1c6c] ss:$16 sps:$4 sm:$0xff]   ;;  %v16266_v50 = vld [vmem:[#allocation7 + $0x1c88] ss:$16 sps:$4 sm:$0xff]  }
 0x6c2   : > { %11197 = vmatprep.subr.bf16.mxu0 %v16169_v58  ;;  %v16239_v58 = vld [vmem:[#allocation7 + $0x1d20] ss:$16 sps:$4 sm:$0xff]  }
 0x6c4   : > { %11407 = vmatpush1.bf16.msra.mxu1 %v16194_v22  ;;  %v16259_v22 = vld [vmem:[#allocation7 + $0x1d84] ss:$16 sps:$4 sm:$0xff]  }
 0x6c5   : > { %11198 = vmatpush1.bf16.msra.mxu0 %v16167_v51  ;;  %11408 = vmatprep.subr.bf16.mxu1 %v16202_v32  ;;  %v16268_v51 = vld [vmem:[#allocation7 + $0x1c8c] ss:$16 sps:$4 sm:$0xff]   ;;  %v16272_v32 = vld [vmem:[#allocation7 + $0x1ca8] ss:$16 sps:$4 sm:$0xff]  }
 0x6c6   : > { %11199 = vmatprep.subr.bf16.mxu0 %v16175_v45  ;;  %v16245_v45 = vld [vmem:[#allocation7 + $0x1d40] ss:$16 sps:$4 sm:$0xff]  }
 0x6c8   : > { %11409 = vmatpush1.bf16.msra.mxu1 %v16200_v52  ;;  %v16265_v52 = vld [vmem:[#allocation7 + $0x1da4] ss:$16 sps:$4 sm:$0xff]  }
 0x6c9   : > { %11200 = vmatpush1.bf16.msra.mxu0 %v16173_v54  ;;  %11410 = vmatprep.subr.bf16.mxu1 %v16208_v5  ;;  %v16274_v54 = vld [vmem:[#allocation7 + $0x1cac] ss:$16 sps:$4 sm:$0xff]   ;;  %v16278_v5 = vld [vmem:[#allocation7 + $0x1cc8] ss:$16 sps:$4 sm:$0xff]  }
 0x6ca   : > { %11201 = vmatprep.subr.bf16.mxu0 %v16181_v41  ;;  %v16251_v41 = vld [vmem:[#allocation7 + $0x1d60] ss:$16 sps:$4 sm:$0xff]  }
 0x6cc   : > { %11411 = vmatpush1.bf16.msra.mxu1 %v16206_v36  ;;  %v16271_v36 = vld [vmem:[#allocation7 + $0x1dc4] ss:$16 sps:$4 sm:$0xff]  }
 0x6cd   : > { %11202 = vmatpush1.bf16.msra.mxu0 %v16179_v17  ;;  %11412 = vmatprep.subr.bf16.mxu1 %v16214_v19  ;;  %v16280_v17 = vld [vmem:[#allocation7 + $0x1ccc] ss:$16 sps:$4 sm:$0xff]  }
 0x6ce   : > { %11244 = vmatprep.subr.bf16.mxu0 %v16187_v7  ;;  %v16257_v7 = vld [vmem:[#allocation7 + $0x1d80] ss:$16 sps:$4 sm:$0xff]   ;;  %v16286_v19 = vld [vmem:[#allocation7 + $0x1d0c] ss:$16 sps:$4 sm:$0xff]  }
 0x6d0   : > { %11204 = vmatmul.mubr.bf16.vlgmr.msra.gmra.mrb[176].mxu0 %v20664_v34  ;;  %11413 = vmatpush1.bf16.msra.mxu1 %v16212_v20  ;;  %v16289_v20 = vld [vmem:[#allocation7 + $0x1d2c] ss:$16 sps:$4 sm:$0xff]  }
 0x6d1   : > { %11213 = vmatprep.mubr.bf16.mxu0 %v20665_v1  ;;  %11245 = vmatpush1.bf16.msra.mxu0 %v16185_v35  ;;  %v16283_v35 = vld [vmem:[#allocation7 + $0x1cec] ss:$16 sps:$4 sm:$0xff]  }
 0x6d2   : > { %11246 = vmatprep.subr.bf16.mxu0 %v16193_v24  ;;  %11414 = vmatprep.subr.bf16.mxu1 %v16220_v25  ;;  %v16263_v24 = vld [vmem:[#allocation7 + $0x1da0] ss:$16 sps:$4 sm:$0xff]  }
 0x6d3   : > { %v16275_v25 = vld [vmem:[#allocation7 + $0x1de0] ss:$16 sps:$4 sm:$0xff]  }
 0x6d4   : > { %11415 = vmatpush1.bf16.msra.mxu1 %v16218_v38  ;;  %v16292_v38 = vld [vmem:[#allocation7 + $0x1d4c] ss:$16 sps:$4 sm:$0xff]  }
 0x6d5   : > { %11247 = vmatpush1.bf16.msra.mxu0 %v16191_v23  ;;  %11416 = vmatprep.subr.bf16.mxu1 %v16226_v44  ;;  %v16277_v23 = vld [vmem:[#allocation7 + $0x1de4] ss:$16 sps:$4 sm:$0xff]  }
 0x6d6   : > { %11248 = vmatprep.subr.bf16.mxu0 %v16199_v29  ;;  %v16284_v29 = vld [vmem:[#allocation7 + $0x1d08] ss:$16 sps:$4 sm:$0xff]  }
 0x6d7   : > { %v16310_v44 = vld [vmem:[%s20399_s6 + $0x48] sm:$0xff]  }
 0x6d8   : > { %11214 = vmatmul.mubr.bf16.gmra.mrb[180].mxu0 %v20666_v30  ;;  %11417 = vmatpush1.bf16.msra.mxu1 %v16224_v14  ;;  %v16293_v14 = vld [vmem:[#allocation7 + $0x1d68] ss:$16 sps:$4 sm:$0xff]  }
 0x6d9   : > { %11223 = vmatprep.mubr.bf16.mxu0 %v20667_v27  ;;  %11249 = vmatpush1.bf16.msra.mxu0 %v16197_v63  ;;  %v16308_v63 = vld [vmem:[%s20399_s6 + $0x40] sm:$0xff]  }
 0x6da   : > { %11250 = vmatprep.subr.bf16.mxu0 %v16205_v9  ;;  %11418 = vmatprep.subr.bf16.mxu1 %v16232_v55  ;;  %v16287_v9 = vld [vmem:[#allocation7 + $0x1d28] ss:$16 sps:$4 sm:$0xff]   ;;  %v16298_v55 = vld [vmem:[#allocation7 + $0x1d8c] ss:$16 sps:$4 sm:$0xff]  }
 0x6dc   : > { %11419 = vmatpush1.bf16.msra.mxu1 %v16230_v11  ;;  %v16301_v11 = vld [vmem:[#allocation7 + $0x1dac] ss:$16 sps:$4 sm:$0xff]  }
 0x6dd   : > { %11251 = vmatpush1.bf16.msra.mxu0 %v16203_v21  ;;  %11420 = vmatprep.subr.bf16.mxu1 %v16238_v15  ;;  %v20672_v21 = vld [vmem:[#allocation65_spill] sm:$0xff] }
 0x6de   : > { %11252 = vmatprep.subr.bf16.mxu0 %v16211_v62  ;;  %v16295_v62 = vld [vmem:[#allocation7 + $0x1d6c] ss:$16 sps:$4 sm:$0xff]  }
 0x6df   : > { %v16304_v15 = vld [vmem:[#allocation7 + $0x1dcc] ss:$16 sps:$4 sm:$0xff]  }
 0x6e0   : > { %11224 = vmatmul.mubr.bf16.gmra.mrb[184].mxu0 %v20668_v12  ;;  %11421 = vmatpush1.bf16.msra.mxu1 %v16236_v18  ;;  %v16311_v18 = vld [vmem:[%s20399_s6 + $0x8] sm:$0xff]  }
 0x6e1   : > { %11233 = vmatprep.mubr.bf16.mxu0 %v20669_v33  ;;  %11253 = vmatpush1.bf16.msra.mxu0 %v16209_v26  ;;  %v16296_v26 = vld [vmem:[#allocation7 + $0x1d88] ss:$16 sps:$4 sm:$0xff]  }
 0x6e2   : > { %11254 = vmatprep.subr.bf16.mxu0 %v16217_v37  ;;  %11463 = vmatprep.subr.bf16.mxu1 %v16244_v61  ;;  %v20673_v37 = vld [vmem:[#allocation67_spill] sm:$0xff]  ;;  %v16312_v61 = vld [vmem:[%s20399_s6 + $0x50] sm:$0xff]  }
 0x6e3   : > { %11423 = vmatmul.mubr.bf16.vlgmr.msra.gmra.mrb[208].mxu1 %v20664_v34  ;;  %v16281_v34 = vld [vmem:[#allocation7 + $0x1ce8] ss:$16 sps:$4 sm:$0xff]  }
 0x6e4   : > { %11432 = vmatprep.mubr.bf16.mxu1 %v20665_v1  ;;  %11464 = vmatpush1.bf16.msra.mxu1 %v16242_v4  ;;  %v16269_v1 = vld [vmem:[#allocation7 + $0x1dc0] ss:$16 sps:$4 sm:$0xff]  }
 0x6e5   : > { %11255 = vmatpush1.bf16.msra.mxu0 %v16215_v6  ;;  %11465 = vmatprep.subr.bf16.mxu1 %v16250_v56  ;;  %v16307_v6 = vld [vmem:[#allocation7 + $0x1dec] ss:$16 sps:$4 sm:$0xff]   ;;  %v16322_v56 = vld [vmem:[%s20399_s6 + $0x78] sm:$0xff]  }
 0x6e6   : > { %11256 = vmatprep.subr.bf16.mxu0 %v16223_v46  ;;  %v16305_v46 = vld [vmem:[#allocation7 + $0x1de8] ss:$16 sps:$4 sm:$0xff]  }
 0x6e7   : > { %v16320_v4 = vld [vmem:[%s20399_s6 + $0x70] sm:$0xff]  }
 0x6e8   : > { %11234 = vmatmul.mubr.bf16.gmra.mrb[188].mxu0 %v20670_v31  ;;  %11466 = vmatpush1.bf16.msra.mxu1 %v16248_v8  ;;  %v20674_v8 = vld [vmem:[#allocation25_spill] sm:$0xff] }
 0x6e9   : > { %11257 = vmatpush1.bf16.msra.mxu0 %v16221_v60  ;;  %11276 = vmatprep.mubr.bf16.mxu0 %v20671_v47  ;;  %v16318_v60 = vld [vmem:[%s20399_s6 + $0x68] sm:$0xff]  }
 0x6ea   : > { %11258 = vmatprep.subr.bf16.mxu0 %v16229_v53  ;;  %11467 = vmatprep.subr.bf16.mxu1 %v16256_v0  ;;  %v16319_v53 = vld [vmem:[%s20399_s6 + $0x28] sm:$0xff]   ;;  %v20675_v0 = vsub.s32 0, %v20674_v8 }
 0x6eb   : > { %11433 = vmatmul.mubr.bf16.gmra.mrb[212].mxu1 %v20666_v30  ;;  %v16309_v30 = vld [vmem:[%s20399_s6] sm:$0xff]  }
 0x6ec   : > { %11442 = vmatprep.mubr.bf16.mxu1 %v20667_v27  ;;  %11468 = vmatpush1.bf16.msra.mxu1 %v16254_v28  ;;  %v16290_v27 = vld [vmem:[#allocation7 + $0x1d48] ss:$16 sps:$4 sm:$0xff]  }
 0x6ed   : > { %11259 = vmatpush1.bf16.msra.mxu0 %v16227_v3  ;;  %11469 = vmatprep.subr.bf16.mxu1 %v16262_v10  ;;  %v16324_v3 = vld [vmem:[%s20399_s6 + $0xc0] sm:$0xff]  }
 0x6ee   : > { %11260 = vmatprep.subr.bf16.mxu0 %v16235_v2  ;;  %v20035_v2 = vld [vmem:[#allocation8] sm:$0xf] }
 0x6f0   : > { %11470 = vmatpush1.bf16.msra.mxu1 %v16260_v59 }
 0x6f1   : > { %11261 = vmatpush1.bf16.msra.mxu0 %v16233_v48  ;;  %11471 = vmatprep.subr.bf16.mxu1 %v16268_v51  ;;  %v20040_v48 = vrot.slane %v20035_v2, %v20675_v0 }
 0x6f2   : > { %11262 = vmatprep.subr.bf16.mxu0 %v16241_v49  ;;  %v20676_v49 = vsub.s32 1, %v20674_v8 }
 0x6f3   : > { %11443 = vmatmul.mubr.bf16.gmra.mrb[216].mxu1 %v20668_v12  ;;  %v16299_v12 = vld [vmem:[#allocation7 + $0x1da8] ss:$16 sps:$4 sm:$0xff]  }
 0x6f4   : > { %11452 = vmatprep.mubr.bf16.mxu1 %v20669_v33  ;;  %11472 = vmatpush1.bf16.msra.mxu1 %v16266_v50  ;;  %v16302_v33 = vld [vmem:[#allocation7 + $0x1dc8] ss:$16 sps:$4 sm:$0xff]   ;;  %v20045_v28 = vrot.slane %v20035_v2, %v20676_v49 }
 0x6f5   : > { %11263 = vmatpush1.bf16.msra.mxu0 %v16239_v58  ;;  %11473 = vmatprep.subr.bf16.mxu1 %v16274_v54 }
 0x6f6   : > { %11264 = vmatprep.subr.bf16.mxu0 %v16247_v40 }
 0x6f8   : > { %11474 = vmatpush1.bf16.msra.mxu1 %v16272_v32 }
 0x6f9   : > { %11265 = vmatpush1.bf16.msra.mxu0 %v16245_v45  ;;  %11475 = vmatprep.subr.bf16.mxu1 %v16280_v17 }
 0x6fa   : > { %11266 = vmatprep.subr.bf16.mxu0 %v16253_v42 }
 0x6fb   : > { %11453 = vmatmul.mubr.bf16.gmra.mrb[220].mxu1 %v20670_v31  ;;  %v16321_v31 = vld [vmem:[%s20399_s6 + $0x30] sm:$0xff]  }
 0x6fc   : > { %11476 = vmatpush1.bf16.msra.mxu1 %v16278_v5  ;;  %11495 = vmatprep.mubr.bf16.mxu1 %v20671_v47  ;;  %v16323_v47 = vld [vmem:[%s20399_s6 + $0x38] sm:$0xff]  }
 0x6fd   : > { %11267 = vmatpush1.bf16.msra.mxu0 %v16251_v41  ;;  %11477 = vmatprep.subr.bf16.mxu1 %v16283_v35 }
 0x6fe   : > { %11268 = vmatprep.subr.bf16.mxu0 %v16259_v22 }
 0x700   : > { %11478 = vmatpush1.bf16.msra.mxu1 %v16281_v34 }
 0x701   : > { %11269 = vmatpush1.bf16.msra.mxu0 %v16257_v7  ;;  %11479 = vmatprep.subr.bf16.mxu1 %v16286_v19 }
 0x702   : > { %11270 = vmatprep.subr.bf16.mxu0 %v16265_v52 }
 0x704   : > { %11480 = vmatpush1.bf16.msra.mxu1 %v16284_v29 }
 0x705   : > { %11271 = vmatpush1.bf16.msra.mxu0 %v16263_v24  ;;  %11481 = vmatprep.subr.bf16.mxu1 %v16289_v20 }
 0x706   : > { %11272 = vmatprep.subr.bf16.mxu0 %v16271_v36 }
 0x708   : > { %11482 = vmatpush1.bf16.msra.mxu1 %v16287_v9 }
 0x709   : > { %11273 = vmatpush1.bf16.msra.mxu0 %v16269_v1  ;;  %11483 = vmatprep.subr.bf16.mxu1 %v16292_v38 }
 0x70a   : > { %11274 = vmatprep.subr.bf16.mxu0 %v16277_v23 }
 0x70c   : > { %11484 = vmatpush1.bf16.msra.mxu1 %v16290_v27 }
 0x70d   : > { %11275 = vmatpush1.bf16.msra.mxu0 %v16275_v25  ;;  %11485 = vmatprep.subr.bf16.mxu1 %v16295_v62 }
 0x70e   : > { %13955 = vmatprep.subr.bf16.mxu0 %v16308_v63 }
 0x710   : > { %11277 = vmatmul.mubr.bf16.vlgmr.msra.gmra.mrb[176].mxu0 %v20672_v21  ;;  %11486 = vmatpush1.bf16.msra.mxu1 %v16293_v14 }
 0x711   : > { %11286 = vmatprep.mubr.bf16.mxu0 %v19790_v43  ;;  %13956 = vmatpush3.bf16.msra.mxu0 %v16309_v30 }
 0x712   : > { %13957 = vmatprep.subr.bf16.mxu0 %v16310_v44  ;;  %11487 = vmatprep.subr.bf16.mxu1 %v16298_v55 }
 0x714   : > { %11488 = vmatpush1.bf16.msra.mxu1 %v16296_v26 }
 0x715   : > { %11489 = vmatprep.subr.bf16.mxu1 %v16301_v11  ;;  %13958 = vmatpush3.bf16.msra.mxu0 %v16311_v18 }
 0x716   : > { %13959 = vmatprep.subr.bf16.mxu0 %v16312_v61 }
 0x718   : > { %11287 = vmatmul.mubr.bf16.gmra.mrb[180].mxu0 %v20673_v37  ;;  %11490 = vmatpush1.bf16.msra.mxu1 %v16299_v12 }
 0x719   : > { %11296 = vmatprep.mubr.bf16.mxu0 %v19798_v39  ;;  %11491 = vmatprep.subr.bf16.mxu1 %v16304_v15 }
 0x71c   : > { %11492 = vmatpush1.bf16.msra.mxu1 %v16302_v33 }
 0x71d   : > { %11493 = vmatprep.subr.bf16.mxu1 %v16307_v6 }
 0x720   : > { %11297 = vmatmul.mubr.bf16.gmra.mrb[184].mxu0 %v19796_v13  ;;  %11494 = vmatpush1.bf16.msra.mxu1 %v16305_v46 }
 0x721   : > { %11306 = vmatprep.mubr.bf16.mxu0 %v19804_v16 }
 0x723   : > { %11496 = vmatmul.mubr.bf16.vlgmr.msra.gmra.mrb[208].mxu1 %v20672_v21 }
 0x724   : > { %11505 = vmatprep.mubr.bf16.mxu1 %v19790_v43  ;;  %v16313_v43 = vld [vmem:[%s20399_s6 + $0x10] sm:$0xff]  }
 0x725   : > { %13960 = vmatpush3.bf16.msra.mxu0 %v16313_v43 }
 0x728   : > { %11307 = vmatmul.mubr.bf16.gmra.mrb[188].mxu0 %v19802_v57 }
 0x72b   : > { %11506 = vmatmul.mubr.bf16.gmra.mrb[212].mxu1 %v20673_v37 }
 0x72c   : > { %11515 = vmatprep.mubr.bf16.mxu1 %v19798_v39  ;;  %v16315_v39 = vld [vmem:[%s20399_s6 + $0x18] sm:$0xff]  }
 0x733   : > { %11516 = vmatmul.mubr.bf16.gmra.mrb[216].mxu1 %v19796_v13  ;;  %v16314_v13 = vld [vmem:[%s20399_s6 + $0x58] sm:$0xff]  }
 0x734   : > { %11525 = vmatprep.mubr.bf16.mxu1 %v19804_v16  ;;  %13961 = vmatprep.subr.bf16.mxu0 %v16314_v13  ;;  %v16317_v16 = vld [vmem:[%s20399_s6 + $0x20] sm:$0xff]  }
 0x735   : > { %13962 = vmatpush3.bf16.msra.mxu0 %v16315_v39 }
 0x73b   : > { %11526 = vmatmul.mubr.bf16.gmra.mrb[220].mxu1 %v19802_v57  ;;  %v16316_v57 = vld [vmem:[%s20399_s6 + $0x60] sm:$0xff]  }
 0x73c   : > { %13963 = vmatprep.subr.bf16.mxu0 %v16316_v57 }
 0x73d   : > { %13964 = vmatpush3.bf16.msra.mxu0 %v16317_v16 }
 0x73e   : > { %13965 = vmatprep.subr.bf16.mxu0 %v16318_v60 }
 0x741   : > { %13966 = vmatpush3.bf16.msra.mxu0 %v16319_v53 }
 0x742   : > { %13967 = vmatprep.subr.bf16.mxu0 %v16320_v4 }
 0x745   : > { %13968 = vmatpush3.bf16.msra.mxu0 %v16321_v31 }
 0x746   : > { %13969 = vmatprep.subr.bf16.mxu0 %v16322_v56 }
 0x749   : > { %13970 = vmatpush3.bf16.msra.mxu0 %v16323_v47 }
 0x74a   : > { %13995 = vmatprep.subr.bf16.mxu0 %v16324_v3 }
 0x7e3   : > { %v11278_v10 = vpop.f32.mrb[176].mxu0 }
 0x7e4   : > { %v11590_v58 = vadd.f32 %v20040_v48, %v11278_v10  ;;  %v11280_v40 = vpop.f32.mrb[177].mxu0 }
 0x7e5   : > { %v20049_v59 = vadd.f32 %v20045_v28, %v11280_v40  ;;  %v11282_v51 = vpop.f32.mrb[178].mxu0  ;;  %v16325_v40 = vld [vmem:[%s20399_s6 + $0x80] sm:$0xff]  }
 0x7e6   : > { %v11654_v45 = vmin.f32 %v11590_v58, 0.0  ;;  %v11594_v42 = vadd.f32 %v20040_v48, %v11282_v51  ;;  %v11284_v50 = vpop.f32.mrb[179].mxu0  ;;  %vm11622_vm8 = vcmp.gt.f32.partialorder %v11590_v58, 0.0 }
 0x7e7   : > { %v11655_v54 = vmin.f32 %v20049_v59, 0.0  ;;  %v20054_v41 = vadd.f32 %v20045_v28, %v11284_v50  ;;  %vm11623_vm9 = vcmp.gt.f32.partialorder %v20049_v59, 0.0  ;;  %v20677_v50 = vsub.s32 2, %v20674_v8 }
 0x7e8   : > { %v11686_v22 = vmul.f32 1.442695, %v11654_v45  ;;  %v11658_v32 = vmin.f32 %v11594_v42, 0.0  ;;  %vm11626_vm10 = vcmp.gt.f32.partialorder %v11594_v42, 0.0 }
 0x7e9   : > { %v11688_v17 = vmul.f32 1.442695, %v11655_v54  ;;  %v11659_v7 = vmin.f32 %v20054_v41, 0.0  ;;  %vm11627_vm11 = vcmp.gt.f32.partialorder %v20054_v41, 0.0  ;;  %v20108_v54 = vrot.slane %v20035_v2, %v20677_v50 }
 0x7ea   : > { %16628 = vpow2.f32 %v11686_v22  ;;  %v11694_v52 = vmul.f32 1.442695, %v11658_v32 }
 0x7eb   : > { %16630 = vpow2.f32 %v11688_v17  ;;  %v11696_v5 = vmul.f32 1.442695, %v11659_v7  ;;  %v11288_v35 = vpop.f32.mrb[180].mxu0 }
 0x7ec   : > { %16632 = vpow2.f32 %v11694_v52  ;;  %v20058_v24 = vadd.f32 %v20040_v48, %v11288_v35  ;;  %v11290_v36 = vpop.f32.mrb[181].mxu0  ;;  %v20678_v52 = vsub.s32 3, %v20674_v8 }
 0x7ed   : > { %16634 = vpow2.f32 %v11696_v5  ;;  %v20061_v34 = vadd.f32 %v20045_v28, %v11290_v36  ;;  %v11292_v19 = vpop.f32.mrb[182].mxu0 }
 0x7ee   : > { %v11662_v1 = vmin.f32 %v20058_v24, 0.0  ;;  %v20065_v23 = vadd.f32 %v20040_v48, %v11292_v19  ;;  %v11294_v29 = vpop.f32.mrb[183].mxu0  ;;  %vm11630_vm12 = vcmp.gt.f32.partialorder %v20058_v24, 0.0  ;;  %v20117_v5 = vrot.slane %v20035_v2, %v20678_v52  ;;  %v16327_v2 = vld [vmem:[%s20399_s6 + $0x88] sm:$0xff]  }
 0x7ef   : > { %v11663_v20 = vmin.f32 %v20061_v34, 0.0  ;;  %v20069_v25 = vadd.f32 %v20045_v28, %v11294_v29  ;;  %vm11631_vm13 = vcmp.gt.f32.partialorder %v20061_v34, 0.0 }
 0x7f0   : > { %v11702_v63 = vmul.f32 1.442695, %v11662_v1  ;;  %v11666_v9 = vmin.f32 %v20065_v23, 0.0  ;;  %vm11634_vm14 = vcmp.gt.f32.partialorder %v20065_v23, 0.0 }
 0x7f1   : > { %v11704_v38 = vmul.f32 1.442695, %v11663_v20  ;;  %v11667_v30 = vmin.f32 %v20069_v25, 0.0  ;;  %vm11635_vm15 = vcmp.gt.f32.partialorder %v20069_v25, 0.0 }
 0x7f2   : > { %16636 = vpow2.f32 %v11702_v63  ;;  %v11710_v44 = vmul.f32 1.442695, %v11666_v9 }
 0x7f3   : > { %16638 = vpow2.f32 %v11704_v38  ;;  %v11712_v27 = vmul.f32 1.442695, %v11667_v30  ;;  %v11298_v21 = vpop.f32.mrb[184].mxu0 }
 0x7f4   : > { %v16629_v62 = vpop.eup %16628  ;;  %16640 = vpow2.f32 %v11710_v44  ;;  %v20074_v14 = vadd.f32 %v20040_v48, %v11298_v21  ;;  %v11300_v55 = vpop.f32.mrb[185].mxu0 }
 0x7f5   : > { %v16631_v26 = vpop.eup %16630  ;;  %v13883_v37 = vadd.f32 -1.0, %v16629_v62  ;;  %16642 = vpow2.f32 %v11712_v27  ;;  %v20077_v11 = vadd.f32 %v20045_v28, %v11300_v55  ;;  %v11302_v12 = vpop.f32.mrb[186].mxu0 }
 0x7f6   : > { %v16633_v15 = vpop.eup %16632  ;;  %v13884_v33 = vadd.f32 -1.0, %v16631_v26  ;;  %v11670_v6 = vmin.f32 %v20074_v14, 0.0  ;;  %v20082_v46 = vadd.f32 %v20040_v48, %v11302_v12  ;;  %v11304_v18 = vpop.f32.mrb[187].mxu0  ;;  %vm11638_vm0 = vcmp.gt.f32.partialorder %v20074_v14, 0.0 }
 0x7f7   : > { %v16635_v61 = vpop.eup %16634  ;;  %v13887_v43 = vadd.f32 -1.0, %v16633_v15  ;;  %v11671_v13 = vmin.f32 %v20077_v11, 0.0  ;;  %v11782_v39 = vsel %vm11622_vm8, %v11590_v58, %v13883_v37  ;;  %v20089_v31 = vadd.f32 %v20045_v28, %v11304_v18  ;;  %v11497_v7 = vpop.f32.mrb[208].mxu1 }
 0x7f8   : > { %v13888_v57 = vadd.f32 -1.0, %v16635_v61  ;;  %v11718_v16 = vmul.f32 1.442695, %v11670_v6  ;;  %v11674_v60 = vmin.f32 %v20082_v46, 0.0  ;;  %v11783_v56 = vsel %vm11623_vm9, %v20049_v59, %v13884_v33  ;;  %v11499_v20 = vpop.f32.mrb[209].mxu1 }
 0x7f9   : > { %v11786_v53 = vsel %vm11626_vm10, %v11594_v42, %v13887_v43  ;;  %v11720_v4 = vmul.f32 1.442695, %v11671_v13  ;;  %v11675_v49 = vmin.f32 %v20089_v31, 0.0  ;;  %v16326_v42 = vld [vmem:[%s20399_s6 + $0xc8] sm:$0xff]   ;;  %v11501_v30 = vpop.f32.mrb[210].mxu1  ;;  %v16330_v13 = vld [vmem:[%s20399_s6 + $0xd8] sm:$0xff]  }
 0x7fa   : > { %v11814_v47 = vpack.c.bf16 %v11786_v53, %v11782_v39  ;;  %16644 = vpow2.f32 %v11718_v16  ;;  %v11726_v3 = vmul.f32 1.442695, %v11674_v60  ;;  %v11787_v0 = vsel %vm11627_vm11, %v20054_v41, %v13888_v57  ;;  %v11503_v62 = vpop.f32.mrb[211].mxu1 }
 0x7fb   : > { %16646 = vpow2.f32 %v11720_v4  ;;  %v11308_v10 = vpop.f32.mrb[188].mxu0  ;;  %v11815_v58 = vpack.c.bf16 %v11787_v0, %v11783_v56  ;;  %v11728_v22 = vmul.f32 1.442695, %v11675_v49  ;;  %v20159_v16 = vadd.f32 %v20108_v54, %v11501_v30 }
 0x7fc   : > { %v16637_v51 = vpop.eup %16636  ;;  %16648 = vpow2.f32 %v11726_v3  ;;  %v20100_v45 = vadd.f32 %v20040_v48, %v11308_v10  ;;  %v11310_v59 = vpop.f32.mrb[189].mxu0  ;;  %v20162_v60 = vadd.f32 %v20117_v5, %v11503_v62  ;;  %vm11639_vm1 = vcmp.gt.f32.partialorder %v20077_v11, 0.0  ;;  %v16331_v10 = vld [vmem:[%s20399_s6 + $0x98] sm:$0xff]   ;;  %v16335_v62 = vld [vmem:[%s20399_s6 + $0xa8] sm:$0xff]  }
 0x7fd   : > { %v16639_v41 = vpop.eup %16638  ;;  %v20112_v32 = vadd.f32 %v20045_v28, %v11310_v59  ;;  %v11312_v17 = vpop.f32.mrb[190].mxu0  ;;  %12118 = vmatprep.mubr.bf16.mxu0 %v11815_v58  ;;  %v13891_v9 = vadd.f32 -1.0, %v16637_v51  ;;  %16650 = vpow2.f32 %v11728_v22  ;;  %vm11642_vm2 = vcmp.gt.f32.partialorder %v20082_v46, 0.0 }
 0x7fe   : > { %v16641_v35 = vpop.eup %16640  ;;  %v13892_v36 = vadd.f32 -1.0, %v16639_v41  ;;  %v11678_v19 = vmin.f32 %v20100_v45, 0.0  ;;  %v20122_v1 = vadd.f32 %v20040_v48, %v11312_v17  ;;  %v11314_v29 = vpop.f32.mrb[191].mxu0  ;;  %12119 = vmatmul.mubr.bf16.vlgmr.msra.gmra.mrb[192].mxu0 %v11814_v47  ;;  %v16328_v48 = vld [vmem:[%s20399_s6 + $0xd0] sm:$0xff]   ;;  %vm11643_vm3 = vcmp.gt.f32.partialorder %v20089_v31, 0.0 }
 0x7ff   : > { %v16643_v63 = vpop.eup %16642  ;;  %v13895_v38 = vadd.f32 -1.0, %v16641_v35  ;;  %v11679_v8 = vmin.f32 %v20112_v32, 0.0  ;;  %13996 = vmatpush3.bf16.msra.mxu0 %v16325_v40  ;;  %v20135_v26 = vadd.f32 %v20045_v28, %v11314_v29  ;;  %v11790_v61 = vsel %vm11630_vm12, %v20058_v24, %v13891_v9  ;;  %v16329_v28 = vld [vmem:[%s20399_s6 + $0x90] sm:$0xff]   ;;  %v11507_v53 = vpop.f32.mrb[212].mxu1  ;;  %v16332_v40 = vld [vmem:[%s20399_s6 + $0xe0] sm:$0xff]  }
 0x800   : > { %v13896_v44 = vadd.f32 -1.0, %v16643_v63  ;;  %v11734_v27 = vmul.f32 1.442695, %v11678_v19  ;;  %v11682_v21 = vmin.f32 %v20122_v1, 0.0  ;;  %13997 = vmatprep.subr.bf16.mxu0 %v16326_v42  ;;  %v11791_v37 = vsel %vm11631_vm13, %v20061_v34, %v13892_v36  ;;  %v11509_v3 = vpop.f32.mrb[213].mxu1 }
 0x801   : > { %v11736_v55 = vmul.f32 1.442695, %v11679_v8  ;;  %v11794_v33 = vsel %vm11634_vm14, %v20065_v23, %v13895_v38  ;;  %v11683_v6 = vmin.f32 %v20135_v26, 0.0  ;;  %v20153_v23 = vadd.f32 %v20117_v5, %v11499_v20  ;;  %v11511_v58 = vpop.f32.mrb[214].mxu1  ;;  %v16334_v8 = vld [vmem:[%s20399_s6 + $0xe8] sm:$0xff]  }
 0x802   : > { %16652 = vpow2.f32 %v11734_v27  ;;  %v11742_v12 = vmul.f32 1.442695, %v11682_v21  ;;  %v11795_v15 = vsel %vm11635_vm15, %v20069_v25, %v13896_v44  ;;  %v11818_v43 = vpack.c.bf16 %v11794_v33, %v11790_v61  ;;  %v11513_v50 = vpop.f32.mrb[215].mxu1 }
 0x803   : > { %16654 = vpow2.f32 %v11736_v55  ;;  %v11819_v18 = vpack.c.bf16 %v11795_v15, %v11791_v37  ;;  %13998 = vmatpush3.bf16.msra.mxu0 %v16327_v2  ;;  %v20150_v25 = vadd.f32 %v20108_v54, %v11497_v7  ;;  %v11744_v57 = vmul.f32 1.442695, %v11683_v6  ;;  %v16336_v6 = vld [vmem:[%s20399_s6 + $0xf0] sm:$0xff]  }
 0x804   : > { %v16645_v34 = vpop.eup %16644  ;;  %16656 = vpow2.f32 %v11742_v12  ;;  %13999 = vmatprep.subr.bf16.mxu0 %v16328_v48  ;;  %v11657_v49 = vmin.f32 %v20153_v23, 0.0  ;;  %v11660_v59 = vmin.f32 %v20159_v16, 0.0  ;;  %v11661_v42 = vmin.f32 %v20162_v60, 0.0 }
 0x805   : > { %v16647_v24 = vpop.eup %16646  ;;  %v13899_v39 = vadd.f32 -1.0, %v16645_v34  ;;  %12126 = vmatprep.mubr.bf16.mxu0 %v11819_v18  ;;  %v11656_v47 = vmin.f32 %v20150_v25, 0.0  ;;  %16658 = vpow2.f32 %v11744_v57  ;;  %v20188_v20 = vadd.f32 %v20108_v54, %v11507_v53 }
 0x806   : > { %v16649_v4 = vpop.eup %16648  ;;  %v13900_v56 = vadd.f32 -1.0, %v16647_v24  ;;  %12127 = vmatmul.mubr.bf16.gmra.mrb[196].mxu0 %v11818_v43  ;;  %v11692_v22 = vmul.f32 1.442695, %v11657_v49  ;;  %v11698_v36 = vmul.f32 1.442695, %v11660_v59  ;;  %v20200_v9 = vadd.f32 %v20108_v54, %v11511_v58  ;;  %v11517_v44 = vpop.f32.mrb[216].mxu1 }
 0x807   : > { %v13903_v0 = vadd.f32 -1.0, %v16649_v4  ;;  %14000 = vmatpush3.bf16.msra.mxu0 %v16329_v28  ;;  %v11690_v51 = vmul.f32 1.442695, %v11656_v47  ;;  %v16651_v41 = vpop.eup %16650  ;;  %v11798_v7 = vsel %vm11638_vm0, %v20074_v14, %v13899_v39  ;;  %v11700_v19 = vmul.f32 1.442695, %v11661_v42  ;;  %v16333_v14 = vld [vmem:[%s20399_s6 + $0xa0] sm:$0xff]  }
 0x808   : > { %14001 = vmatprep.subr.bf16.mxu0 %v16330_v13  ;;  %v11799_v17 = vsel %vm11639_vm1, %v20077_v11, %v13900_v56  ;;  %v13904_v35 = vadd.f32 -1.0, %v16651_v41  ;;  %v20191_v11 = vadd.f32 %v20117_v5, %v11509_v3  ;;  %v20203_v38 = vadd.f32 %v20117_v5, %v11513_v50  ;;  %v11519_v55 = vpop.f32.mrb[217].mxu1  ;;  %v16338_v58 = vld [vmem:[%s20399_s6 + $0xf8] sm:$0xff]  }
 0x809   : > { %v11802_v52 = vsel %vm11642_vm2, %v20082_v46, %v13903_v0  ;;  %16660 = vpow2.f32 %v11690_v51  ;;  %vm11646_vm5 = vcmp.gt.f32.partialorder %v20100_v45, 0.0  ;;  %vm11647_vm6 = vcmp.gt.f32.partialorder %v20112_v32, 0.0  ;;  %v11521_v33 = vpop.f32.mrb[218].mxu1 }
 0x80a   : > { %16662 = vpow2.f32 %v11692_v22  ;;  %v11822_v29 = vpack.c.bf16 %v11802_v52, %v11798_v7  ;;  %v11803_v46 = vsel %vm11643_vm3, %v20089_v31, %v13904_v35  ;;  %vm11650_vm7 = vcmp.gt.f32.partialorder %v20122_v1, 0.0  ;;  %v11523_v34 = vpop.f32.mrb[219].mxu1 }
 0x80b   : > { %14002 = vmatpush3.bf16.msra.mxu0 %v16331_v10  ;;  %16664 = vpow2.f32 %v11698_v36  ;;  %v11823_v48 = vpack.c.bf16 %v11803_v46, %v11799_v17  ;;  %v11664_v31 = vmin.f32 %v20188_v20, 0.0  ;;  %v11665_v21 = vmin.f32 %v20191_v11, 0.0  ;;  %v16339_v36 = vld [vmem:[%s20399_s6 + $0xb8] sm:$0xff]  }
 0x80c   : > { %v16653_v63 = vpop.eup %16652  ;;  %14003 = vmatprep.subr.bf16.mxu0 %v16332_v40  ;;  %16666 = vpow2.f32 %v11700_v19  ;;  %vm11651_vm8 = vcmp.gt.f32.partialorder %v20135_v26, 0.0  ;;  %v11668_v15 = vmin.f32 %v20200_v9, 0.0  ;;  %v11669_v28 = vmin.f32 %v20203_v38, 0.0 }
 0x80d   : > { %v16655_v2 = vpop.eup %16654  ;;  %v13907_v30 = vadd.f32 -1.0, %v16653_v63  ;;  %12134 = vmatprep.mubr.bf16.mxu0 %v11823_v48  ;;  %v11706_v18 = vmul.f32 1.442695, %v11664_v31  ;;  %v11708_v61 = vmul.f32 1.442695, %v11665_v21  ;;  %v20229_v57 = vadd.f32 %v20108_v54, %v11517_v44 }
 0x80e   : > { %v16657_v27 = vpop.eup %16656  ;;  %v13908_v37 = vadd.f32 -1.0, %v16655_v2  ;;  %12135 = vmatmul.mubr.bf16.gmra.mrb[200].mxu0 %v11822_v29  ;;  %v11714_v13 = vmul.f32 1.442695, %v11668_v15  ;;  %v11716_v4 = vmul.f32 1.442695, %v11669_v28  ;;  %v20245_v10 = vadd.f32 %v20108_v54, %v11521_v33  ;;  %v11527_v50 = vpop.f32.mrb[220].mxu1 }
 0x80f   : > { %v13911_v12 = vadd.f32 -1.0, %v16657_v27  ;;  %14004 = vmatpush3.bf16.msra.mxu0 %v16333_v14  ;;  %v16659_v43 = vpop.eup %16658  ;;  %v11806_v24 = vsel %vm11646_vm5, %v20100_v45, %v13907_v30  ;;  %16668 = vpow2.f32 %v11706_v18  ;;  %v11672_v3 = vmin.f32 %v20229_v57, 0.0  ;;  %v11529_v22 = vpop.f32.mrb[221].mxu1 }
 0x810   : > { %14005 = vmatprep.subr.bf16.mxu0 %v16334_v8  ;;  %v13912_v53 = vadd.f32 -1.0, %v16659_v43  ;;  %16670 = vpow2.f32 %v11708_v61  ;;  %v11807_v47 = vsel %vm11647_vm6, %v20112_v32, %v13908_v37  ;;  %v20236_v45 = vadd.f32 %v20117_v5, %v11519_v55  ;;  %v11531_v19 = vpop.f32.mrb[222].mxu1 }
 0x811   : > { %v11810_v39 = vsel %vm11650_vm7, %v20122_v1, %v13911_v12  ;;  %v16337_v1 = vld [vmem:[%s20399_s6 + $0xb0] sm:$0xff]   ;;  %16672 = vpow2.f32 %v11714_v13  ;;  %v20248_v32 = vadd.f32 %v20117_v5, %v11523_v34  ;;  %v11722_v42 = vmul.f32 1.442695, %v11672_v3  ;;  %v11533_v8 = vpop.f32.mrb[223].mxu1 }
 0x812   : > { %v11826_v56 = vpack.c.bf16 %v11810_v39, %v11806_v24  ;;  %v11811_v49 = vsel %vm11651_vm8, %v20135_v26, %v13912_v53  ;;  %16674 = vpow2.f32 %v11716_v4  ;;  %vm11624_vm9 = vcmp.gt.f32.partialorder %v20150_v25, 0.0 }
 0x813   : > { %14006 = vmatpush3.bf16.msra.mxu0 %v16335_v62  ;;  %v16661_v0 = vpop.eup %16660  ;;  %v11827_v59 = vpack.c.bf16 %v11811_v49, %v11807_v47  ;;  %vm11628_vm10 = vcmp.gt.f32.partialorder %v20159_v16, 0.0  ;;  %v11673_v26 = vmin.f32 %v20236_v45, 0.0  ;;  %16676 = vpow2.f32 %v11722_v42 }
 0x814   : > { %14007 = vmatprep.subr.bf16.mxu0 %v16336_v6  ;;  %v16663_v40 = vpop.eup %16662  ;;  %v13885_v51 = vadd.f32 -1.0, %v16661_v0  ;;  %v11676_v35 = vmin.f32 %v20245_v10, 0.0  ;;  %v11677_v46 = vmin.f32 %v20248_v32, 0.0  ;;  %v20266_v48 = vadd.f32 %v20108_v54, %v11527_v50 }
 0x815   : > { %v16665_v41 = vpop.eup %16664  ;;  %v13886_v7 = vadd.f32 -1.0, %v16663_v40  ;;  %12142 = vmatprep.mubr.bf16.mxu0 %v11827_v59  ;;  %v11724_v63 = vmul.f32 1.442695, %v11673_v26  ;;  %v20269_v44 = vadd.f32 %v20117_v5, %v11529_v22  ;;  %v20272_v31 = vadd.f32 %v20108_v54, %v11531_v19 }
 0x816   : > { %v16667_v17 = vpop.eup %16666  ;;  %v13889_v52 = vadd.f32 -1.0, %v16665_v41  ;;  %v11784_v29 = vsel %vm11624_vm9, %v20150_v25, %v13885_v51  ;;  %12143 = vmatmul.mubr.bf16.gmra.mrb[204].mxu0 %v11826_v56  ;;  %v11730_v30 = vmul.f32 1.442695, %v11676_v35  ;;  %v11732_v25 = vmul.f32 1.442695, %v11677_v46 }
 0x817   : > { %14008 = vmatpush3.bf16.msra.mxu0 %v16337_v1  ;;  %v13890_v14 = vadd.f32 -1.0, %v16667_v17  ;;  %16678 = vpow2.f32 %v11724_v63  ;;  %vm11625_vm11 = vcmp.gt.f32.partialorder %v20153_v23, 0.0  ;;  %vm11629_vm12 = vcmp.gt.f32.partialorder %v20162_v60, 0.0 }
 0x818   : > { %14009 = vmatprep.subr.bf16.mxu0 %v16338_v58  ;;  %v11788_v2 = vsel %vm11628_vm10, %v20159_v16, %v13889_v52  ;;  %16680 = vpow2.f32 %v11730_v30  ;;  %v11680_v16 = vmin.f32 %v20266_v48, 0.0  ;;  %vm11632_vm13 = vcmp.gt.f32.partialorder %v20188_v20, 0.0  ;;  %v12308_v30 = vld [vmem:[%s20402_s9 + $0x10] sm:$0xff] }
 0x819   : > { %v11816_v27 = vpack.c.bf16 %v11788_v2, %v11784_v29  ;;  %v16669_v21 = vpop.eup %16668  ;;  %16682 = vpow2.f32 %v11732_v25  ;;  %v11681_v62 = vmin.f32 %v20269_v44, 0.0  ;;  %v11684_v55 = vmin.f32 %v20272_v31, 0.0  ;;  %v12307_v2 = vld [vmem:[%s20402_s9 + $0x8] sm:$0xff]  ;;  %v12310_v25 = vld [vmem:[%s20402_s9 + $0x20] sm:$0xff] }
 0x81a   : > { %v16671_v37 = vpop.eup %16670  ;;  %v13893_v12 = vadd.f32 -1.0, %v16669_v21  ;;  %v11738_v54 = vmul.f32 1.442695, %v11680_v16  ;;  %v11785_v15 = vsel %vm11625_vm11, %v20153_v23, %v13886_v7  ;;  %v11789_v33 = vsel %vm11629_vm12, %v20162_v60, %v13890_v14  ;;  %v12312_v21 = vld [vmem:[%s20402_s9 + $0x30] sm:$0xff] }
 0x81b   : > { %14010 = vmatpush3.bf16.msra.mxu0 %v16339_v36  ;;  %v16673_v6 = vpop.eup %16672  ;;  %v13894_v18 = vadd.f32 -1.0, %v16671_v37  ;;  %v11740_v61 = vmul.f32 1.442695, %v11681_v62  ;;  %v11746_v28 = vmul.f32 1.442695, %v11684_v55  ;;  %v11817_v34 = vpack.c.bf16 %v11789_v33, %v11785_v15  ;;  %v12313_v62 = vld [vmem:[%s20402_s9 + $0x38] sm:$0xff] }
 0x81c   : > { %v16675_v43 = vpop.eup %16674  ;;  %vm11633_vm14 = vcmp.gt.f32.partialorder %v20191_v11, 0.0  ;;  %v13897_v13 = vadd.f32 -1.0, %v16673_v6  ;;  %16684 = vpow2.f32 %v11738_v54  ;;  %v11621_v24 = vadd.f32 %v20117_v5, %v11533_v8  ;;  %v12306_v8 = vld [vmem:[%s20402_s9] sm:$0xff] }
 0x81d   : > { %vm11636_vm15 = vcmp.gt.f32.partialorder %v20200_v9, 0.0  ;;  %vm11637_vm0 = vcmp.gt.f32.partialorder %v20203_v38, 0.0  ;;  %v13898_v39 = vadd.f32 -1.0, %v16675_v43  ;;  %16686 = vpow2.f32 %v11740_v61  ;;  %12183 = vmatprep.mubr.bf16.mxu0 %v11817_v34  ;;  %v16677_v23 = vpop.eup %16676  ;;  %v12314_v37 = vld [vmem:[%s20402_s9 + $0x40] sm:$0xff] }
 0x81e   : > { %16688 = vpow2.f32 %v11746_v28  ;;  %v11685_v60 = vmin.f32 %v11621_v24, 0.0  ;;  %12184 = vmatmul.mubr.bf16.vlgmr.msra.gmra.mrb[208].mxu0 %v11816_v27  ;;  %v11792_v53 = vsel %vm11632_vm13, %v20188_v20, %v13893_v12  ;;  %v11796_v4 = vsel %vm11636_vm15, %v20200_v9, %v13897_v13  ;;  %v12315_v12 = vld [vmem:[%s20402_s9 + $0x48] sm:$0xff] }
 0x81f   : > { %v11793_v56 = vsel %vm11633_vm14, %v20191_v11, %v13894_v18  ;;  %v11797_v5 = vsel %vm11637_vm0, %v20203_v38, %v13898_v39  ;;  %v11820_v47 = vpack.c.bf16 %v11796_v4, %v11792_v53  ;;  %v13901_v49 = vadd.f32 -1.0, %v16677_v23 }
 0x820   : > { %v11748_v3 = vmul.f32 1.442695, %v11685_v60  ;;  %v11821_v1 = vpack.c.bf16 %v11797_v5, %v11793_v56  ;;  %vm11640_vm1 = vcmp.gt.f32.partialorder %v20229_v57, 0.0  ;;  %vm11644_vm2 = vcmp.gt.f32.partialorder %v20245_v10, 0.0 }
 0x821   : > { %v16679_v0 = vpop.eup %16678  ;;  %vm11641_vm3 = vcmp.gt.f32.partialorder %v20236_v45, 0.0  ;;  %vm11645_vm5 = vcmp.gt.f32.partialorder %v20248_v32, 0.0  ;;  %v11800_v11 = vsel %vm11640_vm1, %v20229_v57, %v13901_v49  ;;  %vm11648_vm6 = vcmp.gt.f32.partialorder %v20266_v48, 0.0 }
 0x822   : > { %v16681_v58 = vpop.eup %16680  ;;  %v13902_v40 = vadd.f32 -1.0, %v16679_v0  ;;  %16690 = vpow2.f32 %v11748_v3  ;;  %12191 = vmatprep.mubr.bf16.mxu0 %v11821_v1  ;;  %vm11652_vm7 = vcmp.gt.f32.partialorder %v20272_v31, 0.0  ;;  %vm11649_vm8 = vcmp.gt.f32.partialorder %v20269_v44, 0.0 }
 0x823   : > { %v16683_v51 = vpop.eup %16682  ;;  %v13905_v59 = vadd.f32 -1.0, %v16681_v58  ;;  %vm11653_vm9 = vcmp.gt.f32.partialorder %v11621_v24, 0.0  ;;  %v17007_v63 = vmov 0.0|0.0   ;;  %vm17008_vm10 = vmmov 0  }
 0x824   : > { %v13906_v20 = vadd.f32 -1.0, %v16683_v51  ;;  %v11801_v42 = vsel %vm11641_vm3, %v20236_v45, %v13902_v40  ;;  %14097 = vmatprep.subr.bf16.mxu0 %v17007_v63  ;;  %14109 = vmatprep.subr.bf16.mxu1 %v17007_v63  ;;  %v17009_v46 = vmov 0.0   ;;  %v14119_v55 = vpack.c.bf16 %v12313_v62, %v12312_v21  ;;  %v12220_v21 = vld [vmem:[#allocation10 + $0x20] sm:$0xff]  ;;  %v12221_v62 = vld [vmem:[#allocation10 + $0x28] sm:$0xff] }
 0x825   : > { %v11804_v9 = vsel %vm11644_vm2, %v20245_v10, %v13905_v59  ;;  %14094 = vmatprep.mubr.msk.f32.mxu1 %vm17008_vm10, %v17009_v46  ;;  %v14122_v54 = vpack.c.bf16 %v12315_v12, %v12314_v37  ;;  %vm12323_vm11 = vcmask 654336   ;;  %vm12397_vm12 = vcmask 80896  }
 0x826   : > { %v16685_v38 = vpop.eup %16684  ;;  %12192 = vmatmul.mubr.bf16.gmra.mrb[212].mxu0 %v11820_v47  ;;  %v11805_v50 = vsel %vm11645_vm5, %v20248_v32, %v13906_v20  ;;  %v11824_v41 = vpack.c.bf16 %v11804_v9, %v11800_v11 }
 0x827   : > { %v16687_v26 = vpop.eup %16686  ;;  %v13909_v22 = vadd.f32 -1.0, %v16685_v38  ;;  %v11825_v17 = vpack.c.bf16 %v11805_v50, %v11801_v42  ;;  %v12216_v50 = vld [vmem:[#allocation10] sm:$0xff] }
 0x828   : > { %v16689_v7 = vpop.eup %16688  ;;  %v13910_v57 = vadd.f32 -1.0, %v16687_v26 }
 0x829   : > { %v13913_v52 = vadd.f32 -1.0, %v16689_v7  ;;  %12199 = vmatprep.mubr.bf16.mxu0 %v11825_v17  ;;  %v11808_v10 = vsel %vm11648_vm6, %v20266_v48, %v13909_v22  ;;  %v14110_v48 = vpack.c.bf16 %v12307_v2, %v12306_v8 }
 0x82a   : > { %v11809_v32 = vsel %vm11649_vm8, %v20269_v44, %v13910_v57  ;;  %v12309_v44 = vld [vmem:[%s20402_s9 + $0x18] sm:$0xff] }
 0x82b   : > { %v11812_v35 = vsel %vm11652_vm7, %v20272_v31, %v13913_v52  ;;  %14111 = vmatpush3.bf16.msra.mxu1 %v14110_v48  ;;  %v14113_v27 = vpack.c.bf16 %v12309_v44, %v12308_v30  ;;  %v12311_v31 = vld [vmem:[%s20402_s9 + $0x28] sm:$0xff] }
 0x82c   : > { %v16691_v36 = vpop.eup %16690  ;;  %v11828_v45 = vpack.c.bf16 %v11812_v35, %v11808_v10  ;;  %14112 = vmatprep.subr.bf16.mxu1 %v17007_v63  ;;  %v14116_v16 = vpack.c.bf16 %v12311_v31, %v12310_v25 }
 0x82d   : > { %v13914_v19 = vadd.f32 -1.0, %v16691_v36 }
 0x82e   : > { %12200 = vmatmul.mubr.bf16.gmra.mrb[216].mxu0 %v11824_v41  ;;  %v12217_v41 = vld [vmem:[#allocation10 + $0x8] sm:$0xff] }
 0x82f   : > { %v11813_v29 = vsel %vm11653_vm9, %v11621_v24, %v13914_v19  ;;  %14114 = vmatpush3.bf16.msra.mxu1 %v14113_v27 }
 0x830   : > { %v11829_v14 = vpack.c.bf16 %v11813_v29, %v11809_v32  ;;  %14115 = vmatprep.subr.bf16.mxu1 %v17007_v63  ;;  %v12218_v32 = vld [vmem:[#allocation10 + $0x10] sm:$0xff]  ;;  %v12219_v29 = vld [vmem:[#allocation10 + $0x18] sm:$0xff] }
 0x832   : > { %12207 = vmatprep.mubr.bf16.mxu0 %v11829_v14 }
 0x833   : > { %14117 = vmatpush3.bf16.msra.mxu1 %v14116_v16 }
 0x834   : > { %14118 = vmatprep.subr.bf16.mxu1 %v17007_v63 }
 0x836   : > { %12208 = vmatmul.mubr.bf16.gmra.mrb[220].mxu0 %v11828_v45 }
 0x837   : > { %14071 = vmatprep.mubr.msk.f32.mxu0 %vm17008_vm10, %v17009_v46  ;;  %14120 = vmatpush3.bf16.msra.mxu1 %v14119_v55 }
 0x838   : > { %14121 = vmatprep.subr.bf16.mxu1 %v17007_v63 }
 0x83b   : > { %14123 = vmatpush3.bf16.msra.mxu1 %v14122_v54 }
 0x8d1   : > { %v13971_v15 = vpop.f32.mrb[192].mxu0 }
 0x8d2   : > { %v13972_v33 = vpop.f32.mrb[193].mxu0 }
 0x8d3   : > { %v13973_v6 = vadd.f32 %v13972_v33, %v13971_v15  ;;  %v13974_v18 = vpop.f32.mrb[194].mxu0 }
 0x8d4   : > { %v13975_v61 = vpop.f32.mrb[195].mxu0 }
 0x8d5   : > { %v13976_v28 = vadd.f32 %v13975_v61, %v13974_v18 }
 0x8d9   : > { %v13977_v34 = vpop.f32.mrb[196].mxu0 }
 0x8da   : > { %v13978_v43 = vpop.f32.mrb[197].mxu0 }
 0x8db   : > { %v13979_v13 = vadd.f32 %v13978_v43, %v13977_v34  ;;  %v13980_v24 = vpop.f32.mrb[198].mxu0  ;;  %v12222_v43 = vld [vmem:[#allocation10 + $0x30] sm:$0xff] }
 0x8dc   : > { %v13981_v39 = vpop.f32.mrb[199].mxu0 }
 0x8dd   : > { %v13982_v23 = vadd.f32 %v13981_v39, %v13980_v24 }
 0x8e1   : > { %v13983_v60 = vpop.f32.mrb[200].mxu0 }
 0x8e2   : > { %v13984_v53 = vpop.f32.mrb[201].mxu0 }
 0x8e3   : > { %v13985_v4 = vadd.f32 %v13984_v53, %v13983_v60  ;;  %v13986_v56 = vpop.f32.mrb[202].mxu0  ;;  %v12232_v53 = vld [vmem:[#allocation11] sm:$0xff] }
 0x8e4   : > { %v13987_v5 = vpop.f32.mrb[203].mxu0 }
 0x8e5   : > { %v13988_v47 = vadd.f32 %v13987_v5, %v13986_v56  ;;  %v13948_v5 = vld [vmem:[#allocation13] ss:$0 sm:$0xff] }
 0x8e9   : > { %v13989_v3 = vpop.f32.mrb[204].mxu0 }
 0x8ea   : > { %v13990_v1 = vpop.f32.mrb[205].mxu0 }
 0x8eb   : > { %v13991_v0 = vadd.f32 %v13990_v1, %v13989_v3  ;;  %v13992_v49 = vpop.f32.mrb[206].mxu0 }
 0x8ec   : > { %v13993_v58 = vpop.f32.mrb[207].mxu0 }
 0x8ed   : > { %v13994_v40 = vadd.f32 %v13993_v58, %v13992_v49 }
 0x8f1   : > { %v14011_v51 = vpop.f32.mrb[208].mxu0 }
 0x8f2   : > { %v14012_v59 = vpop.f32.mrb[209].mxu0 }
 0x8f3   : > { %v14013_v20 = vadd.f32 %v14012_v59, %v14011_v51  ;;  %v14014_v11 = vpop.f32.mrb[210].mxu0 }
 0x8f4   : > { %v14015_v9 = vpop.f32.mrb[211].mxu0 }
 0x8f5   : > { %v12186_v38 = vadd.f32 %v14013_v20, %v13973_v6  ;;  %v14016_v42 = vadd.f32 %v14015_v9, %v14014_v11 }
 0x8f7   : > { %v12189_v26 = vadd.f32 %v14016_v42, %v13976_v28  ;;  %v12224_v22 = vmul.f32 %v12216_v50, %v12186_v38 }
 0x8f9   : > { %v12225_v17 = vmul.f32 %v12217_v41, %v12189_v26  ;;  %v14017_v7 = vpop.f32.mrb[212].mxu0 }
 0x8fa   : > { %v14018_v52 = vpop.f32.mrb[213].mxu0 }
 0x8fb   : > { %v14098_v57 = vpack.c.bf16 %v12225_v17, %v12224_v22  ;;  %v14019_v10 = vadd.f32 %v14018_v52, %v14017_v7  ;;  %v14020_v35 = vpop.f32.mrb[214].mxu0 }
 0x8fc   : > { %v14021_v36 = vpop.f32.mrb[215].mxu0 }
 0x8fd   : > { %v12194_v45 = vadd.f32 %v14019_v10, %v13979_v13  ;;  %v14022_v19 = vadd.f32 %v14021_v36, %v14020_v35  ;;  %14099 = vmatpush3.bf16.msra.mxu0 %v14098_v57  ;;  %v12223_v13 = vld [vmem:[#allocation10 + $0x38] sm:$0xff] }
 0x8fe   : > { %14100 = vmatprep.subr.bf16.mxu0 %v17007_v63 }
 0x8ff   : > { %v12197_v14 = vadd.f32 %v14022_v19, %v13982_v23  ;;  %v12226_v46 = vmul.f32 %v12218_v32, %v12194_v45 }
 0x901   : > { %v12227_v8 = vmul.f32 %v12219_v29, %v12197_v14  ;;  %v14023_v2 = vpop.f32.mrb[216].mxu0 }
 0x902   : > { %v14024_v30 = vpop.f32.mrb[217].mxu0 }
 0x903   : > { %v14101_v48 = vpack.c.bf16 %v12227_v8, %v12226_v46  ;;  %v14025_v44 = vadd.f32 %v14024_v30, %v14023_v2  ;;  %v14026_v27 = vpop.f32.mrb[218].mxu0 }
 0x904   : > { %v14027_v25 = vpop.f32.mrb[219].mxu0 }
 0x905   : > { %v12202_v31 = vadd.f32 %v14025_v44, %v13985_v4  ;;  %v14028_v16 = vadd.f32 %v14027_v25, %v14026_v27  ;;  %14102 = vmatpush3.bf16.msra.mxu0 %v14101_v48 }
 0x906   : > { %14103 = vmatprep.subr.bf16.mxu0 %v17007_v63 }
 0x907   : > { %v12205_v55 = vadd.f32 %v14028_v16, %v13988_v47  ;;  %v12228_v37 = vmul.f32 %v12220_v21, %v12202_v31 }
 0x909   : > { %v12229_v12 = vmul.f32 %v12221_v62, %v12205_v55  ;;  %v14029_v54 = vpop.f32.mrb[220].mxu0 }
 0x90a   : > { %v14030_v15 = vpop.f32.mrb[221].mxu0 }
 0x90b   : > { %v14104_v33 = vpack.c.bf16 %v12229_v12, %v12228_v37  ;;  %v14031_v6 = vadd.f32 %v14030_v15, %v14029_v54  ;;  %v14032_v18 = vpop.f32.mrb[222].mxu0 }
 0x90c   : > { %v14033_v61 = vpop.f32.mrb[223].mxu0 }
 0x90d   : > { %v12210_v28 = vadd.f32 %v14031_v6, %v13991_v0  ;;  %v14034_v34 = vadd.f32 %v14033_v61, %v14032_v18  ;;  %14105 = vmatpush3.bf16.msra.mxu0 %v14104_v33 }
 0x90e   : > { %14106 = vmatprep.subr.bf16.mxu0 %v17007_v63 }
 0x90f   : > { %v12213_v24 = vadd.f32 %v14034_v34, %v13994_v40  ;;  %v12230_v39 = vmul.f32 %v12222_v43, %v12210_v28 }
 0x911   : > { %v12231_v23 = vmul.f32 %v12223_v13, %v12213_v24 }
 0x913   : > { %v14107_v60 = vpack.c.bf16 %v12231_v23, %v12230_v39 }
 0x915   : > { %14108 = vmatpush3.bf16.msra.mxu0 %v14107_v60 }
 0x918   : > { %14072 = vmatmul.mubr.msk.f32.vlgmr.msra.gmra.mrb[224].mxu0 %vm2638_vm4, %v12232_v53 }
 0x9eb   : > { %v12302_v4 = vpop.f32.mrb[224].mxu0 }
 0x9ec   : > { %v14073_v56 = vpop.f32.mrb[225].mxu0  ;;  %14095 = vmatmul.mubr.msk.f32.vlgmr.msra.gmra.mrb[224].mxu1 %vm12323_vm11, %v12302_v4 }
 0xabf   : > { %v12393_v63 = vpop.f32.mrb[224].mxu1 }
 0xac0   : > { %v12394_v47 = vadd.f32 %v13948_v5, %v12393_v63  ;;  %v14096_v3 = vpop.f32.mrb[225].mxu1 }
 0xac2   : > { %12398 = vst.msk [vmem:[%s476_s15] sm:$0xff] %vm12397_vm12, %v12394_v47 }
 0xac3   : > { %16927 = shalt.err (!%p16924_p6)
}
 0xac4   : > { %s16928_s22 = scalar_lea.hbm %s20351_s23, 128  ;;  %s16932_s26 = scalar_lea.hbm %s20404_s11, 256 }
 0xac5   : > { %p16929_p5 = scmp.ne.s32.totalorder %s20351_s23, %s16928_s22  ;;  %p16933_p10 = scmp.lt.u32.totalorder %s20351_s23, %s20404_s11 }
 0xac6   : > { %p16934_p2 = scmp.lt.u32.totalorder %s16932_s26, %s16928_s22  ;;  %p16936_p4 = scmp.lt.u32.totalorder %s16928_s22, %s20351_s23 }
 0xac7   : > { %p16930_p9 = pnand %p16929_p5, %p20679_p7 }
 0xac8   : > { %p16935_p3 = por %p16934_p2, %p16933_p10 }
 0xac9   : > { %p16931_p12 = pneg %p16930_p9 }
 0xaca   : > { %p16937_p8 = por %p16936_p4, %p16935_p3 }
 0xacc   : > { %p16938_p11 = pnand %p16937_p8, %p16931_p12 }
 0xace   : > { %16941 = shalt.err (!%p16938_p11)
}
 0xacf   : > { %14600 = dma.vmem_to_hbm [thread:$0]  (%p20679_p7), %s20353_s13, 128, %s20351_s23, %s12400_s30  }
 0xad0 PF: > { %s20680_s2 = sld [smem:[#allocation20_spill]]  ;;  %s20681_s29 = sld [smem:[#allocation24_spill]] }
 0xad1   : > { %p14642_p13 = scmp.ge.s32.totalorder %s16992_s20, 2 }
 0xad6   : > { %s12425_s15 = sand.u32 1, %s20680_s2   ;;  %p20682_p1 = scmp.ne.s32.totalorder %s20681_s29, 0 }
 0xad7   : > { %s12426_s5 = scalar_lea.sflag [#allocation4], %s12425_s15 }
 0xad8   : > { %p14625_p0 = pnand %p14642_p13, %p20682_p1 }
 0xada   : > { %16975 = dma.done.wait (!%p14625_p0), %s12426_s5, 128  }
 0xadb   : > { %16977 = vsyncadd (!%p14625_p0), %s12426_s5, 4294967168  ;;  %s20683_s20 = sld [smem:[#allocation22_spill]]  ;;  %s20684_s28 = sld [smem:[#allocation21_spill]] }
 0xadc   : > { %s20685_s19 = sld [smem:[#allocation23_spill]]  ;;  %s20686_s17 = smov %s16984_s18 }
 0xae1   : > { %p25_p6 = scmp.ge.s32.totalorder %s20683_s20, 4   ;;  %s20687_s18 = smov %s20684_s28 }
 0xae3   :  { %27 = sbr.rel (!%p25_p6) target bundleno = 10 (0xa), region = 132 }
 0xaea   :  { %12431 = vsyncpa [#allocation3], 1 }
 0xaeb   :  { %12433 = vsyncpa [#allocation3 + $0x1], 1 }
 0xaec   :  { %12434 = vsyncpa [#allocation6], 1 }
 0xaed   :  { %12435 = vsyncpa [#allocation9], 1 }
 0xaee   :  { %12436 = vsyncpa [#allocation12], 1 }
 0xaef   :  { %12437 = vsyncpa [#allocation4], 1 }
 0xaf0   :  { %12439 = vsyncpa [#allocation4 + $0x1], 1 }

</bundles_post_ra>
